<compile_context>
chip_gen: v7x
topology: tpu7x:2x2x1
jax: 0.10.0
libtpu: 0.0.40
codegen_flags: <defaults>
</compile_context>

<pallas_src>
import functools
import math

import jax
import jax.numpy as jnp
from jax.experimental import pallas as pl
from jax.experimental.pallas import tpu as pltpu

PAD_TOKEN_VALUE = 0
LN_EPS = 1e-5
# Large finite negative instead of -inf: identical softmax result for any row
# with at least one unmasked key, but avoids NaN (exp(-inf - -inf)) if a row
# is ever fully masked (e.g. an all-PAD source).
MASK_NEG = -1e9


def _full_spec(shape):
    """Whole-array block (block_shape == array shape), grid=(1,)."""
    return pl.BlockSpec(shape, lambda i: (0,) * len(shape))


# ----------------------- in-kernel helpers (operate on values) ----------------

def _layer_norm(z, g, b, eps):
    mean = jnp.mean(z, axis=-1, keepdims=True)
    c = z - mean
    var = jnp.mean(c * c, axis=-1, keepdims=True)
    return c * jax.lax.rsqrt(var + eps) * g + b


def _multihead_attention(x_q, x_kv, wq, bq, wk, bk, wv, bv, wo, bo, mask,
                         *, num_heads, head_dim, scale):
    """All-heads scaled-dot-product attention + output projection.

    Heads are handled with one-hot column masks and full-width matmuls
    (masked-out columns contribute exact zeros), which avoids sub-vreg
    reshapes/transposes entirely (head_dim is tiny and lane-unaligned).
    """
    d_model = num_heads * head_dim
    # Attention scale folded into Q.
    q = (jnp.dot(x_q, wq, preferred_element_type=jnp.float32) + bq) * scale
    k = jnp.dot(x_kv, wk, preferred_element_type=jnp.float32) + bk
    v = jnp.dot(x_kv, wv, preferred_element_type=jnp.float32) + bv

    col = jax.lax.broadcasted_iota(jnp.int32, (1, d_model), 1)
    o_cat = jnp.zeros(x_q.shape, dtype=jnp.float32)      # concat-of-heads output
    for h in range(num_heads):                            # static unroll, small
        lo = h * head_dim
        hm = ((col >= lo) & (col < lo + head_dim)).astype(jnp.float32)   # [1, D]
        s = jax.lax.dot_general(q * hm, k, (((1,), (1,)), ((), ())),
                                preferred_element_type=jnp.float32)      # [Sq, Sk]
        if mask is not None:
            s = s + mask
        m = jnp.max(s, axis=-1, keepdims=True)
        p = jnp.exp(s - m)
        p = p * pl.reciprocal(jnp.sum(p, axis=-1, keepdims=True), approx=True)
        o_cat = o_cat + jnp.dot(p, v * hm, preferred_element_type=jnp.float32)

    return jnp.dot(o_cat, wo, preferred_element_type=jnp.float32) + bo


def _ffn(x, w1, b1, w2, b2):
    # bf16 matmul operands (full-rate MXU, half the weight DMA), f32
    # accumulation; elementwise math stays f32.
    h = jnp.dot(x.astype(jnp.bfloat16), w1, preferred_element_type=jnp.float32) + b1
    h = jnp.maximum(h, 0.0)
    return jnp.dot(h.astype(jnp.bfloat16), w2, preferred_element_type=jnp.float32) + b2


# ----------------------- fused encoder layer (one pallas_call) ----------------

def _encoder_layer_kernel(x_ref, mask_ref,
                          wq_ref, bq_ref, wk_ref, bk_ref, wv_ref, bv_ref,
                          wo_ref, bo_ref,
                          ln1_g_ref, ln1_b_ref,
                          w1_ref, b1_ref, w2_ref, b2_ref,
                          ln2_g_ref, ln2_b_ref,
                          o_ref, *, num_heads, head_dim, scale, eps):
    x = x_ref[...]                                          # [S, D]
    attn = _multihead_attention(
        x, x, wq_ref[...], bq_ref[...], wk_ref[...], bk_ref[...],
        wv_ref[...], bv_ref[...], wo_ref[...], bo_ref[...], mask_ref[...],
        num_heads=num_heads, head_dim=head_dim, scale=scale)
    # Residual + post-LayerNorm (nn.Transformer default norm_first=False).
    x1 = _layer_norm(x + attn, ln1_g_ref[...], ln1_b_ref[...], eps)
    y = _ffn(x1, w1_ref[...], b1_ref[...], w2_ref[...], b2_ref[...])
    o_ref[...] = _layer_norm(x1 + y, ln2_g_ref[...], ln2_b_ref[...],
                             eps).astype(o_ref.dtype)


def encoder_layer(x, p, mask, *, num_heads):
    S, D = x.shape
    head_dim = D // num_heads
    sa = p["self_attn"]
    inputs = (x, mask,
              sa["wq"], sa["bq"], sa["wk"], sa["bk"], sa["wv"], sa["bv"],
              sa["wo"], sa["bo"],
              p["norm1_g"], p["norm1_b"],
              p["lin1_w"], p["lin1_b"], p["lin2_w"], p["lin2_b"],
              p["norm2_g"], p["norm2_b"])
    return pl.pallas_call(
        functools.partial(_encoder_layer_kernel, num_heads=num_heads,
                          head_dim=head_dim, scale=1.0 / math.sqrt(head_dim),
                          eps=LN_EPS),
        out_shape=jax.ShapeDtypeStruct((S, D), jnp.float32),
        grid=(1,),
        in_specs=[_full_spec(a.shape) for a in inputs],
        out_specs=_full_spec((S, D)),
    )(*inputs)


# ----------------------- fused decoder layer (one pallas_call) ----------------

def _decoder_layer_kernel(y_ref, mem_ref, tgt_mask_ref,
                          s_wq_ref, s_bq_ref, s_wk_ref, s_bk_ref,
                          s_wv_ref, s_bv_ref, s_wo_ref, s_bo_ref,
                          ln1_g_ref, ln1_b_ref,
                          c_wq_ref, c_bq_ref, c_wk_ref, c_bk_ref,
                          c_wv_ref, c_bv_ref, c_wo_ref, c_bo_ref,
                          ln2_g_ref, ln2_b_ref,
                          w1_ref, b1_ref, w2_ref, b2_ref,
                          ln3_g_ref, ln3_b_ref,
                          o_ref, *, num_heads, head_dim, scale, eps):
    y = y_ref[...]                                          # [T, D]
    mem = mem_ref[...]                                      # [S, D]
    sa = _multihead_attention(
        y, y, s_wq_ref[...], s_bq_ref[...], s_wk_ref[...], s_bk_ref[...],
        s_wv_ref[...], s_bv_ref[...], s_wo_ref[...], s_bo_ref[...],
        tgt_mask_ref[...],
        num_heads=num_heads, head_dim=head_dim, scale=scale)
    y1 = _layer_norm(y + sa, ln1_g_ref[...], ln1_b_ref[...], eps)
    # memory_mask / memory_key_padding_mask are None in the module -> no mask.
    ca = _multihead_attention(
        y1, mem, c_wq_ref[...], c_bq_ref[...], c_wk_ref[...], c_bk_ref[...],
        c_wv_ref[...], c_bv_ref[...], c_wo_ref[...], c_bo_ref[...], None,
        num_heads=num_heads, head_dim=head_dim, scale=scale)
    y2 = _layer_norm(y1 + ca, ln2_g_ref[...], ln2_b_ref[...], eps)
    f = _ffn(y2, w1_ref[...], b1_ref[...], w2_ref[...], b2_ref[...])
    o_ref[...] = _layer_norm(y2 + f, ln3_g_ref[...], ln3_b_ref[...],
                             eps).astype(o_ref.dtype)


def decoder_layer(y, memory, p, tgt_mask, *, num_heads):
    T, D = y.shape
    head_dim = D // num_heads
    sa, ca = p["self_attn"], p["cross_attn"]
    inputs = (y, memory, tgt_mask,
              sa["wq"], sa["bq"], sa["wk"], sa["bk"], sa["wv"], sa["bv"],
              sa["wo"], sa["bo"],
              p["norm1_g"], p["norm1_b"],
              ca["wq"], ca["bq"], ca["wk"], ca["bk"], ca["wv"], ca["bv"],
              ca["wo"], ca["bo"],
              p["norm2_g"], p["norm2_b"],
              p["lin1_w"], p["lin1_b"], p["lin2_w"], p["lin2_b"],
              p["norm3_g"], p["norm3_b"])
    return pl.pallas_call(
        functools.partial(_decoder_layer_kernel, num_heads=num_heads,
                          head_dim=head_dim, scale=1.0 / math.sqrt(head_dim),
                          eps=LN_EPS),
        out_shape=jax.ShapeDtypeStruct((T, D), jnp.float32),
        grid=(1,),
        in_specs=[_full_spec(a.shape) for a in inputs],
        out_specs=_full_spec((T, D)),
    )(*inputs)


# ----------------------- plain LayerNorm (encoder final norm) -----------------

def _layernorm_kernel(x_ref, g_ref, b_ref, o_ref, *, eps):
    o_ref[...] = _layer_norm(x_ref[...], g_ref[...], b_ref[...],
                             eps).astype(o_ref.dtype)


def layernorm(x, g, b):
    S, D = x.shape
    return pl.pallas_call(
        functools.partial(_layernorm_kernel, eps=LN_EPS),
        out_shape=jax.ShapeDtypeStruct((S, D), jnp.float32),
        grid=(1,),
        in_specs=[_full_spec((S, D)), _full_spec((1, D)), _full_spec((1, D))],
        out_specs=_full_spec((S, D)),
    )(x, g, b)


# --------------- fused decoder-final-LN + vocab projection (N-tiled) ----------

def _ln_vocab_kernel(y_ref, g_ref, b_ref, w_ref, vb_ref, o_ref, *, eps):
    # LN recompute per vocab tile is negligible (T x D tiny) and keeps the
    # whole head in one kernel.
    z = _layer_norm(y_ref[...], g_ref[...], b_ref[...], eps)
    o_ref[...] = (jnp.dot(z.astype(jnp.bfloat16), w_ref[...],
                          preferred_element_type=jnp.float32)
                  + vb_ref[...]).astype(o_ref.dtype)


def ln_vocab_head(y, g, b, w, vb, *, tile_n=512):
    """logits = LayerNorm(y) @ w + vb, tiled along the vocab dim (parallel
    grid axis) so a large vocab never needs the whole [D,V] weight resident in
    VMEM and the axis can shard across TensorCores."""
    T, D = y.shape
    V = w.shape[1]
    tn = V if V <= tile_n else tile_n          # lane-dense tiles for big vocabs
    return pl.pallas_call(
        functools.partial(_ln_vocab_kernel, eps=LN_EPS),
        out_shape=jax.ShapeDtypeStruct((T, V), jnp.float32),
        grid=(pl.cdiv(V, tn),),
        in_specs=[pl.BlockSpec((T, D), lambda j: (0, 0)),
                  pl.BlockSpec((1, D), lambda j: (0, 0)),
                  pl.BlockSpec((1, D), lambda j: (0, 0)),
                  pl.BlockSpec((D, tn), lambda j: (0, j)),
                  pl.BlockSpec((1, tn), lambda j: (0, j))],
        out_specs=pl.BlockSpec((T, tn), lambda j: (0, j)),
        compiler_params=pltpu.CompilerParams(
            dimension_semantics=("parallel",)),
    )(y, g, b, w, vb)


# --------------------------- model glue (plain JAX) --------------------------

def sinusoidal_pe(max_len, d_model):
    pos = jnp.arange(max_len, dtype=jnp.float32)[:, None]
    div = jnp.exp(jnp.arange(0, d_model, 2, dtype=jnp.float32)
                  * (-math.log(10000.0) / d_model))
    pe = jnp.zeros((max_len, d_model), dtype=jnp.float32)
    pe = pe.at[:, 0::2].set(jnp.sin(pos * div))
    pe = pe.at[:, 1::2].set(jnp.cos(pos * div))
    return pe


def seq_embedding(tokens, table, pe):
    # tokens: [B, S] int32 -> [B, S, D]
    # TODO(synk): PositionalEncoding class body is not provided upstream;
    # standard sinusoidal additive encoding (dropout disabled / eval) assumed.
    emb = jnp.take(table, tokens, axis=0)
    return emb + pe[None, : tokens.shape[1], :]


def generate_square_subsequent_mask(sz):
    i = jnp.arange(sz)
    return jnp.where(i[None, :] > i[:, None], MASK_NEG, 0.0).astype(jnp.float32)


def get_key_padding_mask(tokens):
    # float mask: 0 where valid, large-negative at PAD positions (additive)
    return jnp.where(tokens == PAD_TOKEN_VALUE, MASK_NEG, 0.0).astype(jnp.float32)


def translate_model_forward(params, src, tgt, *, num_heads):
    # batch = (src, tgt); src/tgt are 1-D token tensors as in the torch module.
    src_b = src[None, :]            # unsqueeze(0) -> [1, S]
    tgt_b = tgt[None, :]            # unsqueeze(0) -> [1, T]
    S = src.shape[0]
    T = tgt.shape[0]

    x_embedding = seq_embedding(src_b, params["src_emb"], params["pe"])   # [1,S,D]
    y_embedding = seq_embedding(tgt_b, params["tgt_emb"], params["pe"])   # [1,T,D]

    tgt_mask = generate_square_subsequent_mask(T)     # [T, T], float additive
    src_kpm = get_key_padding_mask(src_b)             # [1, S]
    tgt_kpm = get_key_padding_mask(tgt_b)             # [1, T]

    enc_self_mask = jnp.broadcast_to(src_kpm, (S, S))
    dec_self_mask = tgt_mask + tgt_kpm                # causal + key padding

    # TODO(synk): dropout layers of nn.Transformer are treated as identity (eval).
    x = x_embedding[0]                                # batch=1 squeezed
    for lp in params["enc_layers"]:
        x = encoder_layer(x, lp, enc_self_mask, num_heads=num_heads)
    memory = layernorm(x, params["enc_norm_g"], params["enc_norm_b"])

    y = y_embedding[0]
    for lp in params["dec_layers"]:
        y = decoder_layer(y, memory, lp, dec_self_mask, num_heads=num_heads)

    # forward references `self.proj_vocab_layer`; __init__ only defines
    # `self.predictor` -> mapped to the predictor Linear here (fused with the
    # decoder final LayerNorm).
    logits = ln_vocab_head(y, params["dec_norm_g"], params["dec_norm_b"],
                           params["pred_w"], params["pred_b"])            # [T, V]
    logits = logits[None]                                                 # [1, T, V]
    logits = jnp.einsum("ijk->jik", logits)                               # [T, 1, V]
    return logits, y_embedding


# --------------------------- deterministic init -------------------------------

def _w(key, shape, scale=0.05):
    return (scale * jax.random.normal(key, shape)).astype(jnp.float32)


def init_mha_params(key, d_model):
    ks = jax.random.split(key, 8)
    return {
        "wq": _w(ks[0], (d_model, d_model)), "bq": _w(ks[1], (1, d_model)),
        "wk": _w(ks[2], (d_model, d_model)), "bk": _w(ks[3], (1, d_model)),
        "wv": _w(ks[4], (d_model, d_model)), "bv": _w(ks[5], (1, d_model)),
        "wo": _w(ks[6], (d_model, d_model)), "bo": _w(ks[7], (1, d_model)),
    }


def _ffn_params(k1, k2, k3, k4, d_model, dff):
    return {
        "lin1_w": _w(k1, (d_model, dff)).astype(jnp.bfloat16),   # bf16 weights
        "lin1_b": _w(k2, (1, dff)),
        "lin2_w": _w(k3, (dff, d_model)).astype(jnp.bfloat16),
        "lin2_b": _w(k4, (1, d_model)),
    }


def init_encoder_layer_params(key, d_model, dff):
    k0, k1, k2, k3, k4 = jax.random.split(key, 5)
    p = {"self_attn": init_mha_params(k0, d_model)}
    p.update(_ffn_params(k1, k2, k3, k4, d_model, dff))
    p.update({
        "norm1_g": jnp.ones((1, d_model), jnp.float32),
        "norm1_b": jnp.zeros((1, d_model), jnp.float32),
        "norm2_g": jnp.ones((1, d_model), jnp.float32),
        "norm2_b": jnp.zeros((1, d_model), jnp.float32),
    })
    return p


def init_decoder_layer_params(key, d_model, dff):
    k0, k1, k2, k3, k4, k5 = jax.random.split(key, 6)
    p = {"self_attn": init_mha_params(k0, d_model),
         "cross_attn": init_mha_params(k1, d_model)}
    p.update(_ffn_params(k2, k3, k4, k5, d_model, dff))
    p.update({
        "norm1_g": jnp.ones((1, d_model), jnp.float32),
        "norm1_b": jnp.zeros((1, d_model), jnp.float32),
        "norm2_g": jnp.ones((1, d_model), jnp.float32),
        "norm2_b": jnp.zeros((1, d_model), jnp.float32),
        "norm3_g": jnp.ones((1, d_model), jnp.float32),
        "norm3_b": jnp.zeros((1, d_model), jnp.float32),
    })
    return p


def init_translate_model(key, src_vocab_size, tgt_vocab_size, d_dim=3, num_heads=8,
                         num_encoder_layers=6, num_decoder_layers=6,
                         dim_feedforward=2048, max_len=128):
    d_model = d_dim * num_heads
    keys = jax.random.split(key, 4 + num_encoder_layers + num_decoder_layers)
    return {
        "src_emb": _w(keys[0], (src_vocab_size, d_model), scale=1.0),  # nn.Embedding ~ N(0,1)
        "tgt_emb": _w(keys[1], (tgt_vocab_size, d_model), scale=1.0),
        "pe": sinusoidal_pe(max_len, d_model),
        "pred_w": _w(keys[2], (d_model, tgt_vocab_size)).astype(jnp.bfloat16),
        "pred_b": _w(keys[3], (1, tgt_vocab_size)),
        "enc_layers": [init_encoder_layer_params(keys[4 + i], d_model, dim_feedforward)
                       for i in range(num_encoder_layers)],
        "dec_layers": [init_decoder_layer_params(keys[4 + num_encoder_layers + i],
                                                 d_model, dim_feedforward)
                       for i in range(num_decoder_layers)],
        "enc_norm_g": jnp.ones((1, d_model), jnp.float32),
        "enc_norm_b": jnp.zeros((1, d_model), jnp.float32),
        "dec_norm_g": jnp.ones((1, d_model), jnp.float32),
        "dec_norm_b": jnp.zeros((1, d_model), jnp.float32),
    }


# --------------------------- demo / smoke test --------------------------------

if __name__ == "__main__":
    SRC_VOCAB, TGT_VOCAB = 32, 40
    D_DIM, NUM_HEADS = 3, 8           # d_model = d_dim * num_heads = 24
    S_LEN, T_LEN = 10, 8

    key = jax.random.PRNGKey(0)
    k_param, k_src, k_tgt = jax.random.split(key, 3)

    # Small stack for the demo (nn.Transformer defaults are 6/6/2048; same math).
    params = init_translate_model(
        k_param, SRC_VOCAB, TGT_VOCAB, d_dim=D_DIM, num_heads=NUM_HEADS,
        num_encoder_layers=2, num_decoder_layers=2, dim_feedforward=128)

    src = jax.random.randint(k_src, (S_LEN,), 1, SRC_VOCAB, dtype=jnp.int32)
    src = src.at[-2:].set(PAD_TOKEN_VALUE)   # trailing pads exercise key-padding mask
    tgt = jax.random.randint(k_tgt, (T_LEN,), 1, TGT_VOCAB, dtype=jnp.int32)

    fwd = jax.jit(functools.partial(translate_model_forward, num_heads=NUM_HEADS))
    logits, y_emb = fwd(params, src, tgt)
    jax.block_until_ready((logits, y_emb))

    assert logits.shape == (T_LEN, 1, TGT_VOCAB), logits.shape
    assert y_emb.shape == (1, T_LEN, D_DIM * NUM_HEADS), y_emb.shape
    assert bool(jnp.all(jnp.isfinite(logits))), "non-finite logits"
    print("KERNEL_OK")
</pallas_src>

<mosaic_0001>
module attributes {stable_mosaic.version = 11 : i64} {
  func.func @_layernorm_kernel(%arg0: i32, %arg1: memref<10x24xf32, #tpu.memory_space<vmem>>, %arg2: memref<1x24xf32, #tpu.memory_space<vmem>>, %arg3: memref<1x24xf32, #tpu.memory_space<vmem>>, %arg4: memref<10x24xf32, #tpu.memory_space<vmem>>) attributes {dimension_semantics = [#tpu.dimension_semantics<arbitrary>], iteration_bounds = array<i64: 1>, scalar_prefetch = 0 : i64, scratch_operands = 0 : i64, tpu.core_type = #tpu.core_type<tc>, window_params = [{pipeline_mode = #tpu.pipeline_mode<synchronous>, transform_indices = @transform_0, window_bounds = array<i64: 10, 24>}, {pipeline_mode = #tpu.pipeline_mode<synchronous>, transform_indices = @transform_1, window_bounds = array<i64: 1, 24>}, {pipeline_mode = #tpu.pipeline_mode<synchronous>, transform_indices = @transform_2, window_bounds = array<i64: 1, 24>}, {pipeline_mode = #tpu.pipeline_mode<synchronous>, transform_indices = @transform_3, window_bounds = array<i64: 10, 24>}]} {
    %c0 = arith.constant 0 : index
    %c0_0 = arith.constant 0 : index
    %0 = vector.load %arg1[%c0, %c0_0] : memref<10x24xf32, #tpu.memory_space<vmem>>, vector<10x24xf32>
    %c0_1 = arith.constant 0 : index
    %c0_2 = arith.constant 0 : index
    %1 = vector.load %arg2[%c0_1, %c0_2] : memref<1x24xf32, #tpu.memory_space<vmem>>, vector<1x24xf32>
    %c0_3 = arith.constant 0 : index
    %c0_4 = arith.constant 0 : index
    %2 = vector.load %arg3[%c0_3, %c0_4] : memref<1x24xf32, #tpu.memory_space<vmem>>, vector<1x24xf32>
    %cst = arith.constant dense<0.000000e+00> : vector<10xf32>
    %3 = vector.multi_reduction <add>, %0, %cst [1] : vector<10x24xf32> to vector<10xf32>
    %4 = vector.shape_cast %3 : vector<10xf32> to vector<10x1xf32>
    %cst_5 = arith.constant 2.400000e+01 : f32
    %5 = vector.broadcast %cst_5 : f32 to vector<10x1xf32>
    %6 = arith.divf %4, %5 : vector<10x1xf32>
    %7 = vector.broadcast %6 : vector<10x1xf32> to vector<10x24xf32>
    %8 = arith.subf %0, %7 : vector<10x24xf32>
    %9 = arith.mulf %8, %8 : vector<10x24xf32>
    %cst_6 = arith.constant dense<0.000000e+00> : vector<10xf32>
    %10 = vector.multi_reduction <add>, %9, %cst_6 [1] : vector<10x24xf32> to vector<10xf32>
    %11 = vector.shape_cast %10 : vector<10xf32> to vector<10x1xf32>
    %cst_7 = arith.constant 2.400000e+01 : f32
    %12 = vector.broadcast %cst_7 : f32 to vector<10x1xf32>
    %13 = arith.divf %11, %12 : vector<10x1xf32>
    %cst_8 = arith.constant 9.99999974E-6 : f32
    %14 = vector.broadcast %cst_8 : f32 to vector<10x1xf32>
    %15 = arith.addf %13, %14 : vector<10x1xf32>
    %16 = math.rsqrt %15 : vector<10x1xf32>
    %17 = vector.broadcast %16 : vector<10x1xf32> to vector<10x24xf32>
    %18 = arith.mulf %8, %17 : vector<10x24xf32>
    %19 = vector.broadcast %1 : vector<1x24xf32> to vector<10x24xf32>
    %20 = arith.mulf %18, %19 : vector<10x24xf32>
    %21 = vector.broadcast %2 : vector<1x24xf32> to vector<10x24xf32>
    %22 = arith.addf %20, %21 : vector<10x24xf32>
    %c0_9 = arith.constant 0 : index
    %c0_10 = arith.constant 0 : index
    %23 = vector.load %arg4[%c0_9, %c0_10] : memref<10x24xf32, #tpu.memory_space<vmem>>, vector<10x24xf32>
    tpu.vector_store %arg4[%c0_9, %c0_10], %22 {strides = array<i32>} : memref<10x24xf32, #tpu.memory_space<vmem>>, vector<10x24xf32>,
    return
  }
  func.func @transform_0(%arg0: i32) -> (i32, i32) {
    %c0_i32 = arith.constant 0 : i32
    %c0_i32_0 = arith.constant 0 : i32
    %c0_i32_1 = arith.constant 0 : i32
    return %c0_i32, %c0_i32_0 : i32, i32
  }
  func.func @transform_1(%arg0: i32) -> (i32, i32) {
    %c0_i32 = arith.constant 0 : i32
    %c0_i32_0 = arith.constant 0 : i32
    %c0_i32_1 = arith.constant 0 : i32
    return %c0_i32, %c0_i32_0 : i32, i32
  }
  func.func @transform_2(%arg0: i32) -> (i32, i32) {
    %c0_i32 = arith.constant 0 : i32
    %c0_i32_0 = arith.constant 0 : i32
    %c0_i32_1 = arith.constant 0 : i32
    return %c0_i32, %c0_i32_0 : i32, i32
  }
  func.func @transform_3(%arg0: i32) -> (i32, i32) {
    %c0_i32 = arith.constant 0 : i32
    %c0_i32_0 = arith.constant 0 : i32
    %c0_i32_1 = arith.constant 0 : i32
    return %c0_i32, %c0_i32_0 : i32, i32
  }
}

module attributes {stable_mosaic.version = 11 : i64} {
  func.func @_encoder_layer_kernel(%arg0: i32, %arg1: memref<10x24xf32, #tpu.memory_space<vmem>>, %arg2: memref<10x10xf32, #tpu.memory_space<vmem>>, %arg3: memref<24x24xf32, #tpu.memory_space<vmem>>, %arg4: memref<1x24xf32, #tpu.memory_space<vmem>>, %arg5: memref<24x24xf32, #tpu.memory_space<vmem>>, %arg6: memref<1x24xf32, #tpu.memory_space<vmem>>, %arg7: memref<24x24xf32, #tpu.memory_space<vmem>>, %arg8: memref<1x24xf32, #tpu.memory_space<vmem>>, %arg9: memref<24x24xf32, #tpu.memory_space<vmem>>, %arg10: memref<1x24xf32, #tpu.memory_space<vmem>>, %arg11: memref<1x24xf32, #tpu.memory_space<vmem>>, %arg12: memref<1x24xf32, #tpu.memory_space<vmem>>, %arg13: memref<24x128xbf16, #tpu.memory_space<vmem>>, %arg14: memref<1x128xf32, #tpu.memory_space<vmem>>, %arg15: memref<128x24xbf16, #tpu.memory_space<vmem>>, %arg16: memref<1x24xf32, #tpu.memory_space<vmem>>, %arg17: memref<1x24xf32, #tpu.memory_space<vmem>>, %arg18: memref<1x24xf32, #tpu.memory_space<vmem>>, %arg19: memref<10x24xf32, #tpu.memory_space<vmem>>) attributes {dimension_semantics = [#tpu.dimension_semantics<arbitrary>], iteration_bounds = array<i64: 1>, scalar_prefetch = 0 : i64, scratch_operands = 0 : i64, tpu.core_type = #tpu.core_type<tc>, window_params = [{pipeline_mode = #tpu.pipeline_mode<synchronous>, transform_indices = @transform_0, window_bounds = array<i64: 10, 24>}, {pipeline_mode = #tpu.pipeline_mode<synchronous>, transform_indices = @transform_1, window_bounds = array<i64: 10, 10>}, {pipeline_mode = #tpu.pipeline_mode<synchronous>, transform_indices = @transform_2, window_bounds = array<i64: 24, 24>}, {pipeline_mode = #tpu.pipeline_mode<synchronous>, transform_indices = @transform_3, window_bounds = array<i64: 1, 24>}, {pipeline_mode = #tpu.pipeline_mode<synchronous>, transform_indices = @transform_4, window_bounds = array<i64: 24, 24>}, {pipeline_mode = #tpu.pipeline_mode<synchronous>, transform_indices = @transform_5, window_bounds = array<i64: 1, 24>}, {pipeline_mode = #tpu.pipeline_mode<synchronous>, transform_indices = @transform_6, window_bounds = array<i64: 24, 24>}, {pipeline_mode = #tpu.pipeline_mode<synchronous>, transform_indices = @transform_7, window_bounds = array<i64: 1, 24>}, {pipeline_mode = #tpu.pipeline_mode<synchronous>, transform_indices = @transform_8, window_bounds = array<i64: 24, 24>}, {pipeline_mode = #tpu.pipeline_mode<synchronous>, transform_indices = @transform_9, window_bounds = array<i64: 1, 24>}, {pipeline_mode = #tpu.pipeline_mode<synchronous>, transform_indices = @transform_10, window_bounds = array<i64: 1, 24>}, {pipeline_mode = #tpu.pipeline_mode<synchronous>, transform_indices = @transform_11, window_bounds = array<i64: 1, 24>}, {pipeline_mode = #tpu.pipeline_mode<synchronous>, transform_indices = @transform_12, window_bounds = array<i64: 24, 128>}, {pipeline_mode = #tpu.pipeline_mode<synchronous>, transform_indices = @transform_13, window_bounds = array<i64: 1, 128>}, {pipeline_mode = #tpu.pipeline_mode<synchronous>, transform_indices = @transform_14, window_bounds = array<i64: 128, 24>}, {pipeline_mode = #tpu.pipeline_mode<synchronous>, transform_indices = @transform_15, window_bounds = array<i64: 1, 24>}, {pipeline_mode = #tpu.pipeline_mode<synchronous>, transform_indices = @transform_16, window_bounds = array<i64: 1, 24>}, {pipeline_mode = #tpu.pipeline_mode<synchronous>, transform_indices = @transform_17, window_bounds = array<i64: 1, 24>}, {pipeline_mode = #tpu.pipeline_mode<synchronous>, transform_indices = @transform_18, window_bounds = array<i64: 10, 24>}]} {
    %c0 = arith.constant 0 : index
    %c0_0 = arith.constant 0 : index
    %0 = vector.load %arg1[%c0, %c0_0] : memref<10x24xf32, #tpu.memory_space<vmem>>, vector<10x24xf32>
    %c0_1 = arith.constant 0 : index
    %c0_2 = arith.constant 0 : index
    %1 = vector.load %arg3[%c0_1, %c0_2] : memref<24x24xf32, #tpu.memory_space<vmem>>, vector<24x24xf32>
    %c0_3 = arith.constant 0 : index
    %c0_4 = arith.constant 0 : index
    %2 = vector.load %arg4[%c0_3, %c0_4] : memref<1x24xf32, #tpu.memory_space<vmem>>, vector<1x24xf32>
    %c0_5 = arith.constant 0 : index
    %c0_6 = arith.constant 0 : index
    %3 = vector.load %arg5[%c0_5, %c0_6] : memref<24x24xf32, #tpu.memory_space<vmem>>, vector<24x24xf32>
    %c0_7 = arith.constant 0 : index
    %c0_8 = arith.constant 0 : index
    %4 = vector.load %arg6[%c0_7, %c0_8] : memref<1x24xf32, #tpu.memory_space<vmem>>, vector<1x24xf32>
    %c0_9 = arith.constant 0 : index
    %c0_10 = arith.constant 0 : index
    %5 = vector.load %arg7[%c0_9, %c0_10] : memref<24x24xf32, #tpu.memory_space<vmem>>, vector<24x24xf32>
    %c0_11 = arith.constant 0 : index
    %c0_12 = arith.constant 0 : index
    %6 = vector.load %arg8[%c0_11, %c0_12] : memref<1x24xf32, #tpu.memory_space<vmem>>, vector<1x24xf32>
    %c0_13 = arith.constant 0 : index
    %c0_14 = arith.constant 0 : index
    %7 = vector.load %arg9[%c0_13, %c0_14] : memref<24x24xf32, #tpu.memory_space<vmem>>, vector<24x24xf32>
    %c0_15 = arith.constant 0 : index
    %c0_16 = arith.constant 0 : index
    %8 = vector.load %arg10[%c0_15, %c0_16] : memref<1x24xf32, #tpu.memory_space<vmem>>, vector<1x24xf32>
    %c0_17 = arith.constant 0 : index
    %c0_18 = arith.constant 0 : index
    %9 = vector.load %arg2[%c0_17, %c0_18] : memref<10x10xf32, #tpu.memory_space<vmem>>, vector<10x10xf32>
    %cst = arith.constant dense<0.000000e+00> : vector<10x24xf32>
    %10 = tpu.matmul %0, %1, %cst {dimension_numbers = #tpu.dot_dimension_numbers<[1], [0], [0], [1], [0, 0, 1, 1], [], []>} : vector<10x24xf32>, vector<24x24xf32>, vector<10x24xf32> -> vector<10x24xf32>
    %11 = vector.broadcast %2 : vector<1x24xf32> to vector<10x24xf32>
    %12 = arith.addf %10, %11 : vector<10x24xf32>
    %cst_19 = arith.constant 0.577350259 : f32
    %13 = vector.broadcast %cst_19 : f32 to vector<10x24xf32>
    %14 = arith.mulf %12, %13 : vector<10x24xf32>
    %cst_20 = arith.constant dense<0.000000e+00> : vector<10x24xf32>
    %15 = tpu.matmul %0, %3, %cst_20 {dimension_numbers = #tpu.dot_dimension_numbers<[1], [0], [0], [1], [0, 0, 1, 1], [], []>} : vector<10x24xf32>, vector<24x24xf32>, vector<10x24xf32> -> vector<10x24xf32>
    %16 = vector.broadcast %4 : vector<1x24xf32> to vector<10x24xf32>
    %17 = arith.addf %15, %16 : vector<10x24xf32>
    %cst_21 = arith.constant dense<0.000000e+00> : vector<10x24xf32>
    %18 = tpu.matmul %0, %5, %cst_21 {dimension_numbers = #tpu.dot_dimension_numbers<[1], [0], [0], [1], [0, 0, 1, 1], [], []>} : vector<10x24xf32>, vector<24x24xf32>, vector<10x24xf32> -> vector<10x24xf32>
    %19 = vector.broadcast %6 : vector<1x24xf32> to vector<10x24xf32>
    %20 = arith.addf %18, %19 : vector<10x24xf32>
    %21 = tpu.iota {dimensions = array<i32: 1>} : vector<1x24xi32>
    %cst_22 = arith.constant 0.000000e+00 : f32
    %22 = vector.broadcast %cst_22 : f32 to vector<10x24xf32>
    %c0_i32 = arith.constant 0 : i32
    %23 = vector.broadcast %c0_i32 : i32 to vector<1x24xi32>
    %24 = arith.cmpi sge, %21, %23 : vector<1x24xi32>
    %c3_i32 = arith.constant 3 : i32
    %25 = vector.broadcast %c3_i32 : i32 to vector<1x24xi32>
    %26 = arith.cmpi slt, %21, %25 : vector<1x24xi32>
    %27 = arith.andi %24, %26 : vector<1x24xi1>
    %28 = arith.extui %27 : vector<1x24xi1> to vector<1x24xi32>
    %29 = arith.sitofp %28 : vector<1x24xi32> to vector<1x24xf32>
    %30 = vector.broadcast %29 : vector<1x24xf32> to vector<10x24xf32>
    %31 = arith.mulf %14, %30 : vector<10x24xf32>
    %cst_23 = arith.constant dense<0.000000e+00> : vector<10x10xf32>
    %32 = tpu.matmul %31, %17, %cst_23 {dimension_numbers = #tpu.dot_dimension_numbers<[1], [1], [0], [0], [0, 0, 1, 0], [], []>} : vector<10x24xf32>, vector<10x24xf32>, vector<10x10xf32> -> vector<10x10xf32>
    %33 = arith.addf %32, %9 : vector<10x10xf32>
    %cst_24 = arith.constant dense<0xFF800000> : vector<10xf32>
    %34 = vector.multi_reduction <maximumf>, %33, %cst_24 [1] : vector<10x10xf32> to vector<10xf32>
    %35 = vector.shape_cast %34 : vector<10xf32> to vector<10x1xf32>
    %36 = vector.broadcast %35 : vector<10x1xf32> to vector<10x10xf32>
    %37 = arith.subf %33, %36 : vector<10x10xf32>
    %38 = math.exp %37 : vector<10x10xf32>
    %cst_25 = arith.constant dense<0.000000e+00> : vector<10xf32>
    %39 = vector.multi_reduction <add>, %38, %cst_25 [1] : vector<10x10xf32> to vector<10xf32>
    %40 = vector.shape_cast %39 : vector<10xf32> to vector<10x1xf32>
    %41 = tpu.reciprocal %40 {approx = true} : vector<10x1xf32> -> vector<10x1xf32>
    %42 = vector.broadcast %41 : vector<10x1xf32> to vector<10x10xf32>
    %43 = arith.mulf %38, %42 : vector<10x10xf32>
    %44 = vector.broadcast %29 : vector<1x24xf32> to vector<10x24xf32>
    %45 = arith.mulf %20, %44 : vector<10x24xf32>
    %cst_26 = arith.constant dense<0.000000e+00> : vector<10x24xf32>
    %46 = tpu.matmul %43, %45, %cst_26 {dimension_numbers = #tpu.dot_dimension_numbers<[1], [0], [0], [1], [0, 0, 1, 1], [], []>} : vector<10x10xf32>, vector<10x24xf32>, vector<10x24xf32> -> vector<10x24xf32>
    %47 = arith.addf %22, %46 : vector<10x24xf32>
    %c3_i32_27 = arith.constant 3 : i32
    %48 = vector.broadcast %c3_i32_27 : i32 to vector<1x24xi32>
    %49 = arith.cmpi sge, %21, %48 : vector<1x24xi32>
    %c6_i32 = arith.constant 6 : i32
    %50 = vector.broadcast %c6_i32 : i32 to vector<1x24xi32>
    %51 = arith.cmpi slt, %21, %50 : vector<1x24xi32>
    %52 = arith.andi %49, %51 : vector<1x24xi1>
    %53 = arith.extui %52 : vector<1x24xi1> to vector<1x24xi32>
    %54 = arith.sitofp %53 : vector<1x24xi32> to vector<1x24xf32>
    %55 = vector.broadcast %54 : vector<1x24xf32> to vector<10x24xf32>
    %56 = arith.mulf %14, %55 : vector<10x24xf32>
    %cst_28 = arith.constant dense<0.000000e+00> : vector<10x10xf32>
    %57 = tpu.matmul %56, %17, %cst_28 {dimension_numbers = #tpu.dot_dimension_numbers<[1], [1], [0], [0], [0, 0, 1, 0], [], []>} : vector<10x24xf32>, vector<10x24xf32>, vector<10x10xf32> -> vector<10x10xf32>
    %58 = arith.addf %57, %9 : vector<10x10xf32>
    %cst_29 = arith.constant dense<0xFF800000> : vector<10xf32>
    %59 = vector.multi_reduction <maximumf>, %58, %cst_29 [1] : vector<10x10xf32> to vector<10xf32>
    %60 = vector.shape_cast %59 : vector<10xf32> to vector<10x1xf32>
    %61 = vector.broadcast %60 : vector<10x1xf32> to vector<10x10xf32>
    %62 = arith.subf %58, %61 : vector<10x10xf32>
    %63 = math.exp %62 : vector<10x10xf32>
    %cst_30 = arith.constant dense<0.000000e+00> : vector<10xf32>
    %64 = vector.multi_reduction <add>, %63, %cst_30 [1] : vector<10x10xf32> to vector<10xf32>
    %65 = vector.shape_cast %64 : vector<10xf32> to vector<10x1xf32>
    %66 = tpu.reciprocal %65 {approx = true} : vector<10x1xf32> -> vector<10x1xf32>
    %67 = vector.broadcast %66 : vector<10x1xf32> to vector<10x10xf32>
    %68 = arith.mulf %63, %67 : vector<10x10xf32>
    %69 = vector.broadcast %54 : vector<1x24xf32> to vector<10x24xf32>
    %70 = arith.mulf %20, %69 : vector<10x24xf32>
    %cst_31 = arith.constant dense<0.000000e+00> : vector<10x24xf32>
    %71 = tpu.matmul %68, %70, %cst_31 {dimension_numbers = #tpu.dot_dimension_numbers<[1], [0], [0], [1], [0, 0, 1, 1], [], []>} : vector<10x10xf32>, vector<10x24xf32>, vector<10x24xf32> -> vector<10x24xf32>
    %72 = arith.addf %47, %71 : vector<10x24xf32>
    %c6_i32_32 = arith.constant 6 : i32
    %73 = vector.broadcast %c6_i32_32 : i32 to vector<1x24xi32>
    %74 = arith.cmpi sge, %21, %73 : vector<1x24xi32>
    %c9_i32 = arith.constant 9 : i32
    %75 = vector.broadcast %c9_i32 : i32 to vector<1x24xi32>
    %76 = arith.cmpi slt, %21, %75 : vector<1x24xi32>
    %77 = arith.andi %74, %76 : vector<1x24xi1>
    %78 = arith.extui %77 : vector<1x24xi1> to vector<1x24xi32>
    %79 = arith.sitofp %78 : vector<1x24xi32> to vector<1x24xf32>
    %80 = vector.broadcast %79 : vector<1x24xf32> to vector<10x24xf32>
    %81 = arith.mulf %14, %80 : vector<10x24xf32>
    %cst_33 = arith.constant dense<0.000000e+00> : vector<10x10xf32>
    %82 = tpu.matmul %81, %17, %cst_33 {dimension_numbers = #tpu.dot_dimension_numbers<[1], [1], [0], [0], [0, 0, 1, 0], [], []>} : vector<10x24xf32>, vector<10x24xf32>, vector<10x10xf32> -> vector<10x10xf32>
    %83 = arith.addf %82, %9 : vector<10x10xf32>
    %cst_34 = arith.constant dense<0xFF800000> : vector<10xf32>
    %84 = vector.multi_reduction <maximumf>, %83, %cst_34 [1] : vector<10x10xf32> to vector<10xf32>
    %85 = vector.shape_cast %84 : vector<10xf32> to vector<10x1xf32>
    %86 = vector.broadcast %85 : vector<10x1xf32> to vector<10x10xf32>
    %87 = arith.subf %83, %86 : vector<10x10xf32>
    %88 = math.exp %87 : vector<10x10xf32>
    %cst_35 = arith.constant dense<0.000000e+00> : vector<10xf32>
    %89 = vector.multi_reduction <add>, %88, %cst_35 [1] : vector<10x10xf32> to vector<10xf32>
    %90 = vector.shape_cast %89 : vector<10xf32> to vector<10x1xf32>
    %91 = tpu.reciprocal %90 {approx = true} : vector<10x1xf32> -> vector<10x1xf32>
    %92 = vector.broadcast %91 : vector<10x1xf32> to vector<10x10xf32>
    %93 = arith.mulf %88, %92 : vector<10x10xf32>
    %94 = vector.broadcast %79 : vector<1x24xf32> to vector<10x24xf32>
    %95 = arith.mulf %20, %94 : vector<10x24xf32>
    %cst_36 = arith.constant dense<0.000000e+00> : vector<10x24xf32>
    %96 = tpu.matmul %93, %95, %cst_36 {dimension_numbers = #tpu.dot_dimension_numbers<[1], [0], [0], [1], [0, 0, 1, 1], [], []>} : vector<10x10xf32>, vector<10x24xf32>, vector<10x24xf32> -> vector<10x24xf32>
    %97 = arith.addf %72, %96 : vector<10x24xf32>
    %c9_i32_37 = arith.constant 9 : i32
    %98 = vector.broadcast %c9_i32_37 : i32 to vector<1x24xi32>
    %99 = arith.cmpi sge, %21, %98 : vector<1x24xi32>
    %c12_i32 = arith.constant 12 : i32
    %100 = vector.broadcast %c12_i32 : i32 to vector<1x24xi32>
    %101 = arith.cmpi slt, %21, %100 : vector<1x24xi32>
    %102 = arith.andi %99, %101 : vector<1x24xi1>
    %103 = arith.extui %102 : vector<1x24xi1> to vector<1x24xi32>
    %104 = arith.sitofp %103 : vector<1x24xi32> to vector<1x24xf32>
    %105 = vector.broadcast %104 : vector<1x24xf32> to vector<10x24xf32>
    %106 = arith.mulf %14, %105 : vector<10x24xf32>
    %cst_38 = arith.constant dense<0.000000e+00> : vector<10x10xf32>
    %107 = tpu.matmul %106, %17, %cst_38 {dimension_numbers = #tpu.dot_dimension_numbers<[1], [1], [0], [0], [0, 0, 1, 0], [], []>} : vector<10x24xf32>, vector<10x24xf32>, vector<10x10xf32> -> vector<10x10xf32>
    %108 = arith.addf %107, %9 : vector<10x10xf32>
    %cst_39 = arith.constant dense<0xFF800000> : vector<10xf32>
    %109 = vector.multi_reduction <maximumf>, %108, %cst_39 [1] : vector<10x10xf32> to vector<10xf32>
    %110 = vector.shape_cast %109 : vector<10xf32> to vector<10x1xf32>
    %111 = vector.broadcast %110 : vector<10x1xf32> to vector<10x10xf32>
    %112 = arith.subf %108, %111 : vector<10x10xf32>
    %113 = math.exp %112 : vector<10x10xf32>
    %cst_40 = arith.constant dense<0.000000e+00> : vector<10xf32>
    %114 = vector.multi_reduction <add>, %113, %cst_40 [1] : vector<10x10xf32> to vector<10xf32>
    %115 = vector.shape_cast %114 : vector<10xf32> to vector<10x1xf32>
    %116 = tpu.reciprocal %115 {approx = true} : vector<10x1xf32> -> vector<10x1xf32>
    %117 = vector.broadcast %116 : vector<10x1xf32> to vector<10x10xf32>
    %118 = arith.mulf %113, %117 : vector<10x10xf32>
    %119 = vector.broadcast %104 : vector<1x24xf32> to vector<10x24xf32>
    %120 = arith.mulf %20, %119 : vector<10x24xf32>
    %cst_41 = arith.constant dense<0.000000e+00> : vector<10x24xf32>
    %121 = tpu.matmul %118, %120, %cst_41 {dimension_numbers = #tpu.dot_dimension_numbers<[1], [0], [0], [1], [0, 0, 1, 1], [], []>} : vector<10x10xf32>, vector<10x24xf32>, vector<10x24xf32> -> vector<10x24xf32>
    %122 = arith.addf %97, %121 : vector<10x24xf32>
    %c12_i32_42 = arith.constant 12 : i32
    %123 = vector.broadcast %c12_i32_42 : i32 to vector<1x24xi32>
    %124 = arith.cmpi sge, %21, %123 : vector<1x24xi32>
    %c15_i32 = arith.constant 15 : i32
    %125 = vector.broadcast %c15_i32 : i32 to vector<1x24xi32>
    %126 = arith.cmpi slt, %21, %125 : vector<1x24xi32>
    %127 = arith.andi %124, %126 : vector<1x24xi1>
    %128 = arith.extui %127 : vector<1x24xi1> to vector<1x24xi32>
    %129 = arith.sitofp %128 : vector<1x24xi32> to vector<1x24xf32>
    %130 = vector.broadcast %129 : vector<1x24xf32> to vector<10x24xf32>
    %131 = arith.mulf %14, %130 : vector<10x24xf32>
    %cst_43 = arith.constant dense<0.000000e+00> : vector<10x10xf32>
    %132 = tpu.matmul %131, %17, %cst_43 {dimension_numbers = #tpu.dot_dimension_numbers<[1], [1], [0], [0], [0, 0, 1, 0], [], []>} : vector<10x24xf32>, vector<10x24xf32>, vector<10x10xf32> -> vector<10x10xf32>
    %133 = arith.addf %132, %9 : vector<10x10xf32>
    %cst_44 = arith.constant dense<0xFF800000> : vector<10xf32>
    %134 = vector.multi_reduction <maximumf>, %133, %cst_44 [1] : vector<10x10xf32> to vector<10xf32>
    %135 = vector.shape_cast %134 : vector<10xf32> to vector<10x1xf32>
    %136 = vector.broadcast %135 : vector<10x1xf32> to vector<10x10xf32>
    %137 = arith.subf %133, %136 : vector<10x10xf32>
    %138 = math.exp %137 : vector<10x10xf32>
    %cst_45 = arith.constant dense<0.000000e+00> : vector<10xf32>
    %139 = vector.multi_reduction <add>, %138, %cst_45 [1] : vector<10x10xf32> to vector<10xf32>
    %140 = vector.shape_cast %139 : vector<10xf32> to vector<10x1xf32>
    %141 = tpu.reciprocal %140 {approx = true} : vector<10x1xf32> -> vector<10x1xf32>
    %142 = vector.broadcast %141 : vector<10x1xf32> to vector<10x10xf32>
    %143 = arith.mulf %138, %142 : vector<10x10xf32>
    %144 = vector.broadcast %129 : vector<1x24xf32> to vector<10x24xf32>
    %145 = arith.mulf %20, %144 : vector<10x24xf32>
    %cst_46 = arith.constant dense<0.000000e+00> : vector<10x24xf32>
    %146 = tpu.matmul %143, %145, %cst_46 {dimension_numbers = #tpu.dot_dimension_numbers<[1], [0], [0], [1], [0, 0, 1, 1], [], []>} : vector<10x10xf32>, vector<10x24xf32>, vector<10x24xf32> -> vector<10x24xf32>
    %147 = arith.addf %122, %146 : vector<10x24xf32>
    %c15_i32_47 = arith.constant 15 : i32
    %148 = vector.broadcast %c15_i32_47 : i32 to vector<1x24xi32>
    %149 = arith.cmpi sge, %21, %148 : vector<1x24xi32>
    %c18_i32 = arith.constant 18 : i32
    %150 = vector.broadcast %c18_i32 : i32 to vector<1x24xi32>
    %151 = arith.cmpi slt, %21, %150 : vector<1x24xi32>
    %152 = arith.andi %149, %151 : vector<1x24xi1>
    %153 = arith.extui %152 : vector<1x24xi1> to vector<1x24xi32>
    %154 = arith.sitofp %153 : vector<1x24xi32> to vector<1x24xf32>
    %155 = vector.broadcast %154 : vector<1x24xf32> to vector<10x24xf32>
    %156 = arith.mulf %14, %155 : vector<10x24xf32>
    %cst_48 = arith.constant dense<0.000000e+00> : vector<10x10xf32>
    %157 = tpu.matmul %156, %17, %cst_48 {dimension_numbers = #tpu.dot_dimension_numbers<[1], [1], [0], [0], [0, 0, 1, 0], [], []>} : vector<10x24xf32>, vector<10x24xf32>, vector<10x10xf32> -> vector<10x10xf32>
    %158 = arith.addf %157, %9 : vector<10x10xf32>
    %cst_49 = arith.constant dense<0xFF800000> : vector<10xf32>
    %159 = vector.multi_reduction <maximumf>, %158, %cst_49 [1] : vector<10x10xf32> to vector<10xf32>
    %160 = vector.shape_cast %159 : vector<10xf32> to vector<10x1xf32>
    %161 = vector.broadcast %160 : vector<10x1xf32> to vector<10x10xf32>
    %162 = arith.subf %158, %161 : vector<10x10xf32>
    %163 = math.exp %162 : vector<10x10xf32>
    %cst_50 = arith.constant dense<0.000000e+00> : vector<10xf32>
    %164 = vector.multi_reduction <add>, %163, %cst_50 [1] : vector<10x10xf32> to vector<10xf32>
    %165 = vector.shape_cast %164 : vector<10xf32> to vector<10x1xf32>
    %166 = tpu.reciprocal %165 {approx = true} : vector<10x1xf32> -> vector<10x1xf32>
    %167 = vector.broadcast %166 : vector<10x1xf32> to vector<10x10xf32>
    %168 = arith.mulf %163, %167 : vector<10x10xf32>
    %169 = vector.broadcast %154 : vector<1x24xf32> to vector<10x24xf32>
    %170 = arith.mulf %20, %169 : vector<10x24xf32>
    %cst_51 = arith.constant dense<0.000000e+00> : vector<10x24xf32>
    %171 = tpu.matmul %168, %170, %cst_51 {dimension_numbers = #tpu.dot_dimension_numbers<[1], [0], [0], [1], [0, 0, 1, 1], [], []>} : vector<10x10xf32>, vector<10x24xf32>, vector<10x24xf32> -> vector<10x24xf32>
    %172 = arith.addf %147, %171 : vector<10x24xf32>
    %c18_i32_52 = arith.constant 18 : i32
    %173 = vector.broadcast %c18_i32_52 : i32 to vector<1x24xi32>
    %174 = arith.cmpi sge, %21, %173 : vector<1x24xi32>
    %c21_i32 = arith.constant 21 : i32
    %175 = vector.broadcast %c21_i32 : i32 to vector<1x24xi32>
    %176 = arith.cmpi slt, %21, %175 : vector<1x24xi32>
    %177 = arith.andi %174, %176 : vector<1x24xi1>
    %178 = arith.extui %177 : vector<1x24xi1> to vector<1x24xi32>
    %179 = arith.sitofp %178 : vector<1x24xi32> to vector<1x24xf32>
    %180 = vector.broadcast %179 : vector<1x24xf32> to vector<10x24xf32>
    %181 = arith.mulf %14, %180 : vector<10x24xf32>
    %cst_53 = arith.constant dense<0.000000e+00> : vector<10x10xf32>
    %182 = tpu.matmul %181, %17, %cst_53 {dimension_numbers = #tpu.dot_dimension_numbers<[1], [1], [0], [0], [0, 0, 1, 0], [], []>} : vector<10x24xf32>, vector<10x24xf32>, vector<10x10xf32> -> vector<10x10xf32>
    %183 = arith.addf %182, %9 : vector<10x10xf32>
    %cst_54 = arith.constant dense<0xFF800000> : vector<10xf32>
    %184 = vector.multi_reduction <maximumf>, %183, %cst_54 [1] : vector<10x10xf32> to vector<10xf32>
    %185 = vector.shape_cast %184 : vector<10xf32> to vector<10x1xf32>
    %186 = vector.broadcast %185 : vector<10x1xf32> to vector<10x10xf32>
    %187 = arith.subf %183, %186 : vector<10x10xf32>
    %188 = math.exp %187 : vector<10x10xf32>
    %cst_55 = arith.constant dense<0.000000e+00> : vector<10xf32>
    %189 = vector.multi_reduction <add>, %188, %cst_55 [1] : vector<10x10xf32> to vector<10xf32>
    %190 = vector.shape_cast %189 : vector<10xf32> to vector<10x1xf32>
    %191 = tpu.reciprocal %190 {approx = true} : vector<10x1xf32> -> vector<10x1xf32>
    %192 = vector.broadcast %191 : vector<10x1xf32> to vector<10x10xf32>
    %193 = arith.mulf %188, %192 : vector<10x10xf32>
    %194 = vector.broadcast %179 : vector<1x24xf32> to vector<10x24xf32>
    %195 = arith.mulf %20, %194 : vector<10x24xf32>
    %cst_56 = arith.constant dense<0.000000e+00> : vector<10x24xf32>
    %196 = tpu.matmul %193, %195, %cst_56 {dimension_numbers = #tpu.dot_dimension_numbers<[1], [0], [0], [1], [0, 0, 1, 1], [], []>} : vector<10x10xf32>, vector<10x24xf32>, vector<10x24xf32> -> vector<10x24xf32>
    %197 = arith.addf %172, %196 : vector<10x24xf32>
    %c21_i32_57 = arith.constant 21 : i32
    %198 = vector.broadcast %c21_i32_57 : i32 to vector<1x24xi32>
    %199 = arith.cmpi sge, %21, %198 : vector<1x24xi32>
    %c24_i32 = arith.constant 24 : i32
    %200 = vector.broadcast %c24_i32 : i32 to vector<1x24xi32>
    %201 = arith.cmpi slt, %21, %200 : vector<1x24xi32>
    %202 = arith.andi %199, %201 : vector<1x24xi1>
    %203 = arith.extui %202 : vector<1x24xi1> to vector<1x24xi32>
    %204 = arith.sitofp %203 : vector<1x24xi32> to vector<1x24xf32>
    %205 = vector.broadcast %204 : vector<1x24xf32> to vector<10x24xf32>
    %206 = arith.mulf %14, %205 : vector<10x24xf32>
    %cst_58 = arith.constant dense<0.000000e+00> : vector<10x10xf32>
    %207 = tpu.matmul %206, %17, %cst_58 {dimension_numbers = #tpu.dot_dimension_numbers<[1], [1], [0], [0], [0, 0, 1, 0], [], []>} : vector<10x24xf32>, vector<10x24xf32>, vector<10x10xf32> -> vector<10x10xf32>
    %208 = arith.addf %207, %9 : vector<10x10xf32>
    %cst_59 = arith.constant dense<0xFF800000> : vector<10xf32>
    %209 = vector.multi_reduction <maximumf>, %208, %cst_59 [1] : vector<10x10xf32> to vector<10xf32>
    %210 = vector.shape_cast %209 : vector<10xf32> to vector<10x1xf32>
    %211 = vector.broadcast %210 : vector<10x1xf32> to vector<10x10xf32>
    %212 = arith.subf %208, %211 : vector<10x10xf32>
    %213 = math.exp %212 : vector<10x10xf32>
    %cst_60 = arith.constant dense<0.000000e+00> : vector<10xf32>
    %214 = vector.multi_reduction <add>, %213, %cst_60 [1] : vector<10x10xf32> to vector<10xf32>
    %215 = vector.shape_cast %214 : vector<10xf32> to vector<10x1xf32>
    %216 = tpu.reciprocal %215 {approx = true} : vector<10x1xf32> -> vector<10x1xf32>
    %217 = vector.broadcast %216 : vector<10x1xf32> to vector<10x10xf32>
    %218 = arith.mulf %213, %217 : vector<10x10xf32>
    %219 = vector.broadcast %204 : vector<1x24xf32> to vector<10x24xf32>
    %220 = arith.mulf %20, %219 : vector<10x24xf32>
    %cst_61 = arith.constant dense<0.000000e+00> : vector<10x24xf32>
    %221 = tpu.matmul %218, %220, %cst_61 {dimension_numbers = #tpu.dot_dimension_numbers<[1], [0], [0], [1], [0, 0, 1, 1], [], []>} : vector<10x10xf32>, vector<10x24xf32>, vector<10x24xf32> -> vector<10x24xf32>
    %222 = arith.addf %197, %221 : vector<10x24xf32>
    %cst_62 = arith.constant dense<0.000000e+00> : vector<10x24xf32>
    %223 = tpu.matmul %222, %7, %cst_62 {dimension_numbers = #tpu.dot_dimension_numbers<[1], [0], [0], [1], [0, 0, 1, 1], [], []>} : vector<10x24xf32>, vector<24x24xf32>, vector<10x24xf32> -> vector<10x24xf32>
    %224 = vector.broadcast %8 : vector<1x24xf32> to vector<10x24xf32>
    %225 = arith.addf %223, %224 : vector<10x24xf32>
    %226 = arith.addf %0, %225 : vector<10x24xf32>
    %c0_63 = arith.constant 0 : index
    %c0_64 = arith.constant 0 : index
    %227 = vector.load %arg11[%c0_63, %c0_64] : memref<1x24xf32, #tpu.memory_space<vmem>>, vector<1x24xf32>
    %c0_65 = arith.constant 0 : index
    %c0_66 = arith.constant 0 : index
    %228 = vector.load %arg12[%c0_65, %c0_66] : memref<1x24xf32, #tpu.memory_space<vmem>>, vector<1x24xf32>
    %cst_67 = arith.constant dense<0.000000e+00> : vector<10xf32>
    %229 = vector.multi_reduction <add>, %226, %cst_67 [1] : vector<10x24xf32> to vector<10xf32>
    %230 = vector.shape_cast %229 : vector<10xf32> to vector<10x1xf32>
    %cst_68 = arith.constant 2.400000e+01 : f32
    %231 = vector.broadcast %cst_68 : f32 to vector<10x1xf32>
    %232 = arith.divf %230, %231 : vector<10x1xf32>
    %233 = vector.broadcast %232 : vector<10x1xf32> to vector<10x24xf32>
    %234 = arith.subf %226, %233 : vector<10x24xf32>
    %235 = arith.mulf %234, %234 : vector<10x24xf32>
    %cst_69 = arith.constant dense<0.000000e+00> : vector<10xf32>
    %236 = vector.multi_reduction <add>, %235, %cst_69 [1] : vector<10x24xf32> to vector<10xf32>
    %237 = vector.shape_cast %236 : vector<10xf32> to vector<10x1xf32>
    %cst_70 = arith.constant 2.400000e+01 : f32
    %238 = vector.broadcast %cst_70 : f32 to vector<10x1xf32>
    %239 = arith.divf %237, %238 : vector<10x1xf32>
    %cst_71 = arith.constant 9.99999974E-6 : f32
    %240 = vector.broadcast %cst_71 : f32 to vector<10x1xf32>
    %241 = arith.addf %239, %240 : vector<10x1xf32>
    %242 = math.rsqrt %241 : vector<10x1xf32>
    %243 = vector.broadcast %242 : vector<10x1xf32> to vector<10x24xf32>
    %244 = arith.mulf %234, %243 : vector<10x24xf32>
    %245 = vector.broadcast %227 : vector<1x24xf32> to vector<10x24xf32>
    %246 = arith.mulf %244, %245 : vector<10x24xf32>
    %247 = vector.broadcast %228 : vector<1x24xf32> to vector<10x24xf32>
    %248 = arith.addf %246, %247 : vector<10x24xf32>
    %c0_72 = arith.constant 0 : index
    %c0_73 = arith.constant 0 : index
    %249 = vector.load %arg13[%c0_72, %c0_73] : memref<24x128xbf16, #tpu.memory_space<vmem>>, vector<24x128xbf16>
    %c0_74 = arith.constant 0 : index
    %c0_75 = arith.constant 0 : index
    %250 = vector.load %arg14[%c0_74, %c0_75] : memref<1x128xf32, #tpu.memory_space<vmem>>, vector<1x128xf32>
    %c0_76 = arith.constant 0 : index
    %c0_77 = arith.constant 0 : index
    %251 = vector.load %arg15[%c0_76, %c0_77] : memref<128x24xbf16, #tpu.memory_space<vmem>>, vector<128x24xbf16>
    %c0_78 = arith.constant 0 : index
    %c0_79 = arith.constant 0 : index
    %252 = vector.load %arg16[%c0_78, %c0_79] : memref<1x24xf32, #tpu.memory_space<vmem>>, vector<1x24xf32>
    %253 = arith.truncf %248 : vector<10x24xf32> to vector<10x24xbf16>
    %cst_80 = arith.constant dense<0.000000e+00> : vector<10x128xf32>
    %254 = tpu.matmul %253, %249, %cst_80 {dimension_numbers = #tpu.dot_dimension_numbers<[1], [0], [0], [1], [0, 0, 1, 1], [], []>} : vector<10x24xbf16>, vector<24x128xbf16>, vector<10x128xf32> -> vector<10x128xf32>
    %255 = vector.broadcast %250 : vector<1x128xf32> to vector<10x128xf32>
    %256 = arith.addf %254, %255 : vector<10x128xf32>
    %cst_81 = arith.constant 0.000000e+00 : f32
    %257 = vector.broadcast %cst_81 : f32 to vector<10x128xf32>
    %258 = arith.maximumf %256, %257 : vector<10x128xf32>
    %259 = arith.truncf %258 : vector<10x128xf32> to vector<10x128xbf16>
    %cst_82 = arith.constant dense<0.000000e+00> : vector<10x24xf32>
    %260 = tpu.matmul %259, %251, %cst_82 {dimension_numbers = #tpu.dot_dimension_numbers<[1], [0], [0], [1], [0, 0, 1, 1], [], []>} : vector<10x128xbf16>, vector<128x24xbf16>, vector<10x24xf32> -> vector<10x24xf32>
    %261 = vector.broadcast %252 : vector<1x24xf32> to vector<10x24xf32>
    %262 = arith.addf %260, %261 : vector<10x24xf32>
    %263 = arith.addf %248, %262 : vector<10x24xf32>
    %c0_83 = arith.constant 0 : index
    %c0_84 = arith.constant 0 : index
    %264 = vector.load %arg17[%c0_83, %c0_84] : memref<1x24xf32, #tpu.memory_space<vmem>>, vector<1x24xf32>
    %c0_85 = arith.constant 0 : index
    %c0_86 = arith.constant 0 : index
    %265 = vector.load %arg18[%c0_85, %c0_86] : memref<1x24xf32, #tpu.memory_space<vmem>>, vector<1x24xf32>
    %cst_87 = arith.constant dense<0.000000e+00> : vector<10xf32>
    %266 = vector.multi_reduction <add>, %263, %cst_87 [1] : vector<10x24xf32> to vector<10xf32>
    %267 = vector.shape_cast %266 : vector<10xf32> to vector<10x1xf32>
    %cst_88 = arith.constant 2.400000e+01 : f32
    %268 = vector.broadcast %cst_88 : f32 to vector<10x1xf32>
    %269 = arith.divf %267, %268 : vector<10x1xf32>
    %270 = vector.broadcast %269 : vector<10x1xf32> to vector<10x24xf32>
    %271 = arith.subf %263, %270 : vector<10x24xf32>
    %272 = arith.mulf %271, %271 : vector<10x24xf32>
    %cst_89 = arith.constant dense<0.000000e+00> : vector<10xf32>
    %273 = vector.multi_reduction <add>, %272, %cst_89 [1] : vector<10x24xf32> to vector<10xf32>
    %274 = vector.shape_cast %273 : vector<10xf32> to vector<10x1xf32>
    %cst_90 = arith.constant 2.400000e+01 : f32
    %275 = vector.broadcast %cst_90 : f32 to vector<10x1xf32>
    %276 = arith.divf %274, %275 : vector<10x1xf32>
    %cst_91 = arith.constant 9.99999974E-6 : f32
    %277 = vector.broadcast %cst_91 : f32 to vector<10x1xf32>
    %278 = arith.addf %276, %277 : vector<10x1xf32>
    %279 = math.rsqrt %278 : vector<10x1xf32>
    %280 = vector.broadcast %279 : vector<10x1xf32> to vector<10x24xf32>
    %281 = arith.mulf %271, %280 : vector<10x24xf32>
    %282 = vector.broadcast %264 : vector<1x24xf32> to vector<10x24xf32>
    %283 = arith.mulf %281, %282 : vector<10x24xf32>
    %284 = vector.broadcast %265 : vector<1x24xf32> to vector<10x24xf32>
    %285 = arith.addf %283, %284 : vector<10x24xf32>
    %c0_92 = arith.constant 0 : index
    %c0_93 = arith.constant 0 : index
    %286 = vector.load %arg19[%c0_92, %c0_93] : memref<10x24xf32, #tpu.memory_space<vmem>>, vector<10x24xf32>
    tpu.vector_store %arg19[%c0_92, %c0_93], %285 {strides = array<i32>} : memref<10x24xf32, #tpu.memory_space<vmem>>, vector<10x24xf32>,
    return
  }
  func.func @transform_0(%arg0: i32) -> (i32, i32) {
    %c0_i32 = arith.constant 0 : i32
    %c0_i32_0 = arith.constant 0 : i32
    %c0_i32_1 = arith.constant 0 : i32
    return %c0_i32, %c0_i32_0 : i32, i32
  }
  func.func @transform_1(%arg0: i32) -> (i32, i32) {
    %c0_i32 = arith.constant 0 : i32
    %c0_i32_0 = arith.constant 0 : i32
    %c0_i32_1 = arith.constant 0 : i32
    return %c0_i32, %c0_i32_0 : i32, i32
  }
  func.func @transform_2(%arg0: i32) -> (i32, i32) {
    %c0_i32 = arith.constant 0 : i32
    %c0_i32_0 = arith.constant 0 : i32
    %c0_i32_1 = arith.constant 0 : i32
    return %c0_i32, %c0_i32_0 : i32, i32
  }
  func.func @transform_3(%arg0: i32) -> (i32, i32) {
    %c0_i32 = arith.constant 0 : i32
    %c0_i32_0 = arith.constant 0 : i32
    %c0_i32_1 = arith.constant 0 : i32
    return %c0_i32, %c0_i32_0 : i32, i32
  }
  func.func @transform_4(%arg0: i32) -> (i32, i32) {
    %c0_i32 = arith.constant 0 : i32
    %c0_i32_0 = arith.constant 0 : i32
    %c0_i32_1 = arith.constant 0 : i32
    return %c0_i32, %c0_i32_0 : i32, i32
  }
  func.func @transform_5(%arg0: i32) -> (i32, i32) {
    %c0_i32 = arith.constant 0 : i32
    %c0_i32_0 = arith.constant 0 : i32
    %c0_i32_1 = arith.constant 0 : i32
    return %c0_i32, %c0_i32_0 : i32, i32
  }
  func.func @transform_6(%arg0: i32) -> (i32, i32) {
    %c0_i32 = arith.constant 0 : i32
    %c0_i32_0 = arith.constant 0 : i32
    %c0_i32_1 = arith.constant 0 : i32
    return %c0_i32, %c0_i32_0 : i32, i32
  }
  func.func @transform_7(%arg0: i32) -> (i32, i32) {
    %c0_i32 = arith.constant 0 : i32
    %c0_i32_0 = arith.constant 0 : i32
    %c0_i32_1 = arith.constant 0 : i32
    return %c0_i32, %c0_i32_0 : i32, i32
  }
  func.func @transform_8(%arg0: i32) -> (i32, i32) {
    %c0_i32 = arith.constant 0 : i32
    %c0_i32_0 = arith.constant 0 : i32
    %c0_i32_1 = arith.constant 0 : i32
    return %c0_i32, %c0_i32_0 : i32, i32
  }
  func.func @transform_9(%arg0: i32) -> (i32, i32) {
    %c0_i32 = arith.constant 0 : i32
    %c0_i32_0 = arith.constant 0 : i32
    %c0_i32_1 = arith.constant 0 : i32
    return %c0_i32, %c0_i32_0 : i32, i32
  }
  func.func @transform_10(%arg0: i32) -> (i32, i32) {
    %c0_i32 = arith.constant 0 : i32
    %c0_i32_0 = arith.constant 0 : i32
    %c0_i32_1 = arith.constant 0 : i32
    return %c0_i32, %c0_i32_0 : i32, i32
  }
  func.func @transform_11(%arg0: i32) -> (i32, i32) {
    %c0_i32 = arith.constant 0 : i32
    %c0_i32_0 = arith.constant 0 : i32
    %c0_i32_1 = arith.constant 0 : i32
    return %c0_i32, %c0_i32_0 : i32, i32
  }
  func.func @transform_12(%arg0: i32) -> (i32, i32) {
    %c0_i32 = arith.constant 0 : i32
    %c0_i32_0 = arith.constant 0 : i32
    %c0_i32_1 = arith.constant 0 : i32
    return %c0_i32, %c0_i32_0 : i32, i32
  }
  func.func @transform_13(%arg0: i32) -> (i32, i32) {
    %c0_i32 = arith.constant 0 : i32
    %c0_i32_0 = arith.constant 0 : i32
    %c0_i32_1 = arith.constant 0 : i32
    return %c0_i32, %c0_i32_0 : i32, i32
  }
  func.func @transform_14(%arg0: i32) -> (i32, i32) {
    %c0_i32 = arith.constant 0 : i32
    %c0_i32_0 = arith.constant 0 : i32
    %c0_i32_1 = arith.constant 0 : i32
    return %c0_i32, %c0_i32_0 : i32, i32
  }
  func.func @transform_15(%arg0: i32) -> (i32, i32) {
    %c0_i32 = arith.constant 0 : i32
    %c0_i32_0 = arith.constant 0 : i32
    %c0_i32_1 = arith.constant 0 : i32
    return %c0_i32, %c0_i32_0 : i32, i32
  }
  func.func @transform_16(%arg0: i32) -> (i32, i32) {
    %c0_i32 = arith.constant 0 : i32
    %c0_i32_0 = arith.constant 0 : i32
    %c0_i32_1 = arith.constant 0 : i32
    return %c0_i32, %c0_i32_0 : i32, i32
  }
  func.func @transform_17(%arg0: i32) -> (i32, i32) {
    %c0_i32 = arith.constant 0 : i32
    %c0_i32_0 = arith.constant 0 : i32
    %c0_i32_1 = arith.constant 0 : i32
    return %c0_i32, %c0_i32_0 : i32, i32
  }
  func.func @transform_18(%arg0: i32) -> (i32, i32) {
    %c0_i32 = arith.constant 0 : i32
    %c0_i32_0 = arith.constant 0 : i32
    %c0_i32_1 = arith.constant 0 : i32
    return %c0_i32, %c0_i32_0 : i32, i32
  }
}

module attributes {stable_mosaic.version = 11 : i64} {
  func.func @_decoder_layer_kernel(%arg0: i32, %arg1: memref<8x24xf32, #tpu.memory_space<vmem>>, %arg2: memref<10x24xf32, #tpu.memory_space<vmem>>, %arg3: memref<8x8xf32, #tpu.memory_space<vmem>>, %arg4: memref<24x24xf32, #tpu.memory_space<vmem>>, %arg5: memref<1x24xf32, #tpu.memory_space<vmem>>, %arg6: memref<24x24xf32, #tpu.memory_space<vmem>>, %arg7: memref<1x24xf32, #tpu.memory_space<vmem>>, %arg8: memref<24x24xf32, #tpu.memory_space<vmem>>, %arg9: memref<1x24xf32, #tpu.memory_space<vmem>>, %arg10: memref<24x24xf32, #tpu.memory_space<vmem>>, %arg11: memref<1x24xf32, #tpu.memory_space<vmem>>, %arg12: memref<1x24xf32, #tpu.memory_space<vmem>>, %arg13: memref<1x24xf32, #tpu.memory_space<vmem>>, %arg14: memref<24x24xf32, #tpu.memory_space<vmem>>, %arg15: memref<1x24xf32, #tpu.memory_space<vmem>>, %arg16: memref<24x24xf32, #tpu.memory_space<vmem>>, %arg17: memref<1x24xf32, #tpu.memory_space<vmem>>, %arg18: memref<24x24xf32, #tpu.memory_space<vmem>>, %arg19: memref<1x24xf32, #tpu.memory_space<vmem>>, %arg20: memref<24x24xf32, #tpu.memory_space<vmem>>, %arg21: memref<1x24xf32, #tpu.memory_space<vmem>>, %arg22: memref<1x24xf32, #tpu.memory_space<vmem>>, %arg23: memref<1x24xf32, #tpu.memory_space<vmem>>, %arg24: memref<24x128xbf16, #tpu.memory_space<vmem>>, %arg25: memref<1x128xf32, #tpu.memory_space<vmem>>, %arg26: memref<128x24xbf16, #tpu.memory_space<vmem>>, %arg27: memref<1x24xf32, #tpu.memory_space<vmem>>, %arg28: memref<1x24xf32, #tpu.memory_space<vmem>>, %arg29: memref<1x24xf32, #tpu.memory_space<vmem>>, %arg30: memref<8x24xf32, #tpu.memory_space<vmem>>) attributes {dimension_semantics = [#tpu.dimension_semantics<arbitrary>], iteration_bounds = array<i64: 1>, scalar_prefetch = 0 : i64, scratch_operands = 0 : i64, tpu.core_type = #tpu.core_type<tc>, window_params = [{pipeline_mode = #tpu.pipeline_mode<synchronous>, transform_indices = @transform_0, window_bounds = array<i64: 8, 24>}, {pipeline_mode = #tpu.pipeline_mode<synchronous>, transform_indices = @transform_1, window_bounds = array<i64: 10, 24>}, {pipeline_mode = #tpu.pipeline_mode<synchronous>, transform_indices = @transform_2, window_bounds = array<i64: 8, 8>}, {pipeline_mode = #tpu.pipeline_mode<synchronous>, transform_indices = @transform_3, window_bounds = array<i64: 24, 24>}, {pipeline_mode = #tpu.pipeline_mode<synchronous>, transform_indices = @transform_4, window_bounds = array<i64: 1, 24>}, {pipeline_mode = #tpu.pipeline_mode<synchronous>, transform_indices = @transform_5, window_bounds = array<i64: 24, 24>}, {pipeline_mode = #tpu.pipeline_mode<synchronous>, transform_indices = @transform_6, window_bounds = array<i64: 1, 24>}, {pipeline_mode = #tpu.pipeline_mode<synchronous>, transform_indices = @transform_7, window_bounds = array<i64: 24, 24>}, {pipeline_mode = #tpu.pipeline_mode<synchronous>, transform_indices = @transform_8, window_bounds = array<i64: 1, 24>}, {pipeline_mode = #tpu.pipeline_mode<synchronous>, transform_indices = @transform_9, window_bounds = array<i64: 24, 24>}, {pipeline_mode = #tpu.pipeline_mode<synchronous>, transform_indices = @transform_10, window_bounds = array<i64: 1, 24>}, {pipeline_mode = #tpu.pipeline_mode<synchronous>, transform_indices = @transform_11, window_bounds = array<i64: 1, 24>}, {pipeline_mode = #tpu.pipeline_mode<synchronous>, transform_indices = @transform_12, window_bounds = array<i64: 1, 24>}, {pipeline_mode = #tpu.pipeline_mode<synchronous>, transform_indices = @transform_13, window_bounds = array<i64: 24, 24>}, {pipeline_mode = #tpu.pipeline_mode<synchronous>, transform_indices = @transform_14, window_bounds = array<i64: 1, 24>}, {pipeline_mode = #tpu.pipeline_mode<synchronous>, transform_indices = @transform_15, window_bounds = array<i64: 24, 24>}, {pipeline_mode = #tpu.pipeline_mode<synchronous>, transform_indices = @transform_16, window_bounds = array<i64: 1, 24>}, {pipeline_mode = #tpu.pipeline_mode<synchronous>, transform_indices = @transform_17, window_bounds = array<i64: 24, 24>}, {pipeline_mode = #tpu.pipeline_mode<synchronous>, transform_indices = @transform_18, window_bounds = array<i64: 1, 24>}, {pipeline_mode = #tpu.pipeline_mode<synchronous>, transform_indices = @transform_19, window_bounds = array<i64: 24, 24>}, {pipeline_mode = #tpu.pipeline_mode<synchronous>, transform_indices = @transform_20, window_bounds = array<i64: 1, 24>}, {pipeline_mode = #tpu.pipeline_mode<synchronous>, transform_indices = @transform_21, window_bounds = array<i64: 1, 24>}, {pipeline_mode = #tpu.pipeline_mode<synchronous>, transform_indices = @transform_22, window_bounds = array<i64: 1, 24>}, {pipeline_mode = #tpu.pipeline_mode<synchronous>, transform_indices = @transform_23, window_bounds = array<i64: 24, 128>}, {pipeline_mode = #tpu.pipeline_mode<synchronous>, transform_indices = @transform_24, window_bounds = array<i64: 1, 128>}, {pipeline_mode = #tpu.pipeline_mode<synchronous>, transform_indices = @transform_25, window_bounds = array<i64: 128, 24>}, {pipeline_mode = #tpu.pipeline_mode<synchronous>, transform_indices = @transform_26, window_bounds = array<i64: 1, 24>}, {pipeline_mode = #tpu.pipeline_mode<synchronous>, transform_indices = @transform_27, window_bounds = array<i64: 1, 24>}, {pipeline_mode = #tpu.pipeline_mode<synchronous>, transform_indices = @transform_28, window_bounds = array<i64: 1, 24>}, {pipeline_mode = #tpu.pipeline_mode<synchronous>, transform_indices = @transform_29, window_bounds = array<i64: 8, 24>}]} {
    %c0 = arith.constant 0 : index
    %c0_0 = arith.constant 0 : index
    %0 = vector.load %arg1[%c0, %c0_0] : memref<8x24xf32, #tpu.memory_space<vmem>>, vector<8x24xf32>
    %c0_1 = arith.constant 0 : index
    %c0_2 = arith.constant 0 : index
    %1 = vector.load %arg2[%c0_1, %c0_2] : memref<10x24xf32, #tpu.memory_space<vmem>>, vector<10x24xf32>
    %c0_3 = arith.constant 0 : index
    %c0_4 = arith.constant 0 : index
    %2 = vector.load %arg4[%c0_3, %c0_4] : memref<24x24xf32, #tpu.memory_space<vmem>>, vector<24x24xf32>
    %c0_5 = arith.constant 0 : index
    %c0_6 = arith.constant 0 : index
    %3 = vector.load %arg5[%c0_5, %c0_6] : memref<1x24xf32, #tpu.memory_space<vmem>>, vector<1x24xf32>
    %c0_7 = arith.constant 0 : index
    %c0_8 = arith.constant 0 : index
    %4 = vector.load %arg6[%c0_7, %c0_8] : memref<24x24xf32, #tpu.memory_space<vmem>>, vector<24x24xf32>
    %c0_9 = arith.constant 0 : index
    %c0_10 = arith.constant 0 : index
    %5 = vector.load %arg7[%c0_9, %c0_10] : memref<1x24xf32, #tpu.memory_space<vmem>>, vector<1x24xf32>
    %c0_11 = arith.constant 0 : index
    %c0_12 = arith.constant 0 : index
    %6 = vector.load %arg8[%c0_11, %c0_12] : memref<24x24xf32, #tpu.memory_space<vmem>>, vector<24x24xf32>
    %c0_13 = arith.constant 0 : index
    %c0_14 = arith.constant 0 : index
    %7 = vector.load %arg9[%c0_13, %c0_14] : memref<1x24xf32, #tpu.memory_space<vmem>>, vector<1x24xf32>
    %c0_15 = arith.constant 0 : index
    %c0_16 = arith.constant 0 : index
    %8 = vector.load %arg10[%c0_15, %c0_16] : memref<24x24xf32, #tpu.memory_space<vmem>>, vector<24x24xf32>
    %c0_17 = arith.constant 0 : index
    %c0_18 = arith.constant 0 : index
    %9 = vector.load %arg11[%c0_17, %c0_18] : memref<1x24xf32, #tpu.memory_space<vmem>>, vector<1x24xf32>
    %c0_19 = arith.constant 0 : index
    %c0_20 = arith.constant 0 : index
    %10 = vector.load %arg3[%c0_19, %c0_20] : memref<8x8xf32, #tpu.memory_space<vmem>>, vector<8x8xf32>
    %cst = arith.constant dense<0.000000e+00> : vector<8x24xf32>
    %11 = tpu.matmul %0, %2, %cst {dimension_numbers = #tpu.dot_dimension_numbers<[1], [0], [0], [1], [0, 0, 1, 1], [], []>} : vector<8x24xf32>, vector<24x24xf32>, vector<8x24xf32> -> vector<8x24xf32>
    %12 = vector.broadcast %3 : vector<1x24xf32> to vector<8x24xf32>
    %13 = arith.addf %11, %12 : vector<8x24xf32>
    %cst_21 = arith.constant 0.577350259 : f32
    %14 = vector.broadcast %cst_21 : f32 to vector<8x24xf32>
    %15 = arith.mulf %13, %14 : vector<8x24xf32>
    %cst_22 = arith.constant dense<0.000000e+00> : vector<8x24xf32>
    %16 = tpu.matmul %0, %4, %cst_22 {dimension_numbers = #tpu.dot_dimension_numbers<[1], [0], [0], [1], [0, 0, 1, 1], [], []>} : vector<8x24xf32>, vector<24x24xf32>, vector<8x24xf32> -> vector<8x24xf32>
    %17 = vector.broadcast %5 : vector<1x24xf32> to vector<8x24xf32>
    %18 = arith.addf %16, %17 : vector<8x24xf32>
    %cst_23 = arith.constant dense<0.000000e+00> : vector<8x24xf32>
    %19 = tpu.matmul %0, %6, %cst_23 {dimension_numbers = #tpu.dot_dimension_numbers<[1], [0], [0], [1], [0, 0, 1, 1], [], []>} : vector<8x24xf32>, vector<24x24xf32>, vector<8x24xf32> -> vector<8x24xf32>
    %20 = vector.broadcast %7 : vector<1x24xf32> to vector<8x24xf32>
    %21 = arith.addf %19, %20 : vector<8x24xf32>
    %22 = tpu.iota {dimensions = array<i32: 1>} : vector<1x24xi32>
    %cst_24 = arith.constant 0.000000e+00 : f32
    %23 = vector.broadcast %cst_24 : f32 to vector<8x24xf32>
    %c0_i32 = arith.constant 0 : i32
    %24 = vector.broadcast %c0_i32 : i32 to vector<1x24xi32>
    %25 = arith.cmpi sge, %22, %24 : vector<1x24xi32>
    %c3_i32 = arith.constant 3 : i32
    %26 = vector.broadcast %c3_i32 : i32 to vector<1x24xi32>
    %27 = arith.cmpi slt, %22, %26 : vector<1x24xi32>
    %28 = arith.andi %25, %27 : vector<1x24xi1>
    %29 = arith.extui %28 : vector<1x24xi1> to vector<1x24xi32>
    %30 = arith.sitofp %29 : vector<1x24xi32> to vector<1x24xf32>
    %31 = vector.broadcast %30 : vector<1x24xf32> to vector<8x24xf32>
    %32 = arith.mulf %15, %31 : vector<8x24xf32>
    %cst_25 = arith.constant dense<0.000000e+00> : vector<8x8xf32>
    %33 = tpu.matmul %32, %18, %cst_25 {dimension_numbers = #tpu.dot_dimension_numbers<[1], [1], [0], [0], [0, 0, 1, 0], [], []>} : vector<8x24xf32>, vector<8x24xf32>, vector<8x8xf32> -> vector<8x8xf32>
    %34 = arith.addf %33, %10 : vector<8x8xf32>
    %cst_26 = arith.constant dense<0xFF800000> : vector<8xf32>
    %35 = vector.multi_reduction <maximumf>, %34, %cst_26 [1] : vector<8x8xf32> to vector<8xf32>
    %36 = vector.shape_cast %35 : vector<8xf32> to vector<8x1xf32>
    %37 = vector.broadcast %36 : vector<8x1xf32> to vector<8x8xf32>
    %38 = arith.subf %34, %37 : vector<8x8xf32>
    %39 = math.exp %38 : vector<8x8xf32>
    %cst_27 = arith.constant dense<0.000000e+00> : vector<8xf32>
    %40 = vector.multi_reduction <add>, %39, %cst_27 [1] : vector<8x8xf32> to vector<8xf32>
    %41 = vector.shape_cast %40 : vector<8xf32> to vector<8x1xf32>
    %42 = tpu.reciprocal %41 {approx = true} : vector<8x1xf32> -> vector<8x1xf32>
    %43 = vector.broadcast %42 : vector<8x1xf32> to vector<8x8xf32>
    %44 = arith.mulf %39, %43 : vector<8x8xf32>
    %45 = vector.broadcast %30 : vector<1x24xf32> to vector<8x24xf32>
    %46 = arith.mulf %21, %45 : vector<8x24xf32>
    %cst_28 = arith.constant dense<0.000000e+00> : vector<8x24xf32>
    %47 = tpu.matmul %44, %46, %cst_28 {dimension_numbers = #tpu.dot_dimension_numbers<[1], [0], [0], [1], [0, 0, 1, 1], [], []>} : vector<8x8xf32>, vector<8x24xf32>, vector<8x24xf32> -> vector<8x24xf32>
    %48 = arith.addf %23, %47 : vector<8x24xf32>
    %c3_i32_29 = arith.constant 3 : i32
    %49 = vector.broadcast %c3_i32_29 : i32 to vector<1x24xi32>
    %50 = arith.cmpi sge, %22, %49 : vector<1x24xi32>
    %c6_i32 = arith.constant 6 : i32
    %51 = vector.broadcast %c6_i32 : i32 to vector<1x24xi32>
    %52 = arith.cmpi slt, %22, %51 : vector<1x24xi32>
    %53 = arith.andi %50, %52 : vector<1x24xi1>
    %54 = arith.extui %53 : vector<1x24xi1> to vector<1x24xi32>
    %55 = arith.sitofp %54 : vector<1x24xi32> to vector<1x24xf32>
    %56 = vector.broadcast %55 : vector<1x24xf32> to vector<8x24xf32>
    %57 = arith.mulf %15, %56 : vector<8x24xf32>
    %cst_30 = arith.constant dense<0.000000e+00> : vector<8x8xf32>
    %58 = tpu.matmul %57, %18, %cst_30 {dimension_numbers = #tpu.dot_dimension_numbers<[1], [1], [0], [0], [0, 0, 1, 0], [], []>} : vector<8x24xf32>, vector<8x24xf32>, vector<8x8xf32> -> vector<8x8xf32>
    %59 = arith.addf %58, %10 : vector<8x8xf32>
    %cst_31 = arith.constant dense<0xFF800000> : vector<8xf32>
    %60 = vector.multi_reduction <maximumf>, %59, %cst_31 [1] : vector<8x8xf32> to vector<8xf32>
    %61 = vector.shape_cast %60 : vector<8xf32> to vector<8x1xf32>
    %62 = vector.broadcast %61 : vector<8x1xf32> to vector<8x8xf32>
    %63 = arith.subf %59, %62 : vector<8x8xf32>
    %64 = math.exp %63 : vector<8x8xf32>
    %cst_32 = arith.constant dense<0.000000e+00> : vector<8xf32>
    %65 = vector.multi_reduction <add>, %64, %cst_32 [1] : vector<8x8xf32> to vector<8xf32>
    %66 = vector.shape_cast %65 : vector<8xf32> to vector<8x1xf32>
    %67 = tpu.reciprocal %66 {approx = true} : vector<8x1xf32> -> vector<8x1xf32>
    %68 = vector.broadcast %67 : vector<8x1xf32> to vector<8x8xf32>
    %69 = arith.mulf %64, %68 : vector<8x8xf32>
    %70 = vector.broadcast %55 : vector<1x24xf32> to vector<8x24xf32>
    %71 = arith.mulf %21, %70 : vector<8x24xf32>
    %cst_33 = arith.constant dense<0.000000e+00> : vector<8x24xf32>
    %72 = tpu.matmul %69, %71, %cst_33 {dimension_numbers = #tpu.dot_dimension_numbers<[1], [0], [0], [1], [0, 0, 1, 1], [], []>} : vector<8x8xf32>, vector<8x24xf32>, vector<8x24xf32> -> vector<8x24xf32>
    %73 = arith.addf %48, %72 : vector<8x24xf32>
    %c6_i32_34 = arith.constant 6 : i32
    %74 = vector.broadcast %c6_i32_34 : i32 to vector<1x24xi32>
    %75 = arith.cmpi sge, %22, %74 : vector<1x24xi32>
    %c9_i32 = arith.constant 9 : i32
    %76 = vector.broadcast %c9_i32 : i32 to vector<1x24xi32>
    %77 = arith.cmpi slt, %22, %76 : vector<1x24xi32>
    %78 = arith.andi %75, %77 : vector<1x24xi1>
    %79 = arith.extui %78 : vector<1x24xi1> to vector<1x24xi32>
    %80 = arith.sitofp %79 : vector<1x24xi32> to vector<1x24xf32>
    %81 = vector.broadcast %80 : vector<1x24xf32> to vector<8x24xf32>
    %82 = arith.mulf %15, %81 : vector<8x24xf32>
    %cst_35 = arith.constant dense<0.000000e+00> : vector<8x8xf32>
    %83 = tpu.matmul %82, %18, %cst_35 {dimension_numbers = #tpu.dot_dimension_numbers<[1], [1], [0], [0], [0, 0, 1, 0], [], []>} : vector<8x24xf32>, vector<8x24xf32>, vector<8x8xf32> -> vector<8x8xf32>
    %84 = arith.addf %83, %10 : vector<8x8xf32>
    %cst_36 = arith.constant dense<0xFF800000> : vector<8xf32>
    %85 = vector.multi_reduction <maximumf>, %84, %cst_36 [1] : vector<8x8xf32> to vector<8xf32>
    %86 = vector.shape_cast %85 : vector<8xf32> to vector<8x1xf32>
    %87 = vector.broadcast %86 : vector<8x1xf32> to vector<8x8xf32>
    %88 = arith.subf %84, %87 : vector<8x8xf32>
    %89 = math.exp %88 : vector<8x8xf32>
    %cst_37 = arith.constant dense<0.000000e+00> : vector<8xf32>
    %90 = vector.multi_reduction <add>, %89, %cst_37 [1] : vector<8x8xf32> to vector<8xf32>
    %91 = vector.shape_cast %90 : vector<8xf32> to vector<8x1xf32>
    %92 = tpu.reciprocal %91 {approx = true} : vector<8x1xf32> -> vector<8x1xf32>
    %93 = vector.broadcast %92 : vector<8x1xf32> to vector<8x8xf32>
    %94 = arith.mulf %89, %93 : vector<8x8xf32>
    %95 = vector.broadcast %80 : vector<1x24xf32> to vector<8x24xf32>
    %96 = arith.mulf %21, %95 : vector<8x24xf32>
    %cst_38 = arith.constant dense<0.000000e+00> : vector<8x24xf32>
    %97 = tpu.matmul %94, %96, %cst_38 {dimension_numbers = #tpu.dot_dimension_numbers<[1], [0], [0], [1], [0, 0, 1, 1], [], []>} : vector<8x8xf32>, vector<8x24xf32>, vector<8x24xf32> -> vector<8x24xf32>
    %98 = arith.addf %73, %97 : vector<8x24xf32>
    %c9_i32_39 = arith.constant 9 : i32
    %99 = vector.broadcast %c9_i32_39 : i32 to vector<1x24xi32>
    %100 = arith.cmpi sge, %22, %99 : vector<1x24xi32>
    %c12_i32 = arith.constant 12 : i32
    %101 = vector.broadcast %c12_i32 : i32 to vector<1x24xi32>
    %102 = arith.cmpi slt, %22, %101 : vector<1x24xi32>
    %103 = arith.andi %100, %102 : vector<1x24xi1>
    %104 = arith.extui %103 : vector<1x24xi1> to vector<1x24xi32>
    %105 = arith.sitofp %104 : vector<1x24xi32> to vector<1x24xf32>
    %106 = vector.broadcast %105 : vector<1x24xf32> to vector<8x24xf32>
    %107 = arith.mulf %15, %106 : vector<8x24xf32>
    %cst_40 = arith.constant dense<0.000000e+00> : vector<8x8xf32>
    %108 = tpu.matmul %107, %18, %cst_40 {dimension_numbers = #tpu.dot_dimension_numbers<[1], [1], [0], [0], [0, 0, 1, 0], [], []>} : vector<8x24xf32>, vector<8x24xf32>, vector<8x8xf32> -> vector<8x8xf32>
    %109 = arith.addf %108, %10 : vector<8x8xf32>
    %cst_41 = arith.constant dense<0xFF800000> : vector<8xf32>
    %110 = vector.multi_reduction <maximumf>, %109, %cst_41 [1] : vector<8x8xf32> to vector<8xf32>
    %111 = vector.shape_cast %110 : vector<8xf32> to vector<8x1xf32>
    %112 = vector.broadcast %111 : vector<8x1xf32> to vector<8x8xf32>
    %113 = arith.subf %109, %112 : vector<8x8xf32>
    %114 = math.exp %113 : vector<8x8xf32>
    %cst_42 = arith.constant dense<0.000000e+00> : vector<8xf32>
    %115 = vector.multi_reduction <add>, %114, %cst_42 [1] : vector<8x8xf32> to vector<8xf32>
    %116 = vector.shape_cast %115 : vector<8xf32> to vector<8x1xf32>
    %117 = tpu.reciprocal %116 {approx = true} : vector<8x1xf32> -> vector<8x1xf32>
    %118 = vector.broadcast %117 : vector<8x1xf32> to vector<8x8xf32>
    %119 = arith.mulf %114, %118 : vector<8x8xf32>
    %120 = vector.broadcast %105 : vector<1x24xf32> to vector<8x24xf32>
    %121 = arith.mulf %21, %120 : vector<8x24xf32>
    %cst_43 = arith.constant dense<0.000000e+00> : vector<8x24xf32>
    %122 = tpu.matmul %119, %121, %cst_43 {dimension_numbers = #tpu.dot_dimension_numbers<[1], [0], [0], [1], [0, 0, 1, 1], [], []>} : vector<8x8xf32>, vector<8x24xf32>, vector<8x24xf32> -> vector<8x24xf32>
    %123 = arith.addf %98, %122 : vector<8x24xf32>
    %c12_i32_44 = arith.constant 12 : i32
    %124 = vector.broadcast %c12_i32_44 : i32 to vector<1x24xi32>
    %125 = arith.cmpi sge, %22, %124 : vector<1x24xi32>
    %c15_i32 = arith.constant 15 : i32
    %126 = vector.broadcast %c15_i32 : i32 to vector<1x24xi32>
    %127 = arith.cmpi slt, %22, %126 : vector<1x24xi32>
    %128 = arith.andi %125, %127 : vector<1x24xi1>
    %129 = arith.extui %128 : vector<1x24xi1> to vector<1x24xi32>
    %130 = arith.sitofp %129 : vector<1x24xi32> to vector<1x24xf32>
    %131 = vector.broadcast %130 : vector<1x24xf32> to vector<8x24xf32>
    %132 = arith.mulf %15, %131 : vector<8x24xf32>
    %cst_45 = arith.constant dense<0.000000e+00> : vector<8x8xf32>
    %133 = tpu.matmul %132, %18, %cst_45 {dimension_numbers = #tpu.dot_dimension_numbers<[1], [1], [0], [0], [0, 0, 1, 0], [], []>} : vector<8x24xf32>, vector<8x24xf32>, vector<8x8xf32> -> vector<8x8xf32>
    %134 = arith.addf %133, %10 : vector<8x8xf32>
    %cst_46 = arith.constant dense<0xFF800000> : vector<8xf32>
    %135 = vector.multi_reduction <maximumf>, %134, %cst_46 [1] : vector<8x8xf32> to vector<8xf32>
    %136 = vector.shape_cast %135 : vector<8xf32> to vector<8x1xf32>
    %137 = vector.broadcast %136 : vector<8x1xf32> to vector<8x8xf32>
    %138 = arith.subf %134, %137 : vector<8x8xf32>
    %139 = math.exp %138 : vector<8x8xf32>
    %cst_47 = arith.constant dense<0.000000e+00> : vector<8xf32>
    %140 = vector.multi_reduction <add>, %139, %cst_47 [1] : vector<8x8xf32> to vector<8xf32>
    %141 = vector.shape_cast %140 : vector<8xf32> to vector<8x1xf32>
    %142 = tpu.reciprocal %141 {approx = true} : vector<8x1xf32> -> vector<8x1xf32>
    %143 = vector.broadcast %142 : vector<8x1xf32> to vector<8x8xf32>
    %144 = arith.mulf %139, %143 : vector<8x8xf32>
    %145 = vector.broadcast %130 : vector<1x24xf32> to vector<8x24xf32>
    %146 = arith.mulf %21, %145 : vector<8x24xf32>
    %cst_48 = arith.constant dense<0.000000e+00> : vector<8x24xf32>
    %147 = tpu.matmul %144, %146, %cst_48 {dimension_numbers = #tpu.dot_dimension_numbers<[1], [0], [0], [1], [0, 0, 1, 1], [], []>} : vector<8x8xf32>, vector<8x24xf32>, vector<8x24xf32> -> vector<8x24xf32>
    %148 = arith.addf %123, %147 : vector<8x24xf32>
    %c15_i32_49 = arith.constant 15 : i32
    %149 = vector.broadcast %c15_i32_49 : i32 to vector<1x24xi32>
    %150 = arith.cmpi sge, %22, %149 : vector<1x24xi32>
    %c18_i32 = arith.constant 18 : i32
    %151 = vector.broadcast %c18_i32 : i32 to vector<1x24xi32>
    %152 = arith.cmpi slt, %22, %151 : vector<1x24xi32>
    %153 = arith.andi %150, %152 : vector<1x24xi1>
    %154 = arith.extui %153 : vector<1x24xi1> to vector<1x24xi32>
    %155 = arith.sitofp %154 : vector<1x24xi32> to vector<1x24xf32>
    %156 = vector.broadcast %155 : vector<1x24xf32> to vector<8x24xf32>
    %157 = arith.mulf %15, %156 : vector<8x24xf32>
    %cst_50 = arith.constant dense<0.000000e+00> : vector<8x8xf32>
    %158 = tpu.matmul %157, %18, %cst_50 {dimension_numbers = #tpu.dot_dimension_numbers<[1], [1], [0], [0], [0, 0, 1, 0], [], []>} : vector<8x24xf32>, vector<8x24xf32>, vector<8x8xf32> -> vector<8x8xf32>
    %159 = arith.addf %158, %10 : vector<8x8xf32>
    %cst_51 = arith.constant dense<0xFF800000> : vector<8xf32>
    %160 = vector.multi_reduction <maximumf>, %159, %cst_51 [1] : vector<8x8xf32> to vector<8xf32>
    %161 = vector.shape_cast %160 : vector<8xf32> to vector<8x1xf32>
    %162 = vector.broadcast %161 : vector<8x1xf32> to vector<8x8xf32>
    %163 = arith.subf %159, %162 : vector<8x8xf32>
    %164 = math.exp %163 : vector<8x8xf32>
    %cst_52 = arith.constant dense<0.000000e+00> : vector<8xf32>
    %165 = vector.multi_reduction <add>, %164, %cst_52 [1] : vector<8x8xf32> to vector<8xf32>
    %166 = vector.shape_cast %165 : vector<8xf32> to vector<8x1xf32>
    %167 = tpu.reciprocal %166 {approx = true} : vector<8x1xf32> -> vector<8x1xf32>
    %168 = vector.broadcast %167 : vector<8x1xf32> to vector<8x8xf32>
    %169 = arith.mulf %164, %168 : vector<8x8xf32>
    %170 = vector.broadcast %155 : vector<1x24xf32> to vector<8x24xf32>
    %171 = arith.mulf %21, %170 : vector<8x24xf32>
    %cst_53 = arith.constant dense<0.000000e+00> : vector<8x24xf32>
    %172 = tpu.matmul %169, %171, %cst_53 {dimension_numbers = #tpu.dot_dimension_numbers<[1], [0], [0], [1], [0, 0, 1, 1], [], []>} : vector<8x8xf32>, vector<8x24xf32>, vector<8x24xf32> -> vector<8x24xf32>
    %173 = arith.addf %148, %172 : vector<8x24xf32>
    %c18_i32_54 = arith.constant 18 : i32
    %174 = vector.broadcast %c18_i32_54 : i32 to vector<1x24xi32>
    %175 = arith.cmpi sge, %22, %174 : vector<1x24xi32>
    %c21_i32 = arith.constant 21 : i32
    %176 = vector.broadcast %c21_i32 : i32 to vector<1x24xi32>
    %177 = arith.cmpi slt, %22, %176 : vector<1x24xi32>
    %178 = arith.andi %175, %177 : vector<1x24xi1>
    %179 = arith.extui %178 : vector<1x24xi1> to vector<1x24xi32>
    %180 = arith.sitofp %179 : vector<1x24xi32> to vector<1x24xf32>
    %181 = vector.broadcast %180 : vector<1x24xf32> to vector<8x24xf32>
    %182 = arith.mulf %15, %181 : vector<8x24xf32>
    %cst_55 = arith.constant dense<0.000000e+00> : vector<8x8xf32>
    %183 = tpu.matmul %182, %18, %cst_55 {dimension_numbers = #tpu.dot_dimension_numbers<[1], [1], [0], [0], [0, 0, 1, 0], [], []>} : vector<8x24xf32>, vector<8x24xf32>, vector<8x8xf32> -> vector<8x8xf32>
    %184 = arith.addf %183, %10 : vector<8x8xf32>
    %cst_56 = arith.constant dense<0xFF800000> : vector<8xf32>
    %185 = vector.multi_reduction <maximumf>, %184, %cst_56 [1] : vector<8x8xf32> to vector<8xf32>
    %186 = vector.shape_cast %185 : vector<8xf32> to vector<8x1xf32>
    %187 = vector.broadcast %186 : vector<8x1xf32> to vector<8x8xf32>
    %188 = arith.subf %184, %187 : vector<8x8xf32>
    %189 = math.exp %188 : vector<8x8xf32>
    %cst_57 = arith.constant dense<0.000000e+00> : vector<8xf32>
    %190 = vector.multi_reduction <add>, %189, %cst_57 [1] : vector<8x8xf32> to vector<8xf32>
    %191 = vector.shape_cast %190 : vector<8xf32> to vector<8x1xf32>
    %192 = tpu.reciprocal %191 {approx = true} : vector<8x1xf32> -> vector<8x1xf32>
    %193 = vector.broadcast %192 : vector<8x1xf32> to vector<8x8xf32>
    %194 = arith.mulf %189, %193 : vector<8x8xf32>
    %195 = vector.broadcast %180 : vector<1x24xf32> to vector<8x24xf32>
    %196 = arith.mulf %21, %195 : vector<8x24xf32>
    %cst_58 = arith.constant dense<0.000000e+00> : vector<8x24xf32>
    %197 = tpu.matmul %194, %196, %cst_58 {dimension_numbers = #tpu.dot_dimension_numbers<[1], [0], [0], [1], [0, 0, 1, 1], [], []>} : vector<8x8xf32>, vector<8x24xf32>, vector<8x24xf32> -> vector<8x24xf32>
    %198 = arith.addf %173, %197 : vector<8x24xf32>
    %c21_i32_59 = arith.constant 21 : i32
    %199 = vector.broadcast %c21_i32_59 : i32 to vector<1x24xi32>
    %200 = arith.cmpi sge, %22, %199 : vector<1x24xi32>
    %c24_i32 = arith.constant 24 : i32
    %201 = vector.broadcast %c24_i32 : i32 to vector<1x24xi32>
    %202 = arith.cmpi slt, %22, %201 : vector<1x24xi32>
    %203 = arith.andi %200, %202 : vector<1x24xi1>
    %204 = arith.extui %203 : vector<1x24xi1> to vector<1x24xi32>
    %205 = arith.sitofp %204 : vector<1x24xi32> to vector<1x24xf32>
    %206 = vector.broadcast %205 : vector<1x24xf32> to vector<8x24xf32>
    %207 = arith.mulf %15, %206 : vector<8x24xf32>
    %cst_60 = arith.constant dense<0.000000e+00> : vector<8x8xf32>
    %208 = tpu.matmul %207, %18, %cst_60 {dimension_numbers = #tpu.dot_dimension_numbers<[1], [1], [0], [0], [0, 0, 1, 0], [], []>} : vector<8x24xf32>, vector<8x24xf32>, vector<8x8xf32> -> vector<8x8xf32>
    %209 = arith.addf %208, %10 : vector<8x8xf32>
    %cst_61 = arith.constant dense<0xFF800000> : vector<8xf32>
    %210 = vector.multi_reduction <maximumf>, %209, %cst_61 [1] : vector<8x8xf32> to vector<8xf32>
    %211 = vector.shape_cast %210 : vector<8xf32> to vector<8x1xf32>
    %212 = vector.broadcast %211 : vector<8x1xf32> to vector<8x8xf32>
    %213 = arith.subf %209, %212 : vector<8x8xf32>
    %214 = math.exp %213 : vector<8x8xf32>
    %cst_62 = arith.constant dense<0.000000e+00> : vector<8xf32>
    %215 = vector.multi_reduction <add>, %214, %cst_62 [1] : vector<8x8xf32> to vector<8xf32>
    %216 = vector.shape_cast %215 : vector<8xf32> to vector<8x1xf32>
    %217 = tpu.reciprocal %216 {approx = true} : vector<8x1xf32> -> vector<8x1xf32>
    %218 = vector.broadcast %217 : vector<8x1xf32> to vector<8x8xf32>
    %219 = arith.mulf %214, %218 : vector<8x8xf32>
    %220 = vector.broadcast %205 : vector<1x24xf32> to vector<8x24xf32>
    %221 = arith.mulf %21, %220 : vector<8x24xf32>
    %cst_63 = arith.constant dense<0.000000e+00> : vector<8x24xf32>
    %222 = tpu.matmul %219, %221, %cst_63 {dimension_numbers = #tpu.dot_dimension_numbers<[1], [0], [0], [1], [0, 0, 1, 1], [], []>} : vector<8x8xf32>, vector<8x24xf32>, vector<8x24xf32> -> vector<8x24xf32>
    %223 = arith.addf %198, %222 : vector<8x24xf32>
    %cst_64 = arith.constant dense<0.000000e+00> : vector<8x24xf32>
    %224 = tpu.matmul %223, %8, %cst_64 {dimension_numbers = #tpu.dot_dimension_numbers<[1], [0], [0], [1], [0, 0, 1, 1], [], []>} : vector<8x24xf32>, vector<24x24xf32>, vector<8x24xf32> -> vector<8x24xf32>
    %225 = vector.broadcast %9 : vector<1x24xf32> to vector<8x24xf32>
    %226 = arith.addf %224, %225 : vector<8x24xf32>
    %227 = arith.addf %0, %226 : vector<8x24xf32>
    %c0_65 = arith.constant 0 : index
    %c0_66 = arith.constant 0 : index
    %228 = vector.load %arg12[%c0_65, %c0_66] : memref<1x24xf32, #tpu.memory_space<vmem>>, vector<1x24xf32>
    %c0_67 = arith.constant 0 : index
    %c0_68 = arith.constant 0 : index
    %229 = vector.load %arg13[%c0_67, %c0_68] : memref<1x24xf32, #tpu.memory_space<vmem>>, vector<1x24xf32>
    %cst_69 = arith.constant dense<0.000000e+00> : vector<8xf32>
    %230 = vector.multi_reduction <add>, %227, %cst_69 [1] : vector<8x24xf32> to vector<8xf32>
    %231 = vector.shape_cast %230 : vector<8xf32> to vector<8x1xf32>
    %cst_70 = arith.constant 2.400000e+01 : f32
    %232 = vector.broadcast %cst_70 : f32 to vector<8x1xf32>
    %233 = arith.divf %231, %232 : vector<8x1xf32>
    %234 = vector.broadcast %233 : vector<8x1xf32> to vector<8x24xf32>
    %235 = arith.subf %227, %234 : vector<8x24xf32>
    %236 = arith.mulf %235, %235 : vector<8x24xf32>
    %cst_71 = arith.constant dense<0.000000e+00> : vector<8xf32>
    %237 = vector.multi_reduction <add>, %236, %cst_71 [1] : vector<8x24xf32> to vector<8xf32>
    %238 = vector.shape_cast %237 : vector<8xf32> to vector<8x1xf32>
    %cst_72 = arith.constant 2.400000e+01 : f32
    %239 = vector.broadcast %cst_72 : f32 to vector<8x1xf32>
    %240 = arith.divf %238, %239 : vector<8x1xf32>
    %cst_73 = arith.constant 9.99999974E-6 : f32
    %241 = vector.broadcast %cst_73 : f32 to vector<8x1xf32>
    %242 = arith.addf %240, %241 : vector<8x1xf32>
    %243 = math.rsqrt %242 : vector<8x1xf32>
    %244 = vector.broadcast %243 : vector<8x1xf32> to vector<8x24xf32>
    %245 = arith.mulf %235, %244 : vector<8x24xf32>
    %246 = vector.broadcast %228 : vector<1x24xf32> to vector<8x24xf32>
    %247 = arith.mulf %245, %246 : vector<8x24xf32>
    %248 = vector.broadcast %229 : vector<1x24xf32> to vector<8x24xf32>
    %249 = arith.addf %247, %248 : vector<8x24xf32>
    %c0_74 = arith.constant 0 : index
    %c0_75 = arith.constant 0 : index
    %250 = vector.load %arg14[%c0_74, %c0_75] : memref<24x24xf32, #tpu.memory_space<vmem>>, vector<24x24xf32>
    %c0_76 = arith.constant 0 : index
    %c0_77 = arith.constant 0 : index
    %251 = vector.load %arg15[%c0_76, %c0_77] : memref<1x24xf32, #tpu.memory_space<vmem>>, vector<1x24xf32>
    %c0_78 = arith.constant 0 : index
    %c0_79 = arith.constant 0 : index
    %252 = vector.load %arg16[%c0_78, %c0_79] : memref<24x24xf32, #tpu.memory_space<vmem>>, vector<24x24xf32>
    %c0_80 = arith.constant 0 : index
    %c0_81 = arith.constant 0 : index
    %253 = vector.load %arg17[%c0_80, %c0_81] : memref<1x24xf32, #tpu.memory_space<vmem>>, vector<1x24xf32>
    %c0_82 = arith.constant 0 : index
    %c0_83 = arith.constant 0 : index
    %254 = vector.load %arg18[%c0_82, %c0_83] : memref<24x24xf32, #tpu.memory_space<vmem>>, vector<24x24xf32>
    %c0_84 = arith.constant 0 : index
    %c0_85 = arith.constant 0 : index
    %255 = vector.load %arg19[%c0_84, %c0_85] : memref<1x24xf32, #tpu.memory_space<vmem>>, vector<1x24xf32>
    %c0_86 = arith.constant 0 : index
    %c0_87 = arith.constant 0 : index
    %256 = vector.load %arg20[%c0_86, %c0_87] : memref<24x24xf32, #tpu.memory_space<vmem>>, vector<24x24xf32>
    %c0_88 = arith.constant 0 : index
    %c0_89 = arith.constant 0 : index
    %257 = vector.load %arg21[%c0_88, %c0_89] : memref<1x24xf32, #tpu.memory_space<vmem>>, vector<1x24xf32>
    %cst_90 = arith.constant dense<0.000000e+00> : vector<8x24xf32>
    %258 = tpu.matmul %249, %250, %cst_90 {dimension_numbers = #tpu.dot_dimension_numbers<[1], [0], [0], [1], [0, 0, 1, 1], [], []>} : vector<8x24xf32>, vector<24x24xf32>, vector<8x24xf32> -> vector<8x24xf32>
    %259 = vector.broadcast %251 : vector<1x24xf32> to vector<8x24xf32>
    %260 = arith.addf %258, %259 : vector<8x24xf32>
    %cst_91 = arith.constant 0.577350259 : f32
    %261 = vector.broadcast %cst_91 : f32 to vector<8x24xf32>
    %262 = arith.mulf %260, %261 : vector<8x24xf32>
    %cst_92 = arith.constant dense<0.000000e+00> : vector<10x24xf32>
    %263 = tpu.matmul %1, %252, %cst_92 {dimension_numbers = #tpu.dot_dimension_numbers<[1], [0], [0], [1], [0, 0, 1, 1], [], []>} : vector<10x24xf32>, vector<24x24xf32>, vector<10x24xf32> -> vector<10x24xf32>
    %264 = vector.broadcast %253 : vector<1x24xf32> to vector<10x24xf32>
    %265 = arith.addf %263, %264 : vector<10x24xf32>
    %cst_93 = arith.constant dense<0.000000e+00> : vector<10x24xf32>
    %266 = tpu.matmul %1, %254, %cst_93 {dimension_numbers = #tpu.dot_dimension_numbers<[1], [0], [0], [1], [0, 0, 1, 1], [], []>} : vector<10x24xf32>, vector<24x24xf32>, vector<10x24xf32> -> vector<10x24xf32>
    %267 = vector.broadcast %255 : vector<1x24xf32> to vector<10x24xf32>
    %268 = arith.addf %266, %267 : vector<10x24xf32>
    %269 = tpu.iota {dimensions = array<i32: 1>} : vector<1x24xi32>
    %cst_94 = arith.constant 0.000000e+00 : f32
    %270 = vector.broadcast %cst_94 : f32 to vector<8x24xf32>
    %c0_i32_95 = arith.constant 0 : i32
    %271 = vector.broadcast %c0_i32_95 : i32 to vector<1x24xi32>
    %272 = arith.cmpi sge, %269, %271 : vector<1x24xi32>
    %c3_i32_96 = arith.constant 3 : i32
    %273 = vector.broadcast %c3_i32_96 : i32 to vector<1x24xi32>
    %274 = arith.cmpi slt, %269, %273 : vector<1x24xi32>
    %275 = arith.andi %272, %274 : vector<1x24xi1>
    %276 = arith.extui %275 : vector<1x24xi1> to vector<1x24xi32>
    %277 = arith.sitofp %276 : vector<1x24xi32> to vector<1x24xf32>
    %278 = vector.broadcast %277 : vector<1x24xf32> to vector<8x24xf32>
    %279 = arith.mulf %262, %278 : vector<8x24xf32>
    %cst_97 = arith.constant dense<0.000000e+00> : vector<8x10xf32>
    %280 = tpu.matmul %279, %265, %cst_97 {dimension_numbers = #tpu.dot_dimension_numbers<[1], [1], [0], [0], [0, 0, 1, 0], [], []>} : vector<8x24xf32>, vector<10x24xf32>, vector<8x10xf32> -> vector<8x10xf32>
    %cst_98 = arith.constant dense<0xFF800000> : vector<8xf32>
    %281 = vector.multi_reduction <maximumf>, %280, %cst_98 [1] : vector<8x10xf32> to vector<8xf32>
    %282 = vector.shape_cast %281 : vector<8xf32> to vector<8x1xf32>
    %283 = vector.broadcast %282 : vector<8x1xf32> to vector<8x10xf32>
    %284 = arith.subf %280, %283 : vector<8x10xf32>
    %285 = math.exp %284 : vector<8x10xf32>
    %cst_99 = arith.constant dense<0.000000e+00> : vector<8xf32>
    %286 = vector.multi_reduction <add>, %285, %cst_99 [1] : vector<8x10xf32> to vector<8xf32>
    %287 = vector.shape_cast %286 : vector<8xf32> to vector<8x1xf32>
    %288 = tpu.reciprocal %287 {approx = true} : vector<8x1xf32> -> vector<8x1xf32>
    %289 = vector.broadcast %288 : vector<8x1xf32> to vector<8x10xf32>
    %290 = arith.mulf %285, %289 : vector<8x10xf32>
    %291 = vector.broadcast %277 : vector<1x24xf32> to vector<10x24xf32>
    %292 = arith.mulf %268, %291 : vector<10x24xf32>
    %cst_100 = arith.constant dense<0.000000e+00> : vector<8x24xf32>
    %293 = tpu.matmul %290, %292, %cst_100 {dimension_numbers = #tpu.dot_dimension_numbers<[1], [0], [0], [1], [0, 0, 1, 1], [], []>} : vector<8x10xf32>, vector<10x24xf32>, vector<8x24xf32> -> vector<8x24xf32>
    %294 = arith.addf %270, %293 : vector<8x24xf32>
    %c3_i32_101 = arith.constant 3 : i32
    %295 = vector.broadcast %c3_i32_101 : i32 to vector<1x24xi32>
    %296 = arith.cmpi sge, %269, %295 : vector<1x24xi32>
    %c6_i32_102 = arith.constant 6 : i32
    %297 = vector.broadcast %c6_i32_102 : i32 to vector<1x24xi32>
    %298 = arith.cmpi slt, %269, %297 : vector<1x24xi32>
    %299 = arith.andi %296, %298 : vector<1x24xi1>
    %300 = arith.extui %299 : vector<1x24xi1> to vector<1x24xi32>
    %301 = arith.sitofp %300 : vector<1x24xi32> to vector<1x24xf32>
    %302 = vector.broadcast %301 : vector<1x24xf32> to vector<8x24xf32>
    %303 = arith.mulf %262, %302 : vector<8x24xf32>
    %cst_103 = arith.constant dense<0.000000e+00> : vector<8x10xf32>
    %304 = tpu.matmul %303, %265, %cst_103 {dimension_numbers = #tpu.dot_dimension_numbers<[1], [1], [0], [0], [0, 0, 1, 0], [], []>} : vector<8x24xf32>, vector<10x24xf32>, vector<8x10xf32> -> vector<8x10xf32>
    %cst_104 = arith.constant dense<0xFF800000> : vector<8xf32>
    %305 = vector.multi_reduction <maximumf>, %304, %cst_104 [1] : vector<8x10xf32> to vector<8xf32>
    %306 = vector.shape_cast %305 : vector<8xf32> to vector<8x1xf32>
    %307 = vector.broadcast %306 : vector<8x1xf32> to vector<8x10xf32>
    %308 = arith.subf %304, %307 : vector<8x10xf32>
    %309 = math.exp %308 : vector<8x10xf32>
    %cst_105 = arith.constant dense<0.000000e+00> : vector<8xf32>
    %310 = vector.multi_reduction <add>, %309, %cst_105 [1] : vector<8x10xf32> to vector<8xf32>
    %311 = vector.shape_cast %310 : vector<8xf32> to vector<8x1xf32>
    %312 = tpu.reciprocal %311 {approx = true} : vector<8x1xf32> -> vector<8x1xf32>
    %313 = vector.broadcast %312 : vector<8x1xf32> to vector<8x10xf32>
    %314 = arith.mulf %309, %313 : vector<8x10xf32>
    %315 = vector.broadcast %301 : vector<1x24xf32> to vector<10x24xf32>
    %316 = arith.mulf %268, %315 : vector<10x24xf32>
    %cst_106 = arith.constant dense<0.000000e+00> : vector<8x24xf32>
    %317 = tpu.matmul %314, %316, %cst_106 {dimension_numbers = #tpu.dot_dimension_numbers<[1], [0], [0], [1], [0, 0, 1, 1], [], []>} : vector<8x10xf32>, vector<10x24xf32>, vector<8x24xf32> -> vector<8x24xf32>
    %318 = arith.addf %294, %317 : vector<8x24xf32>
    %c6_i32_107 = arith.constant 6 : i32
    %319 = vector.broadcast %c6_i32_107 : i32 to vector<1x24xi32>
    %320 = arith.cmpi sge, %269, %319 : vector<1x24xi32>
    %c9_i32_108 = arith.constant 9 : i32
    %321 = vector.broadcast %c9_i32_108 : i32 to vector<1x24xi32>
    %322 = arith.cmpi slt, %269, %321 : vector<1x24xi32>
    %323 = arith.andi %320, %322 : vector<1x24xi1>
    %324 = arith.extui %323 : vector<1x24xi1> to vector<1x24xi32>
    %325 = arith.sitofp %324 : vector<1x24xi32> to vector<1x24xf32>
    %326 = vector.broadcast %325 : vector<1x24xf32> to vector<8x24xf32>
    %327 = arith.mulf %262, %326 : vector<8x24xf32>
    %cst_109 = arith.constant dense<0.000000e+00> : vector<8x10xf32>
    %328 = tpu.matmul %327, %265, %cst_109 {dimension_numbers = #tpu.dot_dimension_numbers<[1], [1], [0], [0], [0, 0, 1, 0], [], []>} : vector<8x24xf32>, vector<10x24xf32>, vector<8x10xf32> -> vector<8x10xf32>
    %cst_110 = arith.constant dense<0xFF800000> : vector<8xf32>
    %329 = vector.multi_reduction <maximumf>, %328, %cst_110 [1] : vector<8x10xf32> to vector<8xf32>
    %330 = vector.shape_cast %329 : vector<8xf32> to vector<8x1xf32>
    %331 = vector.broadcast %330 : vector<8x1xf32> to vector<8x10xf32>
    %332 = arith.subf %328, %331 : vector<8x10xf32>
    %333 = math.exp %332 : vector<8x10xf32>
    %cst_111 = arith.constant dense<0.000000e+00> : vector<8xf32>
    %334 = vector.multi_reduction <add>, %333, %cst_111 [1] : vector<8x10xf32> to vector<8xf32>
    %335 = vector.shape_cast %334 : vector<8xf32> to vector<8x1xf32>
    %336 = tpu.reciprocal %335 {approx = true} : vector<8x1xf32> -> vector<8x1xf32>
    %337 = vector.broadcast %336 : vector<8x1xf32> to vector<8x10xf32>
    %338 = arith.mulf %333, %337 : vector<8x10xf32>
    %339 = vector.broadcast %325 : vector<1x24xf32> to vector<10x24xf32>
    %340 = arith.mulf %268, %339 : vector<10x24xf32>
    %cst_112 = arith.constant dense<0.000000e+00> : vector<8x24xf32>
    %341 = tpu.matmul %338, %340, %cst_112 {dimension_numbers = #tpu.dot_dimension_numbers<[1], [0], [0], [1], [0, 0, 1, 1], [], []>} : vector<8x10xf32>, vector<10x24xf32>, vector<8x24xf32> -> vector<8x24xf32>
    %342 = arith.addf %318, %341 : vector<8x24xf32>
    %c9_i32_113 = arith.constant 9 : i32
    %343 = vector.broadcast %c9_i32_113 : i32 to vector<1x24xi32>
    %344 = arith.cmpi sge, %269, %343 : vector<1x24xi32>
    %c12_i32_114 = arith.constant 12 : i32
    %345 = vector.broadcast %c12_i32_114 : i32 to vector<1x24xi32>
    %346 = arith.cmpi slt, %269, %345 : vector<1x24xi32>
    %347 = arith.andi %344, %346 : vector<1x24xi1>
    %348 = arith.extui %347 : vector<1x24xi1> to vector<1x24xi32>
    %349 = arith.sitofp %348 : vector<1x24xi32> to vector<1x24xf32>
    %350 = vector.broadcast %349 : vector<1x24xf32> to vector<8x24xf32>
    %351 = arith.mulf %262, %350 : vector<8x24xf32>
    %cst_115 = arith.constant dense<0.000000e+00> : vector<8x10xf32>
    %352 = tpu.matmul %351, %265, %cst_115 {dimension_numbers = #tpu.dot_dimension_numbers<[1], [1], [0], [0], [0, 0, 1, 0], [], []>} : vector<8x24xf32>, vector<10x24xf32>, vector<8x10xf32> -> vector<8x10xf32>
    %cst_116 = arith.constant dense<0xFF800000> : vector<8xf32>
    %353 = vector.multi_reduction <maximumf>, %352, %cst_116 [1] : vector<8x10xf32> to vector<8xf32>
    %354 = vector.shape_cast %353 : vector<8xf32> to vector<8x1xf32>
    %355 = vector.broadcast %354 : vector<8x1xf32> to vector<8x10xf32>
    %356 = arith.subf %352, %355 : vector<8x10xf32>
    %357 = math.exp %356 : vector<8x10xf32>
    %cst_117 = arith.constant dense<0.000000e+00> : vector<8xf32>
    %358 = vector.multi_reduction <add>, %357, %cst_117 [1] : vector<8x10xf32> to vector<8xf32>
    %359 = vector.shape_cast %358 : vector<8xf32> to vector<8x1xf32>
    %360 = tpu.reciprocal %359 {approx = true} : vector<8x1xf32> -> vector<8x1xf32>
    %361 = vector.broadcast %360 : vector<8x1xf32> to vector<8x10xf32>
    %362 = arith.mulf %357, %361 : vector<8x10xf32>
    %363 = vector.broadcast %349 : vector<1x24xf32> to vector<10x24xf32>
    %364 = arith.mulf %268, %363 : vector<10x24xf32>
    %cst_118 = arith.constant dense<0.000000e+00> : vector<8x24xf32>
    %365 = tpu.matmul %362, %364, %cst_118 {dimension_numbers = #tpu.dot_dimension_numbers<[1], [0], [0], [1], [0, 0, 1, 1], [], []>} : vector<8x10xf32>, vector<10x24xf32>, vector<8x24xf32> -> vector<8x24xf32>
    %366 = arith.addf %342, %365 : vector<8x24xf32>
    %c12_i32_119 = arith.constant 12 : i32
    %367 = vector.broadcast %c12_i32_119 : i32 to vector<1x24xi32>
    %368 = arith.cmpi sge, %269, %367 : vector<1x24xi32>
    %c15_i32_120 = arith.constant 15 : i32
    %369 = vector.broadcast %c15_i32_120 : i32 to vector<1x24xi32>
    %370 = arith.cmpi slt, %269, %369 : vector<1x24xi32>
    %371 = arith.andi %368, %370 : vector<1x24xi1>
    %372 = arith.extui %371 : vector<1x24xi1> to vector<1x24xi32>
    %373 = arith.sitofp %372 : vector<1x24xi32> to vector<1x24xf32>
    %374 = vector.broadcast %373 : vector<1x24xf32> to vector<8x24xf32>
    %375 = arith.mulf %262, %374 : vector<8x24xf32>
    %cst_121 = arith.constant dense<0.000000e+00> : vector<8x10xf32>
    %376 = tpu.matmul %375, %265, %cst_121 {dimension_numbers = #tpu.dot_dimension_numbers<[1], [1], [0], [0], [0, 0, 1, 0], [], []>} : vector<8x24xf32>, vector<10x24xf32>, vector<8x10xf32> -> vector<8x10xf32>
    %cst_122 = arith.constant dense<0xFF800000> : vector<8xf32>
    %377 = vector.multi_reduction <maximumf>, %376, %cst_122 [1] : vector<8x10xf32> to vector<8xf32>
    %378 = vector.shape_cast %377 : vector<8xf32> to vector<8x1xf32>
    %379 = vector.broadcast %378 : vector<8x1xf32> to vector<8x10xf32>
    %380 = arith.subf %376, %379 : vector<8x10xf32>
    %381 = math.exp %380 : vector<8x10xf32>
    %cst_123 = arith.constant dense<0.000000e+00> : vector<8xf32>
    %382 = vector.multi_reduction <add>, %381, %cst_123 [1] : vector<8x10xf32> to vector<8xf32>
    %383 = vector.shape_cast %382 : vector<8xf32> to vector<8x1xf32>
    %384 = tpu.reciprocal %383 {approx = true} : vector<8x1xf32> -> vector<8x1xf32>
    %385 = vector.broadcast %384 : vector<8x1xf32> to vector<8x10xf32>
    %386 = arith.mulf %381, %385 : vector<8x10xf32>
    %387 = vector.broadcast %373 : vector<1x24xf32> to vector<10x24xf32>
    %388 = arith.mulf %268, %387 : vector<10x24xf32>
    %cst_124 = arith.constant dense<0.000000e+00> : vector<8x24xf32>
    %389 = tpu.matmul %386, %388, %cst_124 {dimension_numbers = #tpu.dot_dimension_numbers<[1], [0], [0], [1], [0, 0, 1, 1], [], []>} : vector<8x10xf32>, vector<10x24xf32>, vector<8x24xf32> -> vector<8x24xf32>
    %390 = arith.addf %366, %389 : vector<8x24xf32>
    %c15_i32_125 = arith.constant 15 : i32
    %391 = vector.broadcast %c15_i32_125 : i32 to vector<1x24xi32>
    %392 = arith.cmpi sge, %269, %391 : vector<1x24xi32>
    %c18_i32_126 = arith.constant 18 : i32
    %393 = vector.broadcast %c18_i32_126 : i32 to vector<1x24xi32>
    %394 = arith.cmpi slt, %269, %393 : vector<1x24xi32>
    %395 = arith.andi %392, %394 : vector<1x24xi1>
    %396 = arith.extui %395 : vector<1x24xi1> to vector<1x24xi32>
    %397 = arith.sitofp %396 : vector<1x24xi32> to vector<1x24xf32>
    %398 = vector.broadcast %397 : vector<1x24xf32> to vector<8x24xf32>
    %399 = arith.mulf %262, %398 : vector<8x24xf32>
    %cst_127 = arith.constant dense<0.000000e+00> : vector<8x10xf32>
    %400 = tpu.matmul %399, %265, %cst_127 {dimension_numbers = #tpu.dot_dimension_numbers<[1], [1], [0], [0], [0, 0, 1, 0], [], []>} : vector<8x24xf32>, vector<10x24xf32>, vector<8x10xf32> -> vector<8x10xf32>
    %cst_128 = arith.constant dense<0xFF800000> : vector<8xf32>
    %401 = vector.multi_reduction <maximumf>, %400, %cst_128 [1] : vector<8x10xf32> to vector<8xf32>
    %402 = vector.shape_cast %401 : vector<8xf32> to vector<8x1xf32>
    %403 = vector.broadcast %402 : vector<8x1xf32> to vector<8x10xf32>
    %404 = arith.subf %400, %403 : vector<8x10xf32>
    %405 = math.exp %404 : vector<8x10xf32>
    %cst_129 = arith.constant dense<0.000000e+00> : vector<8xf32>
    %406 = vector.multi_reduction <add>, %405, %cst_129 [1] : vector<8x10xf32> to vector<8xf32>
    %407 = vector.shape_cast %406 : vector<8xf32> to vector<8x1xf32>
    %408 = tpu.reciprocal %407 {approx = true} : vector<8x1xf32> -> vector<8x1xf32>
    %409 = vector.broadcast %408 : vector<8x1xf32> to vector<8x10xf32>
    %410 = arith.mulf %405, %409 : vector<8x10xf32>
    %411 = vector.broadcast %397 : vector<1x24xf32> to vector<10x24xf32>
    %412 = arith.mulf %268, %411 : vector<10x24xf32>
    %cst_130 = arith.constant dense<0.000000e+00> : vector<8x24xf32>
    %413 = tpu.matmul %410, %412, %cst_130 {dimension_numbers = #tpu.dot_dimension_numbers<[1], [0], [0], [1], [0, 0, 1, 1], [], []>} : vector<8x10xf32>, vector<10x24xf32>, vector<8x24xf32> -> vector<8x24xf32>
    %414 = arith.addf %390, %413 : vector<8x24xf32>
    %c18_i32_131 = arith.constant 18 : i32
    %415 = vector.broadcast %c18_i32_131 : i32 to vector<1x24xi32>
    %416 = arith.cmpi sge, %269, %415 : vector<1x24xi32>
    %c21_i32_132 = arith.constant 21 : i32
    %417 = vector.broadcast %c21_i32_132 : i32 to vector<1x24xi32>
    %418 = arith.cmpi slt, %269, %417 : vector<1x24xi32>
    %419 = arith.andi %416, %418 : vector<1x24xi1>
    %420 = arith.extui %419 : vector<1x24xi1> to vector<1x24xi32>
    %421 = arith.sitofp %420 : vector<1x24xi32> to vector<1x24xf32>
    %422 = vector.broadcast %421 : vector<1x24xf32> to vector<8x24xf32>
    %423 = arith.mulf %262, %422 : vector<8x24xf32>
    %cst_133 = arith.constant dense<0.000000e+00> : vector<8x10xf32>
    %424 = tpu.matmul %423, %265, %cst_133 {dimension_numbers = #tpu.dot_dimension_numbers<[1], [1], [0], [0], [0, 0, 1, 0], [], []>} : vector<8x24xf32>, vector<10x24xf32>, vector<8x10xf32> -> vector<8x10xf32>
    %cst_134 = arith.constant dense<0xFF800000> : vector<8xf32>
    %425 = vector.multi_reduction <maximumf>, %424, %cst_134 [1] : vector<8x10xf32> to vector<8xf32>
    %426 = vector.shape_cast %425 : vector<8xf32> to vector<8x1xf32>
    %427 = vector.broadcast %426 : vector<8x1xf32> to vector<8x10xf32>
    %428 = arith.subf %424, %427 : vector<8x10xf32>
    %429 = math.exp %428 : vector<8x10xf32>
    %cst_135 = arith.constant dense<0.000000e+00> : vector<8xf32>
    %430 = vector.multi_reduction <add>, %429, %cst_135 [1] : vector<8x10xf32> to vector<8xf32>
    %431 = vector.shape_cast %430 : vector<8xf32> to vector<8x1xf32>
    %432 = tpu.reciprocal %431 {approx = true} : vector<8x1xf32> -> vector<8x1xf32>
    %433 = vector.broadcast %432 : vector<8x1xf32> to vector<8x10xf32>
    %434 = arith.mulf %429, %433 : vector<8x10xf32>
    %435 = vector.broadcast %421 : vector<1x24xf32> to vector<10x24xf32>
    %436 = arith.mulf %268, %435 : vector<10x24xf32>
    %cst_136 = arith.constant dense<0.000000e+00> : vector<8x24xf32>
    %437 = tpu.matmul %434, %436, %cst_136 {dimension_numbers = #tpu.dot_dimension_numbers<[1], [0], [0], [1], [0, 0, 1, 1], [], []>} : vector<8x10xf32>, vector<10x24xf32>, vector<8x24xf32> -> vector<8x24xf32>
    %438 = arith.addf %414, %437 : vector<8x24xf32>
    %c21_i32_137 = arith.constant 21 : i32
    %439 = vector.broadcast %c21_i32_137 : i32 to vector<1x24xi32>
    %440 = arith.cmpi sge, %269, %439 : vector<1x24xi32>
    %c24_i32_138 = arith.constant 24 : i32
    %441 = vector.broadcast %c24_i32_138 : i32 to vector<1x24xi32>
    %442 = arith.cmpi slt, %269, %441 : vector<1x24xi32>
    %443 = arith.andi %440, %442 : vector<1x24xi1>
    %444 = arith.extui %443 : vector<1x24xi1> to vector<1x24xi32>
    %445 = arith.sitofp %444 : vector<1x24xi32> to vector<1x24xf32>
    %446 = vector.broadcast %445 : vector<1x24xf32> to vector<8x24xf32>
    %447 = arith.mulf %262, %446 : vector<8x24xf32>
    %cst_139 = arith.constant dense<0.000000e+00> : vector<8x10xf32>
    %448 = tpu.matmul %447, %265, %cst_139 {dimension_numbers = #tpu.dot_dimension_numbers<[1], [1], [0], [0], [0, 0, 1, 0], [], []>} : vector<8x24xf32>, vector<10x24xf32>, vector<8x10xf32> -> vector<8x10xf32>
    %cst_140 = arith.constant dense<0xFF800000> : vector<8xf32>
    %449 = vector.multi_reduction <maximumf>, %448, %cst_140 [1] : vector<8x10xf32> to vector<8xf32>
    %450 = vector.shape_cast %449 : vector<8xf32> to vector<8x1xf32>
    %451 = vector.broadcast %450 : vector<8x1xf32> to vector<8x10xf32>
    %452 = arith.subf %448, %451 : vector<8x10xf32>
    %453 = math.exp %452 : vector<8x10xf32>
    %cst_141 = arith.constant dense<0.000000e+00> : vector<8xf32>
    %454 = vector.multi_reduction <add>, %453, %cst_141 [1] : vector<8x10xf32> to vector<8xf32>
    %455 = vector.shape_cast %454 : vector<8xf32> to vector<8x1xf32>
    %456 = tpu.reciprocal %455 {approx = true} : vector<8x1xf32> -> vector<8x1xf32>
    %457 = vector.broadcast %456 : vector<8x1xf32> to vector<8x10xf32>
    %458 = arith.mulf %453, %457 : vector<8x10xf32>
    %459 = vector.broadcast %445 : vector<1x24xf32> to vector<10x24xf32>
    %460 = arith.mulf %268, %459 : vector<10x24xf32>
    %cst_142 = arith.constant dense<0.000000e+00> : vector<8x24xf32>
    %461 = tpu.matmul %458, %460, %cst_142 {dimension_numbers = #tpu.dot_dimension_numbers<[1], [0], [0], [1], [0, 0, 1, 1], [], []>} : vector<8x10xf32>, vector<10x24xf32>, vector<8x24xf32> -> vector<8x24xf32>
    %462 = arith.addf %438, %461 : vector<8x24xf32>
    %cst_143 = arith.constant dense<0.000000e+00> : vector<8x24xf32>
    %463 = tpu.matmul %462, %256, %cst_143 {dimension_numbers = #tpu.dot_dimension_numbers<[1], [0], [0], [1], [0, 0, 1, 1], [], []>} : vector<8x24xf32>, vector<24x24xf32>, vector<8x24xf32> -> vector<8x24xf32>
    %464 = vector.broadcast %257 : vector<1x24xf32> to vector<8x24xf32>
    %465 = arith.addf %463, %464 : vector<8x24xf32>
    %466 = arith.addf %249, %465 : vector<8x24xf32>
    %c0_144 = arith.constant 0 : index
    %c0_145 = arith.constant 0 : index
    %467 = vector.load %arg22[%c0_144, %c0_145] : memref<1x24xf32, #tpu.memory_space<vmem>>, vector<1x24xf32>
    %c0_146 = arith.constant 0 : index
    %c0_147 = arith.constant 0 : index
    %468 = vector.load %arg23[%c0_146, %c0_147] : memref<1x24xf32, #tpu.memory_space<vmem>>, vector<1x24xf32>
    %cst_148 = arith.constant dense<0.000000e+00> : vector<8xf32>
    %469 = vector.multi_reduction <add>, %466, %cst_148 [1] : vector<8x24xf32> to vector<8xf32>
    %470 = vector.shape_cast %469 : vector<8xf32> to vector<8x1xf32>
    %cst_149 = arith.constant 2.400000e+01 : f32
    %471 = vector.broadcast %cst_149 : f32 to vector<8x1xf32>
    %472 = arith.divf %470, %471 : vector<8x1xf32>
    %473 = vector.broadcast %472 : vector<8x1xf32> to vector<8x24xf32>
    %474 = arith.subf %466, %473 : vector<8x24xf32>
    %475 = arith.mulf %474, %474 : vector<8x24xf32>
    %cst_150 = arith.constant dense<0.000000e+00> : vector<8xf32>
    %476 = vector.multi_reduction <add>, %475, %cst_150 [1] : vector<8x24xf32> to vector<8xf32>
    %477 = vector.shape_cast %476 : vector<8xf32> to vector<8x1xf32>
    %cst_151 = arith.constant 2.400000e+01 : f32
    %478 = vector.broadcast %cst_151 : f32 to vector<8x1xf32>
    %479 = arith.divf %477, %478 : vector<8x1xf32>
    %cst_152 = arith.constant 9.99999974E-6 : f32
    %480 = vector.broadcast %cst_152 : f32 to vector<8x1xf32>
    %481 = arith.addf %479, %480 : vector<8x1xf32>
    %482 = math.rsqrt %481 : vector<8x1xf32>
    %483 = vector.broadcast %482 : vector<8x1xf32> to vector<8x24xf32>
    %484 = arith.mulf %474, %483 : vector<8x24xf32>
    %485 = vector.broadcast %467 : vector<1x24xf32> to vector<8x24xf32>
    %486 = arith.mulf %484, %485 : vector<8x24xf32>
    %487 = vector.broadcast %468 : vector<1x24xf32> to vector<8x24xf32>
    %488 = arith.addf %486, %487 : vector<8x24xf32>
    %c0_153 = arith.constant 0 : index
    %c0_154 = arith.constant 0 : index
    %489 = vector.load %arg24[%c0_153, %c0_154] : memref<24x128xbf16, #tpu.memory_space<vmem>>, vector<24x128xbf16>
    %c0_155 = arith.constant 0 : index
    %c0_156 = arith.constant 0 : index
    %490 = vector.load %arg25[%c0_155, %c0_156] : memref<1x128xf32, #tpu.memory_space<vmem>>, vector<1x128xf32>
    %c0_157 = arith.constant 0 : index
    %c0_158 = arith.constant 0 : index
    %491 = vector.load %arg26[%c0_157, %c0_158] : memref<128x24xbf16, #tpu.memory_space<vmem>>, vector<128x24xbf16>
    %c0_159 = arith.constant 0 : index
    %c0_160 = arith.constant 0 : index
    %492 = vector.load %arg27[%c0_159, %c0_160] : memref<1x24xf32, #tpu.memory_space<vmem>>, vector<1x24xf32>
    %493 = arith.truncf %488 : vector<8x24xf32> to vector<8x24xbf16>
    %cst_161 = arith.constant dense<0.000000e+00> : vector<8x128xf32>
    %494 = tpu.matmul %493, %489, %cst_161 {dimension_numbers = #tpu.dot_dimension_numbers<[1], [0], [0], [1], [0, 0, 1, 1], [], []>} : vector<8x24xbf16>, vector<24x128xbf16>, vector<8x128xf32> -> vector<8x128xf32>
    %495 = vector.broadcast %490 : vector<1x128xf32> to vector<8x128xf32>
    %496 = arith.addf %494, %495 : vector<8x128xf32>
    %cst_162 = arith.constant 0.000000e+00 : f32
    %497 = vector.broadcast %cst_162 : f32 to vector<8x128xf32>
    %498 = arith.maximumf %496, %497 : vector<8x128xf32>
    %499 = arith.truncf %498 : vector<8x128xf32> to vector<8x128xbf16>
    %cst_163 = arith.constant dense<0.000000e+00> : vector<8x24xf32>
    %500 = tpu.matmul %499, %491, %cst_163 {dimension_numbers = #tpu.dot_dimension_numbers<[1], [0], [0], [1], [0, 0, 1, 1], [], []>} : vector<8x128xbf16>, vector<128x24xbf16>, vector<8x24xf32> -> vector<8x24xf32>
    %501 = vector.broadcast %492 : vector<1x24xf32> to vector<8x24xf32>
    %502 = arith.addf %500, %501 : vector<8x24xf32>
    %503 = arith.addf %488, %502 : vector<8x24xf32>
    %c0_164 = arith.constant 0 : index
    %c0_165 = arith.constant 0 : index
    %504 = vector.load %arg28[%c0_164, %c0_165] : memref<1x24xf32, #tpu.memory_space<vmem>>, vector<1x24xf32>
    %c0_166 = arith.constant 0 : index
    %c0_167 = arith.constant 0 : index
    %505 = vector.load %arg29[%c0_166, %c0_167] : memref<1x24xf32, #tpu.memory_space<vmem>>, vector<1x24xf32>
    %cst_168 = arith.constant dense<0.000000e+00> : vector<8xf32>
    %506 = vector.multi_reduction <add>, %503, %cst_168 [1] : vector<8x24xf32> to vector<8xf32>
    %507 = vector.shape_cast %506 : vector<8xf32> to vector<8x1xf32>
    %cst_169 = arith.constant 2.400000e+01 : f32
    %508 = vector.broadcast %cst_169 : f32 to vector<8x1xf32>
    %509 = arith.divf %507, %508 : vector<8x1xf32>
    %510 = vector.broadcast %509 : vector<8x1xf32> to vector<8x24xf32>
    %511 = arith.subf %503, %510 : vector<8x24xf32>
    %512 = arith.mulf %511, %511 : vector<8x24xf32>
    %cst_170 = arith.constant dense<0.000000e+00> : vector<8xf32>
    %513 = vector.multi_reduction <add>, %512, %cst_170 [1] : vector<8x24xf32> to vector<8xf32>
    %514 = vector.shape_cast %513 : vector<8xf32> to vector<8x1xf32>
    %cst_171 = arith.constant 2.400000e+01 : f32
    %515 = vector.broadcast %cst_171 : f32 to vector<8x1xf32>
    %516 = arith.divf %514, %515 : vector<8x1xf32>
    %cst_172 = arith.constant 9.99999974E-6 : f32
    %517 = vector.broadcast %cst_172 : f32 to vector<8x1xf32>
    %518 = arith.addf %516, %517 : vector<8x1xf32>
    %519 = math.rsqrt %518 : vector<8x1xf32>
    %520 = vector.broadcast %519 : vector<8x1xf32> to vector<8x24xf32>
    %521 = arith.mulf %511, %520 : vector<8x24xf32>
    %522 = vector.broadcast %504 : vector<1x24xf32> to vector<8x24xf32>
    %523 = arith.mulf %521, %522 : vector<8x24xf32>
    %524 = vector.broadcast %505 : vector<1x24xf32> to vector<8x24xf32>
    %525 = arith.addf %523, %524 : vector<8x24xf32>
    %c0_173 = arith.constant 0 : index
    %c0_174 = arith.constant 0 : index
    %526 = vector.load %arg30[%c0_173, %c0_174] : memref<8x24xf32, #tpu.memory_space<vmem>>, vector<8x24xf32>
    tpu.vector_store %arg30[%c0_173, %c0_174], %525 {strides = array<i32>} : memref<8x24xf32, #tpu.memory_space<vmem>>, vector<8x24xf32>,
    return
  }
  func.func @transform_0(%arg0: i32) -> (i32, i32) {
    %c0_i32 = arith.constant 0 : i32
    %c0_i32_0 = arith.constant 0 : i32
    %c0_i32_1 = arith.constant 0 : i32
    return %c0_i32, %c0_i32_0 : i32, i32
  }
  func.func @transform_1(%arg0: i32) -> (i32, i32) {
    %c0_i32 = arith.constant 0 : i32
    %c0_i32_0 = arith.constant 0 : i32
    %c0_i32_1 = arith.constant 0 : i32
    return %c0_i32, %c0_i32_0 : i32, i32
  }
  func.func @transform_2(%arg0: i32) -> (i32, i32) {
    %c0_i32 = arith.constant 0 : i32
    %c0_i32_0 = arith.constant 0 : i32
    %c0_i32_1 = arith.constant 0 : i32
    return %c0_i32, %c0_i32_0 : i32, i32
  }
  func.func @transform_3(%arg0: i32) -> (i32, i32) {
    %c0_i32 = arith.constant 0 : i32
    %c0_i32_0 = arith.constant 0 : i32
    %c0_i32_1 = arith.constant 0 : i32
    return %c0_i32, %c0_i32_0 : i32, i32
  }
  func.func @transform_4(%arg0: i32) -> (i32, i32) {
    %c0_i32 = arith.constant 0 : i32
    %c0_i32_0 = arith.constant 0 : i32
    %c0_i32_1 = arith.constant 0 : i32
    return %c0_i32, %c0_i32_0 : i32, i32
  }
  func.func @transform_5(%arg0: i32) -> (i32, i32) {
    %c0_i32 = arith.constant 0 : i32
    %c0_i32_0 = arith.constant 0 : i32
    %c0_i32_1 = arith.constant 0 : i32
    return %c0_i32, %c0_i32_0 : i32, i32
  }
  func.func @transform_6(%arg0: i32) -> (i32, i32) {
    %c0_i32 = arith.constant 0 : i32
    %c0_i32_0 = arith.constant 0 : i32
    %c0_i32_1 = arith.constant 0 : i32
    return %c0_i32, %c0_i32_0 : i32, i32
  }
  func.func @transform_7(%arg0: i32) -> (i32, i32) {
    %c0_i32 = arith.constant 0 : i32
    %c0_i32_0 = arith.constant 0 : i32
    %c0_i32_1 = arith.constant 0 : i32
    return %c0_i32, %c0_i32_0 : i32, i32
  }
  func.func @transform_8(%arg0: i32) -> (i32, i32) {
    %c0_i32 = arith.constant 0 : i32
    %c0_i32_0 = arith.constant 0 : i32
    %c0_i32_1 = arith.constant 0 : i32
    return %c0_i32, %c0_i32_0 : i32, i32
  }
  func.func @transform_9(%arg0: i32) -> (i32, i32) {
    %c0_i32 = arith.constant 0 : i32
    %c0_i32_0 = arith.constant 0 : i32
    %c0_i32_1 = arith.constant 0 : i32
    return %c0_i32, %c0_i32_0 : i32, i32
  }
  func.func @transform_10(%arg0: i32) -> (i32, i32) {
    %c0_i32 = arith.constant 0 : i32
    %c0_i32_0 = arith.constant 0 : i32
    %c0_i32_1 = arith.constant 0 : i32
    return %c0_i32, %c0_i32_0 : i32, i32
  }
  func.func @transform_11(%arg0: i32) -> (i32, i32) {
    %c0_i32 = arith.constant 0 : i32
    %c0_i32_0 = arith.constant 0 : i32
    %c0_i32_1 = arith.constant 0 : i32
    return %c0_i32, %c0_i32_0 : i32, i32
  }
  func.func @transform_12(%arg0: i32) -> (i32, i32) {
    %c0_i32 = arith.constant 0 : i32
    %c0_i32_0 = arith.constant 0 : i32
    %c0_i32_1 = arith.constant 0 : i32
    return %c0_i32, %c0_i32_0 : i32, i32
  }
  func.func @transform_13(%arg0: i32) -> (i32, i32) {
    %c0_i32 = arith.constant 0 : i32
    %c0_i32_0 = arith.constant 0 : i32
    %c0_i32_1 = arith.constant 0 : i32
    return %c0_i32, %c0_i32_0 : i32, i32
  }
  func.func @transform_14(%arg0: i32) -> (i32, i32) {
    %c0_i32 = arith.constant 0 : i32
    %c0_i32_0 = arith.constant 0 : i32
    %c0_i32_1 = arith.constant 0 : i32
    return %c0_i32, %c0_i32_0 : i32, i32
  }
  func.func @transform_15(%arg0: i32) -> (i32, i32) {
    %c0_i32 = arith.constant 0 : i32
    %c0_i32_0 = arith.constant 0 : i32
    %c0_i32_1 = arith.constant 0 : i32
    return %c0_i32, %c0_i32_0 : i32, i32
  }
  func.func @transform_16(%arg0: i32) -> (i32, i32) {
    %c0_i32 = arith.constant 0 : i32
    %c0_i32_0 = arith.constant 0 : i32
    %c0_i32_1 = arith.constant 0 : i32
    return %c0_i32, %c0_i32_0 : i32, i32
  }
  func.func @transform_17(%arg0: i32) -> (i32, i32) {
    %c0_i32 = arith.constant 0 : i32
    %c0_i32_0 = arith.constant 0 : i32
    %c0_i32_1 = arith.constant 0 : i32
    return %c0_i32, %c0_i32_0 : i32, i32
  }
  func.func @transform_18(%arg0: i32) -> (i32, i32) {
    %c0_i32 = arith.constant 0 : i32
    %c0_i32_0 = arith.constant 0 : i32
    %c0_i32_1 = arith.constant 0 : i32
    return %c0_i32, %c0_i32_0 : i32, i32
  }
  func.func @transform_19(%arg0: i32) -> (i32, i32) {
    %c0_i32 = arith.constant 0 : i32
    %c0_i32_0 = arith.constant 0 : i32
    %c0_i32_1 = arith.constant 0 : i32
    return %c0_i32, %c0_i32_0 : i32, i32
  }
  func.func @transform_20(%arg0: i32) -> (i32, i32) {
    %c0_i32 = arith.constant 0 : i32
    %c0_i32_0 = arith.constant 0 : i32
    %c0_i32_1 = arith.constant 0 : i32
    return %c0_i32, %c0_i32_0 : i32, i32
  }
  func.func @transform_21(%arg0: i32) -> (i32, i32) {
    %c0_i32 = arith.constant 0 : i32
    %c0_i32_0 = arith.constant 0 : i32
    %c0_i32_1 = arith.constant 0 : i32
    return %c0_i32, %c0_i32_0 : i32, i32
  }
  func.func @transform_22(%arg0: i32) -> (i32, i32) {
    %c0_i32 = arith.constant 0 : i32
    %c0_i32_0 = arith.constant 0 : i32
    %c0_i32_1 = arith.constant 0 : i32
    return %c0_i32, %c0_i32_0 : i32, i32
  }
  func.func @transform_23(%arg0: i32) -> (i32, i32) {
    %c0_i32 = arith.constant 0 : i32
    %c0_i32_0 = arith.constant 0 : i32
    %c0_i32_1 = arith.constant 0 : i32
    return %c0_i32, %c0_i32_0 : i32, i32
  }
  func.func @transform_24(%arg0: i32) -> (i32, i32) {
    %c0_i32 = arith.constant 0 : i32
    %c0_i32_0 = arith.constant 0 : i32
    %c0_i32_1 = arith.constant 0 : i32
    return %c0_i32, %c0_i32_0 : i32, i32
  }
  func.func @transform_25(%arg0: i32) -> (i32, i32) {
    %c0_i32 = arith.constant 0 : i32
    %c0_i32_0 = arith.constant 0 : i32
    %c0_i32_1 = arith.constant 0 : i32
    return %c0_i32, %c0_i32_0 : i32, i32
  }
  func.func @transform_26(%arg0: i32) -> (i32, i32) {
    %c0_i32 = arith.constant 0 : i32
    %c0_i32_0 = arith.constant 0 : i32
    %c0_i32_1 = arith.constant 0 : i32
    return %c0_i32, %c0_i32_0 : i32, i32
  }
  func.func @transform_27(%arg0: i32) -> (i32, i32) {
    %c0_i32 = arith.constant 0 : i32
    %c0_i32_0 = arith.constant 0 : i32
    %c0_i32_1 = arith.constant 0 : i32
    return %c0_i32, %c0_i32_0 : i32, i32
  }
  func.func @transform_28(%arg0: i32) -> (i32, i32) {
    %c0_i32 = arith.constant 0 : i32
    %c0_i32_0 = arith.constant 0 : i32
    %c0_i32_1 = arith.constant 0 : i32
    return %c0_i32, %c0_i32_0 : i32, i32
  }
  func.func @transform_29(%arg0: i32) -> (i32, i32) {
    %c0_i32 = arith.constant 0 : i32
    %c0_i32_0 = arith.constant 0 : i32
    %c0_i32_1 = arith.constant 0 : i32
    return %c0_i32, %c0_i32_0 : i32, i32
  }
}

module attributes {stable_mosaic.version = 11 : i64} {
  func.func @_decoder_layer_kernel(%arg0: i32, %arg1: memref<8x24xf32, #tpu.memory_space<vmem>>, %arg2: memref<10x24xf32, #tpu.memory_space<vmem>>, %arg3: memref<8x8xf32, #tpu.memory_space<vmem>>, %arg4: memref<24x24xf32, #tpu.memory_space<vmem>>, %arg5: memref<1x24xf32, #tpu.memory_space<vmem>>, %arg6: memref<24x24xf32, #tpu.memory_space<vmem>>, %arg7: memref<1x24xf32, #tpu.memory_space<vmem>>, %arg8: memref<24x24xf32, #tpu.memory_space<vmem>>, %arg9: memref<1x24xf32, #tpu.memory_space<vmem>>, %arg10: memref<24x24xf32, #tpu.memory_space<vmem>>, %arg11: memref<1x24xf32, #tpu.memory_space<vmem>>, %arg12: memref<1x24xf32, #tpu.memory_space<vmem>>, %arg13: memref<1x24xf32, #tpu.memory_space<vmem>>, %arg14: memref<24x24xf32, #tpu.memory_space<vmem>>, %arg15: memref<1x24xf32, #tpu.memory_space<vmem>>, %arg16: memref<24x24xf32, #tpu.memory_space<vmem>>, %arg17: memref<1x24xf32, #tpu.memory_space<vmem>>, %arg18: memref<24x24xf32, #tpu.memory_space<vmem>>, %arg19: memref<1x24xf32, #tpu.memory_space<vmem>>, %arg20: memref<24x24xf32, #tpu.memory_space<vmem>>, %arg21: memref<1x24xf32, #tpu.memory_space<vmem>>, %arg22: memref<1x24xf32, #tpu.memory_space<vmem>>, %arg23: memref<1x24xf32, #tpu.memory_space<vmem>>, %arg24: memref<24x128xbf16, #tpu.memory_space<vmem>>, %arg25: memref<1x128xf32, #tpu.memory_space<vmem>>, %arg26: memref<128x24xbf16, #tpu.memory_space<vmem>>, %arg27: memref<1x24xf32, #tpu.memory_space<vmem>>, %arg28: memref<1x24xf32, #tpu.memory_space<vmem>>, %arg29: memref<1x24xf32, #tpu.memory_space<vmem>>, %arg30: memref<8x24xf32, #tpu.memory_space<vmem>>) attributes {dimension_semantics = [#tpu.dimension_semantics<arbitrary>], iteration_bounds = array<i64: 1>, scalar_prefetch = 0 : i64, scratch_operands = 0 : i64, tpu.core_type = #tpu.core_type<tc>, window_params = [{pipeline_mode = #tpu.pipeline_mode<synchronous>, transform_indices = @transform_0, window_bounds = array<i64: 8, 24>}, {pipeline_mode = #tpu.pipeline_mode<synchronous>, transform_indices = @transform_1, window_bounds = array<i64: 10, 24>}, {pipeline_mode = #tpu.pipeline_mode<synchronous>, transform_indices = @transform_2, window_bounds = array<i64: 8, 8>}, {pipeline_mode = #tpu.pipeline_mode<synchronous>, transform_indices = @transform_3, window_bounds = array<i64: 24, 24>}, {pipeline_mode = #tpu.pipeline_mode<synchronous>, transform_indices = @transform_4, window_bounds = array<i64: 1, 24>}, {pipeline_mode = #tpu.pipeline_mode<synchronous>, transform_indices = @transform_5, window_bounds = array<i64: 24, 24>}, {pipeline_mode = #tpu.pipeline_mode<synchronous>, transform_indices = @transform_6, window_bounds = array<i64: 1, 24>}, {pipeline_mode = #tpu.pipeline_mode<synchronous>, transform_indices = @transform_7, window_bounds = array<i64: 24, 24>}, {pipeline_mode = #tpu.pipeline_mode<synchronous>, transform_indices = @transform_8, window_bounds = array<i64: 1, 24>}, {pipeline_mode = #tpu.pipeline_mode<synchronous>, transform_indices = @transform_9, window_bounds = array<i64: 24, 24>}, {pipeline_mode = #tpu.pipeline_mode<synchronous>, transform_indices = @transform_10, window_bounds = array<i64: 1, 24>}, {pipeline_mode = #tpu.pipeline_mode<synchronous>, transform_indices = @transform_11, window_bounds = array<i64: 1, 24>}, {pipeline_mode = #tpu.pipeline_mode<synchronous>, transform_indices = @transform_12, window_bounds = array<i64: 1, 24>}, {pipeline_mode = #tpu.pipeline_mode<synchronous>, transform_indices = @transform_13, window_bounds = array<i64: 24, 24>}, {pipeline_mode = #tpu.pipeline_mode<synchronous>, transform_indices = @transform_14, window_bounds = array<i64: 1, 24>}, {pipeline_mode = #tpu.pipeline_mode<synchronous>, transform_indices = @transform_15, window_bounds = array<i64: 24, 24>}, {pipeline_mode = #tpu.pipeline_mode<synchronous>, transform_indices = @transform_16, window_bounds = array<i64: 1, 24>}, {pipeline_mode = #tpu.pipeline_mode<synchronous>, transform_indices = @transform_17, window_bounds = array<i64: 24, 24>}, {pipeline_mode = #tpu.pipeline_mode<synchronous>, transform_indices = @transform_18, window_bounds = array<i64: 1, 24>}, {pipeline_mode = #tpu.pipeline_mode<synchronous>, transform_indices = @transform_19, window_bounds = array<i64: 24, 24>}, {pipeline_mode = #tpu.pipeline_mode<synchronous>, transform_indices = @transform_20, window_bounds = array<i64: 1, 24>}, {pipeline_mode = #tpu.pipeline_mode<synchronous>, transform_indices = @transform_21, window_bounds = array<i64: 1, 24>}, {pipeline_mode = #tpu.pipeline_mode<synchronous>, transform_indices = @transform_22, window_bounds = array<i64: 1, 24>}, {pipeline_mode = #tpu.pipeline_mode<synchronous>, transform_indices = @transform_23, window_bounds = array<i64: 24, 128>}, {pipeline_mode = #tpu.pipeline_mode<synchronous>, transform_indices = @transform_24, window_bounds = array<i64: 1, 128>}, {pipeline_mode = #tpu.pipeline_mode<synchronous>, transform_indices = @transform_25, window_bounds = array<i64: 128, 24>}, {pipeline_mode = #tpu.pipeline_mode<synchronous>, transform_indices = @transform_26, window_bounds = array<i64: 1, 24>}, {pipeline_mode = #tpu.pipeline_mode<synchronous>, transform_indices = @transform_27, window_bounds = array<i64: 1, 24>}, {pipeline_mode = #tpu.pipeline_mode<synchronous>, transform_indices = @transform_28, window_bounds = array<i64: 1, 24>}, {pipeline_mode = #tpu.pipeline_mode<synchronous>, transform_indices = @transform_29, window_bounds = array<i64: 8, 24>}]} {
    %c0 = arith.constant 0 : index
    %c0_0 = arith.constant 0 : index
    %0 = vector.load %arg1[%c0, %c0_0] : memref<8x24xf32, #tpu.memory_space<vmem>>, vector<8x24xf32>
    %c0_1 = arith.constant 0 : index
    %c0_2 = arith.constant 0 : index
    %1 = vector.load %arg2[%c0_1, %c0_2] : memref<10x24xf32, #tpu.memory_space<vmem>>, vector<10x24xf32>
    %c0_3 = arith.constant 0 : index
    %c0_4 = arith.constant 0 : index
    %2 = vector.load %arg4[%c0_3, %c0_4] : memref<24x24xf32, #tpu.memory_space<vmem>>, vector<24x24xf32>
    %c0_5 = arith.constant 0 : index
    %c0_6 = arith.constant 0 : index
    %3 = vector.load %arg5[%c0_5, %c0_6] : memref<1x24xf32, #tpu.memory_space<vmem>>, vector<1x24xf32>
    %c0_7 = arith.constant 0 : index
    %c0_8 = arith.constant 0 : index
    %4 = vector.load %arg6[%c0_7, %c0_8] : memref<24x24xf32, #tpu.memory_space<vmem>>, vector<24x24xf32>
    %c0_9 = arith.constant 0 : index
    %c0_10 = arith.constant 0 : index
    %5 = vector.load %arg7[%c0_9, %c0_10] : memref<1x24xf32, #tpu.memory_space<vmem>>, vector<1x24xf32>
    %c0_11 = arith.constant 0 : index
    %c0_12 = arith.constant 0 : index
    %6 = vector.load %arg8[%c0_11, %c0_12] : memref<24x24xf32, #tpu.memory_space<vmem>>, vector<24x24xf32>
    %c0_13 = arith.constant 0 : index
    %c0_14 = arith.constant 0 : index
    %7 = vector.load %arg9[%c0_13, %c0_14] : memref<1x24xf32, #tpu.memory_space<vmem>>, vector<1x24xf32>
    %c0_15 = arith.constant 0 : index
    %c0_16 = arith.constant 0 : index
    %8 = vector.load %arg10[%c0_15, %c0_16] : memref<24x24xf32, #tpu.memory_space<vmem>>, vector<24x24xf32>
    %c0_17 = arith.constant 0 : index
    %c0_18 = arith.constant 0 : index
    %9 = vector.load %arg11[%c0_17, %c0_18] : memref<1x24xf32, #tpu.memory_space<vmem>>, vector<1x24xf32>
    %c0_19 = arith.constant 0 : index
    %c0_20 = arith.constant 0 : index
    %10 = vector.load %arg3[%c0_19, %c0_20] : memref<8x8xf32, #tpu.memory_space<vmem>>, vector<8x8xf32>
    %cst = arith.constant dense<0.000000e+00> : vector<8x24xf32>
    %11 = tpu.matmul %0, %2, %cst {dimension_numbers = #tpu.dot_dimension_numbers<[1], [0], [0], [1], [0, 0, 1, 1], [], []>} : vector<8x24xf32>, vector<24x24xf32>, vector<8x24xf32> -> vector<8x24xf32>
    %12 = vector.broadcast %3 : vector<1x24xf32> to vector<8x24xf32>
    %13 = arith.addf %11, %12 : vector<8x24xf32>
    %cst_21 = arith.constant 0.577350259 : f32
    %14 = vector.broadcast %cst_21 : f32 to vector<8x24xf32>
    %15 = arith.mulf %13, %14 : vector<8x24xf32>
    %cst_22 = arith.constant dense<0.000000e+00> : vector<8x24xf32>
    %16 = tpu.matmul %0, %4, %cst_22 {dimension_numbers = #tpu.dot_dimension_numbers<[1], [0], [0], [1], [0, 0, 1, 1], [], []>} : vector<8x24xf32>, vector<24x24xf32>, vector<8x24xf32> -> vector<8x24xf32>
    %17 = vector.broadcast %5 : vector<1x24xf32> to vector<8x24xf32>
    %18 = arith.addf %16, %17 : vector<8x24xf32>
    %cst_23 = arith.constant dense<0.000000e+00> : vector<8x24xf32>
    %19 = tpu.matmul %0, %6, %cst_23 {dimension_numbers = #tpu.dot_dimension_numbers<[1], [0], [0], [1], [0, 0, 1, 1], [], []>} : vector<8x24xf32>, vector<24x24xf32>, vector<8x24xf32> -> vector<8x24xf32>
    %20 = vector.broadcast %7 : vector<1x24xf32> to vector<8x24xf32>
    %21 = arith.addf %19, %20 : vector<8x24xf32>
    %22 = tpu.iota {dimensions = array<i32: 1>} : vector<1x24xi32>
    %cst_24 = arith.constant 0.000000e+00 : f32
    %23 = vector.broadcast %cst_24 : f32 to vector<8x24xf32>
    %c0_i32 = arith.constant 0 : i32
    %24 = vector.broadcast %c0_i32 : i32 to vector<1x24xi32>
    %25 = arith.cmpi sge, %22, %24 : vector<1x24xi32>
    %c3_i32 = arith.constant 3 : i32
    %26 = vector.broadcast %c3_i32 : i32 to vector<1x24xi32>
    %27 = arith.cmpi slt, %22, %26 : vector<1x24xi32>
    %28 = arith.andi %25, %27 : vector<1x24xi1>
    %29 = arith.extui %28 : vector<1x24xi1> to vector<1x24xi32>
    %30 = arith.sitofp %29 : vector<1x24xi32> to vector<1x24xf32>
    %31 = vector.broadcast %30 : vector<1x24xf32> to vector<8x24xf32>
    %32 = arith.mulf %15, %31 : vector<8x24xf32>
    %cst_25 = arith.constant dense<0.000000e+00> : vector<8x8xf32>
    %33 = tpu.matmul %32, %18, %cst_25 {dimension_numbers = #tpu.dot_dimension_numbers<[1], [1], [0], [0], [0, 0, 1, 0], [], []>} : vector<8x24xf32>, vector<8x24xf32>, vector<8x8xf32> -> vector<8x8xf32>
    %34 = arith.addf %33, %10 : vector<8x8xf32>
    %cst_26 = arith.constant dense<0xFF800000> : vector<8xf32>
    %35 = vector.multi_reduction <maximumf>, %34, %cst_26 [1] : vector<8x8xf32> to vector<8xf32>
    %36 = vector.shape_cast %35 : vector<8xf32> to vector<8x1xf32>
    %37 = vector.broadcast %36 : vector<8x1xf32> to vector<8x8xf32>
    %38 = arith.subf %34, %37 : vector<8x8xf32>
    %39 = math.exp %38 : vector<8x8xf32>
    %cst_27 = arith.constant dense<0.000000e+00> : vector<8xf32>
    %40 = vector.multi_reduction <add>, %39, %cst_27 [1] : vector<8x8xf32> to vector<8xf32>
    %41 = vector.shape_cast %40 : vector<8xf32> to vector<8x1xf32>
    %42 = tpu.reciprocal %41 {approx = true} : vector<8x1xf32> -> vector<8x1xf32>
    %43 = vector.broadcast %42 : vector<8x1xf32> to vector<8x8xf32>
    %44 = arith.mulf %39, %43 : vector<8x8xf32>
    %45 = vector.broadcast %30 : vector<1x24xf32> to vector<8x24xf32>
    %46 = arith.mulf %21, %45 : vector<8x24xf32>
    %cst_28 = arith.constant dense<0.000000e+00> : vector<8x24xf32>
    %47 = tpu.matmul %44, %46, %cst_28 {dimension_numbers = #tpu.dot_dimension_numbers<[1], [0], [0], [1], [0, 0, 1, 1], [], []>} : vector<8x8xf32>, vector<8x24xf32>, vector<8x24xf32> -> vector<8x24xf32>
    %48 = arith.addf %23, %47 : vector<8x24xf32>
    %c3_i32_29 = arith.constant 3 : i32
    %49 = vector.broadcast %c3_i32_29 : i32 to vector<1x24xi32>
    %50 = arith.cmpi sge, %22, %49 : vector<1x24xi32>
    %c6_i32 = arith.constant 6 : i32
    %51 = vector.broadcast %c6_i32 : i32 to vector<1x24xi32>
    %52 = arith.cmpi slt, %22, %51 : vector<1x24xi32>
    %53 = arith.andi %50, %52 : vector<1x24xi1>
    %54 = arith.extui %53 : vector<1x24xi1> to vector<1x24xi32>
    %55 = arith.sitofp %54 : vector<1x24xi32> to vector<1x24xf32>
    %56 = vector.broadcast %55 : vector<1x24xf32> to vector<8x24xf32>
    %57 = arith.mulf %15, %56 : vector<8x24xf32>
    %cst_30 = arith.constant dense<0.000000e+00> : vector<8x8xf32>
    %58 = tpu.matmul %57, %18, %cst_30 {dimension_numbers = #tpu.dot_dimension_numbers<[1], [1], [0], [0], [0, 0, 1, 0], [], []>} : vector<8x24xf32>, vector<8x24xf32>, vector<8x8xf32> -> vector<8x8xf32>
    %59 = arith.addf %58, %10 : vector<8x8xf32>
    %cst_31 = arith.constant dense<0xFF800000> : vector<8xf32>
    %60 = vector.multi_reduction <maximumf>, %59, %cst_31 [1] : vector<8x8xf32> to vector<8xf32>
    %61 = vector.shape_cast %60 : vector<8xf32> to vector<8x1xf32>
    %62 = vector.broadcast %61 : vector<8x1xf32> to vector<8x8xf32>
    %63 = arith.subf %59, %62 : vector<8x8xf32>
    %64 = math.exp %63 : vector<8x8xf32>
    %cst_32 = arith.constant dense<0.000000e+00> : vector<8xf32>
    %65 = vector.multi_reduction <add>, %64, %cst_32 [1] : vector<8x8xf32> to vector<8xf32>
    %66 = vector.shape_cast %65 : vector<8xf32> to vector<8x1xf32>
    %67 = tpu.reciprocal %66 {approx = true} : vector<8x1xf32> -> vector<8x1xf32>
    %68 = vector.broadcast %67 : vector<8x1xf32> to vector<8x8xf32>
    %69 = arith.mulf %64, %68 : vector<8x8xf32>
    %70 = vector.broadcast %55 : vector<1x24xf32> to vector<8x24xf32>
    %71 = arith.mulf %21, %70 : vector<8x24xf32>
    %cst_33 = arith.constant dense<0.000000e+00> : vector<8x24xf32>
    %72 = tpu.matmul %69, %71, %cst_33 {dimension_numbers = #tpu.dot_dimension_numbers<[1], [0], [0], [1], [0, 0, 1, 1], [], []>} : vector<8x8xf32>, vector<8x24xf32>, vector<8x24xf32> -> vector<8x24xf32>
    %73 = arith.addf %48, %72 : vector<8x24xf32>
    %c6_i32_34 = arith.constant 6 : i32
    %74 = vector.broadcast %c6_i32_34 : i32 to vector<1x24xi32>
    %75 = arith.cmpi sge, %22, %74 : vector<1x24xi32>
    %c9_i32 = arith.constant 9 : i32
    %76 = vector.broadcast %c9_i32 : i32 to vector<1x24xi32>
    %77 = arith.cmpi slt, %22, %76 : vector<1x24xi32>
    %78 = arith.andi %75, %77 : vector<1x24xi1>
    %79 = arith.extui %78 : vector<1x24xi1> to vector<1x24xi32>
    %80 = arith.sitofp %79 : vector<1x24xi32> to vector<1x24xf32>
    %81 = vector.broadcast %80 : vector<1x24xf32> to vector<8x24xf32>
    %82 = arith.mulf %15, %81 : vector<8x24xf32>
    %cst_35 = arith.constant dense<0.000000e+00> : vector<8x8xf32>
    %83 = tpu.matmul %82, %18, %cst_35 {dimension_numbers = #tpu.dot_dimension_numbers<[1], [1], [0], [0], [0, 0, 1, 0], [], []>} : vector<8x24xf32>, vector<8x24xf32>, vector<8x8xf32> -> vector<8x8xf32>
    %84 = arith.addf %83, %10 : vector<8x8xf32>
    %cst_36 = arith.constant dense<0xFF800000> : vector<8xf32>
    %85 = vector.multi_reduction <maximumf>, %84, %cst_36 [1] : vector<8x8xf32> to vector<8xf32>
    %86 = vector.shape_cast %85 : vector<8xf32> to vector<8x1xf32>
    %87 = vector.broadcast %86 : vector<8x1xf32> to vector<8x8xf32>
    %88 = arith.subf %84, %87 : vector<8x8xf32>
    %89 = math.exp %88 : vector<8x8xf32>
    %cst_37 = arith.constant dense<0.000000e+00> : vector<8xf32>
    %90 = vector.multi_reduction <add>, %89, %cst_37 [1] : vector<8x8xf32> to vector<8xf32>
    %91 = vector.shape_cast %90 : vector<8xf32> to vector<8x1xf32>
    %92 = tpu.reciprocal %91 {approx = true} : vector<8x1xf32> -> vector<8x1xf32>
    %93 = vector.broadcast %92 : vector<8x1xf32> to vector<8x8xf32>
    %94 = arith.mulf %89, %93 : vector<8x8xf32>
    %95 = vector.broadcast %80 : vector<1x24xf32> to vector<8x24xf32>
    %96 = arith.mulf %21, %95 : vector<8x24xf32>
    %cst_38 = arith.constant dense<0.000000e+00> : vector<8x24xf32>
    %97 = tpu.matmul %94, %96, %cst_38 {dimension_numbers = #tpu.dot_dimension_numbers<[1], [0], [0], [1], [0, 0, 1, 1], [], []>} : vector<8x8xf32>, vector<8x24xf32>, vector<8x24xf32> -> vector<8x24xf32>
    %98 = arith.addf %73, %97 : vector<8x24xf32>
    %c9_i32_39 = arith.constant 9 : i32
    %99 = vector.broadcast %c9_i32_39 : i32 to vector<1x24xi32>
    %100 = arith.cmpi sge, %22, %99 : vector<1x24xi32>
    %c12_i32 = arith.constant 12 : i32
    %101 = vector.broadcast %c12_i32 : i32 to vector<1x24xi32>
    %102 = arith.cmpi slt, %22, %101 : vector<1x24xi32>
    %103 = arith.andi %100, %102 : vector<1x24xi1>
    %104 = arith.extui %103 : vector<1x24xi1> to vector<1x24xi32>
    %105 = arith.sitofp %104 : vector<1x24xi32> to vector<1x24xf32>
    %106 = vector.broadcast %105 : vector<1x24xf32> to vector<8x24xf32>
    %107 = arith.mulf %15, %106 : vector<8x24xf32>
    %cst_40 = arith.constant dense<0.000000e+00> : vector<8x8xf32>
    %108 = tpu.matmul %107, %18, %cst_40 {dimension_numbers = #tpu.dot_dimension_numbers<[1], [1], [0], [0], [0, 0, 1, 0], [], []>} : vector<8x24xf32>, vector<8x24xf32>, vector<8x8xf32> -> vector<8x8xf32>
    %109 = arith.addf %108, %10 : vector<8x8xf32>
    %cst_41 = arith.constant dense<0xFF800000> : vector<8xf32>
    %110 = vector.multi_reduction <maximumf>, %109, %cst_41 [1] : vector<8x8xf32> to vector<8xf32>
    %111 = vector.shape_cast %110 : vector<8xf32> to vector<8x1xf32>
    %112 = vector.broadcast %111 : vector<8x1xf32> to vector<8x8xf32>
    %113 = arith.subf %109, %112 : vector<8x8xf32>
    %114 = math.exp %113 : vector<8x8xf32>
    %cst_42 = arith.constant dense<0.000000e+00> : vector<8xf32>
    %115 = vector.multi_reduction <add>, %114, %cst_42 [1] : vector<8x8xf32> to vector<8xf32>
    %116 = vector.shape_cast %115 : vector<8xf32> to vector<8x1xf32>
    %117 = tpu.reciprocal %116 {approx = true} : vector<8x1xf32> -> vector<8x1xf32>
    %118 = vector.broadcast %117 : vector<8x1xf32> to vector<8x8xf32>
    %119 = arith.mulf %114, %118 : vector<8x8xf32>
    %120 = vector.broadcast %105 : vector<1x24xf32> to vector<8x24xf32>
    %121 = arith.mulf %21, %120 : vector<8x24xf32>
    %cst_43 = arith.constant dense<0.000000e+00> : vector<8x24xf32>
    %122 = tpu.matmul %119, %121, %cst_43 {dimension_numbers = #tpu.dot_dimension_numbers<[1], [0], [0], [1], [0, 0, 1, 1], [], []>} : vector<8x8xf32>, vector<8x24xf32>, vector<8x24xf32> -> vector<8x24xf32>
    %123 = arith.addf %98, %122 : vector<8x24xf32>
    %c12_i32_44 = arith.constant 12 : i32
    %124 = vector.broadcast %c12_i32_44 : i32 to vector<1x24xi32>
    %125 = arith.cmpi sge, %22, %124 : vector<1x24xi32>
    %c15_i32 = arith.constant 15 : i32
    %126 = vector.broadcast %c15_i32 : i32 to vector<1x24xi32>
    %127 = arith.cmpi slt, %22, %126 : vector<1x24xi32>
    %128 = arith.andi %125, %127 : vector<1x24xi1>
    %129 = arith.extui %128 : vector<1x24xi1> to vector<1x24xi32>
    %130 = arith.sitofp %129 : vector<1x24xi32> to vector<1x24xf32>
    %131 = vector.broadcast %130 : vector<1x24xf32> to vector<8x24xf32>
    %132 = arith.mulf %15, %131 : vector<8x24xf32>
    %cst_45 = arith.constant dense<0.000000e+00> : vector<8x8xf32>
    %133 = tpu.matmul %132, %18, %cst_45 {dimension_numbers = #tpu.dot_dimension_numbers<[1], [1], [0], [0], [0, 0, 1, 0], [], []>} : vector<8x24xf32>, vector<8x24xf32>, vector<8x8xf32> -> vector<8x8xf32>
    %134 = arith.addf %133, %10 : vector<8x8xf32>
    %cst_46 = arith.constant dense<0xFF800000> : vector<8xf32>
    %135 = vector.multi_reduction <maximumf>, %134, %cst_46 [1] : vector<8x8xf32> to vector<8xf32>
    %136 = vector.shape_cast %135 : vector<8xf32> to vector<8x1xf32>
    %137 = vector.broadcast %136 : vector<8x1xf32> to vector<8x8xf32>
    %138 = arith.subf %134, %137 : vector<8x8xf32>
    %139 = math.exp %138 : vector<8x8xf32>
    %cst_47 = arith.constant dense<0.000000e+00> : vector<8xf32>
    %140 = vector.multi_reduction <add>, %139, %cst_47 [1] : vector<8x8xf32> to vector<8xf32>
    %141 = vector.shape_cast %140 : vector<8xf32> to vector<8x1xf32>
    %142 = tpu.reciprocal %141 {approx = true} : vector<8x1xf32> -> vector<8x1xf32>
    %143 = vector.broadcast %142 : vector<8x1xf32> to vector<8x8xf32>
    %144 = arith.mulf %139, %143 : vector<8x8xf32>
    %145 = vector.broadcast %130 : vector<1x24xf32> to vector<8x24xf32>
    %146 = arith.mulf %21, %145 : vector<8x24xf32>
    %cst_48 = arith.constant dense<0.000000e+00> : vector<8x24xf32>
    %147 = tpu.matmul %144, %146, %cst_48 {dimension_numbers = #tpu.dot_dimension_numbers<[1], [0], [0], [1], [0, 0, 1, 1], [], []>} : vector<8x8xf32>, vector<8x24xf32>, vector<8x24xf32> -> vector<8x24xf32>
    %148 = arith.addf %123, %147 : vector<8x24xf32>
    %c15_i32_49 = arith.constant 15 : i32
    %149 = vector.broadcast %c15_i32_49 : i32 to vector<1x24xi32>
    %150 = arith.cmpi sge, %22, %149 : vector<1x24xi32>
    %c18_i32 = arith.constant 18 : i32
    %151 = vector.broadcast %c18_i32 : i32 to vector<1x24xi32>
    %152 = arith.cmpi slt, %22, %151 : vector<1x24xi32>
    %153 = arith.andi %150, %152 : vector<1x24xi1>
    %154 = arith.extui %153 : vector<1x24xi1> to vector<1x24xi32>
    %155 = arith.sitofp %154 : vector<1x24xi32> to vector<1x24xf32>
    %156 = vector.broadcast %155 : vector<1x24xf32> to vector<8x24xf32>
    %157 = arith.mulf %15, %156 : vector<8x24xf32>
    %cst_50 = arith.constant dense<0.000000e+00> : vector<8x8xf32>
    %158 = tpu.matmul %157, %18, %cst_50 {dimension_numbers = #tpu.dot_dimension_numbers<[1], [1], [0], [0], [0, 0, 1, 0], [], []>} : vector<8x24xf32>, vector<8x24xf32>, vector<8x8xf32> -> vector<8x8xf32>
    %159 = arith.addf %158, %10 : vector<8x8xf32>
    %cst_51 = arith.constant dense<0xFF800000> : vector<8xf32>
    %160 = vector.multi_reduction <maximumf>, %159, %cst_51 [1] : vector<8x8xf32> to vector<8xf32>
    %161 = vector.shape_cast %160 : vector<8xf32> to vector<8x1xf32>
    %162 = vector.broadcast %161 : vector<8x1xf32> to vector<8x8xf32>
    %163 = arith.subf %159, %162 : vector<8x8xf32>
    %164 = math.exp %163 : vector<8x8xf32>
    %cst_52 = arith.constant dense<0.000000e+00> : vector<8xf32>
    %165 = vector.multi_reduction <add>, %164, %cst_52 [1] : vector<8x8xf32> to vector<8xf32>
    %166 = vector.shape_cast %165 : vector<8xf32> to vector<8x1xf32>
    %167 = tpu.reciprocal %166 {approx = true} : vector<8x1xf32> -> vector<8x1xf32>
    %168 = vector.broadcast %167 : vector<8x1xf32> to vector<8x8xf32>
    %169 = arith.mulf %164, %168 : vector<8x8xf32>
    %170 = vector.broadcast %155 : vector<1x24xf32> to vector<8x24xf32>
    %171 = arith.mulf %21, %170 : vector<8x24xf32>
    %cst_53 = arith.constant dense<0.000000e+00> : vector<8x24xf32>
    %172 = tpu.matmul %169, %171, %cst_53 {dimension_numbers = #tpu.dot_dimension_numbers<[1], [0], [0], [1], [0, 0, 1, 1], [], []>} : vector<8x8xf32>, vector<8x24xf32>, vector<8x24xf32> -> vector<8x24xf32>
    %173 = arith.addf %148, %172 : vector<8x24xf32>
    %c18_i32_54 = arith.constant 18 : i32
    %174 = vector.broadcast %c18_i32_54 : i32 to vector<1x24xi32>
    %175 = arith.cmpi sge, %22, %174 : vector<1x24xi32>
    %c21_i32 = arith.constant 21 : i32
    %176 = vector.broadcast %c21_i32 : i32 to vector<1x24xi32>
    %177 = arith.cmpi slt, %22, %176 : vector<1x24xi32>
    %178 = arith.andi %175, %177 : vector<1x24xi1>
    %179 = arith.extui %178 : vector<1x24xi1> to vector<1x24xi32>
    %180 = arith.sitofp %179 : vector<1x24xi32> to vector<1x24xf32>
    %181 = vector.broadcast %180 : vector<1x24xf32> to vector<8x24xf32>
    %182 = arith.mulf %15, %181 : vector<8x24xf32>
    %cst_55 = arith.constant dense<0.000000e+00> : vector<8x8xf32>
    %183 = tpu.matmul %182, %18, %cst_55 {dimension_numbers = #tpu.dot_dimension_numbers<[1], [1], [0], [0], [0, 0, 1, 0], [], []>} : vector<8x24xf32>, vector<8x24xf32>, vector<8x8xf32> -> vector<8x8xf32>
    %184 = arith.addf %183, %10 : vector<8x8xf32>
    %cst_56 = arith.constant dense<0xFF800000> : vector<8xf32>
    %185 = vector.multi_reduction <maximumf>, %184, %cst_56 [1] : vector<8x8xf32> to vector<8xf32>
    %186 = vector.shape_cast %185 : vector<8xf32> to vector<8x1xf32>
    %187 = vector.broadcast %186 : vector<8x1xf32> to vector<8x8xf32>
    %188 = arith.subf %184, %187 : vector<8x8xf32>
    %189 = math.exp %188 : vector<8x8xf32>
    %cst_57 = arith.constant dense<0.000000e+00> : vector<8xf32>
    %190 = vector.multi_reduction <add>, %189, %cst_57 [1] : vector<8x8xf32> to vector<8xf32>
    %191 = vector.shape_cast %190 : vector<8xf32> to vector<8x1xf32>
    %192 = tpu.reciprocal %191 {approx = true} : vector<8x1xf32> -> vector<8x1xf32>
    %193 = vector.broadcast %192 : vector<8x1xf32> to vector<8x8xf32>
    %194 = arith.mulf %189, %193 : vector<8x8xf32>
    %195 = vector.broadcast %180 : vector<1x24xf32> to vector<8x24xf32>
    %196 = arith.mulf %21, %195 : vector<8x24xf32>
    %cst_58 = arith.constant dense<0.000000e+00> : vector<8x24xf32>
    %197 = tpu.matmul %194, %196, %cst_58 {dimension_numbers = #tpu.dot_dimension_numbers<[1], [0], [0], [1], [0, 0, 1, 1], [], []>} : vector<8x8xf32>, vector<8x24xf32>, vector<8x24xf32> -> vector<8x24xf32>
    %198 = arith.addf %173, %197 : vector<8x24xf32>
    %c21_i32_59 = arith.constant 21 : i32
    %199 = vector.broadcast %c21_i32_59 : i32 to vector<1x24xi32>
    %200 = arith.cmpi sge, %22, %199 : vector<1x24xi32>
    %c24_i32 = arith.constant 24 : i32
    %201 = vector.broadcast %c24_i32 : i32 to vector<1x24xi32>
    %202 = arith.cmpi slt, %22, %201 : vector<1x24xi32>
    %203 = arith.andi %200, %202 : vector<1x24xi1>
    %204 = arith.extui %203 : vector<1x24xi1> to vector<1x24xi32>
    %205 = arith.sitofp %204 : vector<1x24xi32> to vector<1x24xf32>
    %206 = vector.broadcast %205 : vector<1x24xf32> to vector<8x24xf32>
    %207 = arith.mulf %15, %206 : vector<8x24xf32>
    %cst_60 = arith.constant dense<0.000000e+00> : vector<8x8xf32>
    %208 = tpu.matmul %207, %18, %cst_60 {dimension_numbers = #tpu.dot_dimension_numbers<[1], [1], [0], [0], [0, 0, 1, 0], [], []>} : vector<8x24xf32>, vector<8x24xf32>, vector<8x8xf32> -> vector<8x8xf32>
    %209 = arith.addf %208, %10 : vector<8x8xf32>
    %cst_61 = arith.constant dense<0xFF800000> : vector<8xf32>
    %210 = vector.multi_reduction <maximumf>, %209, %cst_61 [1] : vector<8x8xf32> to vector<8xf32>
    %211 = vector.shape_cast %210 : vector<8xf32> to vector<8x1xf32>
    %212 = vector.broadcast %211 : vector<8x1xf32> to vector<8x8xf32>
    %213 = arith.subf %209, %212 : vector<8x8xf32>
    %214 = math.exp %213 : vector<8x8xf32>
    %cst_62 = arith.constant dense<0.000000e+00> : vector<8xf32>
    %215 = vector.multi_reduction <add>, %214, %cst_62 [1] : vector<8x8xf32> to vector<8xf32>
    %216 = vector.shape_cast %215 : vector<8xf32> to vector<8x1xf32>
    %217 = tpu.reciprocal %216 {approx = true} : vector<8x1xf32> -> vector<8x1xf32>
    %218 = vector.broadcast %217 : vector<8x1xf32> to vector<8x8xf32>
    %219 = arith.mulf %214, %218 : vector<8x8xf32>
    %220 = vector.broadcast %205 : vector<1x24xf32> to vector<8x24xf32>
    %221 = arith.mulf %21, %220 : vector<8x24xf32>
    %cst_63 = arith.constant dense<0.000000e+00> : vector<8x24xf32>
    %222 = tpu.matmul %219, %221, %cst_63 {dimension_numbers = #tpu.dot_dimension_numbers<[1], [0], [0], [1], [0, 0, 1, 1], [], []>} : vector<8x8xf32>, vector<8x24xf32>, vector<8x24xf32> -> vector<8x24xf32>
    %223 = arith.addf %198, %222 : vector<8x24xf32>
    %cst_64 = arith.constant dense<0.000000e+00> : vector<8x24xf32>
    %224 = tpu.matmul %223, %8, %cst_64 {dimension_numbers = #tpu.dot_dimension_numbers<[1], [0], [0], [1], [0, 0, 1, 1], [], []>} : vector<8x24xf32>, vector<24x24xf32>, vector<8x24xf32> -> vector<8x24xf32>
    %225 = vector.broadcast %9 : vector<1x24xf32> to vector<8x24xf32>
    %226 = arith.addf %224, %225 : vector<8x24xf32>
    %227 = arith.addf %0, %226 : vector<8x24xf32>
    %c0_65 = arith.constant 0 : index
    %c0_66 = arith.constant 0 : index
    %228 = vector.load %arg12[%c0_65, %c0_66] : memref<1x24xf32, #tpu.memory_space<vmem>>, vector<1x24xf32>
    %c0_67 = arith.constant 0 : index
    %c0_68 = arith.constant 0 : index
    %229 = vector.load %arg13[%c0_67, %c0_68] : memref<1x24xf32, #tpu.memory_space<vmem>>, vector<1x24xf32>
    %cst_69 = arith.constant dense<0.000000e+00> : vector<8xf32>
    %230 = vector.multi_reduction <add>, %227, %cst_69 [1] : vector<8x24xf32> to vector<8xf32>
    %231 = vector.shape_cast %230 : vector<8xf32> to vector<8x1xf32>
    %cst_70 = arith.constant 2.400000e+01 : f32
    %232 = vector.broadcast %cst_70 : f32 to vector<8x1xf32>
    %233 = arith.divf %231, %232 : vector<8x1xf32>
    %234 = vector.broadcast %233 : vector<8x1xf32> to vector<8x24xf32>
    %235 = arith.subf %227, %234 : vector<8x24xf32>
    %236 = arith.mulf %235, %235 : vector<8x24xf32>
    %cst_71 = arith.constant dense<0.000000e+00> : vector<8xf32>
    %237 = vector.multi_reduction <add>, %236, %cst_71 [1] : vector<8x24xf32> to vector<8xf32>
    %238 = vector.shape_cast %237 : vector<8xf32> to vector<8x1xf32>
    %cst_72 = arith.constant 2.400000e+01 : f32
    %239 = vector.broadcast %cst_72 : f32 to vector<8x1xf32>
    %240 = arith.divf %238, %239 : vector<8x1xf32>
    %cst_73 = arith.constant 9.99999974E-6 : f32
    %241 = vector.broadcast %cst_73 : f32 to vector<8x1xf32>
    %242 = arith.addf %240, %241 : vector<8x1xf32>
    %243 = math.rsqrt %242 : vector<8x1xf32>
    %244 = vector.broadcast %243 : vector<8x1xf32> to vector<8x24xf32>
    %245 = arith.mulf %235, %244 : vector<8x24xf32>
    %246 = vector.broadcast %228 : vector<1x24xf32> to vector<8x24xf32>
    %247 = arith.mulf %245, %246 : vector<8x24xf32>
    %248 = vector.broadcast %229 : vector<1x24xf32> to vector<8x24xf32>
    %249 = arith.addf %247, %248 : vector<8x24xf32>
    %c0_74 = arith.constant 0 : index
    %c0_75 = arith.constant 0 : index
    %250 = vector.load %arg14[%c0_74, %c0_75] : memref<24x24xf32, #tpu.memory_space<vmem>>, vector<24x24xf32>
    %c0_76 = arith.constant 0 : index
    %c0_77 = arith.constant 0 : index
    %251 = vector.load %arg15[%c0_76, %c0_77] : memref<1x24xf32, #tpu.memory_space<vmem>>, vector<1x24xf32>
    %c0_78 = arith.constant 0 : index
    %c0_79 = arith.constant 0 : index
    %252 = vector.load %arg16[%c0_78, %c0_79] : memref<24x24xf32, #tpu.memory_space<vmem>>, vector<24x24xf32>
    %c0_80 = arith.constant 0 : index
    %c0_81 = arith.constant 0 : index
    %253 = vector.load %arg17[%c0_80, %c0_81] : memref<1x24xf32, #tpu.memory_space<vmem>>, vector<1x24xf32>
    %c0_82 = arith.constant 0 : index
    %c0_83 = arith.constant 0 : index
    %254 = vector.load %arg18[%c0_82, %c0_83] : memref<24x24xf32, #tpu.memory_space<vmem>>, vector<24x24xf32>
    %c0_84 = arith.constant 0 : index
    %c0_85 = arith.constant 0 : index
    %255 = vector.load %arg19[%c0_84, %c0_85] : memref<1x24xf32, #tpu.memory_space<vmem>>, vector<1x24xf32>
    %c0_86 = arith.constant 0 : index
    %c0_87 = arith.constant 0 : index
    %256 = vector.load %arg20[%c0_86, %c0_87] : memref<24x24xf32, #tpu.memory_space<vmem>>, vector<24x24xf32>
    %c0_88 = arith.constant 0 : index
    %c0_89 = arith.constant 0 : index
    %257 = vector.load %arg21[%c0_88, %c0_89] : memref<1x24xf32, #tpu.memory_space<vmem>>, vector<1x24xf32>
    %cst_90 = arith.constant dense<0.000000e+00> : vector<8x24xf32>
    %258 = tpu.matmul %249, %250, %cst_90 {dimension_numbers = #tpu.dot_dimension_numbers<[1], [0], [0], [1], [0, 0, 1, 1], [], []>} : vector<8x24xf32>, vector<24x24xf32>, vector<8x24xf32> -> vector<8x24xf32>
    %259 = vector.broadcast %251 : vector<1x24xf32> to vector<8x24xf32>
    %260 = arith.addf %258, %259 : vector<8x24xf32>
    %cst_91 = arith.constant 0.577350259 : f32
    %261 = vector.broadcast %cst_91 : f32 to vector<8x24xf32>
    %262 = arith.mulf %260, %261 : vector<8x24xf32>
    %cst_92 = arith.constant dense<0.000000e+00> : vector<10x24xf32>
    %263 = tpu.matmul %1, %252, %cst_92 {dimension_numbers = #tpu.dot_dimension_numbers<[1], [0], [0], [1], [0, 0, 1, 1], [], []>} : vector<10x24xf32>, vector<24x24xf32>, vector<10x24xf32> -> vector<10x24xf32>
    %264 = vector.broadcast %253 : vector<1x24xf32> to vector<10x24xf32>
    %265 = arith.addf %263, %264 : vector<10x24xf32>
    %cst_93 = arith.constant dense<0.000000e+00> : vector<10x24xf32>
    %266 = tpu.matmul %1, %254, %cst_93 {dimension_numbers = #tpu.dot_dimension_numbers<[1], [0], [0], [1], [0, 0, 1, 1], [], []>} : vector<10x24xf32>, vector<24x24xf32>, vector<10x24xf32> -> vector<10x24xf32>
    %267 = vector.broadcast %255 : vector<1x24xf32> to vector<10x24xf32>
    %268 = arith.addf %266, %267 : vector<10x24xf32>
    %269 = tpu.iota {dimensions = array<i32: 1>} : vector<1x24xi32>
    %cst_94 = arith.constant 0.000000e+00 : f32
    %270 = vector.broadcast %cst_94 : f32 to vector<8x24xf32>
    %c0_i32_95 = arith.constant 0 : i32
    %271 = vector.broadcast %c0_i32_95 : i32 to vector<1x24xi32>
    %272 = arith.cmpi sge, %269, %271 : vector<1x24xi32>
    %c3_i32_96 = arith.constant 3 : i32
    %273 = vector.broadcast %c3_i32_96 : i32 to vector<1x24xi32>
    %274 = arith.cmpi slt, %269, %273 : vector<1x24xi32>
    %275 = arith.andi %272, %274 : vector<1x24xi1>
    %276 = arith.extui %275 : vector<1x24xi1> to vector<1x24xi32>
    %277 = arith.sitofp %276 : vector<1x24xi32> to vector<1x24xf32>
    %278 = vector.broadcast %277 : vector<1x24xf32> to vector<8x24xf32>
    %279 = arith.mulf %262, %278 : vector<8x24xf32>
    %cst_97 = arith.constant dense<0.000000e+00> : vector<8x10xf32>
    %280 = tpu.matmul %279, %265, %cst_97 {dimension_numbers = #tpu.dot_dimension_numbers<[1], [1], [0], [0], [0, 0, 1, 0], [], []>} : vector<8x24xf32>, vector<10x24xf32>, vector<8x10xf32> -> vector<8x10xf32>
    %cst_98 = arith.constant dense<0xFF800000> : vector<8xf32>
    %281 = vector.multi_reduction <maximumf>, %280, %cst_98 [1] : vector<8x10xf32> to vector<8xf32>
    %282 = vector.shape_cast %281 : vector<8xf32> to vector<8x1xf32>
    %283 = vector.broadcast %282 : vector<8x1xf32> to vector<8x10xf32>
    %284 = arith.subf %280, %283 : vector<8x10xf32>
    %285 = math.exp %284 : vector<8x10xf32>
    %cst_99 = arith.constant dense<0.000000e+00> : vector<8xf32>
    %286 = vector.multi_reduction <add>, %285, %cst_99 [1] : vector<8x10xf32> to vector<8xf32>
    %287 = vector.shape_cast %286 : vector<8xf32> to vector<8x1xf32>
    %288 = tpu.reciprocal %287 {approx = true} : vector<8x1xf32> -> vector<8x1xf32>
    %289 = vector.broadcast %288 : vector<8x1xf32> to vector<8x10xf32>
    %290 = arith.mulf %285, %289 : vector<8x10xf32>
    %291 = vector.broadcast %277 : vector<1x24xf32> to vector<10x24xf32>
    %292 = arith.mulf %268, %291 : vector<10x24xf32>
    %cst_100 = arith.constant dense<0.000000e+00> : vector<8x24xf32>
    %293 = tpu.matmul %290, %292, %cst_100 {dimension_numbers = #tpu.dot_dimension_numbers<[1], [0], [0], [1], [0, 0, 1, 1], [], []>} : vector<8x10xf32>, vector<10x24xf32>, vector<8x24xf32> -> vector<8x24xf32>
    %294 = arith.addf %270, %293 : vector<8x24xf32>
    %c3_i32_101 = arith.constant 3 : i32
    %295 = vector.broadcast %c3_i32_101 : i32 to vector<1x24xi32>
    %296 = arith.cmpi sge, %269, %295 : vector<1x24xi32>
    %c6_i32_102 = arith.constant 6 : i32
    %297 = vector.broadcast %c6_i32_102 : i32 to vector<1x24xi32>
    %298 = arith.cmpi slt, %269, %297 : vector<1x24xi32>
    %299 = arith.andi %296, %298 : vector<1x24xi1>
    %300 = arith.extui %299 : vector<1x24xi1> to vector<1x24xi32>
    %301 = arith.sitofp %300 : vector<1x24xi32> to vector<1x24xf32>
    %302 = vector.broadcast %301 : vector<1x24xf32> to vector<8x24xf32>
    %303 = arith.mulf %262, %302 : vector<8x24xf32>
    %cst_103 = arith.constant dense<0.000000e+00> : vector<8x10xf32>
    %304 = tpu.matmul %303, %265, %cst_103 {dimension_numbers = #tpu.dot_dimension_numbers<[1], [1], [0], [0], [0, 0, 1, 0], [], []>} : vector<8x24xf32>, vector<10x24xf32>, vector<8x10xf32> -> vector<8x10xf32>
    %cst_104 = arith.constant dense<0xFF800000> : vector<8xf32>
    %305 = vector.multi_reduction <maximumf>, %304, %cst_104 [1] : vector<8x10xf32> to vector<8xf32>
    %306 = vector.shape_cast %305 : vector<8xf32> to vector<8x1xf32>
    %307 = vector.broadcast %306 : vector<8x1xf32> to vector<8x10xf32>
    %308 = arith.subf %304, %307 : vector<8x10xf32>
    %309 = math.exp %308 : vector<8x10xf32>
    %cst_105 = arith.constant dense<0.000000e+00> : vector<8xf32>
    %310 = vector.multi_reduction <add>, %309, %cst_105 [1] : vector<8x10xf32> to vector<8xf32>
    %311 = vector.shape_cast %310 : vector<8xf32> to vector<8x1xf32>
    %312 = tpu.reciprocal %311 {approx = true} : vector<8x1xf32> -> vector<8x1xf32>
    %313 = vector.broadcast %312 : vector<8x1xf32> to vector<8x10xf32>
    %314 = arith.mulf %309, %313 : vector<8x10xf32>
    %315 = vector.broadcast %301 : vector<1x24xf32> to vector<10x24xf32>
    %316 = arith.mulf %268, %315 : vector<10x24xf32>
    %cst_106 = arith.constant dense<0.000000e+00> : vector<8x24xf32>
    %317 = tpu.matmul %314, %316, %cst_106 {dimension_numbers = #tpu.dot_dimension_numbers<[1], [0], [0], [1], [0, 0, 1, 1], [], []>} : vector<8x10xf32>, vector<10x24xf32>, vector<8x24xf32> -> vector<8x24xf32>
    %318 = arith.addf %294, %317 : vector<8x24xf32>
    %c6_i32_107 = arith.constant 6 : i32
    %319 = vector.broadcast %c6_i32_107 : i32 to vector<1x24xi32>
    %320 = arith.cmpi sge, %269, %319 : vector<1x24xi32>
    %c9_i32_108 = arith.constant 9 : i32
    %321 = vector.broadcast %c9_i32_108 : i32 to vector<1x24xi32>
    %322 = arith.cmpi slt, %269, %321 : vector<1x24xi32>
    %323 = arith.andi %320, %322 : vector<1x24xi1>
    %324 = arith.extui %323 : vector<1x24xi1> to vector<1x24xi32>
    %325 = arith.sitofp %324 : vector<1x24xi32> to vector<1x24xf32>
    %326 = vector.broadcast %325 : vector<1x24xf32> to vector<8x24xf32>
    %327 = arith.mulf %262, %326 : vector<8x24xf32>
    %cst_109 = arith.constant dense<0.000000e+00> : vector<8x10xf32>
    %328 = tpu.matmul %327, %265, %cst_109 {dimension_numbers = #tpu.dot_dimension_numbers<[1], [1], [0], [0], [0, 0, 1, 0], [], []>} : vector<8x24xf32>, vector<10x24xf32>, vector<8x10xf32> -> vector<8x10xf32>
    %cst_110 = arith.constant dense<0xFF800000> : vector<8xf32>
    %329 = vector.multi_reduction <maximumf>, %328, %cst_110 [1] : vector<8x10xf32> to vector<8xf32>
    %330 = vector.shape_cast %329 : vector<8xf32> to vector<8x1xf32>
    %331 = vector.broadcast %330 : vector<8x1xf32> to vector<8x10xf32>
    %332 = arith.subf %328, %331 : vector<8x10xf32>
    %333 = math.exp %332 : vector<8x10xf32>
    %cst_111 = arith.constant dense<0.000000e+00> : vector<8xf32>
    %334 = vector.multi_reduction <add>, %333, %cst_111 [1] : vector<8x10xf32> to vector<8xf32>
    %335 = vector.shape_cast %334 : vector<8xf32> to vector<8x1xf32>
    %336 = tpu.reciprocal %335 {approx = true} : vector<8x1xf32> -> vector<8x1xf32>
    %337 = vector.broadcast %336 : vector<8x1xf32> to vector<8x10xf32>
    %338 = arith.mulf %333, %337 : vector<8x10xf32>
    %339 = vector.broadcast %325 : vector<1x24xf32> to vector<10x24xf32>
    %340 = arith.mulf %268, %339 : vector<10x24xf32>
    %cst_112 = arith.constant dense<0.000000e+00> : vector<8x24xf32>
    %341 = tpu.matmul %338, %340, %cst_112 {dimension_numbers = #tpu.dot_dimension_numbers<[1], [0], [0], [1], [0, 0, 1, 1], [], []>} : vector<8x10xf32>, vector<10x24xf32>, vector<8x24xf32> -> vector<8x24xf32>
    %342 = arith.addf %318, %341 : vector<8x24xf32>
    %c9_i32_113 = arith.constant 9 : i32
    %343 = vector.broadcast %c9_i32_113 : i32 to vector<1x24xi32>
    %344 = arith.cmpi sge, %269, %343 : vector<1x24xi32>
    %c12_i32_114 = arith.constant 12 : i32
    %345 = vector.broadcast %c12_i32_114 : i32 to vector<1x24xi32>
    %346 = arith.cmpi slt, %269, %345 : vector<1x24xi32>
    %347 = arith.andi %344, %346 : vector<1x24xi1>
    %348 = arith.extui %347 : vector<1x24xi1> to vector<1x24xi32>
    %349 = arith.sitofp %348 : vector<1x24xi32> to vector<1x24xf32>
    %350 = vector.broadcast %349 : vector<1x24xf32> to vector<8x24xf32>
    %351 = arith.mulf %262, %350 : vector<8x24xf32>
    %cst_115 = arith.constant dense<0.000000e+00> : vector<8x10xf32>
    %352 = tpu.matmul %351, %265, %cst_115 {dimension_numbers = #tpu.dot_dimension_numbers<[1], [1], [0], [0], [0, 0, 1, 0], [], []>} : vector<8x24xf32>, vector<10x24xf32>, vector<8x10xf32> -> vector<8x10xf32>
    %cst_116 = arith.constant dense<0xFF800000> : vector<8xf32>
    %353 = vector.multi_reduction <maximumf>, %352, %cst_116 [1] : vector<8x10xf32> to vector<8xf32>
    %354 = vector.shape_cast %353 : vector<8xf32> to vector<8x1xf32>
    %355 = vector.broadcast %354 : vector<8x1xf32> to vector<8x10xf32>
    %356 = arith.subf %352, %355 : vector<8x10xf32>
    %357 = math.exp %356 : vector<8x10xf32>
    %cst_117 = arith.constant dense<0.000000e+00> : vector<8xf32>
    %358 = vector.multi_reduction <add>, %357, %cst_117 [1] : vector<8x10xf32> to vector<8xf32>
    %359 = vector.shape_cast %358 : vector<8xf32> to vector<8x1xf32>
    %360 = tpu.reciprocal %359 {approx = true} : vector<8x1xf32> -> vector<8x1xf32>
    %361 = vector.broadcast %360 : vector<8x1xf32> to vector<8x10xf32>
    %362 = arith.mulf %357, %361 : vector<8x10xf32>
    %363 = vector.broadcast %349 : vector<1x24xf32> to vector<10x24xf32>
    %364 = arith.mulf %268, %363 : vector<10x24xf32>
    %cst_118 = arith.constant dense<0.000000e+00> : vector<8x24xf32>
    %365 = tpu.matmul %362, %364, %cst_118 {dimension_numbers = #tpu.dot_dimension_numbers<[1], [0], [0], [1], [0, 0, 1, 1], [], []>} : vector<8x10xf32>, vector<10x24xf32>, vector<8x24xf32> -> vector<8x24xf32>
    %366 = arith.addf %342, %365 : vector<8x24xf32>
    %c12_i32_119 = arith.constant 12 : i32
    %367 = vector.broadcast %c12_i32_119 : i32 to vector<1x24xi32>
    %368 = arith.cmpi sge, %269, %367 : vector<1x24xi32>
    %c15_i32_120 = arith.constant 15 : i32
    %369 = vector.broadcast %c15_i32_120 : i32 to vector<1x24xi32>
    %370 = arith.cmpi slt, %269, %369 : vector<1x24xi32>
    %371 = arith.andi %368, %370 : vector<1x24xi1>
    %372 = arith.extui %371 : vector<1x24xi1> to vector<1x24xi32>
    %373 = arith.sitofp %372 : vector<1x24xi32> to vector<1x24xf32>
    %374 = vector.broadcast %373 : vector<1x24xf32> to vector<8x24xf32>
    %375 = arith.mulf %262, %374 : vector<8x24xf32>
    %cst_121 = arith.constant dense<0.000000e+00> : vector<8x10xf32>
    %376 = tpu.matmul %375, %265, %cst_121 {dimension_numbers = #tpu.dot_dimension_numbers<[1], [1], [0], [0], [0, 0, 1, 0], [], []>} : vector<8x24xf32>, vector<10x24xf32>, vector<8x10xf32> -> vector<8x10xf32>
    %cst_122 = arith.constant dense<0xFF800000> : vector<8xf32>
    %377 = vector.multi_reduction <maximumf>, %376, %cst_122 [1] : vector<8x10xf32> to vector<8xf32>
    %378 = vector.shape_cast %377 : vector<8xf32> to vector<8x1xf32>
    %379 = vector.broadcast %378 : vector<8x1xf32> to vector<8x10xf32>
    %380 = arith.subf %376, %379 : vector<8x10xf32>
    %381 = math.exp %380 : vector<8x10xf32>
    %cst_123 = arith.constant dense<0.000000e+00> : vector<8xf32>
    %382 = vector.multi_reduction <add>, %381, %cst_123 [1] : vector<8x10xf32> to vector<8xf32>
    %383 = vector.shape_cast %382 : vector<8xf32> to vector<8x1xf32>
    %384 = tpu.reciprocal %383 {approx = true} : vector<8x1xf32> -> vector<8x1xf32>
    %385 = vector.broadcast %384 : vector<8x1xf32> to vector<8x10xf32>
    %386 = arith.mulf %381, %385 : vector<8x10xf32>
    %387 = vector.broadcast %373 : vector<1x24xf32> to vector<10x24xf32>
    %388 = arith.mulf %268, %387 : vector<10x24xf32>
    %cst_124 = arith.constant dense<0.000000e+00> : vector<8x24xf32>
    %389 = tpu.matmul %386, %388, %cst_124 {dimension_numbers = #tpu.dot_dimension_numbers<[1], [0], [0], [1], [0, 0, 1, 1], [], []>} : vector<8x10xf32>, vector<10x24xf32>, vector<8x24xf32> -> vector<8x24xf32>
    %390 = arith.addf %366, %389 : vector<8x24xf32>
    %c15_i32_125 = arith.constant 15 : i32
    %391 = vector.broadcast %c15_i32_125 : i32 to vector<1x24xi32>
    %392 = arith.cmpi sge, %269, %391 : vector<1x24xi32>
    %c18_i32_126 = arith.constant 18 : i32
    %393 = vector.broadcast %c18_i32_126 : i32 to vector<1x24xi32>
    %394 = arith.cmpi slt, %269, %393 : vector<1x24xi32>
    %395 = arith.andi %392, %394 : vector<1x24xi1>
    %396 = arith.extui %395 : vector<1x24xi1> to vector<1x24xi32>
    %397 = arith.sitofp %396 : vector<1x24xi32> to vector<1x24xf32>
    %398 = vector.broadcast %397 : vector<1x24xf32> to vector<8x24xf32>
    %399 = arith.mulf %262, %398 : vector<8x24xf32>
    %cst_127 = arith.constant dense<0.000000e+00> : vector<8x10xf32>
    %400 = tpu.matmul %399, %265, %cst_127 {dimension_numbers = #tpu.dot_dimension_numbers<[1], [1], [0], [0], [0, 0, 1, 0], [], []>} : vector<8x24xf32>, vector<10x24xf32>, vector<8x10xf32> -> vector<8x10xf32>
    %cst_128 = arith.constant dense<0xFF800000> : vector<8xf32>
    %401 = vector.multi_reduction <maximumf>, %400, %cst_128 [1] : vector<8x10xf32> to vector<8xf32>
    %402 = vector.shape_cast %401 : vector<8xf32> to vector<8x1xf32>
    %403 = vector.broadcast %402 : vector<8x1xf32> to vector<8x10xf32>
    %404 = arith.subf %400, %403 : vector<8x10xf32>
    %405 = math.exp %404 : vector<8x10xf32>
    %cst_129 = arith.constant dense<0.000000e+00> : vector<8xf32>
    %406 = vector.multi_reduction <add>, %405, %cst_129 [1] : vector<8x10xf32> to vector<8xf32>
    %407 = vector.shape_cast %406 : vector<8xf32> to vector<8x1xf32>
    %408 = tpu.reciprocal %407 {approx = true} : vector<8x1xf32> -> vector<8x1xf32>
    %409 = vector.broadcast %408 : vector<8x1xf32> to vector<8x10xf32>
    %410 = arith.mulf %405, %409 : vector<8x10xf32>
    %411 = vector.broadcast %397 : vector<1x24xf32> to vector<10x24xf32>
    %412 = arith.mulf %268, %411 : vector<10x24xf32>
    %cst_130 = arith.constant dense<0.000000e+00> : vector<8x24xf32>
    %413 = tpu.matmul %410, %412, %cst_130 {dimension_numbers = #tpu.dot_dimension_numbers<[1], [0], [0], [1], [0, 0, 1, 1], [], []>} : vector<8x10xf32>, vector<10x24xf32>, vector<8x24xf32> -> vector<8x24xf32>
    %414 = arith.addf %390, %413 : vector<8x24xf32>
    %c18_i32_131 = arith.constant 18 : i32
    %415 = vector.broadcast %c18_i32_131 : i32 to vector<1x24xi32>
    %416 = arith.cmpi sge, %269, %415 : vector<1x24xi32>
    %c21_i32_132 = arith.constant 21 : i32
    %417 = vector.broadcast %c21_i32_132 : i32 to vector<1x24xi32>
    %418 = arith.cmpi slt, %269, %417 : vector<1x24xi32>
    %419 = arith.andi %416, %418 : vector<1x24xi1>
    %420 = arith.extui %419 : vector<1x24xi1> to vector<1x24xi32>
    %421 = arith.sitofp %420 : vector<1x24xi32> to vector<1x24xf32>
    %422 = vector.broadcast %421 : vector<1x24xf32> to vector<8x24xf32>
    %423 = arith.mulf %262, %422 : vector<8x24xf32>
    %cst_133 = arith.constant dense<0.000000e+00> : vector<8x10xf32>
    %424 = tpu.matmul %423, %265, %cst_133 {dimension_numbers = #tpu.dot_dimension_numbers<[1], [1], [0], [0], [0, 0, 1, 0], [], []>} : vector<8x24xf32>, vector<10x24xf32>, vector<8x10xf32> -> vector<8x10xf32>
    %cst_134 = arith.constant dense<0xFF800000> : vector<8xf32>
    %425 = vector.multi_reduction <maximumf>, %424, %cst_134 [1] : vector<8x10xf32> to vector<8xf32>
    %426 = vector.shape_cast %425 : vector<8xf32> to vector<8x1xf32>
    %427 = vector.broadcast %426 : vector<8x1xf32> to vector<8x10xf32>
    %428 = arith.subf %424, %427 : vector<8x10xf32>
    %429 = math.exp %428 : vector<8x10xf32>
    %cst_135 = arith.constant dense<0.000000e+00> : vector<8xf32>
    %430 = vector.multi_reduction <add>, %429, %cst_135 [1] : vector<8x10xf32> to vector<8xf32>
    %431 = vector.shape_cast %430 : vector<8xf32> to vector<8x1xf32>
    %432 = tpu.reciprocal %431 {approx = true} : vector<8x1xf32> -> vector<8x1xf32>
    %433 = vector.broadcast %432 : vector<8x1xf32> to vector<8x10xf32>
    %434 = arith.mulf %429, %433 : vector<8x10xf32>
    %435 = vector.broadcast %421 : vector<1x24xf32> to vector<10x24xf32>
    %436 = arith.mulf %268, %435 : vector<10x24xf32>
    %cst_136 = arith.constant dense<0.000000e+00> : vector<8x24xf32>
    %437 = tpu.matmul %434, %436, %cst_136 {dimension_numbers = #tpu.dot_dimension_numbers<[1], [0], [0], [1], [0, 0, 1, 1], [], []>} : vector<8x10xf32>, vector<10x24xf32>, vector<8x24xf32> -> vector<8x24xf32>
    %438 = arith.addf %414, %437 : vector<8x24xf32>
    %c21_i32_137 = arith.constant 21 : i32
    %439 = vector.broadcast %c21_i32_137 : i32 to vector<1x24xi32>
    %440 = arith.cmpi sge, %269, %439 : vector<1x24xi32>
    %c24_i32_138 = arith.constant 24 : i32
    %441 = vector.broadcast %c24_i32_138 : i32 to vector<1x24xi32>
    %442 = arith.cmpi slt, %269, %441 : vector<1x24xi32>
    %443 = arith.andi %440, %442 : vector<1x24xi1>
    %444 = arith.extui %443 : vector<1x24xi1> to vector<1x24xi32>
    %445 = arith.sitofp %444 : vector<1x24xi32> to vector<1x24xf32>
    %446 = vector.broadcast %445 : vector<1x24xf32> to vector<8x24xf32>
    %447 = arith.mulf %262, %446 : vector<8x24xf32>
    %cst_139 = arith.constant dense<0.000000e+00> : vector<8x10xf32>
    %448 = tpu.matmul %447, %265, %cst_139 {dimension_numbers = #tpu.dot_dimension_numbers<[1], [1], [0], [0], [0, 0, 1, 0], [], []>} : vector<8x24xf32>, vector<10x24xf32>, vector<8x10xf32> -> vector<8x10xf32>
    %cst_140 = arith.constant dense<0xFF800000> : vector<8xf32>
    %449 = vector.multi_reduction <maximumf>, %448, %cst_140 [1] : vector<8x10xf32> to vector<8xf32>
    %450 = vector.shape_cast %449 : vector<8xf32> to vector<8x1xf32>
    %451 = vector.broadcast %450 : vector<8x1xf32> to vector<8x10xf32>
    %452 = arith.subf %448, %451 : vector<8x10xf32>
    %453 = math.exp %452 : vector<8x10xf32>
    %cst_141 = arith.constant dense<0.000000e+00> : vector<8xf32>
    %454 = vector.multi_reduction <add>, %453, %cst_141 [1] : vector<8x10xf32> to vector<8xf32>
    %455 = vector.shape_cast %454 : vector<8xf32> to vector<8x1xf32>
    %456 = tpu.reciprocal %455 {approx = true} : vector<8x1xf32> -> vector<8x1xf32>
    %457 = vector.broadcast %456 : vector<8x1xf32> to vector<8x10xf32>
    %458 = arith.mulf %453, %457 : vector<8x10xf32>
    %459 = vector.broadcast %445 : vector<1x24xf32> to vector<10x24xf32>
    %460 = arith.mulf %268, %459 : vector<10x24xf32>
    %cst_142 = arith.constant dense<0.000000e+00> : vector<8x24xf32>
    %461 = tpu.matmul %458, %460, %cst_142 {dimension_numbers = #tpu.dot_dimension_numbers<[1], [0], [0], [1], [0, 0, 1, 1], [], []>} : vector<8x10xf32>, vector<10x24xf32>, vector<8x24xf32> -> vector<8x24xf32>
    %462 = arith.addf %438, %461 : vector<8x24xf32>
    %cst_143 = arith.constant dense<0.000000e+00> : vector<8x24xf32>
    %463 = tpu.matmul %462, %256, %cst_143 {dimension_numbers = #tpu.dot_dimension_numbers<[1], [0], [0], [1], [0, 0, 1, 1], [], []>} : vector<8x24xf32>, vector<24x24xf32>, vector<8x24xf32> -> vector<8x24xf32>
    %464 = vector.broadcast %257 : vector<1x24xf32> to vector<8x24xf32>
    %465 = arith.addf %463, %464 : vector<8x24xf32>
    %466 = arith.addf %249, %465 : vector<8x24xf32>
    %c0_144 = arith.constant 0 : index
    %c0_145 = arith.constant 0 : index
    %467 = vector.load %arg22[%c0_144, %c0_145] : memref<1x24xf32, #tpu.memory_space<vmem>>, vector<1x24xf32>
    %c0_146 = arith.constant 0 : index
    %c0_147 = arith.constant 0 : index
    %468 = vector.load %arg23[%c0_146, %c0_147] : memref<1x24xf32, #tpu.memory_space<vmem>>, vector<1x24xf32>
    %cst_148 = arith.constant dense<0.000000e+00> : vector<8xf32>
    %469 = vector.multi_reduction <add>, %466, %cst_148 [1] : vector<8x24xf32> to vector<8xf32>
    %470 = vector.shape_cast %469 : vector<8xf32> to vector<8x1xf32>
    %cst_149 = arith.constant 2.400000e+01 : f32
    %471 = vector.broadcast %cst_149 : f32 to vector<8x1xf32>
    %472 = arith.divf %470, %471 : vector<8x1xf32>
    %473 = vector.broadcast %472 : vector<8x1xf32> to vector<8x24xf32>
    %474 = arith.subf %466, %473 : vector<8x24xf32>
    %475 = arith.mulf %474, %474 : vector<8x24xf32>
    %cst_150 = arith.constant dense<0.000000e+00> : vector<8xf32>
    %476 = vector.multi_reduction <add>, %475, %cst_150 [1] : vector<8x24xf32> to vector<8xf32>
    %477 = vector.shape_cast %476 : vector<8xf32> to vector<8x1xf32>
    %cst_151 = arith.constant 2.400000e+01 : f32
    %478 = vector.broadcast %cst_151 : f32 to vector<8x1xf32>
    %479 = arith.divf %477, %478 : vector<8x1xf32>
    %cst_152 = arith.constant 9.99999974E-6 : f32
    %480 = vector.broadcast %cst_152 : f32 to vector<8x1xf32>
    %481 = arith.addf %479, %480 : vector<8x1xf32>
    %482 = math.rsqrt %481 : vector<8x1xf32>
    %483 = vector.broadcast %482 : vector<8x1xf32> to vector<8x24xf32>
    %484 = arith.mulf %474, %483 : vector<8x24xf32>
    %485 = vector.broadcast %467 : vector<1x24xf32> to vector<8x24xf32>
    %486 = arith.mulf %484, %485 : vector<8x24xf32>
    %487 = vector.broadcast %468 : vector<1x24xf32> to vector<8x24xf32>
    %488 = arith.addf %486, %487 : vector<8x24xf32>
    %c0_153 = arith.constant 0 : index
    %c0_154 = arith.constant 0 : index
    %489 = vector.load %arg24[%c0_153, %c0_154] : memref<24x128xbf16, #tpu.memory_space<vmem>>, vector<24x128xbf16>
    %c0_155 = arith.constant 0 : index
    %c0_156 = arith.constant 0 : index
    %490 = vector.load %arg25[%c0_155, %c0_156] : memref<1x128xf32, #tpu.memory_space<vmem>>, vector<1x128xf32>
    %c0_157 = arith.constant 0 : index
    %c0_158 = arith.constant 0 : index
    %491 = vector.load %arg26[%c0_157, %c0_158] : memref<128x24xbf16, #tpu.memory_space<vmem>>, vector<128x24xbf16>
    %c0_159 = arith.constant 0 : index
    %c0_160 = arith.constant 0 : index
    %492 = vector.load %arg27[%c0_159, %c0_160] : memref<1x24xf32, #tpu.memory_space<vmem>>, vector<1x24xf32>
    %493 = arith.truncf %488 : vector<8x24xf32> to vector<8x24xbf16>
    %cst_161 = arith.constant dense<0.000000e+00> : vector<8x128xf32>
    %494 = tpu.matmul %493, %489, %cst_161 {dimension_numbers = #tpu.dot_dimension_numbers<[1], [0], [0], [1], [0, 0, 1, 1], [], []>} : vector<8x24xbf16>, vector<24x128xbf16>, vector<8x128xf32> -> vector<8x128xf32>
    %495 = vector.broadcast %490 : vector<1x128xf32> to vector<8x128xf32>
    %496 = arith.addf %494, %495 : vector<8x128xf32>
    %cst_162 = arith.constant 0.000000e+00 : f32
    %497 = vector.broadcast %cst_162 : f32 to vector<8x128xf32>
    %498 = arith.maximumf %496, %497 : vector<8x128xf32>
    %499 = arith.truncf %498 : vector<8x128xf32> to vector<8x128xbf16>
    %cst_163 = arith.constant dense<0.000000e+00> : vector<8x24xf32>
    %500 = tpu.matmul %499, %491, %cst_163 {dimension_numbers = #tpu.dot_dimension_numbers<[1], [0], [0], [1], [0, 0, 1, 1], [], []>} : vector<8x128xbf16>, vector<128x24xbf16>, vector<8x24xf32> -> vector<8x24xf32>
    %501 = vector.broadcast %492 : vector<1x24xf32> to vector<8x24xf32>
    %502 = arith.addf %500, %501 : vector<8x24xf32>
    %503 = arith.addf %488, %502 : vector<8x24xf32>
    %c0_164 = arith.constant 0 : index
    %c0_165 = arith.constant 0 : index
    %504 = vector.load %arg28[%c0_164, %c0_165] : memref<1x24xf32, #tpu.memory_space<vmem>>, vector<1x24xf32>
    %c0_166 = arith.constant 0 : index
    %c0_167 = arith.constant 0 : index
    %505 = vector.load %arg29[%c0_166, %c0_167] : memref<1x24xf32, #tpu.memory_space<vmem>>, vector<1x24xf32>
    %cst_168 = arith.constant dense<0.000000e+00> : vector<8xf32>
    %506 = vector.multi_reduction <add>, %503, %cst_168 [1] : vector<8x24xf32> to vector<8xf32>
    %507 = vector.shape_cast %506 : vector<8xf32> to vector<8x1xf32>
    %cst_169 = arith.constant 2.400000e+01 : f32
    %508 = vector.broadcast %cst_169 : f32 to vector<8x1xf32>
    %509 = arith.divf %507, %508 : vector<8x1xf32>
    %510 = vector.broadcast %509 : vector<8x1xf32> to vector<8x24xf32>
    %511 = arith.subf %503, %510 : vector<8x24xf32>
    %512 = arith.mulf %511, %511 : vector<8x24xf32>
    %cst_170 = arith.constant dense<0.000000e+00> : vector<8xf32>
    %513 = vector.multi_reduction <add>, %512, %cst_170 [1] : vector<8x24xf32> to vector<8xf32>
    %514 = vector.shape_cast %513 : vector<8xf32> to vector<8x1xf32>
    %cst_171 = arith.constant 2.400000e+01 : f32
    %515 = vector.broadcast %cst_171 : f32 to vector<8x1xf32>
    %516 = arith.divf %514, %515 : vector<8x1xf32>
    %cst_172 = arith.constant 9.99999974E-6 : f32
    %517 = vector.broadcast %cst_172 : f32 to vector<8x1xf32>
    %518 = arith.addf %516, %517 : vector<8x1xf32>
    %519 = math.rsqrt %518 : vector<8x1xf32>
    %520 = vector.broadcast %519 : vector<8x1xf32> to vector<8x24xf32>
    %521 = arith.mulf %511, %520 : vector<8x24xf32>
    %522 = vector.broadcast %504 : vector<1x24xf32> to vector<8x24xf32>
    %523 = arith.mulf %521, %522 : vector<8x24xf32>
    %524 = vector.broadcast %505 : vector<1x24xf32> to vector<8x24xf32>
    %525 = arith.addf %523, %524 : vector<8x24xf32>
    %c0_173 = arith.constant 0 : index
    %c0_174 = arith.constant 0 : index
    %526 = vector.load %arg30[%c0_173, %c0_174] : memref<8x24xf32, #tpu.memory_space<vmem>>, vector<8x24xf32>
    tpu.vector_store %arg30[%c0_173, %c0_174], %525 {strides = array<i32>} : memref<8x24xf32, #tpu.memory_space<vmem>>, vector<8x24xf32>,
    return
  }
  func.func @transform_0(%arg0: i32) -> (i32, i32) {
    %c0_i32 = arith.constant 0 : i32
    %c0_i32_0 = arith.constant 0 : i32
    %c0_i32_1 = arith.constant 0 : i32
    return %c0_i32, %c0_i32_0 : i32, i32
  }
  func.func @transform_1(%arg0: i32) -> (i32, i32) {
    %c0_i32 = arith.constant 0 : i32
    %c0_i32_0 = arith.constant 0 : i32
    %c0_i32_1 = arith.constant 0 : i32
    return %c0_i32, %c0_i32_0 : i32, i32
  }
  func.func @transform_2(%arg0: i32) -> (i32, i32) {
    %c0_i32 = arith.constant 0 : i32
    %c0_i32_0 = arith.constant 0 : i32
    %c0_i32_1 = arith.constant 0 : i32
    return %c0_i32, %c0_i32_0 : i32, i32
  }
  func.func @transform_3(%arg0: i32) -> (i32, i32) {
    %c0_i32 = arith.constant 0 : i32
    %c0_i32_0 = arith.constant 0 : i32
    %c0_i32_1 = arith.constant 0 : i32
    return %c0_i32, %c0_i32_0 : i32, i32
  }
  func.func @transform_4(%arg0: i32) -> (i32, i32) {
    %c0_i32 = arith.constant 0 : i32
    %c0_i32_0 = arith.constant 0 : i32
    %c0_i32_1 = arith.constant 0 : i32
    return %c0_i32, %c0_i32_0 : i32, i32
  }
  func.func @transform_5(%arg0: i32) -> (i32, i32) {
    %c0_i32 = arith.constant 0 : i32
    %c0_i32_0 = arith.constant 0 : i32
    %c0_i32_1 = arith.constant 0 : i32
    return %c0_i32, %c0_i32_0 : i32, i32
  }
  func.func @transform_6(%arg0: i32) -> (i32, i32) {
    %c0_i32 = arith.constant 0 : i32
    %c0_i32_0 = arith.constant 0 : i32
    %c0_i32_1 = arith.constant 0 : i32
    return %c0_i32, %c0_i32_0 : i32, i32
  }
  func.func @transform_7(%arg0: i32) -> (i32, i32) {
    %c0_i32 = arith.constant 0 : i32
    %c0_i32_0 = arith.constant 0 : i32
    %c0_i32_1 = arith.constant 0 : i32
    return %c0_i32, %c0_i32_0 : i32, i32
  }
  func.func @transform_8(%arg0: i32) -> (i32, i32) {
    %c0_i32 = arith.constant 0 : i32
    %c0_i32_0 = arith.constant 0 : i32
    %c0_i32_1 = arith.constant 0 : i32
    return %c0_i32, %c0_i32_0 : i32, i32
  }
  func.func @transform_9(%arg0: i32) -> (i32, i32) {
    %c0_i32 = arith.constant 0 : i32
    %c0_i32_0 = arith.constant 0 : i32
    %c0_i32_1 = arith.constant 0 : i32
    return %c0_i32, %c0_i32_0 : i32, i32
  }
  func.func @transform_10(%arg0: i32) -> (i32, i32) {
    %c0_i32 = arith.constant 0 : i32
    %c0_i32_0 = arith.constant 0 : i32
    %c0_i32_1 = arith.constant 0 : i32
    return %c0_i32, %c0_i32_0 : i32, i32
  }
  func.func @transform_11(%arg0: i32) -> (i32, i32) {
    %c0_i32 = arith.constant 0 : i32
    %c0_i32_0 = arith.constant 0 : i32
    %c0_i32_1 = arith.constant 0 : i32
    return %c0_i32, %c0_i32_0 : i32, i32
  }
  func.func @transform_12(%arg0: i32) -> (i32, i32) {
    %c0_i32 = arith.constant 0 : i32
    %c0_i32_0 = arith.constant 0 : i32
    %c0_i32_1 = arith.constant 0 : i32
    return %c0_i32, %c0_i32_0 : i32, i32
  }
  func.func @transform_13(%arg0: i32) -> (i32, i32) {
    %c0_i32 = arith.constant 0 : i32
    %c0_i32_0 = arith.constant 0 : i32
    %c0_i32_1 = arith.constant 0 : i32
    return %c0_i32, %c0_i32_0 : i32, i32
  }
  func.func @transform_14(%arg0: i32) -> (i32, i32) {
    %c0_i32 = arith.constant 0 : i32
    %c0_i32_0 = arith.constant 0 : i32
    %c0_i32_1 = arith.constant 0 : i32
    return %c0_i32, %c0_i32_0 : i32, i32
  }
  func.func @transform_15(%arg0: i32) -> (i32, i32) {
    %c0_i32 = arith.constant 0 : i32
    %c0_i32_0 = arith.constant 0 : i32
    %c0_i32_1 = arith.constant 0 : i32
    return %c0_i32, %c0_i32_0 : i32, i32
  }
  func.func @transform_16(%arg0: i32) -> (i32, i32) {
    %c0_i32 = arith.constant 0 : i32
    %c0_i32_0 = arith.constant 0 : i32
    %c0_i32_1 = arith.constant 0 : i32
    return %c0_i32, %c0_i32_0 : i32, i32
  }
  func.func @transform_17(%arg0: i32) -> (i32, i32) {
    %c0_i32 = arith.constant 0 : i32
    %c0_i32_0 = arith.constant 0 : i32
    %c0_i32_1 = arith.constant 0 : i32
    return %c0_i32, %c0_i32_0 : i32, i32
  }
  func.func @transform_18(%arg0: i32) -> (i32, i32) {
    %c0_i32 = arith.constant 0 : i32
    %c0_i32_0 = arith.constant 0 : i32
    %c0_i32_1 = arith.constant 0 : i32
    return %c0_i32, %c0_i32_0 : i32, i32
  }
  func.func @transform_19(%arg0: i32) -> (i32, i32) {
    %c0_i32 = arith.constant 0 : i32
    %c0_i32_0 = arith.constant 0 : i32
    %c0_i32_1 = arith.constant 0 : i32
    return %c0_i32, %c0_i32_0 : i32, i32
  }
  func.func @transform_20(%arg0: i32) -> (i32, i32) {
    %c0_i32 = arith.constant 0 : i32
    %c0_i32_0 = arith.constant 0 : i32
    %c0_i32_1 = arith.constant 0 : i32
    return %c0_i32, %c0_i32_0 : i32, i32
  }
  func.func @transform_21(%arg0: i32) -> (i32, i32) {
    %c0_i32 = arith.constant 0 : i32
    %c0_i32_0 = arith.constant 0 : i32
    %c0_i32_1 = arith.constant 0 : i32
    return %c0_i32, %c0_i32_0 : i32, i32
  }
  func.func @transform_22(%arg0: i32) -> (i32, i32) {
    %c0_i32 = arith.constant 0 : i32
    %c0_i32_0 = arith.constant 0 : i32
    %c0_i32_1 = arith.constant 0 : i32
    return %c0_i32, %c0_i32_0 : i32, i32
  }
  func.func @transform_23(%arg0: i32) -> (i32, i32) {
    %c0_i32 = arith.constant 0 : i32
    %c0_i32_0 = arith.constant 0 : i32
    %c0_i32_1 = arith.constant 0 : i32
    return %c0_i32, %c0_i32_0 : i32, i32
  }
  func.func @transform_24(%arg0: i32) -> (i32, i32) {
    %c0_i32 = arith.constant 0 : i32
    %c0_i32_0 = arith.constant 0 : i32
    %c0_i32_1 = arith.constant 0 : i32
    return %c0_i32, %c0_i32_0 : i32, i32
  }
  func.func @transform_25(%arg0: i32) -> (i32, i32) {
    %c0_i32 = arith.constant 0 : i32
    %c0_i32_0 = arith.constant 0 : i32
    %c0_i32_1 = arith.constant 0 : i32
    return %c0_i32, %c0_i32_0 : i32, i32
  }
  func.func @transform_26(%arg0: i32) -> (i32, i32) {
    %c0_i32 = arith.constant 0 : i32
    %c0_i32_0 = arith.constant 0 : i32
    %c0_i32_1 = arith.constant 0 : i32
    return %c0_i32, %c0_i32_0 : i32, i32
  }
  func.func @transform_27(%arg0: i32) -> (i32, i32) {
    %c0_i32 = arith.constant 0 : i32
    %c0_i32_0 = arith.constant 0 : i32
    %c0_i32_1 = arith.constant 0 : i32
    return %c0_i32, %c0_i32_0 : i32, i32
  }
  func.func @transform_28(%arg0: i32) -> (i32, i32) {
    %c0_i32 = arith.constant 0 : i32
    %c0_i32_0 = arith.constant 0 : i32
    %c0_i32_1 = arith.constant 0 : i32
    return %c0_i32, %c0_i32_0 : i32, i32
  }
  func.func @transform_29(%arg0: i32) -> (i32, i32) {
    %c0_i32 = arith.constant 0 : i32
    %c0_i32_0 = arith.constant 0 : i32
    %c0_i32_1 = arith.constant 0 : i32
    return %c0_i32, %c0_i32_0 : i32, i32
  }
}

module attributes {stable_mosaic.version = 11 : i64} {
  func.func @_ln_vocab_kernel(%arg0: i32, %arg1: memref<8x24xf32, #tpu.memory_space<vmem>>, %arg2: memref<1x24xf32, #tpu.memory_space<vmem>>, %arg3: memref<1x24xf32, #tpu.memory_space<vmem>>, %arg4: memref<24x40xbf16, #tpu.memory_space<vmem>>, %arg5: memref<1x40xf32, #tpu.memory_space<vmem>>, %arg6: memref<8x40xf32, #tpu.memory_space<vmem>>) attributes {dimension_semantics = [#tpu.dimension_semantics<parallel>], iteration_bounds = array<i64: 1>, scalar_prefetch = 0 : i64, scratch_operands = 0 : i64, tpu.core_type = #tpu.core_type<tc>, window_params = [{pipeline_mode = #tpu.pipeline_mode<synchronous>, transform_indices = @transform_0, window_bounds = array<i64: 8, 24>}, {pipeline_mode = #tpu.pipeline_mode<synchronous>, transform_indices = @transform_1, window_bounds = array<i64: 1, 24>}, {pipeline_mode = #tpu.pipeline_mode<synchronous>, transform_indices = @transform_2, window_bounds = array<i64: 1, 24>}, {transform_indices = @transform_3, window_bounds = array<i64: 24, 40>}, {transform_indices = @transform_4, window_bounds = array<i64: 1, 40>}, {transform_indices = @transform_5, window_bounds = array<i64: 8, 40>}]} {
    %c0 = arith.constant 0 : index
    %c0_0 = arith.constant 0 : index
    %0 = vector.load %arg1[%c0, %c0_0] : memref<8x24xf32, #tpu.memory_space<vmem>>, vector<8x24xf32>
    %c0_1 = arith.constant 0 : index
    %c0_2 = arith.constant 0 : index
    %1 = vector.load %arg2[%c0_1, %c0_2] : memref<1x24xf32, #tpu.memory_space<vmem>>, vector<1x24xf32>
    %c0_3 = arith.constant 0 : index
    %c0_4 = arith.constant 0 : index
    %2 = vector.load %arg3[%c0_3, %c0_4] : memref<1x24xf32, #tpu.memory_space<vmem>>, vector<1x24xf32>
    %cst = arith.constant dense<0.000000e+00> : vector<8xf32>
    %3 = vector.multi_reduction <add>, %0, %cst [1] : vector<8x24xf32> to vector<8xf32>
    %4 = vector.shape_cast %3 : vector<8xf32> to vector<8x1xf32>
    %cst_5 = arith.constant 2.400000e+01 : f32
    %5 = vector.broadcast %cst_5 : f32 to vector<8x1xf32>
    %6 = arith.divf %4, %5 : vector<8x1xf32>
    %7 = vector.broadcast %6 : vector<8x1xf32> to vector<8x24xf32>
    %8 = arith.subf %0, %7 : vector<8x24xf32>
    %9 = arith.mulf %8, %8 : vector<8x24xf32>
    %cst_6 = arith.constant dense<0.000000e+00> : vector<8xf32>
    %10 = vector.multi_reduction <add>, %9, %cst_6 [1] : vector<8x24xf32> to vector<8xf32>
    %11 = vector.shape_cast %10 : vector<8xf32> to vector<8x1xf32>
    %cst_7 = arith.constant 2.400000e+01 : f32
    %12 = vector.broadcast %cst_7 : f32 to vector<8x1xf32>
    %13 = arith.divf %11, %12 : vector<8x1xf32>
    %cst_8 = arith.constant 9.99999974E-6 : f32
    %14 = vector.broadcast %cst_8 : f32 to vector<8x1xf32>
    %15 = arith.addf %13, %14 : vector<8x1xf32>
    %16 = math.rsqrt %15 : vector<8x1xf32>
    %17 = vector.broadcast %16 : vector<8x1xf32> to vector<8x24xf32>
    %18 = arith.mulf %8, %17 : vector<8x24xf32>
    %19 = vector.broadcast %1 : vector<1x24xf32> to vector<8x24xf32>
    %20 = arith.mulf %18, %19 : vector<8x24xf32>
    %21 = vector.broadcast %2 : vector<1x24xf32> to vector<8x24xf32>
    %22 = arith.addf %20, %21 : vector<8x24xf32>
    %23 = arith.truncf %22 : vector<8x24xf32> to vector<8x24xbf16>
    %c0_9 = arith.constant 0 : index
    %c0_10 = arith.constant 0 : index
    %24 = vector.load %arg4[%c0_9, %c0_10] : memref<24x40xbf16, #tpu.memory_space<vmem>>, vector<24x40xbf16>
    %cst_11 = arith.constant dense<0.000000e+00> : vector<8x40xf32>
    %25 = tpu.matmul %23, %24, %cst_11 {dimension_numbers = #tpu.dot_dimension_numbers<[1], [0], [0], [1], [0, 0, 1, 1], [], []>} : vector<8x24xbf16>, vector<24x40xbf16>, vector<8x40xf32> -> vector<8x40xf32>
    %c0_12 = arith.constant 0 : index
    %c0_13 = arith.constant 0 : index
    %26 = vector.load %arg5[%c0_12, %c0_13] : memref<1x40xf32, #tpu.memory_space<vmem>>, vector<1x40xf32>
    %27 = vector.broadcast %26 : vector<1x40xf32> to vector<8x40xf32>
    %28 = arith.addf %25, %27 : vector<8x40xf32>
    %c0_14 = arith.constant 0 : index
    %c0_15 = arith.constant 0 : index
    %29 = vector.load %arg6[%c0_14, %c0_15] : memref<8x40xf32, #tpu.memory_space<vmem>>, vector<8x40xf32>
    tpu.vector_store %arg6[%c0_14, %c0_15], %28 {strides = array<i32>} : memref<8x40xf32, #tpu.memory_space<vmem>>, vector<8x40xf32>,
    return
  }
  func.func @transform_0(%arg0: i32) -> (i32, i32) {
    %c0_i32 = arith.constant 0 : i32
    %c0_i32_0 = arith.constant 0 : i32
    %c0_i32_1 = arith.constant 0 : i32
    return %c0_i32, %c0_i32_0 : i32, i32
  }
  func.func @transform_1(%arg0: i32) -> (i32, i32) {
    %c0_i32 = arith.constant 0 : i32
    %c0_i32_0 = arith.constant 0 : i32
    %c0_i32_1 = arith.constant 0 : i32
    return %c0_i32, %c0_i32_0 : i32, i32
  }
  func.func @transform_2(%arg0: i32) -> (i32, i32) {
    %c0_i32 = arith.constant 0 : i32
    %c0_i32_0 = arith.constant 0 : i32
    %c0_i32_1 = arith.constant 0 : i32
    return %c0_i32, %c0_i32_0 : i32, i32
  }
  func.func @transform_3(%arg0: i32) -> (i32, i32) {
    %c0_i32 = arith.constant 0 : i32
    %c0_i32_0 = arith.constant 0 : i32
    return %c0_i32, %arg0 : i32, i32
  }
  func.func @transform_4(%arg0: i32) -> (i32, i32) {
    %c0_i32 = arith.constant 0 : i32
    %c0_i32_0 = arith.constant 0 : i32
    return %c0_i32, %arg0 : i32, i32
  }
  func.func @transform_5(%arg0: i32) -> (i32, i32) {
    %c0_i32 = arith.constant 0 : i32
    %c0_i32_0 = arith.constant 0 : i32
    return %c0_i32, %arg0 : i32, i32
  }
}

</mosaic_0001>

<bundles_post_ra>
// kernel: translate_model_forward.8
= control target key start
LH: loop header
LB: loop body
LE: loop exit
PB: predicated region body
PF: predicated region fallthrough
CT: control target
= control target key end

     0   :  { %vm18_vm0 = vcmask 195584   ;;  %vm22_vm1 = vcmask 189440   ;;  %s119_s0 = inlined_call_operand.vmem [shape: f32[10,24], index: 0, kind: input, shape index: {}]   ;;  %s120_s1 = inlined_call_operand.vmem [shape: f32[1,24], index: 1, kind: input, shape index: {}]   ;;  %s121_s2 = inlined_call_operand.vmem [shape: f32[1,24], index: 2, kind: input, shape index: {}]   ;;  %s122_s3 = inlined_call_operand.vmem [shape: f32[10,24], index: 3, kind: output, shape index: {}]  }
   0x1   :  { %v14_v0 = vld [vmem:[%s119_s0] sm:$0xff]  ;;  %v15_v1 = vld [vmem:[%s119_s0 + $0x8] sm:$0x3] }
   0x2   :  { %v19_v2 = vsel %vm18_vm0, %v14_v0, 0.0  ;;  %v23_v3 = vsel %vm22_vm1, %v15_v1, 0.0  ;;  %v69_v21 = vld [vmem:[%s120_s1] ss:$0 sm:$0xff] }
   0x3   :  { %20 = vadd.xlane.f32.xlu0 %v19_v2  ;;  %v70_v23 = vld [vmem:[%s121_s2] ss:$0 sm:$0xff] }
   0x7   :  { %24 = vadd.xlane.f32.xlu0 %v23_v3 }
  0x90   :  { %v21_v4 = vpop.xlane.xlu0 %20 }
  0x91   :  { %v27_v5 = vmul.f32 0.041666668, %v21_v4 }
  0x93   :  { %v29_v6 = vsub.f32 %v14_v0, %v27_v5 }
  0x94   :  { %v25_v7 = vpop.xlane.xlu0 %24 }
  0x95   :  { %v28_v8 = vmul.f32 0.041666668, %v25_v7  ;;  %v31_v9 = vmul.f32 %v29_v6, %v29_v6 }
  0x97   :  { %v30_v10 = vsub.f32 %v15_v1, %v28_v8  ;;  %v33_v11 = vsel %vm18_vm0, %v31_v9, 0.0 }
  0x98   :  { %34 = vadd.xlane.f32.xlu1 %v33_v11 }
  0x99   :  { %v32_v12 = vmul.f32 %v30_v10, %v30_v10 }
  0x9b   :  { %v36_v13 = vsel %vm22_vm1, %v32_v12, 0.0 }
  0x9c   :  { %37 = vadd.xlane.f32.xlu1 %v36_v13 }
 0x125   :  { %v35_v14 = vpop.xlane.xlu1 %34 }
 0x126   :  { %v39_v15 = vmul.f32 0.041666668, %v35_v14 }
 0x128   :  { %v41_v16 = vadd.f32 1e-05, %v39_v15 }
 0x129   :  { %v38_v17 = vpop.xlane.xlu1 %37 }
 0x12a   :  { %71 = vrsqrt.f32 %v41_v16  ;;  %v40_v18 = vmul.f32 0.041666668, %v38_v17 }
 0x12c   :  { %v42_v19 = vadd.f32 1e-05, %v40_v18 }
 0x12e   :  { %73 = vrsqrt.f32 %v42_v19 }
 0x134   :  { %v72_v20 = vpop.eup %71 }
 0x135   :  { %v45_v22 = vmul.f32 %v72_v20, %v29_v6 }
 0x137   :  { %v53_v24 = vmul.f32 %v69_v21, %v45_v22 }
 0x138   :  { %v74_v25 = vpop.eup %73 }
 0x139   :  { %v61_v26 = vadd.f32 %v70_v23, %v53_v24  ;;  %v46_v27 = vmul.f32 %v74_v25, %v30_v10 }
 0x13b   :  { %63 = vst.msk [vmem:[%s122_s3] sm:$0xff] %vm18_vm0, %v61_v26  ;;  %v54_v28 = vmul.f32 %v69_v21, %v46_v27 }
 0x13d   :  { %v62_v29 = vadd.f32 %v70_v23, %v54_v28 }
 0x13f   :  { %64 = vst.msk [vmem:[%s122_s3 + $0x8] sm:$0x3] %vm22_vm1, %v62_v29 }

// kernel: translate_model_forward.11
= control target key start
LH: loop header
LB: loop body
LE: loop exit
PB: predicated region body
PF: predicated region fallthrough
CT: control target
= control target key end

     0   :  { %vm25_vm0 = vcmask 195584   ;;  %s251_s0 = inlined_call_operand.vmem [shape: f32[8,24], index: 0, kind: input, shape index: {}]   ;;  %s252_s1 = inlined_call_operand.vmem [shape: f32[1,24], index: 1, kind: input, shape index: {}]   ;;  %s253_s2 = inlined_call_operand.vmem [shape: f32[1,24], index: 2, kind: input, shape index: {}]   ;;  %s254_s3 = inlined_call_operand.vmem [shape: bf16[24,40], index: 3, kind: input, shape index: {}]   ;;  %s255_s4 = inlined_call_operand.vmem [shape: f32[1,40], index: 4, kind: input, shape index: {}]   ;;  %s256_s5 = inlined_call_operand.hbm [shape: f32[8,40], index: 5, kind: output, shape index: {}]  }
   0x1   :  { %v22_v0 = vld [vmem:[%s251_s0] sm:$0xff] }
   0x2   :  { %v26_v1 = vsel %vm25_vm0, %v22_v0, 0.0 }
   0x3   :  { %10 = vsyncpa [#allocation3], 0  ;;  %27 = vadd.xlane.f32.xlu0 %v26_v1  ;;  %v157_v7 = vld [vmem:[%s254_s3] sm:$0xff]   ;;  %v185_v8 = vmov 0.0   ;;  %v158_v9 = vld [vmem:[%s254_s3 + $0x8] ss:$0 sps:$4 sm:$0xff]  }
   0x4   :  { %146 = vmatprep.subr.bf16.mxu0 %v185_v8  ;;  %vm77_vm1 = vcmask 1043456   ;;  %vm186_vm2 = vmmov 0   ;;  %v137_v15 = vld [vmem:[%s252_s1] ss:$0 sm:$0xff]  ;;  %s187_s28 = smov [#allocation2]   ;;  %vm121_vm3 = vcmask 326656  }
   0x5   :  { %147 = vmatpush3.bf16.msra.mxu0 %v157_v7  ;;  %150 = vmatprep.mubr.msk.bf16.mxu0 %vm186_vm2, %v185_v8  ;;  %v79_v10 = vsel %vm77_vm1, %v158_v9, 0  ;;  %v138_v17 = vld [vmem:[%s253_s2] ss:$0 sm:$0xff]  ;;  %s129_s29 = sshll.u32 %s187_s28, 4  ;;  %s130_s29 = int_to_ptr.vmem [resolvable:$true] %s129_s29 }
   0x6   :  { %148 = vmatprep.subr.bf16.mxu0 %v185_v8  ;;  %v139_v21 = vld [vmem:[%s255_s4] ss:$0 sm:$0xff]  ;;  %s161_s1 = scalar_lea.vmem %s130_s29, 128  ;;  %p166_p1 = scmp.lt.s32.totalorder %s130_s29, %s130_s29 }
   0x7   :  { %p162_p0 = scmp.ne.s32.totalorder %s130_s29, %s161_s1  ;;  %p167_p2 = scmp.lt.s32.totalorder %s161_s1, %s161_s1 }
   0x9   :  { %149 = vmatpush3.bf16.msra.mxu0 %v79_v10  ;;  %p168_p3 = por %p167_p2, %p166_p1 }
   0xb   :  { %p169_p4 = pnand %p168_p3, %p162_p0 }
  0x90   :  { %v28_v2 = vpop.xlane.xlu0 %27 }
  0x91   :  { %v30_v3 = vmul.f32 0.041666668, %v28_v2 }
  0x93   :  { %v31_v4 = vsub.f32 %v22_v0, %v30_v3 }
  0x95   :  { %v32_v5 = vmul.f32 %v31_v4, %v31_v4 }
  0x97   :  { %v33_v6 = vsel %vm25_vm0, %v32_v5, 0.0 }
  0x98   :  { %34 = vadd.xlane.f32.xlu0 %v33_v6 }
 0x125   :  { %v35_v11 = vpop.xlane.xlu0 %34 }
 0x126   :  { %v36_v12 = vmul.f32 0.041666668, %v35_v11 }
 0x128   :  { %v37_v13 = vadd.f32 1e-05, %v36_v12 }
 0x12a   :  { %159 = vrsqrt.f32 %v37_v13 }
 0x134   :  { %v160_v14 = vpop.eup %159 }
 0x135   :  { %v39_v16 = vmul.f32 %v160_v14, %v31_v4 }
 0x137   :  { %v46_v18 = vmul.f32 %v137_v15, %v39_v16 }
 0x139   :  { %v53_v19 = vadd.f32 %v138_v17, %v46_v18 }
 0x13b   :  { %v54_v20 = vpack.c.bf16 %v53_v19, %v53_v19 }
 0x13d   :  { %151 = vmatmul.mubr.msk.bf16.vlgmr.msra.gmra.mrb[0].mxu0 %vm25_vm0, %v54_v20 }
 0x210   :  { %v115_v22 = vpop.f32.mrb[0].mxu0 }
 0x211   :  { %v116_v23 = vadd.f32 %v139_v21, %v115_v22  ;;  %v152_v24 = vpop.f32.mrb[1].mxu0 }
 0x212   :  { %v118_v25 = vpop.f32.mrb[2].mxu0 }
 0x213   :  { %v153_v26 = vpop.f32.mrb[3].mxu0  ;;  %122 = vst.msk [vmem:[#allocation2] sm:$0xff] %vm121_vm3, %v116_v23 }
 0x214   :  { %172 = shalt.err (!%p169_p4)
}
 0x215   :  { %s173_s4 = scalar_lea.hbm %s256_s5, 128 }
 0x216   :  { %p174_p5 = scmp.ne.s32.totalorder %s256_s5, %s173_s4  ;;  %p177_p6 = scmp.lt.u32.totalorder %s173_s4, %s256_s5 }
 0x218   :  { %p179_p7 = pnand %p177_p6, %p174_p5 }
 0x21a   :  { %182 = shalt.err (!%p179_p7)
}
 0x21b   :  { %132 = dma.vmem_to_hbm [thread:$0]  %s130_s29, 128, %s256_s5, [#allocation3]  }
 0x21c   :  { %183 = dma.done.wait [#allocation3], 128  }
 0x21d   :  { %184 = vsyncadd [#allocation3], 4294967168 }
 0x21e   :  { %136 = vsyncpa [#allocation3], 1 }

// kernel: translate_model_forward.6
= control target key start
LH: loop header
LB: loop body
LE: loop exit
PB: predicated region body
PF: predicated region fallthrough
CT: control target
= control target key end

     0   :  { %vm86_vm0 = vcmask 195584   ;;  %v332_v14 = vlaneseq  ;;  %v2869_v21 = vmov 0.0   ;;  %s3421_s2 = inlined_call_operand.vmem [shape: f32[24,24], index: 2, kind: input, shape index: {}]   ;;  %s3422_s0 = inlined_call_operand.vmem [shape: f32[10,24], index: 0, kind: input, shape index: {}]   ;;  %s3423_s4 = inlined_call_operand.vmem [shape: f32[24,24], index: 4, kind: input, shape index: {}]   ;;  %s3424_s6 = inlined_call_operand.vmem [shape: f32[24,24], index: 6, kind: input, shape index: {}]   ;;  %s3425_s3 = inlined_call_operand.vmem [shape: f32[1,24], index: 3, kind: input, shape index: {}]   ;;  %s3426_s5 = inlined_call_operand.vmem [shape: f32[1,24], index: 5, kind: input, shape index: {}]   ;;  %s3427_s7 = inlined_call_operand.vmem [shape: f32[1,24], index: 7, kind: input, shape index: {}]   ;;  %s3428_s1 = inlined_call_operand.vmem [shape: f32[10,10], index: 1, kind: input, shape index: {}]   ;;  %s3429_s8 = inlined_call_operand.vmem [shape: f32[24,24], index: 8, kind: input, shape index: {}]   ;;  %s3430_s9 = inlined_call_operand.vmem [shape: f32[1,24], index: 9, kind: input, shape index: {}]   ;;  %s3431_s12 = inlined_call_operand.vmem [shape: bf16[24,128], index: 12, kind: input, shape index: {}]   ;;  %s3432_s14 = inlined_call_operand.vmem [shape: bf16[128,24], index: 14, kind: input, shape index: {}]   ;;  %s3433_s10 = inlined_call_operand.vmem [shape: f32[1,24], index: 10, kind: input, shape index: {}]   ;;  %s3434_s11 = inlined_call_operand.vmem [shape: f32[1,24], index: 11, kind: input, shape index: {}]   ;;  %s3435_s13 = inlined_call_operand.vmem [shape: f32[1,128], index: 13, kind: input, shape index: {}]   ;;  %s3436_s15 = inlined_call_operand.vmem [shape: f32[1,24], index: 15, kind: input, shape index: {}]   ;;  %s3437_s16 = inlined_call_operand.vmem [shape: f32[1,24], index: 16, kind: input, shape index: {}]   ;;  %s3438_s17 = inlined_call_operand.vmem [shape: f32[1,24], index: 17, kind: input, shape index: {}]   ;;  %s3439_s18 = inlined_call_operand.vmem [shape: f32[10,24], index: 18, kind: output, shape index: {}]  }
   0x1   :  { %3443 = sst [smem:[#allocation2_spill]] %s3421_s2  ;;  %v70_v10 = vld [vmem:[%s3424_s6] sm:$0xff]  ;;  %v71_v11 = vld [vmem:[%s3424_s6 + $0x8] sm:$0xff]  ;;  %v72_v13 = vld [vmem:[%s3424_s6 + $0x10] sm:$0xff] }
   0x2   :  { %3444 = sst [smem:[#allocation3_spill]] %s3422_s0  ;;  %s3446_s29 = sld [smem:[#allocation2_spill]]  ;;  %v2666_v12 = vpack.c.bf16 %v71_v11, %v70_v10  ;;  %v3016_v15 = vand.u32 127, %v332_v14  ;;  %v2293_v16 = vld [vmem:[%s3425_s3] ss:$0 sm:$0xff]  ;;  %vm3055_vm8 = vmpackc.low %vm86_vm0, %vm86_vm0 }
   0x3   :  { %3445 = sst [smem:[#allocation4_spill]] %s3423_s4  ;;  %s3447_s20 = sld [smem:[#allocation3_spill]]  ;;  %v2296_v25 = vld [vmem:[%s3426_s5] ss:$0 sm:$0xff] }
   0x4   :  { %s3448_s24 = sld [smem:[#allocation4_spill]]  ;;  %vm933_vm1 = vcmp.ge.s32.totalorder %v3016_v15, 9  ;;  %vm934_vm2 = vcmp.lt.s32.totalorder %v3016_v15, 12  ;;  %vm335_vm3 = vcmp.lt.s32.totalorder %v3016_v15, 3  ;;  %vm1725_vm4 = vcmp.ge.s32.totalorder %v3016_v15, 21 }
   0x5   :  { %vm1726_vm5 = vcmp.lt.s32.totalorder %v3016_v15, 24  ;;  %vm935_vm6 = vmand %vm933_vm1, %vm934_vm2  ;;  %v3027_v22 = vsel %vm335_vm3, 1.0, %v2869_v21  ;;  %vm454_vm9 = vcmp.ge.s32.totalorder %v3016_v15, 3  ;;  %vm455_vm10 = vcmp.lt.s32.totalorder %v3016_v15, 6  ;;  %v2299_v55 = vld [vmem:[%s3427_s7] ss:$0 sm:$0xff] }
   0x6   :  { %vm1727_vm7 = vmand %vm1725_vm4, %vm1726_vm5  ;;  %v3037_v26 = vsel %vm935_vm6, 1.0, %v2869_v21  ;;  %vm735_vm12 = vcmp.ge.s32.totalorder %v3016_v15, 6  ;;  %vm736_vm13 = vcmp.lt.s32.totalorder %v3016_v15, 9  ;;  %vm1131_vm15 = vcmp.ge.s32.totalorder %v3016_v15, 12 }
   0x7   :  { %v3042_v29 = vsel %vm1727_vm7, 1.0, %v2869_v21  ;;  %vm456_vm11 = vmand %vm454_vm9, %vm455_vm10  ;;  %vm1132_vm1 = vcmp.lt.s32.totalorder %v3016_v15, 15  ;;  %vm1329_vm3 = vcmp.ge.s32.totalorder %v3016_v15, 15  ;;  %vm1330_vm4 = vcmp.lt.s32.totalorder %v3016_v15, 18 }
   0x8   :  { %v62_v0 = vld [vmem:[%s3446_s29] sm:$0xff]  ;;  %v63_v1 = vld [vmem:[%s3446_s29 + $0x8] sm:$0xff]  ;;  %v64_v4 = vld [vmem:[%s3446_s29 + $0x10] sm:$0xff]  ;;  %v2307_v39 = vsel %vm456_vm11, 1.0, %v2869_v21  ;;  %vm1527_vm6 = vcmp.ge.s32.totalorder %v3016_v15, 18  ;;  %vm1528_vm7 = vcmp.lt.s32.totalorder %v3016_v15, 21 }
   0x9   :  { %v2658_v2 = vpack.c.bf16 %v63_v1, %v62_v0  ;;  %v2976_v3 = vld [vmem:[%s3447_s20] sm:$0xff]  ;;  %v2992_v8 = vld [vmem:[%s3447_s20 + $0x8] sm:$0x3]  ;;  %vm737_vm14 = vmand %vm735_vm12, %vm736_vm13  ;;  %vm572_vm10 = vcmask 1041408   ;;  %vm2870_vm11 = vmmov 1   ;;  %vm428_vm13 = vcmask 80896  }
   0xa   :  { %2488 = vmatprep.mubr.msk.f32.mxu0 %vm86_vm0, %v2976_v3  ;;  %v66_v5 = vld [vmem:[%s3448_s24] sm:$0xff]  ;;  %v67_v6 = vld [vmem:[%s3448_s24 + $0x8] sm:$0xff]  ;;  %v68_v9 = vld [vmem:[%s3448_s24 + $0x10] sm:$0xff]  ;;  %v2318_v42 = vsel %vm737_vm14, 1.0, %v2869_v21  ;;  %vm432_vm14 = vcmask 74752  }
   0xb   :  { %2659 = vmatprep.subr.bf16.mxu0 %v2658_v2  ;;  %v2662_v7 = vpack.c.bf16 %v67_v6, %v66_v5  ;;  %vm1133_vm2 = vmand %vm1131_vm15, %vm1132_vm1  ;;  %vm2098_vm15 = vcmask 1043456   ;;  %vm2871_vm1 = vmmov 0  }
   0xc   :  { %2661 = vmatpush3.bf16.msra.mxu0 %v2658_v2  ;;  %v2334_v45 = vsel %vm1133_vm2, 1.0, %v2869_v21  ;;  %vm1331_vm5 = vmand %vm1329_vm3, %vm1330_vm4 }
   0xd   :  { %2486 = vmatprep.subr.mxu0 %v64_v4  ;;  %v2342_v48 = vsel %vm1331_vm5, 1.0, %v2869_v21  ;;  %vm1529_vm9 = vmand %vm1527_vm6, %vm1528_vm7 }
   0xe   :  { %v2350_v51 = vsel %vm1529_vm9, 1.0, %v2869_v21  ;;  %vm3146_vm12 = vmpackc.low %vm572_vm10, %vm2870_vm11 }
  0x10   :  { %2487 = vmatpush3.msra.mxu0 %v64_v4 }
  0x11   :  { %2489 = vmatmul.mubr.msk.f32.vlgmr.msra.gmra.mrb[0].mxu0 %vm86_vm0, %v2992_v8  ;;  %2663 = vmatprep.subr.bf16.mxu0 %v2662_v7 }
  0x12   :  { %2665 = vmatpush3.bf16.msra.mxu0 %v2662_v7  ;;  %2497 = vmatprep.mubr.msk.f32.mxu0 %vm86_vm0, %v2976_v3 }
  0x13   :  { %2495 = vmatprep.subr.mxu0 %v68_v9 }
  0x16   :  { %2496 = vmatpush3.msra.mxu0 %v68_v9 }
  0x17   :  { %2498 = vmatmul.mubr.msk.f32.vlgmr.msra.gmra.mrb[2].mxu0 %vm86_vm0, %v2992_v8  ;;  %2667 = vmatprep.subr.bf16.mxu0 %v2666_v12 }
  0x18   :  { %2506 = vmatprep.mubr.msk.f32.mxu0 %vm86_vm0, %v2976_v3  ;;  %2669 = vmatpush3.bf16.msra.mxu0 %v2666_v12 }
  0x19   :  { %2504 = vmatprep.subr.mxu0 %v72_v13 }
  0x1c   :  { %2505 = vmatpush3.msra.mxu0 %v72_v13 }
  0x1d   :  { %2507 = vmatmul.mubr.msk.f32.vlgmr.msra.gmra.mrb[4].mxu0 %vm86_vm0, %v2992_v8 }
  0xe4   :  { %v2490_v17 = vpop.f32.mrb[0].mxu0 }
  0xe5   :  { %v165_v18 = vadd.f32 %v2490_v17, %v2293_v16  ;;  %v159_v19 = vpop.f32.mrb[1].mxu0 }
  0xe6   :  { %v160_v20 = vadd.f32 %v2293_v16, %v159_v19 }
  0xe7   :  { %v3029_v23 = vmul.f32 0.57735026, %v165_v18 }
  0xe8   :  { %v3031_v24 = vmul.f32 0.57735026, %v160_v20 }
  0xe9   :  { %v3051_v34 = vmul.f32 %v3037_v26, %v3029_v23  ;;  %v3065_v37 = vmul.f32 %v3042_v29, %v3029_v23  ;;  %v340_v40 = vmul.f32 %v3027_v22, %v3029_v23  ;;  %v460_v43 = vmul.f32 %v2307_v39, %v3029_v23 }
  0xea   :  { %v2499_v27 = vpop.f32.mrb[2].mxu0  ;;  %v339_v28 = vmul.f32 %v3027_v22, %v3031_v24  ;;  %v3047_v33 = vmul.f32 %v3037_v26, %v3031_v24  ;;  %v3061_v36 = vmul.f32 %v3042_v29, %v3031_v24  ;;  %v459_v41 = vmul.f32 %v2307_v39, %v3031_v24 }
  0xeb   :  { %v248_v30 = vadd.f32 %v2499_v27, %v2296_v25  ;;  %v242_v31 = vpop.f32.mrb[3].mxu0  ;;  %v740_v44 = vmul.f32 %v2318_v42, %v3031_v24  ;;  %v741_v46 = vmul.f32 %v2318_v42, %v3029_v23  ;;  %v1136_v47 = vmul.f32 %v2334_v45, %v3031_v24 }
  0xec   :  { %v243_v32 = vadd.f32 %v2296_v25, %v242_v31  ;;  %2513 = vmatprep.mubr.msk.f32.mxu0 %vm86_vm0, %v339_v28  ;;  %v1137_v49 = vmul.f32 %v2334_v45, %v3029_v23  ;;  %v1334_v50 = vmul.f32 %v2342_v48, %v3031_v24  ;;  %v1335_v52 = vmul.f32 %v2342_v48, %v3029_v23 }
  0xed   :  { %v1532_v53 = vmul.f32 %v2350_v51, %v3031_v24  ;;  %v1533_v54 = vmul.f32 %v2350_v51, %v3029_v23  ;;  %v3180_v24 = vld [vmem:[%s3428_s1] sm:$0xff] }
  0xee   :  { %v3067_v38 = vpack.c.bf16 %v248_v30, %v243_v32 }
  0xf0   :  { %2672 = vmatprep.subr.msk.bf16.mxu0 %vm3055_vm8, %v3067_v38  ;;  %v2508_v56 = vpop.f32.mrb[4].mxu0 }
  0xf1   :  { %2675 = vmatpush3.bf16.xpose.msk.msra.mxu0 %vm3055_vm8, %v3067_v38  ;;  %v329_v57 = vadd.f32 %v2508_v56, %v2299_v55  ;;  %v323_v58 = vpop.f32.mrb[5].mxu0 }
  0xf2   :  { %2678 = vmatprep.subr.msk.bf16.mxu0 %vm3055_vm8, %v3067_v38  ;;  %v324_v59 = vadd.f32 %v2299_v55, %v323_v58 }
  0xf3   :  { %v565_v60 = vmul.f32 %v2307_v39, %v329_v57  ;;  %v453_v1 = vmul.f32 %v3027_v22, %v329_v57  ;;  %v846_v4 = vmul.f32 %v2318_v42, %v329_v57  ;;  %v1044_v6 = vmul.f32 %v3037_v26, %v329_v57 }
  0xf4   :  { %v564_v61 = vmul.f32 %v2307_v39, %v324_v59  ;;  %v452_v0 = vmul.f32 %v3027_v22, %v324_v59  ;;  %v845_v2 = vmul.f32 %v2318_v42, %v324_v59  ;;  %v1043_v5 = vmul.f32 %v3037_v26, %v324_v59  ;;  %v3185_v26 = vld [vmem:[%s3428_s1 + $0x8] sm:$0x3] }
  0xf5   :  { %v1241_v7 = vmul.f32 %v2334_v45, %v324_v59  ;;  %v1242_v9 = vmul.f32 %v2334_v45, %v329_v57  ;;  %v1439_v12 = vmul.f32 %v2342_v48, %v324_v59  ;;  %v1440_v13 = vmul.f32 %v2342_v48, %v329_v57 }
  0xf6   :  { %v2682_v63 = vpack.c.bf16 %v565_v60, %v564_v61  ;;  %v3158_v10 = vpack.c.bf16 %v453_v1, %v452_v0  ;;  %v3160_v11 = vpack.c.bf16 %v846_v4, %v845_v2  ;;  %v3162_v14 = vpack.c.bf16 %v1044_v6, %v1043_v5 }
  0xf7   :  { %v3164_v15 = vpack.c.bf16 %v1242_v9, %v1241_v7  ;;  %v1637_v16 = vmul.f32 %v2350_v51, %v324_v59  ;;  %v1638_v17 = vmul.f32 %v2350_v51, %v329_v57  ;;  %v3169_v18 = vpack.c.bf16 %v1440_v13, %v1439_v12 }
  0xf8   :  { %2514 = vmatmul.mubr.msk.f32.vlgmr.msra.gmra.mrb[6].mxu0 %vm86_vm0, %v340_v40  ;;  %2684 = vmatprep.subr.msk.bf16.mxu1 %vm3146_vm12, %v2682_v63  ;;  %v1835_v19 = vmul.f32 %v3042_v29, %v324_v59  ;;  %v1836_v20 = vmul.f32 %v3042_v29, %v329_v57 }
  0xf9   :  { %2681 = vmatpush3.bf16.xpose.msk.msra.mxu0 %vm3055_vm8, %v3067_v38  ;;  %2520 = vmatprep.mubr.msk.f32.mxu0 %vm86_vm0, %v459_v41  ;;  %v3173_v22 = vpack.c.bf16 %v1638_v17, %v1637_v16 }
  0xfa   :  { %2696 = vmatprep.subr.msk.bf16.mxu0 %vm3055_vm8, %v3067_v38  ;;  %2687 = vmatpush3.bf16.msk.msra.mxu1 %vm3146_vm12, %v2682_v63  ;;  %v3175_v23 = vpack.c.bf16 %v1836_v20, %v1835_v19 }
  0xfb   :  { %2690 = vmatprep.subr.msk.bf16.mxu1 %vm3146_vm12, %v3158_v10 }
 0x100   :  { %2521 = vmatmul.mubr.msk.f32.vlgmr.msra.gmra.mrb[8].mxu0 %vm86_vm0, %v460_v43 }
 0x101   :  { %2699 = vmatpush3.bf16.xpose.msk.msra.mxu0 %vm3055_vm8, %v3067_v38  ;;  %2541 = vmatprep.mubr.msk.f32.mxu0 %vm86_vm0, %v740_v44 }
 0x102   :  { %2720 = vmatprep.subr.msk.bf16.mxu0 %vm3055_vm8, %v3067_v38 }
 0x108   :  { %2542 = vmatmul.mubr.msk.f32.vlgmr.msra.gmra.mrb[10].mxu0 %vm86_vm0, %v741_v46 }
 0x109   :  { %2723 = vmatpush3.bf16.xpose.msk.msra.mxu0 %vm3055_vm8, %v3067_v38  ;;  %2569 = vmatprep.mubr.msk.f32.mxu0 %vm86_vm0, %v1136_v47 }
 0x10a   :  { %2732 = vmatprep.subr.msk.bf16.mxu0 %vm3055_vm8, %v3067_v38 }
 0x110   :  { %2570 = vmatmul.mubr.msk.f32.vlgmr.msra.gmra.mrb[12].mxu0 %vm86_vm0, %v1137_v49 }
 0x111   :  { %2735 = vmatpush3.bf16.xpose.msk.msra.mxu0 %vm3055_vm8, %v3067_v38  ;;  %2583 = vmatprep.mubr.msk.f32.mxu0 %vm86_vm0, %v1334_v50 }
 0x112   :  { %2744 = vmatprep.subr.msk.bf16.mxu0 %vm3055_vm8, %v3067_v38 }
 0x118   :  { %2584 = vmatmul.mubr.msk.f32.vlgmr.msra.gmra.mrb[14].mxu0 %vm86_vm0, %v1335_v52 }
 0x119   :  { %2747 = vmatpush3.bf16.xpose.msk.msra.mxu0 %vm3055_vm8, %v3067_v38  ;;  %2597 = vmatprep.mubr.msk.f32.mxu0 %vm86_vm0, %v1532_v53 }
 0x120   :  { %2598 = vmatmul.mubr.msk.f32.vlgmr.msra.gmra.mrb[16].mxu0 %vm86_vm0, %v1533_v54 }
 0x1cb   :  { %v2515_v25 = vpop.f32.mrb[6].mxu0 }
 0x1cc   :  { %v419_v27 = vpop.f32.mrb[7].mxu0  ;;  %v425_v29 = vadd.f32 %v2515_v25, %v3185_v26 }
 0x1cd   :  { %v420_v28 = vadd.f32 %v419_v27, %v3180_v24 }
 0x1ce   :  { %v433_v32 = vsel %vm432_vm14, %v425_v29, -inf }
 0x1cf   :  { %v429_v30 = vsel %vm428_vm13, %v420_v28, -inf }
 0x1d0   :  { %430 = vmax.xlane.f32.xlu1 %v429_v30 }
 0x1d3   :  { %v2522_v31 = vpop.f32.mrb[8].mxu0 }
 0x1d4   :  { %v533_v39 = vpop.f32.mrb[9].mxu0  ;;  %434 = vmax.xlane.f32.xlu1 %v433_v32  ;;  %v539_v41 = vadd.f32 %v2522_v31, %v3185_v26 }
 0x1d5   :  { %v534_v40 = vadd.f32 %v533_v39, %v3180_v24 }
 0x1d6   :  { %v545_v44 = vsel %vm432_vm14, %v539_v41, -inf }
 0x1d7   :  { %v542_v42 = vsel %vm428_vm13, %v534_v40, -inf }
 0x1d8   :  { %543 = vmax.xlane.f32.xlu0 %v542_v42 }
 0x1db   :  { %v2543_v43 = vpop.f32.mrb[10].mxu0 }
 0x1dc   :  { %v820_v45 = vadd.f32 %v2543_v43, %v3185_v26  ;;  %v814_v46 = vpop.f32.mrb[11].mxu0  ;;  %546 = vmax.xlane.f32.xlu0 %v545_v44 }
 0x1dd   :  { %v815_v47 = vadd.f32 %v814_v46, %v3180_v24 }
 0x1de   :  { %v826_v48 = vsel %vm432_vm14, %v820_v45, -inf }
 0x1df   :  { %827 = vmax.xlane.f32.xlu1 %v826_v48  ;;  %v823_v49 = vsel %vm428_vm13, %v815_v47, -inf }
 0x1e0   :  { %824 = vmax.xlane.f32.xlu0 %v823_v49 }
 0x1e3   :  { %v3199_v50 = vpop.f32.mrb[12].mxu0 }
 0x1e4   :  { %v3201_v51 = vpop.f32.mrb[13].mxu0 }
 0x1eb   :  { %v3203_v52 = vpop.f32.mrb[14].mxu0 }
 0x1ec   :  { %v3205_v53 = vpop.f32.mrb[15].mxu0 }
 0x1f3   :  { %v3207_v54 = vpop.f32.mrb[16].mxu0 }
 0x1f4   :  { %v3209_v55 = vpop.f32.mrb[17].mxu0 }
 0x25d   :  { %v431_v56 = vpop.xlane.xlu1 %430 }
 0x25e   :  { %v436_v57 = vsub.f32 %v420_v28, %v431_v56 }
 0x260   :  { %v438_v61 = vmul.f32 1.442695, %v436_v57 }
 0x261   :  { %v435_v58 = vpop.xlane.xlu1 %434 }
 0x262   :  { %v437_v63 = vsub.f32 %v425_v29, %v435_v58 }
 0x264   :  { %v440_v4 = vmul.f32 1.442695, %v437_v63 }
 0x265   :  { %v544_v59 = vpop.xlane.xlu0 %543 }
 0x266   :  { %v548_v60 = vsub.f32 %v534_v40, %v544_v59 }
 0x268   :  { %v550_v0 = vmul.f32 1.442695, %v548_v60 }
 0x269   :  { %v547_v1 = vpop.xlane.xlu0 %546 }
 0x26a   :  { %2797 = vpow2.f32 %v550_v0  ;;  %v549_v2 = vsub.f32 %v539_v41, %v547_v1 }
 0x26b   :  { %2799 = vpow2.f32 %v438_v61 }
 0x26c   :  { %v552_v5 = vmul.f32 1.442695, %v549_v2  ;;  %v828_v6 = vpop.xlane.xlu1 %827 }
 0x26d   :  { %v830_v7 = vsub.f32 %v820_v45, %v828_v6  ;;  %v825_v9 = vpop.xlane.xlu0 %824  ;;  %v1414_v6 = vadd.f32 %v3203_v52, %v3185_v26 }
 0x26e   :  { %2801 = vpow2.f32 %v552_v5  ;;  %v829_v12 = vsub.f32 %v815_v47, %v825_v9  ;;  %v1409_v9 = vadd.f32 %v3205_v53, %v3180_v24 }
 0x26f   :  { %2803 = vpow2.f32 %v440_v4  ;;  %v833_v13 = vmul.f32 1.442695, %v830_v7  ;;  %v1216_v4 = vadd.f32 %v3199_v50, %v3185_v26 }
 0x270   :  { %v831_v16 = vmul.f32 1.442695, %v829_v12  ;;  %v1612_v12 = vadd.f32 %v3207_v54, %v3185_v26  ;;  %v1417_v52 = vsel %vm428_vm13, %v1409_v9, -inf }
 0x271   :  { %v1222_v7 = vsel %vm432_vm14, %v1216_v4, -inf }
 0x272   :  { %2805 = vpow2.f32 %v831_v16  ;;  %v1618_v16 = vsel %vm432_vm14, %v1612_v12, -inf }
 0x273   :  { %2807 = vpow2.f32 %v833_v13  ;;  %v1607_v13 = vadd.f32 %v3209_v55, %v3180_v24 }
 0x274   :  { %v2798_v17 = vpop.eup %2797 }
 0x275   :  { %v554_v19 = vsel %vm428_vm13, %v2798_v17, 0.0  ;;  %v2800_v20 = vpop.eup %2799  ;;  %v1615_v53 = vsel %vm428_vm13, %v1607_v13, -inf }
 0x276   :  { %555 = vadd.xlane.f32.xlu0 %v554_v19  ;;  %v442_v28 = vsel %vm428_vm13, %v2800_v20, 0.0 }
 0x278   :  { %v2802_v25 = vpop.eup %2801 }
 0x279   :  { %v557_v27 = vsel %vm432_vm14, %v2802_v25, 0.0  ;;  %v2804_v29 = vpop.eup %2803 }
 0x27a   :  { %558 = vadd.xlane.f32.xlu1 %v557_v27  ;;  %443 = vadd.xlane.f32.xlu0 %v442_v28  ;;  %v445_v32 = vsel %vm432_vm14, %v2804_v29, 0.0 }
 0x27c   :  { %v2806_v30 = vpop.eup %2805 }
 0x27d   :  { %v835_v31 = vsel %vm428_vm13, %v2806_v30, 0.0  ;;  %v2808_v39 = vpop.eup %2807 }
 0x27e   :  { %836 = vadd.xlane.f32.xlu0 %v835_v31  ;;  %446 = vadd.xlane.f32.xlu1 %v445_v32  ;;  %v838_v40 = vsel %vm432_vm14, %v2808_v39, 0.0 }
 0x282   :  { %839 = vadd.xlane.f32.xlu1 %v838_v40 }
 0x303   :  { %v556_v41 = vpop.xlane.xlu0 %555 }
 0x304   :  { %2809 = vrcp.f32 %v556_v41 }
 0x307   :  { %v444_v42 = vpop.xlane.xlu0 %443  ;;  %v559_v43 = vpop.xlane.xlu1 %558 }
 0x308   :  { %2811 = vrcp.f32 %v444_v42 }
 0x309   :  { %2813 = vrcp.f32 %v559_v43 }
 0x30b   :  { %v447_v44 = vpop.xlane.xlu1 %446  ;;  %v837_v45 = vpop.xlane.xlu0 %836 }
 0x30c   :  { %2815 = vrcp.f32 %v447_v44 }
 0x30d   :  { %2817 = vrcp.f32 %v837_v45 }
 0x30e   :  { %v2810_v46 = vpop.eup %2809 }
 0x30f   :  { %v562_v47 = vmul.f32 %v2810_v46, %v2798_v17  ;;  %v840_v57 = vpop.xlane.xlu1 %839 }
 0x310   :  { %2819 = vrcp.f32 %v840_v57 }
 0x311   :  { %2527 = vmatprep.mubr.msk.f32.mxu1 %vm428_vm13, %v562_v47 }
 0x312   :  { %v2812_v48 = vpop.eup %2811 }
 0x313   :  { %v2814_v49 = vpop.eup %2813  ;;  %v450_v56 = vmul.f32 %v2812_v48, %v2800_v20 }
 0x314   :  { %v563_v58 = vmul.f32 %v2814_v49, %v2802_v25 }
 0x316   :  { %2528 = vmatmul.mubr.msk.f32.vlgmr.msra.gmra.mrb[0].mxu1 %vm428_vm13, %v563_v58  ;;  %v2816_v59 = vpop.eup %2815 }
 0x317   :  { %2693 = vmatpush3.bf16.msk.msra.mxu1 %vm3146_vm12, %v3158_v10  ;;  %2534 = vmatprep.mubr.msk.f32.mxu1 %vm428_vm13, %v450_v56  ;;  %v2818_v60 = vpop.eup %2817  ;;  %v451_v61 = vmul.f32 %v2816_v59, %v2804_v29 }
 0x318   :  { %2702 = vmatprep.subr.msk.bf16.mxu1 %vm3146_vm12, %v3160_v11  ;;  %v843_v63 = vmul.f32 %v2818_v60, %v2806_v30 }
 0x31a   :  { %v2820_v10 = vpop.eup %2819 }
 0x31b   :  { %v844_v0 = vmul.f32 %v2820_v10, %v2808_v39 }
 0x31e   :  { %2535 = vmatmul.mubr.msk.f32.vlgmr.msra.gmra.mrb[0].mxu1 %vm428_vm13, %v451_v61 }
 0x31f   :  { %2705 = vmatpush3.bf16.msk.msra.mxu1 %vm3146_vm12, %v3160_v11  ;;  %2548 = vmatprep.mubr.msk.f32.mxu1 %vm428_vm13, %v843_v63 }
 0x320   :  { %2708 = vmatprep.subr.msk.bf16.mxu1 %vm3055_vm8, %v3067_v38 }
 0x326   :  { %2549 = vmatmul.mubr.msk.f32.vlgmr.msra.gmra.mrb[0].mxu1 %vm428_vm13, %v844_v0 }
 0x327   :  { %2555 = vmatprep.mubr.msk.f32.mxu1 %vm86_vm0, %v3047_v33 }
 0x328   :  { %2711 = vmatpush3.bf16.xpose.msk.msra.mxu1 %vm3055_vm8, %v3067_v38 }
 0x329   :  { %2714 = vmatprep.subr.msk.bf16.mxu1 %vm3146_vm12, %v3162_v14 }
 0x32f   :  { %2556 = vmatmul.mubr.msk.f32.vlgmr.msra.gmra.mrb[2].mxu1 %vm86_vm0, %v3051_v34  ;;  %v1211_v34 = vadd.f32 %v3201_v51, %v3180_v24  ;;  %v1420_v51 = vsel %vm432_vm14, %v1414_v6, -inf }
 0x330   :  { %2717 = vmatpush3.bf16.msk.msra.mxu1 %vm3146_vm12, %v3162_v14 }
 0x331   :  { %2726 = vmatprep.subr.msk.bf16.mxu1 %vm3146_vm12, %v3164_v15  ;;  %v1219_v50 = vsel %vm428_vm13, %v1211_v34, -inf }
 0x402   :  { %v2557_v33 = vpop.f32.mrb[2].mxu1 }
 0x403   :  { %v1018_v11 = vadd.f32 %v2557_v33, %v3185_v26  ;;  %v1012_v1 = vpop.f32.mrb[3].mxu1 }
 0x404   :  { %v1013_v2 = vadd.f32 %v1012_v1, %v3180_v24 }
 0x405   :  { %v1024_v5 = vsel %vm432_vm14, %v1018_v11, -inf }
 0x406   :  { %1025 = vmax.xlane.f32.xlu1 %v1024_v5  ;;  %v1021_v14 = vsel %vm428_vm13, %v1013_v2, -inf }
 0x407   :  { %1022 = vmax.xlane.f32.xlu0 %v1021_v14 }
 0x40a   :  { %1223 = vmax.xlane.f32.xlu1 %v1222_v7 }
 0x40b   :  { %1220 = vmax.xlane.f32.xlu0 %v1219_v50 }
 0x40e   :  { %1421 = vmax.xlane.f32.xlu1 %v1420_v51 }
 0x40f   :  { %1418 = vmax.xlane.f32.xlu0 %v1417_v52 }
 0x412   :  { %1619 = vmax.xlane.f32.xlu1 %v1618_v16 }
 0x413   :  { %1616 = vmax.xlane.f32.xlu0 %v1615_v53 }
 0x493   :  { %v1026_v17 = vpop.xlane.xlu1 %1025 }
 0x494   :  { %v1028_v19 = vsub.f32 %v1018_v11, %v1026_v17  ;;  %v1023_v20 = vpop.xlane.xlu0 %1022 }
 0x495   :  { %v1027_v25 = vsub.f32 %v1013_v2, %v1023_v20 }
 0x496   :  { %v1031_v54 = vmul.f32 1.442695, %v1028_v19 }
 0x497   :  { %v1029_v27 = vmul.f32 1.442695, %v1027_v25  ;;  %v1224_v28 = vpop.xlane.xlu1 %1223 }
 0x498   :  { %2821 = vpow2.f32 %v1031_v54  ;;  %v1226_v29 = vsub.f32 %v1216_v4, %v1224_v28  ;;  %v1221_v55 = vpop.xlane.xlu0 %1220 }
 0x499   :  { %2823 = vpow2.f32 %v1029_v27  ;;  %v1225_v30 = vsub.f32 %v1211_v34, %v1221_v55 }
 0x49a   :  { %v1229_v31 = vmul.f32 1.442695, %v1226_v29 }
 0x49b   :  { %v1227_v32 = vmul.f32 1.442695, %v1225_v30  ;;  %v1422_v39 = vpop.xlane.xlu1 %1421 }
 0x49c   :  { %2825 = vpow2.f32 %v1229_v31  ;;  %v1424_v40 = vsub.f32 %v1414_v6, %v1422_v39  ;;  %v1419_v41 = vpop.xlane.xlu0 %1418 }
 0x49d   :  { %2827 = vpow2.f32 %v1227_v32  ;;  %v1423_v42 = vsub.f32 %v1409_v9, %v1419_v41 }
 0x49e   :  { %v1427_v43 = vmul.f32 1.442695, %v1424_v40 }
 0x49f   :  { %v1425_v44 = vmul.f32 1.442695, %v1423_v42  ;;  %v1620_v45 = vpop.xlane.xlu1 %1619 }
 0x4a0   :  { %2829 = vpow2.f32 %v1427_v43  ;;  %v1622_v46 = vsub.f32 %v1612_v12, %v1620_v45  ;;  %v1617_v47 = vpop.xlane.xlu0 %1616 }
 0x4a1   :  { %2831 = vpow2.f32 %v1425_v44  ;;  %v1621_v48 = vsub.f32 %v1607_v13, %v1617_v47  ;;  %v75_v47 = vld [vmem:[%s3429_s8 + $0x8] sm:$0xff] }
 0x4a2   :  { %v2822_v49 = vpop.eup %2821  ;;  %v1625_v56 = vmul.f32 1.442695, %v1622_v46  ;;  %v74_v46 = vld [vmem:[%s3429_s8] sm:$0xff] }
 0x4a3   :  { %v2824_v57 = vpop.eup %2823  ;;  %v1623_v58 = vmul.f32 1.442695, %v1621_v48  ;;  %v1036_v59 = vsel %vm432_vm14, %v2822_v49, 0.0  ;;  %v2766_v48 = vpack.c.bf16 %v75_v47, %v74_v46 }
 0x4a4   :  { %2833 = vpow2.f32 %v1625_v56  ;;  %1037 = vadd.xlane.f32.xlu1 %v1036_v59  ;;  %v1033_v60 = vsel %vm428_vm13, %v2824_v57, 0.0 }
 0x4a5   :  { %2835 = vpow2.f32 %v1623_v58  ;;  %1034 = vadd.xlane.f32.xlu0 %v1033_v60  ;;  %2767 = vmatprep.subr.bf16.mxu0 %v2766_v48 }
 0x4a6   :  { %v2826_v61 = vpop.eup %2825  ;;  %2769 = vmatpush3.bf16.msra.mxu0 %v2766_v48 }
 0x4a7   :  { %v2828_v63 = vpop.eup %2827  ;;  %v1234_v10 = vsel %vm432_vm14, %v2826_v61, 0.0 }
 0x4a8   :  { %1235 = vadd.xlane.f32.xlu1 %v1234_v10  ;;  %v1231_v0 = vsel %vm428_vm13, %v2828_v63, 0.0 }
 0x4a9   :  { %1232 = vadd.xlane.f32.xlu0 %v1231_v0  ;;  %v2366_v0 = vld [vmem:[%s3430_s9] ss:$0 sm:$0xff] }
 0x4aa   :  { %v2830_v33 = vpop.eup %2829 }
 0x4ab   :  { %v2832_v11 = vpop.eup %2831  ;;  %v1432_v1 = vsel %vm432_vm14, %v2830_v33, 0.0 }
 0x4ac   :  { %1433 = vadd.xlane.f32.xlu1 %v1432_v1  ;;  %v1429_v2 = vsel %vm428_vm13, %v2832_v11, 0.0 }
 0x4ad   :  { %1430 = vadd.xlane.f32.xlu0 %v1429_v2 }
 0x4ae   :  { %v2834_v4 = vpop.eup %2833 }
 0x4af   :  { %v2836_v5 = vpop.eup %2835  ;;  %v1630_v34 = vsel %vm432_vm14, %v2834_v4, 0.0 }
 0x4b0   :  { %1631 = vadd.xlane.f32.xlu1 %v1630_v34  ;;  %v1627_v14 = vsel %vm428_vm13, %v2836_v5, 0.0 }
 0x4b1   :  { %1628 = vadd.xlane.f32.xlu0 %v1627_v14 }
 0x531   :  { %v1038_v6 = vpop.xlane.xlu1 %1037 }
 0x532   :  { %2837 = vrcp.f32 %v1038_v6  ;;  %v1035_v7 = vpop.xlane.xlu0 %1034 }
 0x533   :  { %2839 = vrcp.f32 %v1035_v7 }
 0x535   :  { %v1236_v50 = vpop.xlane.xlu1 %1235 }
 0x536   :  { %v1233_v9 = vpop.xlane.xlu0 %1232 }
 0x537   :  { %2841 = vrcp.f32 %v1233_v9 }
 0x538   :  { %2843 = vrcp.f32 %v1236_v50 }
 0x539   :  { %v1434_v53 = vpop.xlane.xlu1 %1433 }
 0x53a   :  { %v1431_v12 = vpop.xlane.xlu0 %1430 }
 0x53b   :  { %2845 = vrcp.f32 %v1431_v12 }
 0x53c   :  { %v2838_v51 = vpop.eup %2837  ;;  %2847 = vrcp.f32 %v1434_v53  ;;  %v2788_v53 = vld [vmem:[%s3431_s12 + $0x8] ss:$0 sps:$4 sm:$0xff]  }
 0x53d   :  { %v2840_v13 = vpop.eup %2839  ;;  %v1042_v16 = vmul.f32 %v2838_v51, %v2822_v49  ;;  %v1632_v28 = vpop.xlane.xlu1 %1631 }
 0x53e   :  { %v1041_v52 = vmul.f32 %v2840_v13, %v2824_v57  ;;  %v1629_v17 = vpop.xlane.xlu0 %1628 }
 0x53f   :  { %2849 = vrcp.f32 %v1629_v17  ;;  %v2100_v17 = vsel %vm2098_vm15, %v2788_v53, 0 }
 0x540   :  { %2562 = vmatprep.mubr.msk.f32.mxu1 %vm428_vm13, %v1041_v52  ;;  %2851 = vrcp.f32 %v1632_v28  ;;  %v2794_v28 = vld [vmem:[%s3432_s14 + $0x28] sm:$0xff]  }
 0x541   :  { %v2842_v19 = vpop.eup %2841  ;;  %2563 = vmatmul.mubr.msk.f32.vlgmr.msra.gmra.mrb[0].mxu1 %vm428_vm13, %v1042_v16 }
 0x542   :  { %2729 = vmatpush3.bf16.msk.msra.mxu1 %vm3146_vm12, %v3164_v15  ;;  %v1239_v20 = vmul.f32 %v2842_v19, %v2828_v63  ;;  %v2844_v25 = vpop.eup %2843  ;;  %v2789_v19 = vld [vmem:[%s3432_s14] sm:$0xff]  }
 0x543   :  { %2738 = vmatprep.subr.msk.bf16.mxu1 %vm3146_vm12, %v3169_v18  ;;  %v1240_v27 = vmul.f32 %v2844_v25, %v2826_v61  ;;  %v76_v61 = vld [vmem:[%s3429_s8 + $0x10] sm:$0xff] }
 0x544   :  { %2576 = vmatprep.mubr.msk.f32.mxu1 %vm428_vm13, %v1239_v20  ;;  %2625 = vmatprep.subr.mxu0 %v76_v61  ;;  %v2790_v20 = vld [vmem:[%s3432_s14 + $0x8] sm:$0xff]   ;;  %v2791_v25 = vld [vmem:[%s3432_s14 + $0x10] sm:$0xff]  }
 0x545   :  { %v2846_v54 = vpop.eup %2845  ;;  %2626 = vmatpush3.msra.mxu0 %v76_v61 }
 0x546   :  { %v1437_v29 = vmul.f32 %v2846_v54, %v2832_v11  ;;  %v2848_v15 = vpop.eup %2847  ;;  %2630 = vmatprep.subr.bf16.mxu0 %v2869_v21  ;;  %v2792_v54 = vld [vmem:[%s3432_s14 + $0x18] sm:$0xff]  }
 0x547   :  { %v1438_v30 = vmul.f32 %v2848_v15, %v2830_v33 }
 0x549   :  { %2577 = vmatmul.mubr.msk.f32.vlgmr.msra.gmra.mrb[0].mxu1 %vm428_vm13, %v1240_v27  ;;  %v2850_v55 = vpop.eup %2849  ;;  %v2793_v27 = vld [vmem:[%s3432_s14 + $0x20] sm:$0xff]  }
 0x54a   :  { %2741 = vmatpush3.bf16.msk.msra.mxu1 %vm3146_vm12, %v3169_v18  ;;  %2590 = vmatprep.mubr.msk.f32.mxu1 %vm428_vm13, %v1437_v29  ;;  %v1635_v31 = vmul.f32 %v2850_v55, %v2836_v5  ;;  %v2852_v18 = vpop.eup %2851 }
 0x54b   :  { %2750 = vmatprep.subr.msk.bf16.mxu1 %vm3146_vm12, %v3173_v22  ;;  %v1636_v32 = vmul.f32 %v2852_v18, %v2834_v4 }
 0x551   :  { %2591 = vmatmul.mubr.msk.f32.vlgmr.msra.gmra.mrb[0].mxu1 %vm428_vm13, %v1438_v30 }
 0x552   :  { %2753 = vmatpush3.bf16.msk.msra.mxu1 %vm3146_vm12, %v3173_v22  ;;  %2604 = vmatprep.mubr.msk.f32.mxu1 %vm428_vm13, %v1635_v31 }
 0x553   :  { %2756 = vmatprep.subr.msk.bf16.mxu1 %vm3055_vm8, %v3067_v38 }
 0x559   :  { %2605 = vmatmul.mubr.msk.f32.vlgmr.msra.gmra.mrb[0].mxu1 %vm428_vm13, %v1636_v32 }
 0x55a   :  { %2611 = vmatprep.mubr.msk.f32.mxu1 %vm86_vm0, %v3061_v36 }
 0x55b   :  { %2759 = vmatpush3.bf16.xpose.msk.msra.mxu1 %vm3055_vm8, %v3067_v38  ;;  %vm2017_vm8 = vcmask 189440  }
 0x55c   :  { %2762 = vmatprep.subr.msk.bf16.mxu1 %vm3146_vm12, %v3175_v23 }
 0x562   :  { %2612 = vmatmul.mubr.msk.f32.vlgmr.msra.gmra.mrb[4].mxu1 %vm86_vm0, %v3065_v37 }
 0x563   :  { %2765 = vmatpush3.bf16.msk.msra.mxu1 %vm3146_vm12, %v3175_v23 }
 0x564   :  { %2638 = vmatprep.subr.bf16.mxu1 %v2869_v21 }
 0x635   :  { %v2613_v22 = vpop.f32.mrb[4].mxu1 }
 0x636   :  { %v1810_v36 = vadd.f32 %v2613_v22, %v3185_v26  ;;  %v1804_v39 = vpop.f32.mrb[5].mxu1  ;;  %v2369_v22 = vld [vmem:[%s3433_s10] ss:$0 sm:$0xff] }
 0x637   :  { %v1805_v35 = vadd.f32 %v1804_v39, %v3180_v24 }
 0x638   :  { %v1816_v38 = vsel %vm432_vm14, %v1810_v36, -inf }
 0x639   :  { %1817 = vmax.xlane.f32.xlu1 %v1816_v38  ;;  %v1813_v40 = vsel %vm428_vm13, %v1805_v35, -inf  ;;  %v2370_v38 = vld [vmem:[%s3434_s11] ss:$0 sm:$0xff] }
 0x63a   :  { %1814 = vmax.xlane.f32.xlu0 %v1813_v40 }
 0x6c6   :  { %v1818_v41 = vpop.xlane.xlu1 %1817 }
 0x6c7   :  { %v1820_v37 = vsub.f32 %v1810_v36, %v1818_v41  ;;  %v1815_v42 = vpop.xlane.xlu0 %1814 }
 0x6c8   :  { %v1819_v43 = vsub.f32 %v1805_v35, %v1815_v42 }
 0x6c9   :  { %v1823_v62 = vmul.f32 1.442695, %v1820_v37 }
 0x6ca   :  { %v1821_v23 = vmul.f32 1.442695, %v1819_v43 }
 0x6cb   :  { %2853 = vpow2.f32 %v1823_v62  ;;  %v2795_v62 = vld [vmem:[%s3432_s14 + $0x30] sm:$0xff]  }
 0x6cc   :  { %2855 = vpow2.f32 %v1821_v23  ;;  %v2796_v23 = vld [vmem:[%s3432_s14 + $0x38] sm:$0xff]  }
 0x6d5   :  { %v2854_v44 = vpop.eup %2853 }
 0x6d6   :  { %v2856_v45 = vpop.eup %2855  ;;  %v1828_v26 = vsel %vm432_vm14, %v2854_v44, 0.0 }
 0x6d7   :  { %1829 = vadd.xlane.f32.xlu1 %v1828_v26  ;;  %v1825_v24 = vsel %vm428_vm13, %v2856_v45, 0.0 }
 0x6d8   :  { %1826 = vadd.xlane.f32.xlu0 %v1825_v24 }
 0x764   :  { %v1830_v49 = vpop.xlane.xlu1 %1829 }
 0x765   :  { %2857 = vrcp.f32 %v1830_v49  ;;  %v1827_v56 = vpop.xlane.xlu0 %1826 }
 0x766   :  { %2859 = vrcp.f32 %v1827_v56 }
 0x76f   :  { %v2858_v57 = vpop.eup %2857 }
 0x770   :  { %v2860_v58 = vpop.eup %2859  ;;  %v1834_v60 = vmul.f32 %v2858_v57, %v2854_v44  ;;  %v2371_v44 = vld [vmem:[%s3435_s13] ss:$0 sm:$0xff] }
 0x771   :  { %v1833_v59 = vmul.f32 %v2860_v58, %v2856_v45 }
 0x773   :  { %2618 = vmatprep.mubr.msk.f32.mxu1 %vm428_vm13, %v1833_v59 }
 0x774   :  { %2619 = vmatmul.mubr.msk.f32.vlgmr.msra.gmra.mrb[0].mxu1 %vm428_vm13, %v1834_v60 }
 0x775   :  { %2654 = vmatprep.mubr.msk.bf16.mxu1 %vm2871_vm1, %v2869_v21  ;;  %2639 = vmatpush3.bf16.msra.mxu1 %v2789_v19 }
 0x776   :  { %2640 = vmatprep.subr.bf16.mxu1 %v2869_v21 }
 0x779   :  { %2641 = vmatpush3.bf16.msra.mxu1 %v2790_v20 }
 0x77a   :  { %2642 = vmatprep.subr.bf16.mxu1 %v2869_v21 }
 0x77d   :  { %2643 = vmatpush3.bf16.msra.mxu1 %v2791_v25  ;;  %v2385_v25 = vld [vmem:[%s3438_s17] ss:$0 sm:$0xff] }
 0x77e   :  { %2644 = vmatprep.subr.bf16.mxu1 %v2869_v21 }
 0x781   :  { %2645 = vmatpush3.bf16.msra.mxu1 %v2792_v54 }
 0x782   :  { %2646 = vmatprep.subr.bf16.mxu1 %v2869_v21 }
 0x785   :  { %2647 = vmatpush3.bf16.msra.mxu1 %v2793_v27 }
 0x786   :  { %2648 = vmatprep.subr.bf16.mxu1 %v2869_v21 }
 0x789   :  { %2649 = vmatpush3.bf16.msra.mxu1 %v2794_v28 }
 0x78a   :  { %2650 = vmatprep.subr.bf16.mxu1 %v2869_v21 }
 0x78d   :  { %2651 = vmatpush3.bf16.msra.mxu1 %v2795_v62 }
 0x78e   :  { %2652 = vmatprep.subr.bf16.mxu1 %v2869_v21 }
 0x791   :  { %2653 = vmatpush3.bf16.msra.mxu1 %v2796_v23 }
 0x847   :  { %v2620_v63 = vpop.f32.mrb[0].mxu1 }
 0x848   :  { %v1912_v10 = vpop.f32.mrb[1].mxu1 }
 0x849   :  { %2627 = vmatprep.mubr.msk.f32.mxu0 %vm86_vm0, %v1912_v10 }
 0x84a   :  { %2628 = vmatmul.mubr.msk.f32.vlgmr.msra.gmra.mrb[18].mxu0 %vm86_vm0, %v2620_v63 }
 0x84b   :  { %2634 = vmatprep.mubr.msk.bf16.mxu0 %vm2871_vm1, %v2869_v21 }
 0x91d   :  { %v2629_v33 = vpop.f32.mrb[18].mxu0 }
 0x91e   :  { %v2007_v11 = vadd.f32 %v2629_v33, %v2366_v0  ;;  %v2001_v1 = vpop.f32.mrb[19].mxu0 }
 0x91f   :  { %v2002_v2 = vadd.f32 %v2366_v0, %v2001_v1 }
 0x920   :  { %v2011_v4 = vadd.f32 %v2007_v11, %v2992_v8 }
 0x921   :  { %v2010_v5 = vadd.f32 %v2002_v2, %v2976_v3  ;;  %v2787_v3 = vld [vmem:[%s3431_s12] sm:$0xff]  }
 0x922   :  { %v2018_v34 = vsel %vm2017_vm8, %v2011_v4, 0.0  ;;  %2631 = vmatpush3.bf16.msra.mxu0 %v2787_v3 }
 0x923   :  { %2019 = vadd.xlane.f32.xlu1 %v2018_v34  ;;  %v2014_v14 = vsel %vm86_vm0, %v2010_v5, 0.0  ;;  %2632 = vmatprep.subr.bf16.mxu0 %v2869_v21  ;;  %v2375_v21 = vld [vmem:[%s3436_s15] ss:$0 sm:$0xff] }
 0x924   :  { %2015 = vadd.xlane.f32.xlu0 %v2014_v14 }
 0x926   :  { %2633 = vmatpush3.bf16.msra.mxu0 %v2100_v17  ;;  %v2384_v17 = vld [vmem:[%s3437_s16] ss:$0 sm:$0xff] }
 0x9b0   :  { %v2020_v6 = vpop.xlane.xlu1 %2019 }
 0x9b1   :  { %v2023_v7 = vmul.f32 0.041666668, %v2020_v6  ;;  %v2016_v9 = vpop.xlane.xlu0 %2015 }
 0x9b2   :  { %v2022_v50 = vmul.f32 0.041666668, %v2016_v9 }
 0x9b3   :  { %v2025_v12 = vsub.f32 %v2011_v4, %v2023_v7 }
 0x9b4   :  { %v2024_v51 = vsub.f32 %v2010_v5, %v2022_v50 }
 0x9b5   :  { %v2027_v13 = vmul.f32 %v2025_v12, %v2025_v12 }
 0x9b6   :  { %v2026_v52 = vmul.f32 %v2024_v51, %v2024_v51 }
 0x9b7   :  { %v2031_v16 = vsel %vm2017_vm8, %v2027_v13, 0.0 }
 0x9b8   :  { %2032 = vadd.xlane.f32.xlu1 %v2031_v16  ;;  %v2028_v8 = vsel %vm86_vm0, %v2026_v52, 0.0 }
 0x9b9   :  { %2029 = vadd.xlane.f32.xlu0 %v2028_v8 }
 0xa45   :  { %v2033_v29 = vpop.xlane.xlu1 %2032 }
 0xa46   :  { %v2035_v15 = vmul.f32 0.041666668, %v2033_v29  ;;  %v2030_v55 = vpop.xlane.xlu0 %2029 }
 0xa47   :  { %v2034_v30 = vmul.f32 0.041666668, %v2030_v55 }
 0xa48   :  { %v2037_v31 = vadd.f32 1e-05, %v2035_v15 }
 0xa49   :  { %v2036_v18 = vadd.f32 1e-05, %v2034_v30 }
 0xa4a   :  { %2861 = vrsqrt.f32 %v2037_v31 }
 0xa4b   :  { %2863 = vrsqrt.f32 %v2036_v18 }
 0xa54   :  { %v2862_v32 = vpop.eup %2861 }
 0xa55   :  { %v2864_v36 = vpop.eup %2863  ;;  %v2041_v39 = vmul.f32 %v2862_v32, %v2025_v12 }
 0xa56   :  { %v2040_v35 = vmul.f32 %v2864_v36, %v2024_v51 }
 0xa57   :  { %v2049_v40 = vmul.f32 %v2369_v22, %v2041_v39 }
 0xa58   :  { %v2048_v41 = vmul.f32 %v2369_v22, %v2040_v35 }
 0xa59   :  { %v2057_v37 = vadd.f32 %v2370_v38, %v2049_v40 }
 0xa5a   :  { %v2056_v42 = vadd.f32 %v2370_v38, %v2048_v41 }
 0xa5c   :  { %v2079_v43 = vpack.c.bf16 %v2057_v37, %v2056_v42 }
 0xa5e   :  { %2635 = vmatmul.mubr.msk.bf16.vlgmr.msra.gmra.mrb[20].mxu0 %vm86_vm0, %v2079_v43 }
 0xb31   :  { %v2136_v45 = vpop.f32.mrb[20].mxu0 }
 0xb32   :  { %v2137_v26 = vadd.f32 %v2371_v44, %v2136_v45  ;;  %v2636_v24 = vpop.f32.mrb[21].mxu0 }
 0xb33   :  { %v2139_v46 = vpop.f32.mrb[22].mxu0 }
 0xb34   :  { %v2140_v47 = vadd.f32 %v2371_v44, %v2139_v46  ;;  %v2637_v48 = vpop.f32.mrb[23].mxu0  ;;  %v2143_v49 = vmax.f32 %v2137_v26, 0.0 }
 0xb36   :  { %v2144_v56 = vmax.f32 %v2140_v47, 0.0 }
 0xb38   :  { %v2145_v57 = vpack.c.bf16 %v2144_v56, %v2143_v49 }
 0xb3a   :  { %2655 = vmatmul.mubr.bf16.vlgmr.msra.gmra.mrb[8].mxu1 %v2145_v57 }
 0xc0d   :  { %v2234_v58 = vpop.f32.mrb[8].mxu1 }
 0xc0e   :  { %v2235_v59 = vadd.f32 %v2375_v21, %v2234_v58  ;;  %v2656_v60 = vpop.f32.mrb[9].mxu1 }
 0xc0f   :  { %v2237_v61 = vpop.f32.mrb[10].mxu1 }
 0xc10   :  { %v2238_v63 = vadd.f32 %v2375_v21, %v2237_v61  ;;  %v2657_v10 = vpop.f32.mrb[11].mxu1  ;;  %v2241_v0 = vadd.f32 %v2235_v59, %v2056_v42 }
 0xc12   :  { %v2245_v33 = vsel %vm86_vm0, %v2241_v0, 0.0  ;;  %v2242_v11 = vadd.f32 %v2238_v63, %v2057_v37 }
 0xc13   :  { %2246 = vadd.xlane.f32.xlu0 %v2245_v33 }
 0xc14   :  { %v2248_v1 = vsel %vm2017_vm8, %v2242_v11, 0.0 }
 0xc15   :  { %2249 = vadd.xlane.f32.xlu1 %v2248_v1 }
 0xca0   :  { %v2247_v2 = vpop.xlane.xlu0 %2246 }
 0xca1   :  { %v2251_v4 = vmul.f32 0.041666668, %v2247_v2 }
 0xca2   :  { %v2250_v5 = vpop.xlane.xlu1 %2249 }
 0xca3   :  { %v2253_v34 = vsub.f32 %v2241_v0, %v2251_v4  ;;  %v2252_v14 = vmul.f32 0.041666668, %v2250_v5 }
 0xca5   :  { %v2254_v6 = vsub.f32 %v2242_v11, %v2252_v14  ;;  %v2255_v7 = vmul.f32 %v2253_v34, %v2253_v34 }
 0xca7   :  { %v2257_v9 = vsel %vm86_vm0, %v2255_v7, 0.0  ;;  %v2256_v50 = vmul.f32 %v2254_v6, %v2254_v6 }
 0xca8   :  { %2258 = vadd.xlane.f32.xlu0 %v2257_v9 }
 0xca9   :  { %v2260_v12 = vsel %vm2017_vm8, %v2256_v50, 0.0 }
 0xcaa   :  { %2261 = vadd.xlane.f32.xlu1 %v2260_v12 }
 0xd35   :  { %v2259_v51 = vpop.xlane.xlu0 %2258 }
 0xd36   :  { %v2263_v13 = vmul.f32 0.041666668, %v2259_v51 }
 0xd37   :  { %v2262_v52 = vpop.xlane.xlu1 %2261 }
 0xd38   :  { %v2265_v16 = vadd.f32 1e-05, %v2263_v13  ;;  %v2264_v8 = vmul.f32 0.041666668, %v2262_v52 }
 0xd3a   :  { %2865 = vrsqrt.f32 %v2265_v16  ;;  %v2266_v3 = vadd.f32 1e-05, %v2264_v8 }
 0xd3c   :  { %2867 = vrsqrt.f32 %v2266_v3 }
 0xd44   :  { %v2866_v53 = vpop.eup %2865 }
 0xd45   :  { %v2269_v19 = vmul.f32 %v2866_v53, %v2253_v34 }
 0xd46   :  { %v2868_v20 = vpop.eup %2867 }
 0xd47   :  { %v2277_v54 = vmul.f32 %v2384_v17, %v2269_v19  ;;  %v2270_v27 = vmul.f32 %v2868_v20, %v2254_v6 }
 0xd49   :  { %v2285_v28 = vadd.f32 %v2385_v25, %v2277_v54  ;;  %v2278_v29 = vmul.f32 %v2384_v17, %v2270_v27 }
 0xd4b   :  { %2287 = vst.msk [vmem:[%s3439_s18] sm:$0xff] %vm86_vm0, %v2285_v28  ;;  %v2286_v15 = vadd.f32 %v2385_v25, %v2278_v29 }
 0xd4d   :  { %2288 = vst.msk [vmem:[%s3439_s18 + $0x8] sm:$0x3] %vm2017_vm8, %v2286_v15 }

// kernel: translate_model_forward.9
= control target key start
LH: loop header
LB: loop body
LE: loop exit
PB: predicated region body
PF: predicated region fallthrough
CT: control target
= control target key end

     0   :  { %v4503_v0 = vmov 0.0|0.0   ;;  %s4504_s3 = smov 3   ;;  %vm4505_vm0 = vmmov 0   ;;  %v4506_v1 = vmov 0.0   ;;  %s4507_s7 = smov 5   ;;  %vm149_vm1 = vcmask 195584   ;;  %s5144_s0 = inlined_call_operand.smem [shape: u32[30], index: -1, kind: input, shape index: {}] }
   0x1   :  { %4272 = vmatprep.subr.bf16.mxu0 %v4503_v0  ;;  %s3718_s6 = sld [smem:[%s5144_s0 + %s4504_s3]]   ;;  %3986 = vmatprep.mubr.msk.f32.mxu0 %vm4505_vm0, %v4506_v1  ;;  %s4508_s14 = smov 4   ;;  %v376_v11 = vlaneseq }
   0x2   :  { %s3720_s10 = sld [smem:[%s5144_s0 + %s4507_s7]]   ;;  %4007 = vmatprep.subr.mxu1 %v4506_v1  ;;  %4009 = vmatprep.mubr.msk.f32.mxu1 %vm4505_vm0, %v4506_v1  ;;  %s4509_s18 = smov 6  }
   0x3   :  { %s1_s13 = sld [smem:[%s5144_s0]]   ;;  %v4576_v14 = vand.u32 127, %v376_v11  ;;  %s4510_s22 = smov 7  }
   0x4   :  { %s3719_s17 = sld [smem:[%s5144_s0 + %s4508_s14]]   ;;  %s4511_s26 = smov 2  }
   0x5   :  { %s3721_s21 = sld [smem:[%s5144_s0 + %s4509_s18]]   ;;  %vm379_vm2 = vcmp.lt.s32.totalorder %v4576_v14, 3  ;;  %vm473_vm3 = vcmp.ge.s32.totalorder %v4576_v14, 3  ;;  %vm474_vm4 = vcmp.lt.s32.totalorder %v4576_v14, 6  ;;  %vm710_vm6 = vcmp.ge.s32.totalorder %v4576_v14, 6  ;;  %s4512_s30 = smov 8  }
   0x6   :  { %v4586_v22 = vsel %vm379_vm2, 1.0, %v4506_v1  ;;  %vm475_vm5 = vmand %vm473_vm3, %vm474_vm4  ;;  %vm711_vm7 = vcmp.lt.s32.totalorder %v4576_v14, 9  ;;  %vm875_vm9 = vcmp.ge.s32.totalorder %v4576_v14, 9  ;;  %vm876_vm10 = vcmp.lt.s32.totalorder %v4576_v14, 12  ;;  %s3722_s25 = sld [smem:[%s5144_s0 + %s4510_s22]]   ;;  %s4513_s4 = smov 9  }
   0x7   :  { %v126_v2 = vld [vmem:[%s3718_s6] sm:$0xff]  ;;  %v127_v3 = vld [vmem:[%s3718_s6 + $0x8] sm:$0xff]  ;;  %v128_v7 = vld [vmem:[%s3718_s6 + $0x10] sm:$0xff]  ;;  %v4596_v24 = vsel %vm475_vm5, 1.0, %v4506_v1  ;;  %vm1040_vm12 = vcmp.ge.s32.totalorder %v4576_v14, 12  ;;  %vm1041_vm13 = vcmp.lt.s32.totalorder %v4576_v14, 15  ;;  %s3717_s29 = sld [smem:[%s5144_s0 + %s4511_s26]]  }
   0x8   :  { %v4273_v4 = vpack.c.bf16 %v127_v3, %v126_v2  ;;  %v130_v5 = vld [vmem:[%s3720_s10] sm:$0xff]  ;;  %v131_v6 = vld [vmem:[%s3720_s10 + $0x8] sm:$0xff]  ;;  %v132_v10 = vld [vmem:[%s3720_s10 + $0x10] sm:$0xff]  ;;  %vm1205_vm15 = vcmp.ge.s32.totalorder %v4576_v14, 15  ;;  %vm1206_vm2 = vcmp.lt.s32.totalorder %v4576_v14, 18  ;;  %vm1370_vm4 = vcmp.ge.s32.totalorder %v4576_v14, 18  ;;  %s3723_s3 = sld [smem:[%s5144_s0 + %s4512_s30]]  }
   0x9   :  { %v4557_v8 = vld [vmem:[%s1_s13] sm:$0xff]  ;;  %v4276_v9 = vpack.c.bf16 %v131_v6, %v130_v5  ;;  %vm712_vm8 = vmand %vm710_vm6, %vm711_vm7  ;;  %vm1371_vm5 = vcmp.lt.s32.totalorder %v4576_v14, 21  ;;  %vm1535_vm7 = vcmp.ge.s32.totalorder %v4576_v14, 21  ;;  %s4742_s7 = sld [smem:[%s5144_s0 + %s4513_s4]]   ;;  %s4514_s8 = smov 10  }
   0xa   :  { %4274 = vmatpush3.bf16.msra.mxu0 %v4273_v4  ;;  %v3745_v12 = vld [vmem:[%s3719_s17] ss:$0 sm:$0xff]  ;;  %v4609_v26 = vsel %vm712_vm8, 1.0, %v4506_v1  ;;  %vm877_vm11 = vmand %vm875_vm9, %vm876_vm10  ;;  %vm1536_vm8 = vcmp.lt.s32.totalorder %v4576_v14, 24  ;;  %vm460_vm10 = vcmask 64512   ;;  %s3725_s11 = sld [smem:[%s5144_s0 + %s4514_s8]]   ;;  %s4515_s12 = smov 15  }
   0xb   :  { %3984 = vmatprep.subr.mxu0 %v4506_v1  ;;  %v3747_v17 = vld [vmem:[%s3721_s21] ss:$0 sm:$0xff]  ;;  %v4622_v28 = vsel %vm877_vm11, 1.0, %v4506_v1  ;;  %vm1042_vm14 = vmand %vm1040_vm12, %vm1041_vm13  ;;  %s3730_s15 = sld [smem:[%s5144_s0 + %s4515_s12]]   ;;  %s4516_s16 = smov 1   ;;  %vm2258_vm12 = vcmask 1041408   ;;  %vm4524_vm13 = vmmov 1  }
   0xc   :  { %v4635_v30 = vsel %vm1042_vm14, 1.0, %v4506_v1  ;;  %vm1207_vm3 = vmand %vm1205_vm15, %vm1206_vm2  ;;  %v134_v38 = vld [vmem:[%s3722_s25] sm:$0xff]  ;;  %v135_v39 = vld [vmem:[%s3722_s25 + $0x8] sm:$0xff]  ;;  %s3716_s19 = sld [smem:[%s5144_s0 + %s4516_s16]]   ;;  %s4517_s20 = smov 13   ;;  %vm2154_vm15 = vcmask 80896  }
   0xd   :  { %v4648_v32 = vsel %vm1207_vm3, 1.0, %v4506_v1  ;;  %vm1372_vm6 = vmand %vm1370_vm4, %vm1371_vm5  ;;  %v4279_v40 = vpack.c.bf16 %v135_v39, %v134_v38  ;;  %v136_v41 = vld [vmem:[%s3722_s25 + $0x10] sm:$0xff]  ;;  %v142_v44 = vld [vmem:[%s3717_s29] sm:$0xff]  ;;  %s3728_s23 = sld [smem:[%s5144_s0 + %s4517_s20]]   ;;  %s4518_s24 = smov 17  }
   0xe   :  { %3985 = vmatpush3.msra.mxu0 %v128_v7  ;;  %v4661_v34 = vsel %vm1372_vm6, 1.0, %v4506_v1  ;;  %vm1537_vm9 = vmand %vm1535_vm7, %vm1536_vm8  ;;  %s3732_s27 = sld [smem:[%s5144_s0 + %s4518_s24]]   ;;  %s4519_s28 = smov 11  }
   0xf   :  { %3987 = vmatmul.mubr.msk.f32.vlgmr.msra.gmra.mrb[0].mxu0 %vm149_vm1, %v4557_v8  ;;  %4275 = vmatprep.subr.bf16.mxu0 %v4503_v0  ;;  %v4672_v36 = vsel %vm1537_vm9, 1.0, %v4506_v1  ;;  %s3726_s1 = sld [smem:[%s5144_s0 + %s4519_s28]]   ;;  %s4520_s2 = smov 12   ;;  %vm4844_vm11 = vmpackc.low %vm149_vm1, %vm149_vm1 }
  0x10   :  { %4277 = vmatpush3.bf16.msra.mxu0 %v4276_v9  ;;  %3995 = vmatprep.mubr.msk.f32.mxu0 %vm4505_vm0, %v4506_v1  ;;  %s3727_s5 = sld [smem:[%s5144_s0 + %s4520_s2]]   ;;  %s4521_s6 = smov 16   ;;  %vm4934_vm14 = vmpackc.low %vm2258_vm12, %vm4524_vm13 }
  0x11   :  { %3993 = vmatprep.subr.mxu0 %v4506_v1  ;;  %s3731_s9 = sld [smem:[%s5144_s0 + %s4521_s6]]   ;;  %s4522_s10 = smov 14  }
  0x12   :  { %s3729_s13 = sld [smem:[%s5144_s0 + %s4522_s10]]   ;;  %s4523_s14 = smov 18  }
  0x13   :  { %s3733_s17 = sld [smem:[%s5144_s0 + %s4523_s14]]   ;;  %s4525_s18 = smov 19  }
  0x14   :  { %3994 = vmatpush3.msra.mxu0 %v132_v10  ;;  %s3734_s21 = sld [smem:[%s5144_s0 + %s4525_s18]]   ;;  %s4526_s22 = smov 20  }
  0x15   :  { %3996 = vmatmul.mubr.msk.f32.vlgmr.msra.gmra.mrb[2].mxu0 %vm149_vm1, %v4557_v8  ;;  %4278 = vmatprep.subr.bf16.mxu0 %v4503_v0  ;;  %s3735_s25 = sld [smem:[%s5144_s0 + %s4526_s22]]   ;;  %s4527_s26 = smov 23  }
  0x16   :  { %4004 = vmatprep.mubr.msk.f32.mxu0 %vm4505_vm0, %v4506_v1  ;;  %4280 = vmatpush3.bf16.msra.mxu0 %v4279_v40  ;;  %s3738_s29 = sld [smem:[%s5144_s0 + %s4527_s26]]   ;;  %s4528_s30 = smov 25  }
  0x17   :  { %4002 = vmatprep.subr.mxu0 %v4506_v1  ;;  %s4529_s4 = smov 21   ;;  %s4530_s8 = smov 22  }
  0x18   :  { %s4531_s12 = smov 24   ;;  %s4532_s16 = smov 26  }
  0x19   :  { %s4533_s20 = smov 27   ;;  %s4534_s24 = smov 28  }
  0x1a   :  { %4003 = vmatpush3.msra.mxu0 %v136_v41  ;;  %s4535_s28 = smov 29  }
  0x1b   :  { %4005 = vmatmul.mubr.msk.f32.vlgmr.msra.gmra.mrb[4].mxu0 %vm149_vm1, %v4557_v8  ;;  %4017 = vmatprep.subr.mxu0 %v4506_v1 }
  0x1c   :  { %4019 = vmatprep.mubr.msk.f32.mxu0 %vm4505_vm0, %v4506_v1 }
  0xe2   :  { %v219_v13 = vpop.f32.mrb[0].mxu0 }
  0xe3   :  { %v3988_v15 = vpop.f32.mrb[1].mxu0  ;;  %v220_v16 = vadd.f32 %v3745_v12, %v219_v13 }
  0xe5   :  { %v4581_v18 = vmul.f32 0.57735026, %v220_v16 }
  0xe7   :  { %v383_v23 = vmul.f32 %v4586_v22, %v4581_v18  ;;  %v478_v25 = vmul.f32 %v4596_v24, %v4581_v18  ;;  %v715_v27 = vmul.f32 %v4609_v26, %v4581_v18  ;;  %v880_v29 = vmul.f32 %v4622_v28, %v4581_v18 }
  0xe8   :  { %v296_v19 = vpop.f32.mrb[2].mxu0  ;;  %v1045_v31 = vmul.f32 %v4635_v30, %v4581_v18  ;;  %v1210_v33 = vmul.f32 %v4648_v32, %v4581_v18  ;;  %v1375_v35 = vmul.f32 %v4661_v34, %v4581_v18  ;;  %v1540_v37 = vmul.f32 %v4672_v36, %v4581_v18 }
  0xe9   :  { %v4583_v20 = vadd.f32 %v3747_v17, %v296_v19  ;;  %v3997_v21 = vpop.f32.mrb[3].mxu0 }
  0xeb   :  { %4008 = vmatpush3.xpose.msk.msra.mxu1 %vm149_vm1, %v4583_v20 }
  0xec   :  { %4012 = vmatprep.subr.mxu1 %v4506_v1 }
  0xee   :  { %4010 = vmatmul.mubr.msk.f32.vlgmr.msra.gmra.mrb[0].mxu1 %vm149_vm1, %v383_v23 }
  0xef   :  { %4013 = vmatpush3.xpose.msk.msra.mxu1 %vm149_vm1, %v4583_v20  ;;  %4014 = vmatprep.mubr.msk.f32.mxu1 %vm4505_vm0, %v4506_v1 }
  0xf0   :  { %4027 = vmatprep.subr.mxu1 %v4506_v1 }
  0xf2   :  { %4015 = vmatmul.mubr.msk.f32.vlgmr.msra.gmra.mrb[2].mxu1 %vm149_vm1, %v478_v25 }
  0xf3   :  { %4028 = vmatpush3.xpose.msk.msra.mxu1 %vm149_vm1, %v4583_v20  ;;  %4029 = vmatprep.mubr.msk.f32.mxu1 %vm4505_vm0, %v4506_v1 }
  0xf4   :  { %4037 = vmatprep.subr.mxu1 %v4506_v1 }
  0xf6   :  { %4030 = vmatmul.mubr.msk.f32.vlgmr.msra.gmra.mrb[4].mxu1 %vm149_vm1, %v715_v27 }
  0xf7   :  { %4038 = vmatpush3.xpose.msk.msra.mxu1 %vm149_vm1, %v4583_v20  ;;  %4039 = vmatprep.mubr.msk.f32.mxu1 %vm4505_vm0, %v4506_v1 }
  0xf8   :  { %4047 = vmatprep.subr.mxu1 %v4506_v1 }
  0xfa   :  { %4040 = vmatmul.mubr.msk.f32.vlgmr.msra.gmra.mrb[6].mxu1 %vm149_vm1, %v880_v29 }
  0xfb   :  { %4048 = vmatpush3.xpose.msk.msra.mxu1 %vm149_vm1, %v4583_v20  ;;  %4049 = vmatprep.mubr.msk.f32.mxu1 %vm4505_vm0, %v4506_v1 }
  0xfc   :  { %4057 = vmatprep.subr.mxu1 %v4506_v1 }
  0xfe   :  { %4050 = vmatmul.mubr.msk.f32.vlgmr.msra.gmra.mrb[8].mxu1 %vm149_vm1, %v1045_v31 }
  0xff   :  { %4058 = vmatpush3.xpose.msk.msra.mxu1 %vm149_vm1, %v4583_v20  ;;  %4059 = vmatprep.mubr.msk.f32.mxu1 %vm4505_vm0, %v4506_v1 }
 0x100   :  { %4067 = vmatprep.subr.mxu1 %v4506_v1 }
 0x102   :  { %4060 = vmatmul.mubr.msk.f32.vlgmr.msra.gmra.mrb[10].mxu1 %vm149_vm1, %v1210_v33 }
 0x103   :  { %4068 = vmatpush3.xpose.msk.msra.mxu1 %vm149_vm1, %v4583_v20  ;;  %4069 = vmatprep.mubr.msk.f32.mxu1 %vm4505_vm0, %v4506_v1 }
 0x104   :  { %4077 = vmatprep.subr.mxu1 %v4506_v1 }
 0x106   :  { %4070 = vmatmul.mubr.msk.f32.vlgmr.msra.gmra.mrb[12].mxu1 %vm149_vm1, %v1375_v35 }
 0x107   :  { %4078 = vmatpush3.xpose.msk.msra.mxu1 %vm149_vm1, %v4583_v20  ;;  %4079 = vmatprep.mubr.msk.f32.mxu1 %vm4505_vm0, %v4506_v1 }
 0x108   :  { %4281 = vmatprep.subr.bf16.mxu1 %v4503_v0 }
 0x10a   :  { %4080 = vmatmul.mubr.msk.f32.vlgmr.msra.gmra.mrb[14].mxu1 %vm149_vm1, %v1540_v37 }
 0x10b   :  { %4093 = vmatprep.mubr.msk.f32.mxu1 %vm4505_vm0, %v4506_v1 }
 0x1c1   :  { %v456_v42 = vpop.f32.mrb[0].mxu1 }
 0x1c2   :  { %v4011_v43 = vpop.f32.mrb[1].mxu1  ;;  %v457_v48 = vadd.f32 %v456_v42, %v142_v44 }
 0x1c4   :  { %v461_v53 = vsel %vm460_vm10, %v457_v48, -inf }
 0x1c5   :  { %v548_v45 = vpop.f32.mrb[2].mxu1 }
 0x1c6   :  { %v549_v46 = vadd.f32 %v548_v45, %v142_v44  ;;  %v4016_v47 = vpop.f32.mrb[3].mxu1 }
 0x1c8   :  { %v552_v49 = vsel %vm460_vm10, %v549_v46, -inf }
 0x1c9   :  { %553 = vmax.xlane.f32.xlu0 %v552_v49  ;;  %v785_v50 = vpop.f32.mrb[4].mxu1 }
 0x1ca   :  { %v786_v51 = vadd.f32 %v785_v50, %v142_v44  ;;  %v4031_v52 = vpop.f32.mrb[5].mxu1 }
 0x1cc   :  { %v789_v54 = vsel %vm460_vm10, %v786_v51, -inf }
 0x1cd   :  { %462 = vmax.xlane.f32.xlu0 %v461_v53  ;;  %790 = vmax.xlane.f32.xlu1 %v789_v54  ;;  %v950_v55 = vpop.f32.mrb[6].mxu1 }
 0x1ce   :  { %v951_v56 = vadd.f32 %v950_v55, %v142_v44  ;;  %v4041_v57 = vpop.f32.mrb[7].mxu1 }
 0x1d0   :  { %v954_v58 = vsel %vm460_vm10, %v951_v56, -inf }
 0x1d1   :  { %955 = vmax.xlane.f32.xlu1 %v954_v58  ;;  %v1115_v59 = vpop.f32.mrb[8].mxu1 }
 0x1d2   :  { %v1116_v60 = vadd.f32 %v1115_v59, %v142_v44  ;;  %v4051_v61 = vpop.f32.mrb[9].mxu1 }
 0x1d3   :  { %v372_v61 = vpop.f32.mrb[4].mxu0 }
 0x1d4   :  { %v1119_v62 = vsel %vm460_vm10, %v1116_v60, -inf }
 0x1d5   :  { %1120 = vmax.xlane.f32.xlu0 %v1119_v62  ;;  %v1280_v63 = vpop.f32.mrb[10].mxu1 }
 0x1d6   :  { %v1281_v2 = vadd.f32 %v1280_v63, %v142_v44  ;;  %v4061_v3 = vpop.f32.mrb[11].mxu1 }
 0x1d8   :  { %v1284_v4 = vsel %vm460_vm10, %v1281_v2, -inf }
 0x1d9   :  { %1285 = vmax.xlane.f32.xlu1 %v1284_v4  ;;  %v1445_v5 = vpop.f32.mrb[12].mxu1 }
 0x1da   :  { %v1446_v6 = vadd.f32 %v1445_v5, %v142_v44  ;;  %v4071_v7 = vpop.f32.mrb[13].mxu1  ;;  %v138_v5 = vld [vmem:[%s4742_s7] sm:$0xff] }
 0x1dc   :  { %v1449_v9 = vsel %vm460_vm10, %v1446_v6, -inf }
 0x1dd   :  { %1450 = vmax.xlane.f32.xlu0 %v1449_v9  ;;  %v1610_v10 = vpop.f32.mrb[14].mxu1 }
 0x1de   :  { %v1611_v11 = vadd.f32 %v1610_v10, %v142_v44  ;;  %v4081_v12 = vpop.f32.mrb[15].mxu1 }
 0x1e0   :  { %v1614_v13 = vsel %vm460_vm10, %v1611_v11, -inf }
 0x1e1   :  { %1615 = vmax.xlane.f32.xlu1 %v1614_v13 }
 0x256   :  { %v554_v14 = vpop.xlane.xlu0 %553 }
 0x257   :  { %v555_v15 = vsub.f32 %v549_v46, %v554_v14 }
 0x259   :  { %v556_v16 = vmul.f32 1.442695, %v555_v15 }
 0x25a   :  { %v463_v17 = vpop.xlane.xlu0 %462  ;;  %v791_v18 = vpop.xlane.xlu1 %790 }
 0x25b   :  { %4433 = vpow2.f32 %v556_v16  ;;  %v464_v19 = vsub.f32 %v457_v48, %v463_v17  ;;  %v792_v20 = vsub.f32 %v786_v51, %v791_v18 }
 0x25d   :  { %v465_v21 = vmul.f32 1.442695, %v464_v19  ;;  %v793_v23 = vmul.f32 1.442695, %v792_v20 }
 0x25e   :  { %v956_v25 = vpop.xlane.xlu1 %955 }
 0x25f   :  { %4435 = vpow2.f32 %v465_v21  ;;  %v957_v27 = vsub.f32 %v951_v56, %v956_v25 }
 0x260   :  { %4437 = vpow2.f32 %v793_v23 }
 0x261   :  { %v958_v29 = vmul.f32 1.442695, %v957_v27 }
 0x262   :  { %v1121_v31 = vpop.xlane.xlu0 %1120 }
 0x263   :  { %4439 = vpow2.f32 %v958_v29  ;;  %v1122_v33 = vsub.f32 %v1116_v60, %v1121_v31  ;;  %v3749_v60 = vld [vmem:[%s3723_s3] ss:$0 sm:$0xff]  ;;  %s5102_s3 = sld [smem:[%s5144_s0 + %s4528_s30]]  }
 0x264   :  { %v4732_v63 = vadd.f32 %v3749_v60, %v372_v61 }
 0x265   :  { %v4434_v35 = vpop.eup %4433  ;;  %v1123_v37 = vmul.f32 1.442695, %v1122_v33 }
 0x266   :  { %v1286_v38 = vpop.xlane.xlu1 %1285  ;;  %v558_v39 = vsel %vm460_vm10, %v4434_v35, 0.0  ;;  %v563_v4 = vmul.f32 %v4596_v24, %v4732_v63  ;;  %v472_v12 = vmul.f32 %v4586_v22, %v4732_v63  ;;  %v800_v18 = vmul.f32 %v4609_v26, %v4732_v63 }
 0x267   :  { %4441 = vpow2.f32 %v1123_v37  ;;  %v1287_v40 = vsub.f32 %v1281_v2, %v1286_v38  ;;  %559 = vadd.xlane.f32.xlu0 %v558_v39  ;;  %v4006_v2 = vpop.f32.mrb[5].mxu0  ;;  %v965_v23 = vmul.f32 %v4622_v28, %v4732_v63  ;;  %v1130_v31 = vmul.f32 %v4635_v30, %v4732_v63 }
 0x268   :  { %4018 = vmatpush3.msra.mxu0 %v563_v4  ;;  %v1295_v38 = vmul.f32 %v4648_v32, %v4732_v63  ;;  %v125_v4 = vld [vmem:[%s3716_s19 + $0x8] sm:$0x3] }
 0x269   :  { %v4436_v41 = vpop.eup %4435  ;;  %v1288_v42 = vmul.f32 1.442695, %v1287_v40  ;;  %4022 = vmatprep.subr.mxu0 %v4506_v1 }
 0x26a   :  { %v4706_v43 = vpop.eup %4437  ;;  %v1451_v44 = vpop.xlane.xlu0 %1450  ;;  %v467_v45 = vsel %vm460_vm10, %v4436_v41, 0.0 }
 0x26b   :  { %4443 = vpow2.f32 %v1288_v42  ;;  %v1452_v46 = vsub.f32 %v1446_v6, %v1451_v44  ;;  %v795_v47 = vsel %vm460_vm10, %v4706_v43, 0.0  ;;  %468 = vadd.xlane.f32.xlu1 %v467_v45  ;;  %v139_v6 = vld [vmem:[%s4742_s7 + $0x8] sm:$0xff]  ;;  %v1460_v42 = vmul.f32 %v4661_v34, %v4732_v63 }
 0x26c   :  { %796 = vadd.xlane.f32.xlu0 %v795_v47  ;;  %v4282_v7 = vpack.c.bf16 %v139_v6, %v138_v5  ;;  %v1625_v45 = vmul.f32 %v4672_v36, %v4732_v63  ;;  %v1815_v63 = vld [vmem:[%s3730_s15 + $0x8] sm:$0xff]  ;;  %v1810_v5 = vld [vmem:[%s3728_s23] sm:$0xff] }
 0x26d   :  { %v4711_v48 = vpop.eup %4439  ;;  %v1453_v49 = vmul.f32 1.442695, %v1452_v46  ;;  %v1811_v6 = vld [vmem:[%s3728_s23 + $0x8] sm:$0xff] }
 0x26e   :  { %v1616_v50 = vpop.xlane.xlu1 %1615  ;;  %v960_v51 = vsel %vm460_vm10, %v4711_v48, 0.0  ;;  %4283 = vmatpush3.bf16.msra.mxu1 %v4282_v7  ;;  %v4285_v7 = vpack.c.bf16 %v1811_v6, %v1810_v5 }
 0x26f   :  { %4445 = vpow2.f32 %v1453_v49  ;;  %v1617_v52 = vsub.f32 %v1611_v11, %v1616_v50  ;;  %961 = vadd.xlane.f32.xlu1 %v960_v51  ;;  %4091 = vmatprep.subr.mxu1 %v4506_v1  ;;  %v3783_v51 = vld [vmem:[%s3725_s11] ss:$0 sm:$0xff]  ;;  %s3737_s11 = sld [smem:[%s5144_s0 + %s4530_s8]]  }
 0x271   :  { %v4715_v53 = vpop.eup %4441  ;;  %v1618_v54 = vmul.f32 1.442695, %v1617_v52 }
 0x272   :  { %v1125_v55 = vsel %vm460_vm10, %v4715_v53, 0.0 }
 0x273   :  { %4447 = vpow2.f32 %v1618_v54  ;;  %1126 = vadd.xlane.f32.xlu0 %v1125_v55 }
 0x275   :  { %v4719_v56 = vpop.eup %4443 }
 0x276   :  { %v1290_v57 = vsel %vm460_vm10, %v4719_v56, 0.0 }
 0x277   :  { %1291 = vadd.xlane.f32.xlu1 %v1290_v57 }
 0x279   :  { %v4726_v58 = vpop.eup %4445 }
 0x27a   :  { %v1455_v59 = vsel %vm460_vm10, %v4726_v58, 0.0 }
 0x27b   :  { %1456 = vadd.xlane.f32.xlu0 %v1455_v59 }
 0x27d   :  { %v4730_v62 = vpop.eup %4447 }
 0x27e   :  { %v1620_v3 = vsel %vm460_vm10, %v4730_v62, 0.0 }
 0x27f   :  { %1621 = vadd.xlane.f32.xlu1 %v1620_v3  ;;  %v124_v3 = vld [vmem:[%s3716_s19] sm:$0xff]  ;;  %s3741_s19 = sld [smem:[%s5144_s0 + %s4532_s16]]  }
 0x2f4   :  { %v560_v9 = vpop.xlane.xlu0 %559 }
 0x2f5   :  { %4449 = vrcp.f32 %v560_v9  ;;  %v1812_v9 = vld [vmem:[%s3728_s23 + $0x10] sm:$0xff]  ;;  %s3742_s23 = sld [smem:[%s5144_s0 + %s4533_s20]]  }
 0x2f8   :  { %v469_v10 = vpop.xlane.xlu1 %468 }
 0x2f9   :  { %4451 = vrcp.f32 %v469_v10  ;;  %v797_v14 = vpop.xlane.xlu0 %796  ;;  %v1818_v10 = vld [vmem:[%s3732_s27] sm:$0xff] }
 0x2fa   :  { %4453 = vrcp.f32 %v797_v14 }
 0x2fc   :  { %v962_v17 = vpop.xlane.xlu1 %961 }
 0x2fd   :  { %4455 = vrcp.f32 %v962_v17  ;;  %v3785_v17 = vld [vmem:[%s3726_s1] ss:$0 sm:$0xff]  ;;  %s3744_s1 = sld [smem:[%s5144_s0 + %s4535_s28]]  }
 0x2ff   :  { %v4450_v11 = vpop.eup %4449 }
 0x300   :  { %v562_v13 = vmul.f32 %v4450_v11, %v4434_v35  ;;  %v1127_v21 = vpop.xlane.xlu0 %1126  ;;  %v1819_v11 = vld [vmem:[%s3732_s27 + $0x8] sm:$0xff] }
 0x301   :  { %4457 = vrcp.f32 %v1127_v21 }
 0x302   :  { %4020 = vmatmul.mubr.msk.f32.vlgmr.msra.gmra.mrb[6].mxu0 %vm460_vm10, %v562_v13 }
 0x303   :  { %4023 = vmatpush3.msra.mxu0 %v472_v12  ;;  %4024 = vmatprep.mubr.msk.f32.mxu0 %vm4505_vm0, %v4506_v1  ;;  %v4452_v15 = vpop.eup %4451  ;;  %v4291_v12 = vpack.c.bf16 %v1819_v11, %v1818_v10 }
 0x304   :  { %4032 = vmatprep.subr.mxu0 %v4506_v1  ;;  %v471_v16 = vmul.f32 %v4452_v15, %v4436_v41  ;;  %v4454_v19 = vpop.eup %4453  ;;  %v1292_v29 = vpop.xlane.xlu1 %1291 }
 0x305   :  { %v799_v20 = vmul.f32 %v4454_v19, %v4706_v43  ;;  %4459 = vrcp.f32 %v1292_v29  ;;  %v3786_v19 = vld [vmem:[%s3727_s5] ss:$0 sm:$0xff] }
 0x307   :  { %v4456_v25 = vpop.eup %4455 }
 0x308   :  { %v964_v27 = vmul.f32 %v4456_v25, %v4711_v48  ;;  %v1457_v37 = vpop.xlane.xlu0 %1456  ;;  %v140_v48 = vld [vmem:[%s4742_s7 + $0x10] sm:$0xff]  ;;  %v3789_v25 = vld [vmem:[%s3731_s9] ss:$0 sm:$0xff]  ;;  %s3736_s7 = sld [smem:[%s5144_s0 + %s4529_s4]]  }
 0x309   :  { %4461 = vrcp.f32 %v1457_v37  ;;  %4092 = vmatpush3.msra.mxu1 %v140_v48 }
 0x30a   :  { %4025 = vmatmul.mubr.msk.f32.vlgmr.msra.gmra.mrb[6].mxu0 %vm460_vm10, %v471_v16 }
 0x30b   :  { %4033 = vmatpush3.msra.mxu0 %v800_v18  ;;  %4034 = vmatprep.mubr.msk.f32.mxu0 %vm4505_vm0, %v4506_v1  ;;  %v4458_v33 = vpop.eup %4457 }
 0x30c   :  { %4042 = vmatprep.subr.mxu0 %v4506_v1  ;;  %v1129_v35 = vmul.f32 %v4458_v33, %v4715_v53  ;;  %v1622_v41 = vpop.xlane.xlu1 %1621 }
 0x30d   :  { %4463 = vrcp.f32 %v1622_v41 }
 0x30f   :  { %v4460_v39 = vpop.eup %4459 }
 0x310   :  { %v1294_v40 = vmul.f32 %v4460_v39, %v4719_v56 }
 0x312   :  { %4035 = vmatmul.mubr.msk.f32.vlgmr.msra.gmra.mrb[6].mxu0 %vm460_vm10, %v799_v20 }
 0x313   :  { %4043 = vmatpush3.msra.mxu0 %v965_v23  ;;  %4044 = vmatprep.mubr.msk.f32.mxu0 %vm4505_vm0, %v4506_v1  ;;  %v4462_v43 = vpop.eup %4461  ;;  %v1820_v23 = vld [vmem:[%s3732_s27 + $0x10] sm:$0xff]  ;;  %s3743_s27 = sld [smem:[%s5144_s0 + %s4534_s24]]  }
 0x314   :  { %4052 = vmatprep.subr.mxu0 %v4506_v1  ;;  %v1459_v44 = vmul.f32 %v4462_v43, %v4726_v58 }
 0x317   :  { %v4464_v46 = vpop.eup %4463 }
 0x318   :  { %v1624_v47 = vmul.f32 %v4464_v46, %v4730_v62  ;;  %v1814_v62 = vld [vmem:[%s3730_s15] sm:$0xff] }
 0x319   :  { %v4287_v2 = vpack.c.bf16 %v1815_v63, %v1814_v62 }
 0x31a   :  { %4045 = vmatmul.mubr.msk.f32.vlgmr.msra.gmra.mrb[6].mxu0 %vm460_vm10, %v964_v27 }
 0x31b   :  { %4053 = vmatpush3.msra.mxu0 %v1130_v31  ;;  %4054 = vmatprep.mubr.msk.f32.mxu0 %vm4505_vm0, %v4506_v1 }
 0x31c   :  { %4062 = vmatprep.subr.mxu0 %v4506_v1  ;;  %4288 = vmatprep.subr.bf16.mxu1 %v4287_v2 }
 0x322   :  { %4055 = vmatmul.mubr.msk.f32.vlgmr.msra.gmra.mrb[6].mxu0 %vm460_vm10, %v1129_v35 }
 0x323   :  { %4063 = vmatpush3.msra.mxu0 %v1295_v38  ;;  %4064 = vmatprep.mubr.msk.f32.mxu0 %vm4505_vm0, %v4506_v1  ;;  %v3787_v38 = vld [vmem:[%s3729_s13] ss:$0 sm:$0xff] }
 0x324   :  { %4072 = vmatprep.subr.mxu0 %v4506_v1 }
 0x32a   :  { %4065 = vmatmul.mubr.msk.f32.vlgmr.msra.gmra.mrb[6].mxu0 %vm460_vm10, %v1294_v40 }
 0x32b   :  { %4073 = vmatpush3.msra.mxu0 %v1460_v42  ;;  %4074 = vmatprep.mubr.msk.f32.mxu0 %vm4505_vm0, %v4506_v1 }
 0x32c   :  { %4082 = vmatprep.subr.mxu0 %v4506_v1 }
 0x332   :  { %4075 = vmatmul.mubr.msk.f32.vlgmr.msra.gmra.mrb[6].mxu0 %vm460_vm10, %v1459_v44 }
 0x333   :  { %4083 = vmatpush3.msra.mxu0 %v1625_v45  ;;  %4084 = vmatprep.mubr.msk.f32.mxu0 %vm4505_vm0, %v4506_v1 }
 0x334   :  { %4284 = vmatprep.subr.bf16.mxu0 %v4503_v0 }
 0x33a   :  { %4085 = vmatmul.mubr.msk.f32.vlgmr.msra.gmra.mrb[6].mxu0 %vm460_vm10, %v1624_v47 }
 0x33b   :  { %4102 = vmatprep.mubr.msk.f32.mxu0 %vm4505_vm0, %v4506_v1  ;;  %4286 = vmatpush3.bf16.msra.mxu0 %v4285_v7 }
 0x33c   :  { %4100 = vmatprep.subr.mxu0 %v4506_v1 }
 0x33f   :  { %4101 = vmatpush3.msra.mxu0 %v1812_v9 }
 0x340   :  { %4292 = vmatprep.subr.bf16.mxu0 %v4291_v12 }
 0x40d   :  { %v1695_v49 = vpop.f32.mrb[6].mxu0 }
 0x40e   :  { %v4086_v50 = vpop.f32.mrb[7].mxu0  ;;  %4094 = vmatmul.mubr.msk.f32.vlgmr.msra.gmra.mrb[16].mxu1 %vm149_vm1, %v1695_v49 }
 0x40f   :  { %4290 = vmatpush3.bf16.msra.mxu1 %v4287_v2  ;;  %4111 = vmatprep.mubr.msk.f32.mxu1 %vm149_vm1, %v124_v3 }
 0x4e1   :  { %v1775_v52 = vpop.f32.mrb[16].mxu1 }
 0x4e2   :  { %v1776_v53 = vadd.f32 %v3783_v51, %v1775_v52  ;;  %v4095_v54 = vpop.f32.mrb[17].mxu1  ;;  %v3792_v51 = vld [vmem:[%s3733_s17] ss:$0 sm:$0xff] }
 0x4e4   :  { %v1779_v55 = vadd.f32 %v1776_v53, %v4557_v8  ;;  %v1816_v8 = vld [vmem:[%s3730_s15 + $0x10] sm:$0xff]  ;;  %s3739_s15 = sld [smem:[%s5144_s0 + %s4531_s12]]  }
 0x4e5   :  { %4109 = vmatprep.subr.mxu1 %v1816_v8 }
 0x4e6   :  { %v1782_v56 = vsel %vm149_vm1, %v1779_v55, 0.0  ;;  %4110 = vmatpush3.msra.mxu1 %v1816_v8 }
 0x4e7   :  { %1783 = vadd.xlane.f32.xlu0 %v1782_v56  ;;  %4112 = vmatmul.mubr.msk.f32.vlgmr.msra.gmra.mrb[18].mxu1 %vm149_vm1, %v125_v4 }
 0x4e8   :  { %4303 = vmatprep.subr.bf16.mxu1 %v4503_v0  ;;  %4141 = vmatprep.mubr.msk.f32.mxu1 %vm4505_vm0, %v4506_v1 }
 0x574   :  { %v1784_v57 = vpop.xlane.xlu0 %1783 }
 0x575   :  { %v1786_v58 = vmul.f32 0.041666668, %v1784_v57 }
 0x577   :  { %v1787_v59 = vsub.f32 %v1779_v55, %v1786_v58 }
 0x579   :  { %v1788_v60 = vmul.f32 %v1787_v59, %v1787_v59 }
 0x57b   :  { %v1789_v61 = vsel %vm149_vm1, %v1788_v60, 0.0 }
 0x57c   :  { %1790 = vadd.xlane.f32.xlu1 %v1789_v61 }
 0x5ba   :  { %v4113_v27 = vpop.f32.mrb[18].mxu1 }
 0x5bb   :  { %v1990_v29 = vadd.f32 %v4113_v27, %v3789_v25  ;;  %v1984_v31 = vpop.f32.mrb[19].mxu1 }
 0x5bc   :  { %v1985_v33 = vadd.f32 %v3789_v25, %v1984_v31 }
 0x5be   :  { %v4848_v37 = vpack.c.bf16 %v1990_v29, %v1985_v33 }
 0x609   :  { %v1791_v13 = vpop.xlane.xlu1 %1790 }
 0x60a   :  { %v1792_v14 = vmul.f32 0.041666668, %v1791_v13 }
 0x60c   :  { %v1793_v15 = vadd.f32 1e-05, %v1792_v14 }
 0x60e   :  { %4465 = vrsqrt.f32 %v1793_v15 }
 0x618   :  { %v4466_v16 = vpop.eup %4465 }
 0x619   :  { %v1795_v18 = vmul.f32 %v4466_v16, %v1787_v59 }
 0x61b   :  { %v1802_v20 = vmul.f32 %v3785_v17, %v1795_v18 }
 0x61d   :  { %v4830_v21 = vadd.f32 %v3786_v19, %v1802_v20 }
 0x61f   :  { %4103 = vmatmul.mubr.msk.f32.vlgmr.msra.gmra.mrb[8].mxu0 %vm149_vm1, %v4830_v21 }
 0x620   :  { %4294 = vmatpush3.bf16.msra.mxu0 %v4291_v12  ;;  %4120 = vmatprep.mubr.msk.f32.mxu0 %vm149_vm1, %v124_v3 }
 0x621   :  { %4118 = vmatprep.subr.mxu0 %v1820_v23 }
 0x624   :  { %4119 = vmatpush3.msra.mxu0 %v1820_v23 }
 0x625   :  { %4295 = vmatprep.subr.bf16.mxu0 %v4503_v0  ;;  %4121 = vmatmul.mubr.msk.f32.vlgmr.msra.gmra.mrb[10].mxu0 %vm149_vm1, %v125_v4 }
 0x626   :  { %4127 = vmatprep.mubr.msk.f32.mxu0 %vm4505_vm0, %v4506_v1 }
 0x62b   :  { %4298 = vmatpush3.bf16.xpose.msk.msra.mxu0 %vm4844_vm11, %v4848_v37 }
 0x62c   :  { %4299 = vmatprep.subr.bf16.mxu0 %v4503_v0 }
 0x6f2   :  { %v1901_v39 = vpop.f32.mrb[8].mxu0 }
 0x6f3   :  { %v1902_v40 = vadd.f32 %v3787_v38, %v1901_v39  ;;  %v4104_v41 = vpop.f32.mrb[9].mxu0 }
 0x6f5   :  { %v4857_v42 = vmul.f32 0.57735026, %v1902_v40 }
 0x6f7   :  { %v2074_v43 = vmul.f32 %v4586_v22, %v4857_v42  ;;  %v2168_v46 = vmul.f32 %v4596_v24, %v4857_v42  ;;  %v2408_v47 = vmul.f32 %v4609_v26, %v4857_v42  ;;  %v2736_v48 = vmul.f32 %v4635_v30, %v4857_v42 }
 0x6f8   :  { %v4122_v44 = vpop.f32.mrb[10].mxu0  ;;  %v2900_v49 = vmul.f32 %v4648_v32, %v4857_v42  ;;  %v3064_v50 = vmul.f32 %v4661_v34, %v4857_v42 }
 0x6f9   :  { %4128 = vmatmul.mubr.msk.f32.vlgmr.msra.gmra.mrb[12].mxu0 %vm149_vm1, %v2074_v43  ;;  %v2065_v45 = vpop.f32.mrb[11].mxu0  ;;  %v2071_v52 = vadd.f32 %v4122_v44, %v3792_v51 }
 0x6fa   :  { %4302 = vmatpush3.bf16.xpose.msk.msra.mxu0 %vm4844_vm11, %v4848_v37  ;;  %4134 = vmatprep.mubr.msk.f32.mxu0 %vm4505_vm0, %v4506_v1  ;;  %v2066_v53 = vadd.f32 %v3792_v51, %v2065_v45 }
 0x6fb   :  { %4311 = vmatprep.subr.bf16.mxu0 %v4503_v0  ;;  %v2254_v55 = vmul.f32 %v4596_v24, %v2071_v52  ;;  %v4918_v57 = vmul.f32 %v4586_v22, %v2071_v52  ;;  %v4924_v59 = vmul.f32 %v4609_v26, %v2071_v52  ;;  %v4930_v61 = vmul.f32 %v4622_v28, %v2071_v52 }
 0x6fc   :  { %v2253_v54 = vmul.f32 %v4596_v24, %v2066_v53  ;;  %v4915_v56 = vmul.f32 %v4586_v22, %v2066_v53  ;;  %v4921_v58 = vmul.f32 %v4609_v26, %v2066_v53  ;;  %v4927_v60 = vmul.f32 %v4622_v28, %v2066_v53  ;;  %v1822_v22 = vld [vmem:[%s3734_s21] sm:$0xff] }
 0x6fd   :  { %v4943_v2 = vmul.f32 %v4635_v30, %v2066_v53  ;;  %v4946_v8 = vmul.f32 %v4635_v30, %v2071_v52  ;;  %v4951_v3 = vmul.f32 %v4648_v32, %v2066_v53  ;;  %v4954_v4 = vmul.f32 %v4648_v32, %v2071_v52 }
 0x6fe   :  { %v4304_v24 = vpack.c.bf16 %v2254_v55, %v2253_v54  ;;  %v4308_v62 = vpack.c.bf16 %v4918_v57, %v4915_v56  ;;  %v4316_v26 = vpack.c.bf16 %v4924_v59, %v4921_v58  ;;  %v4324_v63 = vpack.c.bf16 %v4930_v61, %v4927_v60 }
 0x6ff   :  { %v4957_v5 = vmul.f32 %v4661_v34, %v2066_v53  ;;  %v4960_v6 = vmul.f32 %v4661_v34, %v2071_v52  ;;  %v4332_v30 = vpack.c.bf16 %v4946_v8, %v4943_v2  ;;  %v4966_v7 = vmul.f32 %v4672_v36, %v2066_v53 }
 0x700   :  { %4306 = vmatpush3.bf16.msk.msra.mxu1 %vm4934_vm14, %v4304_v24  ;;  %v4969_v9 = vmul.f32 %v4672_v36, %v2071_v52  ;;  %v4340_v32 = vpack.c.bf16 %v4954_v4, %v4951_v3  ;;  %v2572_v59 = vmul.f32 %v4622_v28, %v4857_v42 }
 0x701   :  { %4135 = vmatmul.mubr.msk.f32.vlgmr.msra.gmra.mrb[14].mxu0 %vm149_vm1, %v2168_v46  ;;  %4307 = vmatprep.subr.bf16.mxu1 %v4503_v0  ;;  %v4348_v10 = vpack.c.bf16 %v4960_v6, %v4957_v5  ;;  %v3228_v5 = vmul.f32 %v4672_v36, %v4857_v42 }
 0x702   :  { %4314 = vmatpush3.bf16.xpose.msk.msra.mxu0 %vm4844_vm11, %v4848_v37  ;;  %4155 = vmatprep.mubr.msk.f32.mxu0 %vm4505_vm0, %v4506_v1  ;;  %v4356_v34 = vpack.c.bf16 %v4969_v9, %v4966_v7  ;;  %v1823_v9 = vld [vmem:[%s3734_s21 + $0x8] sm:$0xff] }
 0x703   :  { %4327 = vmatprep.subr.bf16.mxu0 %v4503_v0 }
 0x709   :  { %4156 = vmatmul.mubr.msk.f32.vlgmr.msra.gmra.mrb[16].mxu0 %vm149_vm1, %v2408_v47 }
 0x70a   :  { %4330 = vmatpush3.bf16.xpose.msk.msra.mxu0 %vm4844_vm11, %v4848_v37  ;;  %4183 = vmatprep.mubr.msk.f32.mxu0 %vm4505_vm0, %v4506_v1 }
 0x70b   :  { %4335 = vmatprep.subr.bf16.mxu0 %v4503_v0 }
 0x711   :  { %4184 = vmatmul.mubr.msk.f32.vlgmr.msra.gmra.mrb[18].mxu0 %vm149_vm1, %v2736_v48 }
 0x712   :  { %4338 = vmatpush3.bf16.xpose.msk.msra.mxu0 %vm4844_vm11, %v4848_v37  ;;  %4197 = vmatprep.mubr.msk.f32.mxu0 %vm4505_vm0, %v4506_v1 }
 0x713   :  { %4343 = vmatprep.subr.bf16.mxu0 %v4503_v0 }
 0x719   :  { %4198 = vmatmul.mubr.msk.f32.vlgmr.msra.gmra.mrb[20].mxu0 %vm149_vm1, %v2900_v49 }
 0x71a   :  { %4346 = vmatpush3.bf16.xpose.msk.msra.mxu0 %vm4844_vm11, %v4848_v37  ;;  %4211 = vmatprep.mubr.msk.f32.mxu0 %vm4505_vm0, %v4506_v1 }
 0x71b   :  { %4359 = vmatprep.subr.bf16.mxu0 %v4503_v0 }
 0x721   :  { %4212 = vmatmul.mubr.msk.f32.vlgmr.msra.gmra.mrb[22].mxu0 %vm149_vm1, %v3064_v50 }
 0x722   :  { %4241 = vmatprep.mubr.msk.f32.mxu0 %vm4505_vm0, %v4506_v1 }
 0x7cc   :  { %v2150_v11 = vpop.f32.mrb[12].mxu0 }
 0x7cd   :  { %v4129_v12 = vpop.f32.mrb[13].mxu0  ;;  %v2155_v13 = vsel %vm2154_vm15, %v2150_v11, -inf }
 0x7ce   :  { %2156 = vmax.xlane.f32.xlu1 %v2155_v13 }
 0x7d4   :  { %v2238_v14 = vpop.f32.mrb[14].mxu0 }
 0x7d5   :  { %v4136_v15 = vpop.f32.mrb[15].mxu0  ;;  %v2242_v16 = vsel %vm2154_vm15, %v2238_v14, -inf }
 0x7d6   :  { %2243 = vmax.xlane.f32.xlu0 %v2242_v16 }
 0x7dc   :  { %v2478_v17 = vpop.f32.mrb[16].mxu0 }
 0x7dd   :  { %v4157_v18 = vpop.f32.mrb[17].mxu0  ;;  %v2482_v19 = vsel %vm2154_vm15, %v2478_v17, -inf }
 0x7de   :  { %2483 = vmax.xlane.f32.xlu0 %v2482_v19 }
 0x7e4   :  { %v2806_v20 = vpop.f32.mrb[18].mxu0 }
 0x7e5   :  { %v4185_v23 = vpop.f32.mrb[19].mxu0  ;;  %v2810_v53 = vsel %vm2154_vm15, %v2806_v20, -inf }
 0x7ec   :  { %v4980_v25 = vpop.f32.mrb[20].mxu0 }
 0x7ed   :  { %v4199_v27 = vpop.f32.mrb[21].mxu0  ;;  %v2974_v28 = vsel %vm2154_vm15, %v4980_v25, -inf }
 0x7f4   :  { %v3134_v29 = vpop.f32.mrb[22].mxu0 }
 0x7f5   :  { %v4213_v31 = vpop.f32.mrb[23].mxu0  ;;  %v3138_v54 = vsel %vm2154_vm15, %v3134_v29, -inf }
 0x85b   :  { %v2157_v33 = vpop.xlane.xlu1 %2156 }
 0x85c   :  { %v2158_v38 = vsub.f32 %v2150_v11, %v2157_v33 }
 0x85e   :  { %v2159_v39 = vmul.f32 1.442695, %v2158_v38 }
 0x860   :  { %4467 = vpow2.f32 %v2159_v39 }
 0x863   :  { %v2244_v40 = vpop.xlane.xlu0 %2243 }
 0x864   :  { %v2245_v41 = vsub.f32 %v2238_v14, %v2244_v40 }
 0x866   :  { %v2246_v43 = vmul.f32 1.442695, %v2245_v41 }
 0x868   :  { %4469 = vpow2.f32 %v2246_v43 }
 0x86a   :  { %v4468_v44 = vpop.eup %4467 }
 0x86b   :  { %v2484_v45 = vpop.xlane.xlu0 %2483  ;;  %v2161_v46 = vsel %vm2154_vm15, %v4468_v44, 0.0 }
 0x86c   :  { %v2485_v47 = vsub.f32 %v2478_v17, %v2484_v45  ;;  %2162 = vadd.xlane.f32.xlu0 %v2161_v46 }
 0x86e   :  { %v2486_v48 = vmul.f32 1.442695, %v2485_v47 }
 0x870   :  { %4471 = vpow2.f32 %v2486_v48 }
 0x872   :  { %v4470_v49 = vpop.eup %4469 }
 0x873   :  { %v2248_v50 = vsel %vm2154_vm15, %v4470_v49, 0.0 }
 0x874   :  { %2249 = vadd.xlane.f32.xlu1 %v2248_v50 }
 0x87a   :  { %v4472_v51 = vpop.eup %4471 }
 0x87b   :  { %v2488_v52 = vsel %vm2154_vm15, %v4472_v51, 0.0 }
 0x87c   :  { %2489 = vadd.xlane.f32.xlu1 %v2488_v52 }
 0x880   :  { %2811 = vmax.xlane.f32.xlu1 %v2810_v53 }
 0x884   :  { %3139 = vmax.xlane.f32.xlu1 %v3138_v54  ;;  %v1824_v54 = vld [vmem:[%s3734_s21 + $0x10] sm:$0xff] }
 0x8f9   :  { %v2163_v24 = vpop.xlane.xlu0 %2162 }
 0x901   :  { %v2250_v55 = vpop.xlane.xlu1 %2249 }
 0x902   :  { %4473 = vrcp.f32 %v2250_v55 }
 0x903   :  { %4475 = vrcp.f32 %v2163_v24 }
 0x909   :  { %v2490_v11 = vpop.xlane.xlu1 %2489 }
 0x90a   :  { %4477 = vrcp.f32 %v2490_v11  ;;  %v3835_v11 = vld [vmem:[%s3735_s25] ss:$0 sm:$0xff] }
 0x90c   :  { %v4474_v12 = vpop.eup %4473 }
 0x90d   :  { %v2252_v13 = vmul.f32 %v4474_v12, %v4470_v49  ;;  %v2812_v14 = vpop.xlane.xlu1 %2811  ;;  %v4476_v18 = vpop.eup %4475 }
 0x90e   :  { %v2813_v15 = vsub.f32 %v2806_v20, %v2812_v14  ;;  %v2165_v23 = vmul.f32 %v4476_v18, %v4468_v44 }
 0x90f   :  { %4142 = vmatmul.mubr.msk.f32.vlgmr.msra.gmra.mrb[20].mxu1 %vm2154_vm15, %v2252_v13 }
 0x910   :  { %v2814_v16 = vmul.f32 1.442695, %v2813_v15  ;;  %4310 = vmatpush3.bf16.msk.msra.mxu1 %vm4934_vm14, %v4308_v62  ;;  %4148 = vmatprep.mubr.msk.f32.mxu1 %vm4505_vm0, %v4506_v1 }
 0x911   :  { %v3140_v17 = vpop.xlane.xlu1 %3139  ;;  %4315 = vmatprep.subr.bf16.mxu1 %v4503_v0 }
 0x912   :  { %4479 = vpow2.f32 %v2814_v16  ;;  %v3141_v19 = vsub.f32 %v3134_v29, %v3140_v17 }
 0x914   :  { %v3142_v20 = vmul.f32 1.442695, %v3141_v19  ;;  %v4478_v56 = vpop.eup %4477 }
 0x915   :  { %v2492_v62 = vmul.f32 %v4478_v56, %v4472_v51  ;;  %v4423_v56 = vld [vmem:[%s3738_s29] sm:$0xff]  }
 0x916   :  { %4481 = vpow2.f32 %v3142_v20 }
 0x917   :  { %4149 = vmatmul.mubr.msk.f32.vlgmr.msra.gmra.mrb[20].mxu1 %vm2154_vm15, %v2165_v23 }
 0x918   :  { %4318 = vmatpush3.bf16.msk.msra.mxu1 %vm4934_vm14, %v4316_v26  ;;  %4162 = vmatprep.mubr.msk.f32.mxu1 %vm4505_vm0, %v4506_v1 }
 0x919   :  { %4319 = vmatprep.subr.bf16.mxu1 %v4503_v0 }
 0x91c   :  { %v4480_v57 = vpop.eup %4479 }
 0x91d   :  { %v2816_v27 = vsel %vm2154_vm15, %v4480_v57, 0.0 }
 0x91e   :  { %2817 = vadd.xlane.f32.xlu1 %v2816_v27  ;;  %v4426_v27 = vld [vmem:[%s5102_s3 + $0x8] sm:$0xff]  }
 0x91f   :  { %4163 = vmatmul.mubr.msk.f32.vlgmr.msra.gmra.mrb[20].mxu1 %vm2154_vm15, %v2492_v62  ;;  %v4425_v62 = vld [vmem:[%s5102_s3] sm:$0xff]  }
 0x920   :  { %v4482_v29 = vpop.eup %4481  ;;  %4169 = vmatprep.mubr.msk.f32.mxu1 %vm4505_vm0, %v4506_v1 }
 0x921   :  { %4322 = vmatpush3.bf16.xpose.msk.msra.mxu1 %vm4844_vm11, %v4848_v37  ;;  %v3144_v58 = vsel %vm2154_vm15, %v4482_v29, 0.0 }
 0x922   :  { %3145 = vadd.xlane.f32.xlu1 %v3144_v58  ;;  %4323 = vmatprep.subr.bf16.mxu1 %v4503_v0  ;;  %v4428_v58 = vld [vmem:[%s5102_s3 + $0x18] sm:$0xff]  }
 0x928   :  { %4170 = vmatmul.mubr.msk.f32.vlgmr.msra.gmra.mrb[22].mxu1 %vm149_vm1, %v2572_v59  ;;  %v4429_v59 = vld [vmem:[%s5102_s3 + $0x20] sm:$0xff]  }
 0x929   :  { %4326 = vmatpush3.bf16.msk.msra.mxu1 %vm4934_vm14, %v4324_v63  ;;  %4176 = vmatprep.mubr.msk.f32.mxu1 %vm4505_vm0, %v4506_v1 }
 0x92a   :  { %4331 = vmatprep.subr.bf16.mxu1 %v4503_v0 }
 0x9ab   :  { %v2818_v47 = vpop.xlane.xlu1 %2817 }
 0x9af   :  { %v3146_v52 = vpop.xlane.xlu1 %3145 }
 0x9fb   :  { %v2642_v26 = vpop.f32.mrb[22].mxu1 }
 0x9fc   :  { %v4171_v31 = vpop.f32.mrb[23].mxu1  ;;  %v2646_v33 = vsel %vm2154_vm15, %v2642_v26, -inf }
 0x9fd   :  { %2647 = vmax.xlane.f32.xlu0 %v2646_v33 }
 0xa01   :  { %2975 = vmax.xlane.f32.xlu0 %v2974_v28 }
 0xa8a   :  { %v2648_v38 = vpop.xlane.xlu0 %2647 }
 0xa8b   :  { %v2649_v39 = vsub.f32 %v2642_v26, %v2648_v38  ;;  %v4430_v26 = vld [vmem:[%s5102_s3 + $0x28] sm:$0xff]  }
 0xa8d   :  { %v2650_v60 = vmul.f32 1.442695, %v2649_v39  ;;  %v3837_v39 = vld [vmem:[%s3736_s7] ss:$0 sm:$0xff] }
 0xa8e   :  { %v2976_v61 = vpop.xlane.xlu0 %2975 }
 0xa8f   :  { %4483 = vpow2.f32 %v2650_v60  ;;  %v2977_v63 = vsub.f32 %v4980_v25, %v2976_v61  ;;  %v3838_v61 = vld [vmem:[%s3737_s11] ss:$0 sm:$0xff] }
 0xa91   :  { %v2978_v40 = vmul.f32 1.442695, %v2977_v63 }
 0xa93   :  { %4485 = vpow2.f32 %v2978_v40 }
 0xa99   :  { %v4484_v41 = vpop.eup %4483 }
 0xa9a   :  { %v2652_v43 = vsel %vm2154_vm15, %v4484_v41, 0.0 }
 0xa9b   :  { %2653 = vadd.xlane.f32.xlu0 %v2652_v43  ;;  %v4431_v43 = vld [vmem:[%s5102_s3 + $0x30] sm:$0xff]  }
 0xa9d   :  { %v4486_v44 = vpop.eup %4485 }
 0xa9e   :  { %v2980_v45 = vsel %vm2154_vm15, %v4486_v44, 0.0 }
 0xa9f   :  { %2981 = vadd.xlane.f32.xlu0 %v2980_v45  ;;  %v3839_v45 = vld [vmem:[%s3739_s15] ss:$0 sm:$0xff] }
 0xb28   :  { %v2654_v46 = vpop.xlane.xlu0 %2653 }
 0xb29   :  { %4487 = vrcp.f32 %v2654_v46 }
 0xb2a   :  { %4489 = vrcp.f32 %v2818_v47 }
 0xb2c   :  { %v2982_v50 = vpop.xlane.xlu0 %2981 }
 0xb2d   :  { %4491 = vrcp.f32 %v2982_v50 }
 0xb2e   :  { %4493 = vrcp.f32 %v3146_v52 }
 0xb33   :  { %v4488_v48 = vpop.eup %4487 }
 0xb34   :  { %v2656_v49 = vmul.f32 %v4488_v48, %v4484_v41  ;;  %v4490_v25 = vpop.eup %4489 }
 0xb35   :  { %v2820_v51 = vmul.f32 %v4490_v25, %v4480_v57 }
 0xb36   :  { %4177 = vmatmul.mubr.msk.f32.vlgmr.msra.gmra.mrb[20].mxu1 %vm2154_vm15, %v2656_v49 }
 0xb37   :  { %4334 = vmatpush3.bf16.msk.msra.mxu1 %vm4934_vm14, %v4332_v30  ;;  %4190 = vmatprep.mubr.msk.f32.mxu1 %vm4505_vm0, %v4506_v1  ;;  %v4492_v2 = vpop.eup %4491 }
 0xb38   :  { %4339 = vmatprep.subr.bf16.mxu1 %v4503_v0  ;;  %v2984_v8 = vmul.f32 %v4492_v2, %v4486_v44  ;;  %v4494_v3 = vpop.eup %4493  ;;  %v4432_v44 = vld [vmem:[%s5102_s3 + $0x38] sm:$0xff]  }
 0xb39   :  { %v3148_v4 = vmul.f32 %v4494_v3, %v4482_v29  ;;  %v4427_v29 = vld [vmem:[%s5102_s3 + $0x10] sm:$0xff]  }
 0xb3e   :  { %4191 = vmatmul.mubr.msk.f32.vlgmr.msra.gmra.mrb[20].mxu1 %vm2154_vm15, %v2820_v51 }
 0xb3f   :  { %4342 = vmatpush3.bf16.msk.msra.mxu1 %vm4934_vm14, %v4340_v32  ;;  %4204 = vmatprep.mubr.msk.f32.mxu1 %vm4505_vm0, %v4506_v1  ;;  %v4360_v32 = vpack.c.bf16 %v1823_v9, %v1822_v22 }
 0xb40   :  { %4347 = vmatprep.subr.bf16.mxu1 %v4503_v0 }
 0xb41   :  { %4361 = vmatpush3.bf16.msra.mxu0 %v4360_v32  ;;  %v3852_v32 = vld [vmem:[%s3742_s23] ss:$0 sm:$0xff] }
 0xb42   :  { %4239 = vmatprep.subr.mxu0 %v4506_v1 }
 0xb45   :  { %4240 = vmatpush3.msra.mxu0 %v1824_v54 }
 0xb46   :  { %4205 = vmatmul.mubr.msk.f32.vlgmr.msra.gmra.mrb[20].mxu1 %vm2154_vm15, %v2984_v8  ;;  %4244 = vmatprep.subr.bf16.mxu0 %v4506_v1 }
 0xb47   :  { %4350 = vmatpush3.bf16.msk.msra.mxu1 %vm4934_vm14, %v4348_v10  ;;  %4218 = vmatprep.mubr.msk.f32.mxu1 %vm4505_vm0, %v4506_v1 }
 0xb48   :  { %4351 = vmatprep.subr.bf16.mxu1 %v4503_v0 }
 0xb4e   :  { %4219 = vmatmul.mubr.msk.f32.vlgmr.msra.gmra.mrb[20].mxu1 %vm2154_vm15, %v3148_v4 }
 0xb4f   :  { %4225 = vmatprep.mubr.msk.f32.mxu1 %vm4505_vm0, %v4506_v1 }
 0xb50   :  { %4354 = vmatpush3.bf16.xpose.msk.msra.mxu1 %vm4844_vm11, %v4848_v37 }
 0xb51   :  { %4355 = vmatprep.subr.bf16.mxu1 %v4503_v0 }
 0xb57   :  { %4226 = vmatmul.mubr.msk.f32.vlgmr.msra.gmra.mrb[24].mxu1 %vm149_vm1, %v3228_v5 }
 0xb58   :  { %4358 = vmatpush3.bf16.msk.msra.mxu1 %vm4934_vm14, %v4356_v34  ;;  %4232 = vmatprep.mubr.msk.f32.mxu1 %vm4505_vm0, %v4506_v1 }
 0xb59   :  { %4252 = vmatprep.subr.bf16.mxu1 %v4506_v1 }
 0xc2a   :  { %v3298_v35 = vpop.f32.mrb[24].mxu1 }
 0xc2b   :  { %v4227_v37 = vpop.f32.mrb[25].mxu1  ;;  %v3302_v0 = vsel %vm2154_vm15, %v3298_v35, -inf }
 0xc2c   :  { %3303 = vmax.xlane.f32.xlu0 %v3302_v0 }
 0xcb9   :  { %v3304_v6 = vpop.xlane.xlu0 %3303 }
 0xcba   :  { %v3305_v36 = vsub.f32 %v3298_v35, %v3304_v6 }
 0xcbc   :  { %v3306_v42 = vmul.f32 1.442695, %v3305_v36 }
 0xcbe   :  { %4495 = vpow2.f32 %v3306_v42 }
 0xcc8   :  { %v4496_v30 = vpop.eup %4495 }
 0xcc9   :  { %v3308_v7 = vsel %vm2154_vm15, %v4496_v30, 0.0 }
 0xcca   :  { %3309 = vadd.xlane.f32.xlu1 %v3308_v7 }
 0xd57   :  { %v3310_v10 = vpop.xlane.xlu1 %3309 }
 0xd58   :  { %4497 = vrcp.f32 %v3310_v10 }
 0xd62   :  { %v4498_v34 = vpop.eup %4497 }
 0xd63   :  { %v3312_v53 = vmul.f32 %v4498_v34, %v4496_v30  ;;  %v3853_v34 = vld [vmem:[%s3743_s27] ss:$0 sm:$0xff] }
 0xd65   :  { %4233 = vmatmul.mubr.msk.f32.vlgmr.msra.gmra.mrb[20].mxu1 %vm2154_vm15, %v3312_v53 }
 0xd66   :  { %4268 = vmatprep.mubr.msk.bf16.mxu1 %vm4505_vm0, %v4506_v1  ;;  %4253 = vmatpush3.bf16.msra.mxu1 %v4425_v62 }
 0xd67   :  { %4254 = vmatprep.subr.bf16.mxu1 %v4506_v1 }
 0xd6a   :  { %4255 = vmatpush3.bf16.msra.mxu1 %v4426_v27 }
 0xd6b   :  { %4256 = vmatprep.subr.bf16.mxu1 %v4506_v1 }
 0xd6e   :  { %4257 = vmatpush3.bf16.msra.mxu1 %v4427_v29 }
 0xd6f   :  { %4258 = vmatprep.subr.bf16.mxu1 %v4506_v1 }
 0xd72   :  { %4259 = vmatpush3.bf16.msra.mxu1 %v4428_v58 }
 0xd73   :  { %4260 = vmatprep.subr.bf16.mxu1 %v4506_v1 }
 0xd76   :  { %4261 = vmatpush3.bf16.msra.mxu1 %v4429_v59 }
 0xd77   :  { %4262 = vmatprep.subr.bf16.mxu1 %v4506_v1 }
 0xd7a   :  { %4263 = vmatpush3.bf16.msra.mxu1 %v4430_v26 }
 0xd7b   :  { %4264 = vmatprep.subr.bf16.mxu1 %v4506_v1 }
 0xd7e   :  { %4265 = vmatpush3.bf16.msra.mxu1 %v4431_v43 }
 0xd7f   :  { %4266 = vmatprep.subr.bf16.mxu1 %v4506_v1 }
 0xd82   :  { %4267 = vmatpush3.bf16.msra.mxu1 %v4432_v44 }
 0xe38   :  { %v3387_v55 = vpop.f32.mrb[20].mxu1 }
 0xe39   :  { %v4234_v24 = vpop.f32.mrb[21].mxu1  ;;  %4242 = vmatmul.mubr.msk.f32.vlgmr.msra.gmra.mrb[24].mxu0 %vm149_vm1, %v3387_v55 }
 0xe3a   :  { %4248 = vmatprep.mubr.msk.bf16.mxu0 %vm4505_vm0, %v4506_v1  ;;  %4245 = vmatpush3.bf16.msra.mxu0 %v4423_v56  ;;  %vm3541_vm0 = vcmask 1043456  }
 0xe3b   :  { %4246 = vmatprep.subr.bf16.mxu0 %v4506_v1  ;;  %v3843_v1 = vld [vmem:[%s3741_s19] ss:$0 sm:$0xff] }
 0xf0c   :  { %v3467_v12 = vpop.f32.mrb[24].mxu0 }
 0xf0d   :  { %v3468_v13 = vadd.f32 %v3835_v11, %v3467_v12  ;;  %v4243_v14 = vpop.f32.mrb[25].mxu0 }
 0xf0f   :  { %v3471_v15 = vadd.f32 %v3468_v13, %v4830_v21  ;;  %v4424_v21 = vld [vmem:[%s3738_s29 + $0x8] ss:$0 sps:$4 sm:$0xff]  }
 0xf10   :  { %v3543_v57 = vsel %vm3541_vm0, %v4424_v21, 0 }
 0xf11   :  { %v3474_v16 = vsel %vm149_vm1, %v3471_v15, 0.0  ;;  %4247 = vmatpush3.bf16.msra.mxu0 %v3543_v57 }
 0xf12   :  { %3475 = vadd.xlane.f32.xlu0 %v3474_v16 }
 0xf9f   :  { %v3476_v17 = vpop.xlane.xlu0 %3475 }
 0xfa0   :  { %v3477_v18 = vmul.f32 0.041666668, %v3476_v17 }
 0xfa2   :  { %v3478_v19 = vsub.f32 %v3471_v15, %v3477_v18 }
 0xfa4   :  { %v3479_v20 = vmul.f32 %v3478_v19, %v3478_v19 }
 0xfa6   :  { %v3480_v23 = vsel %vm149_vm1, %v3479_v20, 0.0 }
 0xfa7   :  { %3481 = vadd.xlane.f32.xlu1 %v3480_v23 }
0x1034   :  { %v3482_v31 = vpop.xlane.xlu1 %3481 }
0x1035   :  { %v3483_v33 = vmul.f32 0.041666668, %v3482_v31 }
0x1037   :  { %v3484_v28 = vadd.f32 1e-05, %v3483_v33 }
0x1039   :  { %4499 = vrsqrt.f32 %v3484_v28 }
0x1043   :  { %v4500_v38 = vpop.eup %4499 }
0x1044   :  { %v3486_v60 = vmul.f32 %v4500_v38, %v3478_v19 }
0x1046   :  { %v3493_v63 = vmul.f32 %v3837_v39, %v3486_v60 }
0x1048   :  { %v3500_v40 = vadd.f32 %v3838_v61, %v3493_v63 }
0x104a   :  { %v3522_v41 = vpack.c.bf16 %v3500_v40, %v3500_v40 }
0x104c   :  { %4249 = vmatmul.mubr.msk.bf16.vlgmr.msra.gmra.mrb[28].mxu0 %vm149_vm1, %v3522_v41 }
0x111f   :  { %v3579_v46 = vpop.f32.mrb[28].mxu0 }
0x1120   :  { %v3580_v47 = vadd.f32 %v3839_v45, %v3579_v46  ;;  %v4250_v48 = vpop.f32.mrb[29].mxu0 }
0x1121   :  { %v3582_v49 = vpop.f32.mrb[30].mxu0 }
0x1122   :  { %v3585_v50 = vmax.f32 %v3580_v47, 0.0  ;;  %v4251_v25 = vpop.f32.mrb[31].mxu0 }
0x1124   :  { %v3586_v51 = vpack.c.bf16 %v3585_v50, %v3585_v50 }
0x1126   :  { %4269 = vmatmul.mubr.bf16.vlgmr.msra.gmra.mrb[28].mxu1 %v3586_v51 }
0x11f9   :  { %v3675_v52 = vpop.f32.mrb[28].mxu1 }
0x11fa   :  { %v3676_v2 = vadd.f32 %v3843_v1, %v3675_v52  ;;  %v4270_v8 = vpop.f32.mrb[29].mxu1 }
0x11fb   :  { %v3678_v3 = vpop.f32.mrb[30].mxu1 }
0x11fc   :  { %v4271_v4 = vpop.f32.mrb[31].mxu1  ;;  %v3681_v5 = vadd.f32 %v3676_v2, %v3500_v40 }
0x11fe   :  { %v3684_v35 = vsel %vm149_vm1, %v3681_v5, 0.0 }
0x11ff   :  { %3685 = vadd.xlane.f32.xlu0 %v3684_v35 }
0x128c   :  { %v3686_v37 = vpop.xlane.xlu0 %3685 }
0x128d   :  { %v3687_v0 = vmul.f32 0.041666668, %v3686_v37 }
0x128f   :  { %v3688_v6 = vsub.f32 %v3681_v5, %v3687_v0 }
0x1291   :  { %v3689_v36 = vmul.f32 %v3688_v6, %v3688_v6 }
0x1293   :  { %v3690_v42 = vsel %vm149_vm1, %v3689_v36, 0.0 }
0x1294   :  { %3691 = vadd.xlane.f32.xlu1 %v3690_v42 }
0x1321   :  { %v3692_v30 = vpop.xlane.xlu1 %3691 }
0x1322   :  { %v3693_v7 = vmul.f32 0.041666668, %v3692_v30 }
0x1324   :  { %v3694_v22 = vadd.f32 1e-05, %v3693_v7 }
0x1326   :  { %4501 = vrsqrt.f32 %v3694_v22 }
0x1330   :  { %v4502_v9 = vpop.eup %4501 }
0x1331   :  { %v3696_v10 = vmul.f32 %v4502_v9, %v3688_v6 }
0x1333   :  { %v3703_v53 = vmul.f32 %v3852_v32, %v3696_v10 }
0x1335   :  { %v3710_v54 = vadd.f32 %v3853_v34, %v3703_v53 }
0x1337   :  { %3711 = vst.msk [vmem:[%s3744_s1] sm:$0xff] %vm149_vm1, %v3710_v54 }

// kernel: translate_model_forward.10
= control target key start
LH: loop header
LB: loop body
LE: loop exit
PB: predicated region body
PF: predicated region fallthrough
CT: control target
= control target key end

     0   :  { %s5045_s6 = smov 1   ;;  %s5046_s10 = smov 2   ;;  %s5846_s0 = inlined_call_operand.smem [shape: u32[30], index: -1, kind: input, shape index: {}] }
   0x1   :  { %s5101_s5 = sld [smem:[%s5846_s0]]   ;;  %s5047_s14 = smov 3  }
   0x2   :  { %s5106_s9 = sld [smem:[%s5846_s0 + %s5045_s6]]   ;;  %s5048_s18 = smov 4  }
   0x3   :  { %s5111_s13 = sld [smem:[%s5846_s0 + %s5046_s10]]   ;;  %s5049_s22 = smov 5  }
   0x4   :  { %s5116_s17 = sld [smem:[%s5846_s0 + %s5047_s14]]   ;;  %s5050_s26 = smov 6  }
   0x5   :  { %s5121_s21 = sld [smem:[%s5846_s0 + %s5048_s18]]   ;;  %s5051_s30 = smov 7  }
   0x6   :  { %s5126_s25 = sld [smem:[%s5846_s0 + %s5049_s22]]   ;;  %s5052_s4 = smov 8  }
   0x7   :  { %5856 = sst [smem:[#allocation33_spill]] %s5101_s5  ;;  %s5053_s10 = smov 9  }
   0x8   :  { %5857 = sst [smem:[#allocation34_spill]] %s5106_s9  ;;  %s5054_s15 = smov 10  }
   0x9   :  { %5858 = sst [smem:[#allocation35_spill]] %s5111_s13  ;;  %s5055_s20 = smov 11  }
   0xa   :  { %s5131_s29 = sld [smem:[%s5846_s0 + %s5050_s26]]   ;;  %s5056_s26 = smov 12  }
   0xb   :  { %5859 = sst [smem:[#allocation36_spill]] %s5121_s21  ;;  %s5057_s1 = smov 13  }
   0xc   :  { %s5136_s3 = sld [smem:[%s5846_s0 + %s5051_s30]]   ;;  %s5058_s7 = smov 14  }
   0xd   :  { %s5141_s8 = sld [smem:[%s5846_s0 + %s5052_s4]]   ;;  %s5060_s22 = smov 16  }
   0xe   :  { %s5146_s14 = sld [smem:[%s5846_s0 + %s5053_s10]]   ;;  %s5061_s28 = smov 17  }
   0xf   :  { %s5151_s19 = sld [smem:[%s5846_s0 + %s5054_s15]]   ;;  %s5059_s15 = smov 15  }
  0x10   :  { %s5156_s24 = sld [smem:[%s5846_s0 + %s5055_s20]]  }
  0x11   :  { %s5161_s30 = sld [smem:[%s5846_s0 + %s5056_s26]]  }
  0x12   :  { %5860 = sst [smem:[#allocation37_spill]] %s5136_s3 }
  0x13   :  { %s5166_s6 = sld [smem:[%s5846_s0 + %s5057_s1]]  }
  0x14   :  { %5861 = sst [smem:[#allocation38_spill]] %s5146_s14 }
  0x15   :  { %s5171_s12 = sld [smem:[%s5846_s0 + %s5058_s7]]   ;;  %s5062_s7 = smov 18  }
  0x16   :  { %s5176_s20 = sld [smem:[%s5846_s0 + %s5059_s15]]   ;;  %s5063_s15 = smov 19  }
  0x17   :  { %s5181_s27 = sld [smem:[%s5846_s0 + %s5060_s22]]   ;;  %s5064_s22 = smov 20  }
  0x18   :  { %s5186_s4 = sld [smem:[%s5846_s0 + %s5061_s28]]   ;;  %s5065_s28 = smov 21  }
  0x19   :  { %5862 = sst [smem:[#allocation39_spill]] %s5166_s6 }
  0x1a   :  { %s5191_s6 = sld [smem:[%s5846_s0 + %s5062_s7]]   ;;  %s5066_s7 = smov 22  }
  0x1b   :  { %s5196_s9 = sld [smem:[%s5846_s0 + %s5063_s15]]   ;;  %s5067_s15 = smov 23  }
  0x1c   :  { %5863 = sst [smem:[#allocation40_spill]] %s5176_s20 }
  0x1d   :  { %s5201_s20 = sld [smem:[%s5846_s0 + %s5064_s22]]   ;;  %s5068_s22 = smov 24  }
  0x1e   :  { %5864 = sst [smem:[#allocation41_spill]] %s5186_s4 }
  0x1f   :  { %s5206_s4 = sld [smem:[%s5846_s0 + %s5065_s28]]   ;;  %s5069_s28 = smov 25  }
  0x20   :  { %s5211_s14 = sld [smem:[%s5846_s0 + %s5066_s7]]   ;;  %s5070_s7 = smov 26  }
  0x21   :  { %5865 = sst [smem:[#allocation42_spill]] %s5196_s9 }
  0x22   :  { %s5216_s9 = sld [smem:[%s5846_s0 + %s5067_s15]]   ;;  %s5071_s15 = smov 27  }
  0x23   :  { %s5221_s13 = sld [smem:[%s5846_s0 + %s5068_s22]]   ;;  %s5072_s22 = smov 28  }
  0x24   :  { %s5226_s3 = sld [smem:[%s5846_s0 + %s5069_s28]]   ;;  %s5073_s28 = smov 29  }
  0x25   :  { %s5231_s21 = sld [smem:[%s5846_s0 + %s5070_s7]]  }
  0x26   :  { %s5241_s5 = sld [smem:[%s5846_s0 + %s5072_s22]]  }
  0x28   :  { %5866 = sst [smem:[#allocation43_spill]] %s5216_s9 }
  0x29   :  { %s5236_s9 = sld [smem:[%s5846_s0 + %s5071_s15]]  }
  0x2a   :  { %5867 = sst [smem:[#allocation44_spill]] %s5226_s3 }
  0x2b   :  { %s5246_s3 = sld [smem:[%s5846_s0 + %s5073_s28]]  }
  0x2c   :  { %64 = vsyncpa [#allocation3], 0 }
  0x2d   :  { %65 = vsyncpa [#allocation5], 0 }
  0x2e   :  { %66 = vsyncpa [#allocation8], 0 }
  0x2f   :  { %67 = vsyncpa [#allocation11], 0 }
  0x30   :  { %68 = vsyncpa [#allocation14], 0 }
  0x31   :  { %69 = vsyncpa [#allocation17], 0 }
  0x32   :  { %70 = vsyncpa [#allocation20], 0 }
  0x33   :  { %71 = vsyncpa [#allocation23], 0  ;;  %s5074_s7 = smov [#allocation4]   ;;  %s5075_s11 = smov [#allocation7]  }
  0x34   :  { %s102_s10 = sshll.u32 %s5074_s7, 4  ;;  %s124_s15 = sshll.u32 %s5075_s11, 4  ;;  %s103_s10 = int_to_ptr.vmem [resolvable:$true] %s102_s10  ;;  %s125_s15 = int_to_ptr.vmem [resolvable:$true] %s124_s15 }
  0x35   :  { %s4699_s16 = scalar_lea.hbm %s5141_s8, 16 }
  0x36   :  { %p4700_p0 = scmp.ne.s32.totalorder %s5141_s8, %s4699_s16  ;;  %p4703_p1 = scmp.lt.u32.totalorder %s4699_s16, %s5141_s8 }
  0x38   :  { %p4705_p2 = pnand %p4703_p1, %p4700_p0 }
  0x3a   :  { %4708 = shalt.err (!%p4705_p2)
}
  0x3b   :  { %s4709_s0 = scalar_lea.vmem %s103_s10, 16  ;;  %s4713_s18 = scalar_lea.vmem %s103_s10, 32 }
  0x3c   :  { %p4710_p3 = scmp.ne.s32.totalorder %s103_s10, %s4709_s0  ;;  %p4714_p4 = scmp.lt.s32.totalorder %s103_s10, %s103_s10 }
  0x3d   :  { %p4715_p5 = scmp.lt.s32.totalorder %s4713_s18, %s4709_s0 }
  0x3f   :  { %p4716_p6 = por %p4715_p5, %p4714_p4 }
  0x41   :  { %p4717_p7 = pnand %p4716_p6, %p4710_p3 }
  0x43   :  { %4720 = shalt.err (!%p4717_p7)
}
  0x44   :  { %105 = dma.hbm_to_vmem [thread:$0]  %s5141_s8, 16, %s103_s10, [#allocation5]  }
  0x45   :  { %s4721_s22 = scalar_lea.hbm %s5156_s24, 16 }
  0x46   :  { %p4722_p8 = scmp.ne.s32.totalorder %s5156_s24, %s4721_s22  ;;  %p4725_p9 = scmp.lt.u32.totalorder %s4721_s22, %s5156_s24 }
  0x48   :  { %p4727_p10 = pnand %p4725_p9, %p4722_p8 }
  0x4a   :  { %4730 = shalt.err (!%p4727_p10)
}
  0x4b   :  { %s4731_s23 = scalar_lea.vmem %s125_s15, 16  ;;  %s4735_s26 = scalar_lea.vmem %s125_s15, 32 }
  0x4c   :  { %p4732_p11 = scmp.ne.s32.totalorder %s125_s15, %s4731_s23  ;;  %p4736_p12 = scmp.lt.s32.totalorder %s125_s15, %s125_s15 }
  0x4d   :  { %p4737_p13 = scmp.lt.s32.totalorder %s4735_s26, %s4731_s23 }
  0x4f   :  { %p4738_p0 = por %p4737_p13, %p4736_p12 }
  0x51   :  { %p4739_p1 = pnand %p4738_p0, %p4732_p11 }
  0x53   :  { %4742 = shalt.err (!%p4739_p1)
}
  0x54   :  { %127 = dma.hbm_to_vmem [thread:$0]  %s5156_s24, 16, %s125_s15, [#allocation8]  }
  0x55   :  { %s5076_s28 = smov [#allocation10]   ;;  %s5077_s1 = smov [#allocation13]  }
  0x56   :  { %s146_s8 = sshll.u32 %s5076_s28, 4  ;;  %s170_s2 = sshll.u32 %s5077_s1, 4  ;;  %s147_s8 = int_to_ptr.vmem [resolvable:$true] %s146_s8  ;;  %s171_s2 = int_to_ptr.vmem [resolvable:$true] %s170_s2 }
  0x57   :  { %s4743_s7 = scalar_lea.hbm %s5171_s12, 16 }
  0x58   :  { %p4744_p2 = scmp.ne.s32.totalorder %s5171_s12, %s4743_s7  ;;  %p4747_p3 = scmp.lt.u32.totalorder %s4743_s7, %s5171_s12 }
  0x5a   :  { %p4749_p4 = pnand %p4747_p3, %p4744_p2 }
  0x5c   :  { %4752 = shalt.err (!%p4749_p4)
}
  0x5d   :  { %s4753_s10 = scalar_lea.vmem %s147_s8, 16  ;;  %s4757_s11 = scalar_lea.vmem %s147_s8, 32 }
  0x5e   :  { %p4754_p5 = scmp.ne.s32.totalorder %s147_s8, %s4753_s10  ;;  %p4758_p6 = scmp.lt.s32.totalorder %s147_s8, %s147_s8 }
  0x5f   :  { %p4759_p7 = scmp.lt.s32.totalorder %s4757_s11, %s4753_s10 }
  0x61   :  { %p4760_p8 = por %p4759_p7, %p4758_p6 }
  0x63   :  { %p4761_p9 = pnand %p4760_p8, %p4754_p5 }
  0x65   :  { %4764 = shalt.err (!%p4761_p9)
}
  0x66   :  { %149 = dma.hbm_to_vmem [thread:$0]  %s5171_s12, 16, %s147_s8, [#allocation11]  }
  0x67   :  { %s4765_s24 = scalar_lea.hbm %s5191_s6, 16 }
  0x68   :  { %p4766_p10 = scmp.ne.s32.totalorder %s5191_s6, %s4765_s24  ;;  %p4769_p11 = scmp.lt.u32.totalorder %s4765_s24, %s5191_s6 }
  0x6a   :  { %p4771_p12 = pnand %p4769_p11, %p4766_p10 }
  0x6c   :  { %4774 = shalt.err (!%p4771_p12)
}
  0x6d   :  { %s4775_s15 = scalar_lea.vmem %s171_s2, 16  ;;  %s4779_s16 = scalar_lea.vmem %s171_s2, 32 }
  0x6e   :  { %p4776_p13 = scmp.ne.s32.totalorder %s171_s2, %s4775_s15  ;;  %p4780_p0 = scmp.lt.s32.totalorder %s171_s2, %s171_s2 }
  0x6f   :  { %p4781_p1 = scmp.lt.s32.totalorder %s4779_s16, %s4775_s15 }
  0x71   :  { %p4782_p2 = por %p4781_p1, %p4780_p0 }
  0x73   :  { %p4783_p3 = pnand %p4782_p2, %p4776_p13 }
  0x75   :  { %4786 = shalt.err (!%p4783_p3)
}
  0x76   :  { %173 = dma.hbm_to_vmem [thread:$0]  %s5191_s6, 16, %s171_s2, [#allocation14]  }
  0x77   :  { %s5078_s0 = smov [#allocation16]   ;;  %s5079_s18 = smov [#allocation19]  }
  0x78   :  { %s192_s12 = sshll.u32 %s5078_s0, 4  ;;  %s214_s22 = sshll.u32 %s5079_s18, 4  ;;  %s193_s12 = int_to_ptr.vmem [resolvable:$true] %s192_s12  ;;  %s215_s22 = int_to_ptr.vmem [resolvable:$true] %s214_s22 }
  0x79   :  { %s4787_s23 = scalar_lea.hbm %s5206_s4, 16 }
  0x7a   :  { %p4788_p4 = scmp.ne.s32.totalorder %s5206_s4, %s4787_s23  ;;  %p4791_p5 = scmp.lt.u32.totalorder %s4787_s23, %s5206_s4 }
  0x7c   :  { %p4793_p6 = pnand %p4791_p5, %p4788_p4 }
  0x7e   :  { %4796 = shalt.err (!%p4793_p6)
}
  0x7f   :  { %s4797_s26 = scalar_lea.vmem %s193_s12, 16  ;;  %s4801_s28 = scalar_lea.vmem %s193_s12, 32 }
  0x80   :  { %p4798_p7 = scmp.ne.s32.totalorder %s193_s12, %s4797_s26  ;;  %p4802_p8 = scmp.lt.s32.totalorder %s193_s12, %s193_s12 }
  0x81   :  { %p4803_p9 = scmp.lt.s32.totalorder %s4801_s28, %s4797_s26 }
  0x83   :  { %p4804_p10 = por %p4803_p9, %p4802_p8 }
  0x85   :  { %p4805_p11 = pnand %p4804_p10, %p4798_p7 }
  0x87   :  { %4808 = shalt.err (!%p4805_p11)
}
  0x88   :  { %195 = dma.hbm_to_vmem [thread:$0]  %s5206_s4, 16, %s193_s12, [#allocation17]  }
  0x89   :  { %s4809_s6 = scalar_lea.hbm %s5221_s13, 16 }
  0x8a   :  { %p4810_p12 = scmp.ne.s32.totalorder %s5221_s13, %s4809_s6  ;;  %p4813_p13 = scmp.lt.u32.totalorder %s4809_s6, %s5221_s13 }
  0x8c   :  { %p4815_p0 = pnand %p4813_p13, %p4810_p12 }
  0x8e   :  { %4818 = shalt.err (!%p4815_p0)
}
  0x8f   :  { %s4819_s8 = scalar_lea.vmem %s215_s22, 16  ;;  %s4823_s1 = scalar_lea.vmem %s215_s22, 32 }
  0x90   :  { %p4820_p1 = scmp.ne.s32.totalorder %s215_s22, %s4819_s8  ;;  %p4824_p2 = scmp.lt.s32.totalorder %s215_s22, %s215_s22 }
  0x91   :  { %p4825_p3 = scmp.lt.s32.totalorder %s4823_s1, %s4819_s8 }
  0x93   :  { %p4826_p4 = por %p4825_p3, %p4824_p2 }
  0x95   :  { %p4827_p5 = pnand %p4826_p4, %p4820_p1 }
  0x97   :  { %4830 = shalt.err (!%p4827_p5)
}
  0x98   :  { %217 = dma.hbm_to_vmem [thread:$0]  %s5221_s13, 16, %s215_s22, [#allocation20]  }
  0x99   :  { %s5080_s2 = smov [#allocation22]   ;;  %s5081_s7 = smov [#allocation2]  }
  0x9a   :  { %s236_s4 = sshll.u32 %s5080_s2, 4  ;;  %s90_s10 = sshll.u32 %s5081_s7, 4  ;;  %s237_s4 = int_to_ptr.vmem [resolvable:$true] %s236_s4  ;;  %s91_s10 = int_to_ptr.vmem [resolvable:$true] %s90_s10 }
  0x9b   :  { %s4831_s11 = scalar_lea.hbm %s5236_s9, 16 }
  0x9c   :  { %p4832_p6 = scmp.ne.s32.totalorder %s5236_s9, %s4831_s11  ;;  %p4835_p7 = scmp.lt.u32.totalorder %s4831_s11, %s5236_s9 }
  0x9e   :  { %p4837_p8 = pnand %p4835_p7, %p4832_p6 }
  0xa0   :  { %4840 = shalt.err (!%p4837_p8)
}
  0xa1   :  { %s4841_s24 = scalar_lea.vmem %s237_s4, 16  ;;  %s4845_s15 = scalar_lea.vmem %s237_s4, 32 }
  0xa2   :  { %p4842_p9 = scmp.ne.s32.totalorder %s237_s4, %s4841_s24  ;;  %p4846_p10 = scmp.lt.s32.totalorder %s237_s4, %s237_s4 }
  0xa3   :  { %p4847_p11 = scmp.lt.s32.totalorder %s4845_s15, %s4841_s24 }
  0xa5   :  { %p4848_p12 = por %p4847_p11, %p4846_p10 }
  0xa7   :  { %p4849_p13 = pnand %p4848_p12, %p4842_p9 }
  0xa9   :  { %4852 = shalt.err (!%p4849_p13)
}
  0xaa   :  { %239 = dma.hbm_to_vmem [thread:$0]  %s5236_s9, 16, %s237_s4, [#allocation23]  }
  0xab   :  { %s4853_s13 = scalar_lea.hbm %s5131_s29, 16 }
  0xac   :  { %p4854_p0 = scmp.ne.s32.totalorder %s5131_s29, %s4853_s13  ;;  %p4857_p1 = scmp.lt.u32.totalorder %s4853_s13, %s5131_s29 }
  0xae   :  { %p4859_p2 = pnand %p4857_p1, %p4854_p0 }
  0xb0   :  { %4862 = shalt.err (!%p4859_p2)
}
  0xb1   :  { %s4863_s16 = scalar_lea.vmem %s91_s10, 16  ;;  %s4867_s0 = scalar_lea.vmem %s91_s10, 32 }
  0xb2   :  { %p4864_p3 = scmp.ne.s32.totalorder %s91_s10, %s4863_s16  ;;  %p4868_p4 = scmp.lt.s32.totalorder %s91_s10, %s91_s10 }
  0xb3   :  { %p4869_p5 = scmp.lt.s32.totalorder %s4867_s0, %s4863_s16 }
  0xb5   :  { %p4870_p6 = por %p4869_p5, %p4868_p4 }
  0xb7   :  { %p4871_p7 = pnand %p4870_p6, %p4864_p3 }
  0xb9   :  { %4874 = shalt.err (!%p4871_p7)
}
  0xba   :  { %93 = dma.hbm_to_vmem [thread:$0]  %s5131_s29, 16, %s91_s10, [#allocation3]  }
  0xbb   :  { %s5082_s12 = smov [#allocation6]   ;;  %s5083_s18 = smov [#allocation9]  }
  0xbc   :  { %s114_s9 = sshll.u32 %s5082_s12, 4  ;;  %s134_s22 = sshll.u32 %s5083_s18, 4  ;;  %s115_s9 = int_to_ptr.vmem [resolvable:$true] %s114_s9  ;;  %s135_s22 = int_to_ptr.vmem [resolvable:$true] %s134_s22 }
  0xbd   :  { %s4875_s23 = scalar_lea.hbm %s5151_s19, 16 }
  0xbe   :  { %p4876_p8 = scmp.ne.s32.totalorder %s5151_s19, %s4875_s23  ;;  %p4879_p9 = scmp.lt.u32.totalorder %s4875_s23, %s5151_s19 }
  0xc0   :  { %p4881_p10 = pnand %p4879_p9, %p4876_p8 }
  0xc2   :  { %4884 = shalt.err (!%p4881_p10)
}
  0xc3   :  { %s4885_s26 = scalar_lea.vmem %s115_s9, 16  ;;  %s4889_s28 = scalar_lea.vmem %s115_s9, 32 }
  0xc4   :  { %p4886_p11 = scmp.ne.s32.totalorder %s115_s9, %s4885_s26  ;;  %p4890_p12 = scmp.lt.s32.totalorder %s115_s9, %s115_s9 }
  0xc5   :  { %p4891_p13 = scmp.lt.s32.totalorder %s4889_s28, %s4885_s26 }
  0xc7   :  { %p4892_p0 = por %p4891_p13, %p4890_p12 }
  0xc9   :  { %p4893_p1 = pnand %p4892_p0, %p4886_p11 }
  0xcb   :  { %4896 = shalt.err (!%p4893_p1)
}
  0xcc   :  { %117 = dma.hbm_to_vmem [thread:$0]  %s5151_s19, 16, %s115_s9, [#allocation5]  }
  0xcd   :  { %s4897_s29 = scalar_lea.hbm %s5161_s30, 16 }
  0xce   :  { %p4898_p2 = scmp.ne.s32.totalorder %s5161_s30, %s4897_s29  ;;  %p4901_p3 = scmp.lt.u32.totalorder %s4897_s29, %s5161_s30 }
  0xd0   :  { %p4903_p4 = pnand %p4901_p3, %p4898_p2 }
  0xd2   :  { %4906 = shalt.err (!%p4903_p4)
}
  0xd3   :  { %s4907_s6 = scalar_lea.vmem %s135_s22, 16  ;;  %s4911_s8 = scalar_lea.vmem %s135_s22, 32 }
  0xd4   :  { %p4908_p5 = scmp.ne.s32.totalorder %s135_s22, %s4907_s6  ;;  %p4912_p6 = scmp.lt.s32.totalorder %s135_s22, %s135_s22 }
  0xd5   :  { %p4913_p7 = scmp.lt.s32.totalorder %s4911_s8, %s4907_s6 }
  0xd7   :  { %p4914_p8 = por %p4913_p7, %p4912_p6 }
  0xd9   :  { %p4915_p9 = pnand %p4914_p8, %p4908_p5 }
  0xdb   :  { %4918 = shalt.err (!%p4915_p9)
}
  0xdc   :  { %137 = dma.hbm_to_vmem [thread:$0]  %s5161_s30, 16, %s135_s22, [#allocation8]  }
  0xdd   :  { %s5084_s1 = smov [#allocation12]   ;;  %s5085_s2 = smov [#allocation15]  }
  0xde   :  { %s158_s19 = sshll.u32 %s5084_s1, 4  ;;  %s182_s4 = sshll.u32 %s5085_s2, 4  ;;  %s159_s19 = int_to_ptr.vmem [resolvable:$true] %s158_s19  ;;  %s183_s4 = int_to_ptr.vmem [resolvable:$true] %s182_s4 }
  0xdf   :  { %s4919_s7 = scalar_lea.hbm %s5181_s27, 16 }
  0xe0   :  { %p4920_p10 = scmp.ne.s32.totalorder %s5181_s27, %s4919_s7  ;;  %p4923_p11 = scmp.lt.u32.totalorder %s4919_s7, %s5181_s27 }
  0xe2   :  { %p4925_p12 = pnand %p4923_p11, %p4920_p10 }
  0xe4   :  { %4928 = shalt.err (!%p4925_p12)
}
  0xe5   :  { %s4929_s10 = scalar_lea.vmem %s159_s19, 16  ;;  %s4933_s11 = scalar_lea.vmem %s159_s19, 32 }
  0xe6   :  { %p4930_p13 = scmp.ne.s32.totalorder %s159_s19, %s4929_s10  ;;  %p4934_p0 = scmp.lt.s32.totalorder %s159_s19, %s159_s19 }
  0xe7   :  { %p4935_p1 = scmp.lt.s32.totalorder %s4933_s11, %s4929_s10 }
  0xe9   :  { %p4936_p2 = por %p4935_p1, %p4934_p0 }
  0xeb   :  { %p4937_p3 = pnand %p4936_p2, %p4930_p13 }
  0xed   :  { %4940 = shalt.err (!%p4937_p3)
}
  0xee   :  { %161 = dma.hbm_to_vmem [thread:$0]  %s5181_s27, 16, %s159_s19, [#allocation11]  }
  0xef   :  { %s4941_s30 = scalar_lea.hbm %s5201_s20, 16 }
  0xf0   :  { %p4942_p4 = scmp.ne.s32.totalorder %s5201_s20, %s4941_s30  ;;  %p4945_p5 = scmp.lt.u32.totalorder %s4941_s30, %s5201_s20 }
  0xf2   :  { %p4947_p6 = pnand %p4945_p5, %p4942_p4 }
  0xf4   :  { %4950 = shalt.err (!%p4947_p6)
}
  0xf5   :  { %s4951_s24 = scalar_lea.vmem %s183_s4, 16  ;;  %s4955_s15 = scalar_lea.vmem %s183_s4, 32 }
  0xf6   :  { %p4952_p7 = scmp.ne.s32.totalorder %s183_s4, %s4951_s24  ;;  %p4956_p8 = scmp.lt.s32.totalorder %s183_s4, %s183_s4 }
  0xf7   :  { %p4957_p9 = scmp.lt.s32.totalorder %s4955_s15, %s4951_s24 }
  0xf9   :  { %p4958_p10 = por %p4957_p9, %p4956_p8 }
  0xfb   :  { %p4959_p11 = pnand %p4958_p10, %p4952_p7 }
  0xfd   :  { %4962 = shalt.err (!%p4959_p11)
}
  0xfe   :  { %185 = dma.hbm_to_vmem [thread:$0]  %s5201_s20, 16, %s183_s4, [#allocation14]  }
  0xff   :  { %s5086_s13 = smov [#allocation18]   ;;  %s5087_s16 = smov [#allocation21]  }
 0x100   :  { %s202_s27 = sshll.u32 %s5086_s13, 4  ;;  %s226_s0 = sshll.u32 %s5087_s16, 4  ;;  %s203_s27 = int_to_ptr.vmem [resolvable:$true] %s202_s27  ;;  %s227_s0 = int_to_ptr.vmem [resolvable:$true] %s226_s0 }
 0x101   :  { %s4963_s12 = scalar_lea.hbm %s5211_s14, 16 }
 0x102   :  { %p4964_p12 = scmp.ne.s32.totalorder %s5211_s14, %s4963_s12  ;;  %p4967_p13 = scmp.lt.u32.totalorder %s4963_s12, %s5211_s14 }
 0x104   :  { %p4969_p0 = pnand %p4967_p13, %p4964_p12 }
 0x106   :  { %4972 = shalt.err (!%p4969_p0)
}
 0x107   :  { %s4973_s9 = scalar_lea.vmem %s203_s27, 16  ;;  %s4977_s18 = scalar_lea.vmem %s203_s27, 32 }
 0x108   :  { %p4974_p1 = scmp.ne.s32.totalorder %s203_s27, %s4973_s9  ;;  %p4978_p2 = scmp.lt.s32.totalorder %s203_s27, %s203_s27 }
 0x109   :  { %p4979_p3 = scmp.lt.s32.totalorder %s4977_s18, %s4973_s9 }
 0x10b   :  { %p4980_p4 = por %p4979_p3, %p4978_p2 }
 0x10d   :  { %p4981_p5 = pnand %p4980_p4, %p4974_p1 }
 0x10f   :  { %4984 = shalt.err (!%p4981_p5)
}
 0x110   :  { %205 = dma.hbm_to_vmem [thread:$0]  %s5211_s14, 16, %s203_s27, [#allocation17]  }
 0x111   :  { %s4985_s20 = scalar_lea.hbm %s5231_s21, 16 }
 0x112   :  { %p4986_p6 = scmp.ne.s32.totalorder %s5231_s21, %s4985_s20  ;;  %p4989_p7 = scmp.lt.u32.totalorder %s4985_s20, %s5231_s21 }
 0x114   :  { %p4991_p8 = pnand %p4989_p7, %p4986_p6 }
 0x116   :  { %4994 = shalt.err (!%p4991_p8)
}
 0x117   :  { %s4995_s22 = scalar_lea.vmem %s227_s0, 16  ;;  %s4999_s23 = scalar_lea.vmem %s227_s0, 32 }
 0x118   :  { %p4996_p9 = scmp.ne.s32.totalorder %s227_s0, %s4995_s22  ;;  %p5000_p10 = scmp.lt.s32.totalorder %s227_s0, %s227_s0 }
 0x119   :  { %p5001_p11 = scmp.lt.s32.totalorder %s4999_s23, %s4995_s22 }
 0x11b   :  { %p5002_p12 = por %p5001_p11, %p5000_p10 }
 0x11d   :  { %p5003_p13 = pnand %p5002_p12, %p4996_p9 }
 0x11f   :  { %5006 = shalt.err (!%p5003_p13)
}
 0x120   :  { %229 = dma.hbm_to_vmem [thread:$0]  %s5231_s21, 16, %s227_s0, [#allocation20]  }
 0x121   :  { %s5088_s26 = smov [#allocation24]   ;;  %s5007_s28 = scalar_lea.hbm %s5241_s5, 16 }
 0x122   :  { %s246_s14 = sshll.u32 %s5088_s26, 4  ;;  %p5008_p0 = scmp.ne.s32.totalorder %s5241_s5, %s5007_s28  ;;  %s247_s14 = int_to_ptr.vmem [resolvable:$true] %s246_s14 }
 0x123   :  { %p5011_p1 = scmp.lt.u32.totalorder %s5007_s28, %s5241_s5 }
 0x125   :  { %p5013_p2 = pnand %p5011_p1, %p5008_p0 }
 0x127   :  { %5016 = shalt.err (!%p5013_p2)
}
 0x128   :  { %s5017_s29 = scalar_lea.vmem %s247_s14, 16  ;;  %s5021_s6 = scalar_lea.vmem %s247_s14, 32 }
 0x129   :  { %p5018_p3 = scmp.ne.s32.totalorder %s247_s14, %s5017_s29  ;;  %p5022_p4 = scmp.lt.s32.totalorder %s247_s14, %s247_s14 }
 0x12a   :  { %p5023_p5 = scmp.lt.s32.totalorder %s5021_s6, %s5017_s29 }
 0x12c   :  { %p5024_p6 = por %p5023_p5, %p5022_p4 }
 0x12e   :  { %p5025_p7 = pnand %p5024_p6, %p5018_p3 }
 0x130   :  { %5028 = shalt.err (!%p5025_p7)
}
 0x131   :  { %249 = dma.hbm_to_vmem [thread:$0]  %s5241_s5, 16, %s247_s14, [#allocation23]  }
 0x132   :  { %5029 = dma.done.wait [#allocation3], 16  }
 0x133   :  { %5030 = vsyncadd [#allocation3], 4294967280 }
 0x134   :  { %5031 = dma.done.wait [#allocation5], 32  }
 0x135   :  { %5032 = vsyncadd [#allocation5], 4294967264 }
 0x136   :  { %5033 = dma.done.wait [#allocation8], 32  }
 0x137   :  { %5034 = vsyncadd [#allocation8], 4294967264 }
 0x138   :  { %5035 = dma.done.wait [#allocation11], 32  }
 0x139   :  { %5036 = vsyncadd [#allocation11], 4294967264 }
 0x13a   :  { %5037 = dma.done.wait [#allocation14], 32  }
 0x13b   :  { %5038 = vsyncadd [#allocation14], 4294967264 }
 0x13c   :  { %5039 = dma.done.wait [#allocation17], 32  }
 0x13d   :  { %5040 = vsyncadd [#allocation17], 4294967264 }
 0x13e   :  { %5041 = dma.done.wait [#allocation20], 32  }
 0x13f   :  { %5042 = vsyncadd [#allocation20], 4294967264 }
 0x140   :  { %5043 = dma.done.wait [#allocation23], 32  }
 0x141   :  { %5044 = vsyncadd [#allocation23], 4294967264  ;;  %s5868_s5 = sld [smem:[#allocation33_spill]]  ;;  %v5089_v0 = vmov 0.0|0.0   ;;  %vm5090_vm0 = vmmov 0   ;;  %v5091_v1 = vmov 0.0   ;;  %v549_v11 = vlaneseq }
 0x142   :  { %4453 = vmatprep.subr.bf16.mxu0 %v5089_v0  ;;  %4167 = vmatprep.mubr.msk.f32.mxu0 %vm5090_vm0, %v5091_v1  ;;  %v299_v2 = vld [vmem:[%s5116_s17] sm:$0xff]  ;;  %v300_v3 = vld [vmem:[%s5116_s17 + $0x8] sm:$0xff]  ;;  %v301_v5 = vld [vmem:[%s5116_s17 + $0x10] sm:$0xff]  ;;  %vm322_vm1 = vcmask 195584   ;;  %s5869_s21 = sld [smem:[#allocation36_spill]]  ;;  %s5870_s17 = sld [smem:[#allocation37_spill]] }
 0x143   :  { %4188 = vmatprep.subr.mxu1 %v5091_v1  ;;  %4190 = vmatprep.mubr.msk.f32.mxu1 %vm5090_vm0, %v5091_v1  ;;  %v4454_v4 = vpack.c.bf16 %v300_v3, %v299_v2  ;;  %v303_v6 = vld [vmem:[%s5126_s25] sm:$0xff]  ;;  %v304_v7 = vld [vmem:[%s5126_s25 + $0x8] sm:$0xff]  ;;  %v305_v10 = vld [vmem:[%s5126_s25 + $0x10] sm:$0xff]  ;;  %v5336_v14 = vand.u32 127, %v549_v11  ;;  %s5871_s25 = sld [smem:[#allocation35_spill]]  ;;  %s5872_s8 = sld [smem:[#allocation38_spill]] }
 0x144   :  { %v4457_v9 = vpack.c.bf16 %v304_v7, %v303_v6  ;;  %v3928_v17 = vld [vmem:[#allocation2] ss:$0 sm:$0xff]  ;;  %s5873_s1 = sld [smem:[#allocation40_spill]]  ;;  %s5874_s19 = sld [smem:[#allocation34_spill]] }
 0x145   :  { %4455 = vmatpush3.bf16.msra.mxu0 %v4454_v4  ;;  %vm552_vm2 = vcmp.lt.s32.totalorder %v5336_v14, 3  ;;  %vm646_vm3 = vcmp.ge.s32.totalorder %v5336_v14, 3  ;;  %vm647_vm4 = vcmp.lt.s32.totalorder %v5336_v14, 6  ;;  %vm883_vm6 = vcmp.ge.s32.totalorder %v5336_v14, 6  ;;  %s5875_s2 = sld [smem:[#allocation39_spill]]  ;;  %s5876_s4 = sld [smem:[#allocation41_spill]] }
 0x146   :  { %4165 = vmatprep.subr.mxu0 %v5091_v1  ;;  %v5346_v22 = vsel %vm552_vm2, 1.0, %v5091_v1  ;;  %vm648_vm5 = vmand %vm646_vm3, %vm647_vm4  ;;  %vm884_vm7 = vcmp.lt.s32.totalorder %v5336_v14, 9  ;;  %vm1048_vm9 = vcmp.ge.s32.totalorder %v5336_v14, 9  ;;  %vm1049_vm10 = vcmp.lt.s32.totalorder %v5336_v14, 12  ;;  %s5881_s7 = sld [smem:[#allocation42_spill]]  ;;  %s5882_s10 = sld [smem:[#allocation43_spill]] }
 0x147   :  { %v5320_v8 = vld [vmem:[%s5868_s5] sm:$0xff]  ;;  %v5356_v24 = vsel %vm648_vm5, 1.0, %v5091_v1  ;;  %vm885_vm8 = vmand %vm883_vm6, %vm884_vm7  ;;  %vm1213_vm12 = vcmp.ge.s32.totalorder %v5336_v14, 12  ;;  %vm1214_vm13 = vcmp.lt.s32.totalorder %v5336_v14, 15  ;;  %vm1378_vm15 = vcmp.ge.s32.totalorder %v5336_v14, 15  ;;  %s5883_s11 = sld [smem:[#allocation44_spill]] }
 0x148   :  { %v3926_v12 = vld [vmem:[%s5869_s21] ss:$0 sm:$0xff]  ;;  %v5369_v26 = vsel %vm885_vm8, 1.0, %v5091_v1  ;;  %vm1050_vm11 = vmand %vm1048_vm9, %vm1049_vm10  ;;  %vm1379_vm2 = vcmp.lt.s32.totalorder %v5336_v14, 18  ;;  %vm1543_vm4 = vcmp.ge.s32.totalorder %v5336_v14, 18  ;;  %vm1544_vm5 = vcmp.lt.s32.totalorder %v5336_v14, 21 }
 0x149   :  { %4166 = vmatpush3.msra.mxu0 %v301_v5  ;;  %v5382_v28 = vsel %vm1050_vm11, 1.0, %v5091_v1  ;;  %vm1215_vm14 = vmand %vm1213_vm12, %vm1214_vm13  ;;  %vm1708_vm7 = vcmp.ge.s32.totalorder %v5336_v14, 21  ;;  %vm1709_vm8 = vcmp.lt.s32.totalorder %v5336_v14, 24  ;;  %v307_v38 = vld [vmem:[%s5870_s17] sm:$0xff]  ;;  %v308_v39 = vld [vmem:[%s5870_s17 + $0x8] sm:$0xff]  ;;  %vm633_vm10 = vcmask 64512  }
 0x14a   :  { %4168 = vmatmul.mubr.msk.f32.vlgmr.msra.gmra.mrb[0].mxu0 %vm322_vm1, %v5320_v8  ;;  %4456 = vmatprep.subr.bf16.mxu0 %v5089_v0  ;;  %v5395_v30 = vsel %vm1215_vm14, 1.0, %v5091_v1  ;;  %vm1380_vm3 = vmand %vm1378_vm15, %vm1379_vm2  ;;  %v4460_v40 = vpack.c.bf16 %v308_v39, %v307_v38  ;;  %v309_v41 = vld [vmem:[%s5870_s17 + $0x10] sm:$0xff]  ;;  %v315_v44 = vld [vmem:[%s5871_s25] sm:$0xff]  ;;  %vm2431_vm12 = vcmask 1041408   ;;  %vm5092_vm13 = vmmov 1  }
 0x14b   :  { %4458 = vmatpush3.bf16.msra.mxu0 %v4457_v9  ;;  %4176 = vmatprep.mubr.msk.f32.mxu0 %vm5090_vm0, %v5091_v1  ;;  %v5408_v32 = vsel %vm1380_vm3, 1.0, %v5091_v1  ;;  %vm1545_vm6 = vmand %vm1543_vm4, %vm1544_vm5  ;;  %vm2327_vm15 = vcmask 80896  }
 0x14c   :  { %4174 = vmatprep.subr.mxu0 %v5091_v1  ;;  %v5421_v34 = vsel %vm1545_vm6, 1.0, %v5091_v1  ;;  %vm1710_vm9 = vmand %vm1708_vm7, %vm1709_vm8 }
 0x14d   :  { %v5432_v36 = vsel %vm1710_vm9, 1.0, %v5091_v1  ;;  %vm5581_vm11 = vmpackc.low %vm322_vm1, %vm322_vm1 }
 0x14e   :  { %vm5665_vm14 = vmpackc.low %vm2431_vm12, %vm5092_vm13 }
 0x14f   :  { %4175 = vmatpush3.msra.mxu0 %v305_v10 }
 0x150   :  { %4177 = vmatmul.mubr.msk.f32.vlgmr.msra.gmra.mrb[2].mxu0 %vm322_vm1, %v5320_v8  ;;  %4459 = vmatprep.subr.bf16.mxu0 %v5089_v0 }
 0x151   :  { %4185 = vmatprep.mubr.msk.f32.mxu0 %vm5090_vm0, %v5091_v1  ;;  %4461 = vmatpush3.bf16.msra.mxu0 %v4460_v40 }
 0x152   :  { %4183 = vmatprep.subr.mxu0 %v5091_v1 }
 0x155   :  { %4184 = vmatpush3.msra.mxu0 %v309_v41 }
 0x156   :  { %4186 = vmatmul.mubr.msk.f32.vlgmr.msra.gmra.mrb[4].mxu0 %vm322_vm1, %v5320_v8  ;;  %4198 = vmatprep.subr.mxu0 %v5091_v1 }
 0x157   :  { %4200 = vmatprep.mubr.msk.f32.mxu0 %vm5090_vm0, %v5091_v1 }
 0x21d   :  { %v392_v13 = vpop.f32.mrb[0].mxu0 }
 0x21e   :  { %v4169_v15 = vpop.f32.mrb[1].mxu0  ;;  %v393_v16 = vadd.f32 %v3926_v12, %v392_v13 }
 0x220   :  { %v5341_v18 = vmul.f32 0.57735026, %v393_v16 }
 0x222   :  { %v556_v23 = vmul.f32 %v5346_v22, %v5341_v18  ;;  %v651_v25 = vmul.f32 %v5356_v24, %v5341_v18  ;;  %v888_v27 = vmul.f32 %v5369_v26, %v5341_v18  ;;  %v1053_v29 = vmul.f32 %v5382_v28, %v5341_v18 }
 0x223   :  { %v469_v19 = vpop.f32.mrb[2].mxu0  ;;  %v1218_v31 = vmul.f32 %v5395_v30, %v5341_v18  ;;  %v1383_v33 = vmul.f32 %v5408_v32, %v5341_v18  ;;  %v1548_v35 = vmul.f32 %v5421_v34, %v5341_v18  ;;  %v1713_v37 = vmul.f32 %v5432_v36, %v5341_v18 }
 0x224   :  { %v5343_v20 = vadd.f32 %v3928_v17, %v469_v19  ;;  %v4178_v21 = vpop.f32.mrb[3].mxu0 }
 0x226   :  { %4189 = vmatpush3.xpose.msk.msra.mxu1 %vm322_vm1, %v5343_v20 }
 0x227   :  { %4193 = vmatprep.subr.mxu1 %v5091_v1 }
 0x229   :  { %4191 = vmatmul.mubr.msk.f32.vlgmr.msra.gmra.mrb[0].mxu1 %vm322_vm1, %v556_v23 }
 0x22a   :  { %4194 = vmatpush3.xpose.msk.msra.mxu1 %vm322_vm1, %v5343_v20  ;;  %4195 = vmatprep.mubr.msk.f32.mxu1 %vm5090_vm0, %v5091_v1 }
 0x22b   :  { %4208 = vmatprep.subr.mxu1 %v5091_v1 }
 0x22d   :  { %4196 = vmatmul.mubr.msk.f32.vlgmr.msra.gmra.mrb[2].mxu1 %vm322_vm1, %v651_v25 }
 0x22e   :  { %4209 = vmatpush3.xpose.msk.msra.mxu1 %vm322_vm1, %v5343_v20  ;;  %4210 = vmatprep.mubr.msk.f32.mxu1 %vm5090_vm0, %v5091_v1 }
 0x22f   :  { %4218 = vmatprep.subr.mxu1 %v5091_v1 }
 0x231   :  { %4211 = vmatmul.mubr.msk.f32.vlgmr.msra.gmra.mrb[4].mxu1 %vm322_vm1, %v888_v27 }
 0x232   :  { %4219 = vmatpush3.xpose.msk.msra.mxu1 %vm322_vm1, %v5343_v20  ;;  %4220 = vmatprep.mubr.msk.f32.mxu1 %vm5090_vm0, %v5091_v1 }
 0x233   :  { %4228 = vmatprep.subr.mxu1 %v5091_v1 }
 0x235   :  { %4221 = vmatmul.mubr.msk.f32.vlgmr.msra.gmra.mrb[6].mxu1 %vm322_vm1, %v1053_v29 }
 0x236   :  { %4229 = vmatpush3.xpose.msk.msra.mxu1 %vm322_vm1, %v5343_v20  ;;  %4230 = vmatprep.mubr.msk.f32.mxu1 %vm5090_vm0, %v5091_v1 }
 0x237   :  { %4238 = vmatprep.subr.mxu1 %v5091_v1 }
 0x239   :  { %4231 = vmatmul.mubr.msk.f32.vlgmr.msra.gmra.mrb[8].mxu1 %vm322_vm1, %v1218_v31 }
 0x23a   :  { %4239 = vmatpush3.xpose.msk.msra.mxu1 %vm322_vm1, %v5343_v20  ;;  %4240 = vmatprep.mubr.msk.f32.mxu1 %vm5090_vm0, %v5091_v1 }
 0x23b   :  { %4248 = vmatprep.subr.mxu1 %v5091_v1 }
 0x23d   :  { %4241 = vmatmul.mubr.msk.f32.vlgmr.msra.gmra.mrb[10].mxu1 %vm322_vm1, %v1383_v33 }
 0x23e   :  { %4249 = vmatpush3.xpose.msk.msra.mxu1 %vm322_vm1, %v5343_v20  ;;  %4250 = vmatprep.mubr.msk.f32.mxu1 %vm5090_vm0, %v5091_v1 }
 0x23f   :  { %4258 = vmatprep.subr.mxu1 %v5091_v1 }
 0x241   :  { %4251 = vmatmul.mubr.msk.f32.vlgmr.msra.gmra.mrb[12].mxu1 %vm322_vm1, %v1548_v35 }
 0x242   :  { %4259 = vmatpush3.xpose.msk.msra.mxu1 %vm322_vm1, %v5343_v20  ;;  %4260 = vmatprep.mubr.msk.f32.mxu1 %vm5090_vm0, %v5091_v1 }
 0x243   :  { %4462 = vmatprep.subr.bf16.mxu1 %v5089_v0 }
 0x245   :  { %4261 = vmatmul.mubr.msk.f32.vlgmr.msra.gmra.mrb[14].mxu1 %vm322_vm1, %v1713_v37 }
 0x246   :  { %4274 = vmatprep.mubr.msk.f32.mxu1 %vm5090_vm0, %v5091_v1 }
 0x2fc   :  { %v629_v42 = vpop.f32.mrb[0].mxu1 }
 0x2fd   :  { %v4192_v43 = vpop.f32.mrb[1].mxu1  ;;  %v630_v48 = vadd.f32 %v629_v42, %v315_v44 }
 0x2ff   :  { %v634_v53 = vsel %vm633_vm10, %v630_v48, -inf }
 0x300   :  { %v721_v45 = vpop.f32.mrb[2].mxu1 }
 0x301   :  { %v722_v46 = vadd.f32 %v721_v45, %v315_v44  ;;  %v4197_v47 = vpop.f32.mrb[3].mxu1 }
 0x303   :  { %v725_v49 = vsel %vm633_vm10, %v722_v46, -inf }
 0x304   :  { %726 = vmax.xlane.f32.xlu0 %v725_v49  ;;  %v958_v50 = vpop.f32.mrb[4].mxu1 }
 0x305   :  { %v959_v51 = vadd.f32 %v958_v50, %v315_v44  ;;  %v4212_v52 = vpop.f32.mrb[5].mxu1 }
 0x307   :  { %v962_v54 = vsel %vm633_vm10, %v959_v51, -inf }
 0x308   :  { %635 = vmax.xlane.f32.xlu0 %v634_v53  ;;  %963 = vmax.xlane.f32.xlu1 %v962_v54  ;;  %v1123_v55 = vpop.f32.mrb[6].mxu1 }
 0x309   :  { %v1124_v56 = vadd.f32 %v1123_v55, %v315_v44  ;;  %v4222_v57 = vpop.f32.mrb[7].mxu1 }
 0x30b   :  { %v1127_v58 = vsel %vm633_vm10, %v1124_v56, -inf }
 0x30c   :  { %1128 = vmax.xlane.f32.xlu1 %v1127_v58  ;;  %v1288_v59 = vpop.f32.mrb[8].mxu1 }
 0x30d   :  { %v1289_v60 = vadd.f32 %v1288_v59, %v315_v44  ;;  %v4232_v61 = vpop.f32.mrb[9].mxu1 }
 0x30e   :  { %v545_v61 = vpop.f32.mrb[4].mxu0 }
 0x30f   :  { %v1292_v62 = vsel %vm633_vm10, %v1289_v60, -inf }
 0x310   :  { %1293 = vmax.xlane.f32.xlu0 %v1292_v62  ;;  %v1453_v63 = vpop.f32.mrb[10].mxu1 }
 0x311   :  { %v1454_v2 = vadd.f32 %v1453_v63, %v315_v44  ;;  %v4242_v3 = vpop.f32.mrb[11].mxu1 }
 0x313   :  { %v1457_v4 = vsel %vm633_vm10, %v1454_v2, -inf }
 0x314   :  { %1458 = vmax.xlane.f32.xlu1 %v1457_v4  ;;  %v1618_v5 = vpop.f32.mrb[12].mxu1 }
 0x315   :  { %v1619_v6 = vadd.f32 %v1618_v5, %v315_v44  ;;  %v4252_v7 = vpop.f32.mrb[13].mxu1  ;;  %v311_v5 = vld [vmem:[%s5872_s8] sm:$0xff] }
 0x317   :  { %v1622_v9 = vsel %vm633_vm10, %v1619_v6, -inf }
 0x318   :  { %1623 = vmax.xlane.f32.xlu0 %v1622_v9  ;;  %v1783_v10 = vpop.f32.mrb[14].mxu1 }
 0x319   :  { %v1784_v11 = vadd.f32 %v1783_v10, %v315_v44  ;;  %v4262_v12 = vpop.f32.mrb[15].mxu1 }
 0x31b   :  { %v1787_v13 = vsel %vm633_vm10, %v1784_v11, -inf }
 0x31c   :  { %1788 = vmax.xlane.f32.xlu1 %v1787_v13 }
 0x391   :  { %v727_v14 = vpop.xlane.xlu0 %726 }
 0x392   :  { %v728_v15 = vsub.f32 %v722_v46, %v727_v14 }
 0x394   :  { %v729_v16 = vmul.f32 1.442695, %v728_v15 }
 0x395   :  { %v636_v17 = vpop.xlane.xlu0 %635  ;;  %v964_v18 = vpop.xlane.xlu1 %963 }
 0x396   :  { %4629 = vpow2.f32 %v729_v16  ;;  %v637_v19 = vsub.f32 %v630_v48, %v636_v17  ;;  %v965_v20 = vsub.f32 %v959_v51, %v964_v18 }
 0x398   :  { %v638_v21 = vmul.f32 1.442695, %v637_v19  ;;  %v966_v23 = vmul.f32 1.442695, %v965_v20 }
 0x399   :  { %v1129_v25 = vpop.xlane.xlu1 %1128 }
 0x39a   :  { %4631 = vpow2.f32 %v638_v21  ;;  %v1130_v27 = vsub.f32 %v1124_v56, %v1129_v25 }
 0x39b   :  { %4633 = vpow2.f32 %v966_v23 }
 0x39c   :  { %v1131_v29 = vmul.f32 1.442695, %v1130_v27 }
 0x39d   :  { %v1294_v31 = vpop.xlane.xlu0 %1293 }
 0x39e   :  { %4635 = vpow2.f32 %v1131_v29  ;;  %v1295_v33 = vsub.f32 %v1289_v60, %v1294_v31  ;;  %v3930_v60 = vld [vmem:[#allocation4] ss:$0 sm:$0xff] }
 0x39f   :  { %v5487_v63 = vadd.f32 %v3930_v60, %v545_v61 }
 0x3a0   :  { %v4630_v35 = vpop.eup %4629  ;;  %v1296_v37 = vmul.f32 1.442695, %v1295_v33 }
 0x3a1   :  { %v1459_v38 = vpop.xlane.xlu1 %1458  ;;  %v731_v39 = vsel %vm633_vm10, %v4630_v35, 0.0  ;;  %v736_v4 = vmul.f32 %v5356_v24, %v5487_v63  ;;  %v645_v12 = vmul.f32 %v5346_v22, %v5487_v63  ;;  %v973_v18 = vmul.f32 %v5369_v26, %v5487_v63 }
 0x3a2   :  { %4637 = vpow2.f32 %v1296_v37  ;;  %v1460_v40 = vsub.f32 %v1454_v2, %v1459_v38  ;;  %732 = vadd.xlane.f32.xlu0 %v731_v39  ;;  %v4187_v2 = vpop.f32.mrb[5].mxu0  ;;  %v1138_v23 = vmul.f32 %v5382_v28, %v5487_v63  ;;  %v1303_v31 = vmul.f32 %v5395_v30, %v5487_v63 }
 0x3a3   :  { %4199 = vmatpush3.msra.mxu0 %v736_v4  ;;  %v1468_v38 = vmul.f32 %v5408_v32, %v5487_v63  ;;  %v298_v4 = vld [vmem:[%s5874_s19 + $0x8] sm:$0x3] }
 0x3a4   :  { %v4632_v41 = vpop.eup %4631  ;;  %v1461_v42 = vmul.f32 1.442695, %v1460_v40  ;;  %4203 = vmatprep.subr.mxu0 %v5091_v1 }
 0x3a5   :  { %v5464_v43 = vpop.eup %4633  ;;  %v1624_v44 = vpop.xlane.xlu0 %1623  ;;  %v640_v45 = vsel %vm633_vm10, %v4632_v41, 0.0 }
 0x3a6   :  { %4639 = vpow2.f32 %v1461_v42  ;;  %v1625_v46 = vsub.f32 %v1619_v6, %v1624_v44  ;;  %v968_v47 = vsel %vm633_vm10, %v5464_v43, 0.0  ;;  %641 = vadd.xlane.f32.xlu1 %v640_v45  ;;  %v312_v6 = vld [vmem:[%s5872_s8 + $0x8] sm:$0xff]  ;;  %v1633_v42 = vmul.f32 %v5421_v34, %v5487_v63 }
 0x3a7   :  { %969 = vadd.xlane.f32.xlu0 %v968_v47  ;;  %v4463_v7 = vpack.c.bf16 %v312_v6, %v311_v5  ;;  %v1798_v45 = vmul.f32 %v5432_v36, %v5487_v63  ;;  %v1988_v63 = vld [vmem:[%s5873_s1 + $0x8] sm:$0xff]  ;;  %v1983_v5 = vld [vmem:[%s5875_s2] sm:$0xff] }
 0x3a8   :  { %v5469_v48 = vpop.eup %4635  ;;  %v1626_v49 = vmul.f32 1.442695, %v1625_v46  ;;  %v1984_v6 = vld [vmem:[%s5875_s2 + $0x8] sm:$0xff] }
 0x3a9   :  { %v1789_v50 = vpop.xlane.xlu1 %1788  ;;  %v1133_v51 = vsel %vm633_vm10, %v5469_v48, 0.0  ;;  %4464 = vmatpush3.bf16.msra.mxu1 %v4463_v7  ;;  %v4466_v7 = vpack.c.bf16 %v1984_v6, %v1983_v5 }
 0x3aa   :  { %4641 = vpow2.f32 %v1626_v49  ;;  %v1790_v52 = vsub.f32 %v1784_v11, %v1789_v50  ;;  %1134 = vadd.xlane.f32.xlu1 %v1133_v51  ;;  %4272 = vmatprep.subr.mxu1 %v5091_v1  ;;  %v3964_v51 = vld [vmem:[#allocation6] ss:$0 sm:$0xff] }
 0x3ac   :  { %v5473_v53 = vpop.eup %4637  ;;  %v1791_v54 = vmul.f32 1.442695, %v1790_v52 }
 0x3ad   :  { %v1298_v55 = vsel %vm633_vm10, %v5473_v53, 0.0 }
 0x3ae   :  { %4643 = vpow2.f32 %v1791_v54  ;;  %1299 = vadd.xlane.f32.xlu0 %v1298_v55 }
 0x3b0   :  { %v5477_v56 = vpop.eup %4639 }
 0x3b1   :  { %v1463_v57 = vsel %vm633_vm10, %v5477_v56, 0.0 }
 0x3b2   :  { %1464 = vadd.xlane.f32.xlu1 %v1463_v57 }
 0x3b4   :  { %v5481_v58 = vpop.eup %4641 }
 0x3b5   :  { %v1628_v59 = vsel %vm633_vm10, %v5481_v58, 0.0 }
 0x3b6   :  { %1629 = vadd.xlane.f32.xlu0 %v1628_v59 }
 0x3b8   :  { %v5485_v62 = vpop.eup %4643 }
 0x3b9   :  { %v1793_v3 = vsel %vm633_vm10, %v5485_v62, 0.0 }
 0x3ba   :  { %1794 = vadd.xlane.f32.xlu1 %v1793_v3  ;;  %v297_v3 = vld [vmem:[%s5874_s19] sm:$0xff] }
 0x42f   :  { %v733_v9 = vpop.xlane.xlu0 %732 }
 0x430   :  { %4645 = vrcp.f32 %v733_v9  ;;  %v1985_v9 = vld [vmem:[%s5875_s2 + $0x10] sm:$0xff] }
 0x433   :  { %v642_v10 = vpop.xlane.xlu1 %641 }
 0x434   :  { %4647 = vrcp.f32 %v642_v10  ;;  %v970_v14 = vpop.xlane.xlu0 %969  ;;  %v1991_v10 = vld [vmem:[%s5876_s4] sm:$0xff] }
 0x435   :  { %4649 = vrcp.f32 %v970_v14 }
 0x437   :  { %v1135_v17 = vpop.xlane.xlu1 %1134 }
 0x438   :  { %4651 = vrcp.f32 %v1135_v17  ;;  %v3966_v17 = vld [vmem:[#allocation7] ss:$0 sm:$0xff] }
 0x43a   :  { %v4646_v11 = vpop.eup %4645 }
 0x43b   :  { %v735_v13 = vmul.f32 %v4646_v11, %v4630_v35  ;;  %v1300_v21 = vpop.xlane.xlu0 %1299  ;;  %v1992_v11 = vld [vmem:[%s5876_s4 + $0x8] sm:$0xff] }
 0x43c   :  { %4653 = vrcp.f32 %v1300_v21 }
 0x43d   :  { %4201 = vmatmul.mubr.msk.f32.vlgmr.msra.gmra.mrb[6].mxu0 %vm633_vm10, %v735_v13 }
 0x43e   :  { %4204 = vmatpush3.msra.mxu0 %v645_v12  ;;  %4205 = vmatprep.mubr.msk.f32.mxu0 %vm5090_vm0, %v5091_v1  ;;  %v4648_v15 = vpop.eup %4647  ;;  %v4472_v12 = vpack.c.bf16 %v1992_v11, %v1991_v10 }
 0x43f   :  { %4213 = vmatprep.subr.mxu0 %v5091_v1  ;;  %v644_v16 = vmul.f32 %v4648_v15, %v4632_v41  ;;  %v4650_v19 = vpop.eup %4649  ;;  %v1465_v29 = vpop.xlane.xlu1 %1464 }
 0x440   :  { %v972_v20 = vmul.f32 %v4650_v19, %v5464_v43  ;;  %4655 = vrcp.f32 %v1465_v29  ;;  %v3967_v19 = vld [vmem:[#allocation9] ss:$0 sm:$0xff] }
 0x442   :  { %v4652_v25 = vpop.eup %4651 }
 0x443   :  { %v1137_v27 = vmul.f32 %v4652_v25, %v5469_v48  ;;  %v1630_v37 = vpop.xlane.xlu0 %1629  ;;  %v313_v48 = vld [vmem:[%s5872_s8 + $0x10] sm:$0xff]  ;;  %v3970_v25 = vld [vmem:[#allocation12] ss:$0 sm:$0xff] }
 0x444   :  { %4657 = vrcp.f32 %v1630_v37  ;;  %4273 = vmatpush3.msra.mxu1 %v313_v48 }
 0x445   :  { %4206 = vmatmul.mubr.msk.f32.vlgmr.msra.gmra.mrb[6].mxu0 %vm633_vm10, %v644_v16 }
 0x446   :  { %4214 = vmatpush3.msra.mxu0 %v973_v18  ;;  %4215 = vmatprep.mubr.msk.f32.mxu0 %vm5090_vm0, %v5091_v1  ;;  %v4654_v33 = vpop.eup %4653 }
 0x447   :  { %4223 = vmatprep.subr.mxu0 %v5091_v1  ;;  %v1302_v35 = vmul.f32 %v4654_v33, %v5473_v53  ;;  %v1795_v41 = vpop.xlane.xlu1 %1794 }
 0x448   :  { %4659 = vrcp.f32 %v1795_v41 }
 0x44a   :  { %v4656_v39 = vpop.eup %4655 }
 0x44b   :  { %v1467_v40 = vmul.f32 %v4656_v39, %v5477_v56 }
 0x44d   :  { %4216 = vmatmul.mubr.msk.f32.vlgmr.msra.gmra.mrb[6].mxu0 %vm633_vm10, %v972_v20 }
 0x44e   :  { %4224 = vmatpush3.msra.mxu0 %v1138_v23  ;;  %4225 = vmatprep.mubr.msk.f32.mxu0 %vm5090_vm0, %v5091_v1  ;;  %v4658_v43 = vpop.eup %4657  ;;  %v1993_v23 = vld [vmem:[%s5876_s4 + $0x10] sm:$0xff] }
 0x44f   :  { %4233 = vmatprep.subr.mxu0 %v5091_v1  ;;  %v1632_v44 = vmul.f32 %v4658_v43, %v5481_v58 }
 0x452   :  { %v4660_v46 = vpop.eup %4659 }
 0x453   :  { %v1797_v47 = vmul.f32 %v4660_v46, %v5485_v62  ;;  %v1987_v62 = vld [vmem:[%s5873_s1] sm:$0xff] }
 0x454   :  { %v4468_v2 = vpack.c.bf16 %v1988_v63, %v1987_v62 }
 0x455   :  { %4226 = vmatmul.mubr.msk.f32.vlgmr.msra.gmra.mrb[6].mxu0 %vm633_vm10, %v1137_v27 }
 0x456   :  { %4234 = vmatpush3.msra.mxu0 %v1303_v31  ;;  %4235 = vmatprep.mubr.msk.f32.mxu0 %vm5090_vm0, %v5091_v1 }
 0x457   :  { %4243 = vmatprep.subr.mxu0 %v5091_v1  ;;  %4469 = vmatprep.subr.bf16.mxu1 %v4468_v2 }
 0x45d   :  { %4236 = vmatmul.mubr.msk.f32.vlgmr.msra.gmra.mrb[6].mxu0 %vm633_vm10, %v1302_v35 }
 0x45e   :  { %4244 = vmatpush3.msra.mxu0 %v1468_v38  ;;  %4245 = vmatprep.mubr.msk.f32.mxu0 %vm5090_vm0, %v5091_v1  ;;  %v3968_v38 = vld [vmem:[#allocation10] ss:$0 sm:$0xff] }
 0x45f   :  { %4253 = vmatprep.subr.mxu0 %v5091_v1 }
 0x465   :  { %4246 = vmatmul.mubr.msk.f32.vlgmr.msra.gmra.mrb[6].mxu0 %vm633_vm10, %v1467_v40 }
 0x466   :  { %4254 = vmatpush3.msra.mxu0 %v1633_v42  ;;  %4255 = vmatprep.mubr.msk.f32.mxu0 %vm5090_vm0, %v5091_v1 }
 0x467   :  { %4263 = vmatprep.subr.mxu0 %v5091_v1 }
 0x46d   :  { %4256 = vmatmul.mubr.msk.f32.vlgmr.msra.gmra.mrb[6].mxu0 %vm633_vm10, %v1632_v44 }
 0x46e   :  { %4264 = vmatpush3.msra.mxu0 %v1798_v45  ;;  %4265 = vmatprep.mubr.msk.f32.mxu0 %vm5090_vm0, %v5091_v1 }
 0x46f   :  { %4465 = vmatprep.subr.bf16.mxu0 %v5089_v0 }
 0x475   :  { %4266 = vmatmul.mubr.msk.f32.vlgmr.msra.gmra.mrb[6].mxu0 %vm633_vm10, %v1797_v47 }
 0x476   :  { %4283 = vmatprep.mubr.msk.f32.mxu0 %vm5090_vm0, %v5091_v1  ;;  %4467 = vmatpush3.bf16.msra.mxu0 %v4466_v7 }
 0x477   :  { %4281 = vmatprep.subr.mxu0 %v5091_v1 }
 0x47a   :  { %4282 = vmatpush3.msra.mxu0 %v1985_v9 }
 0x47b   :  { %4473 = vmatprep.subr.bf16.mxu0 %v4472_v12 }
 0x548   :  { %v1868_v49 = vpop.f32.mrb[6].mxu0 }
 0x549   :  { %v4267_v50 = vpop.f32.mrb[7].mxu0  ;;  %4275 = vmatmul.mubr.msk.f32.vlgmr.msra.gmra.mrb[16].mxu1 %vm322_vm1, %v1868_v49 }
 0x54a   :  { %4471 = vmatpush3.bf16.msra.mxu1 %v4468_v2  ;;  %4292 = vmatprep.mubr.msk.f32.mxu1 %vm322_vm1, %v297_v3 }
 0x61c   :  { %v1948_v52 = vpop.f32.mrb[16].mxu1 }
 0x61d   :  { %v1949_v53 = vadd.f32 %v3964_v51, %v1948_v52  ;;  %v4276_v54 = vpop.f32.mrb[17].mxu1  ;;  %v3973_v51 = vld [vmem:[#allocation13] ss:$0 sm:$0xff] }
 0x61f   :  { %v1952_v55 = vadd.f32 %v1949_v53, %v5320_v8  ;;  %v1989_v8 = vld [vmem:[%s5873_s1 + $0x10] sm:$0xff] }
 0x620   :  { %4290 = vmatprep.subr.mxu1 %v1989_v8 }
 0x621   :  { %v1955_v56 = vsel %vm322_vm1, %v1952_v55, 0.0  ;;  %4291 = vmatpush3.msra.mxu1 %v1989_v8 }
 0x622   :  { %1956 = vadd.xlane.f32.xlu0 %v1955_v56  ;;  %4293 = vmatmul.mubr.msk.f32.vlgmr.msra.gmra.mrb[18].mxu1 %vm322_vm1, %v298_v4 }
 0x623   :  { %4484 = vmatprep.subr.bf16.mxu1 %v5089_v0  ;;  %4322 = vmatprep.mubr.msk.f32.mxu1 %vm5090_vm0, %v5091_v1 }
 0x6af   :  { %v1957_v57 = vpop.xlane.xlu0 %1956 }
 0x6b0   :  { %v1959_v58 = vmul.f32 0.041666668, %v1957_v57 }
 0x6b2   :  { %v1960_v59 = vsub.f32 %v1952_v55, %v1959_v58 }
 0x6b4   :  { %v1961_v60 = vmul.f32 %v1960_v59, %v1960_v59 }
 0x6b6   :  { %v1962_v61 = vsel %vm322_vm1, %v1961_v60, 0.0 }
 0x6b7   :  { %1963 = vadd.xlane.f32.xlu1 %v1962_v61 }
 0x6f5   :  { %v4294_v27 = vpop.f32.mrb[18].mxu1 }
 0x6f6   :  { %v2163_v29 = vadd.f32 %v4294_v27, %v3970_v25  ;;  %v2157_v31 = vpop.f32.mrb[19].mxu1 }
 0x6f7   :  { %v2158_v33 = vadd.f32 %v3970_v25, %v2157_v31 }
 0x6f9   :  { %v5585_v37 = vpack.c.bf16 %v2163_v29, %v2158_v33 }
 0x744   :  { %v1964_v13 = vpop.xlane.xlu1 %1963 }
 0x745   :  { %v1965_v14 = vmul.f32 0.041666668, %v1964_v13 }
 0x747   :  { %v1966_v15 = vadd.f32 1e-05, %v1965_v14 }
 0x749   :  { %4661 = vrsqrt.f32 %v1966_v15 }
 0x753   :  { %v4662_v16 = vpop.eup %4661 }
 0x754   :  { %v1968_v18 = vmul.f32 %v4662_v16, %v1960_v59 }
 0x756   :  { %v1975_v20 = vmul.f32 %v3966_v17, %v1968_v18 }
 0x758   :  { %v5569_v21 = vadd.f32 %v3967_v19, %v1975_v20 }
 0x75a   :  { %4284 = vmatmul.mubr.msk.f32.vlgmr.msra.gmra.mrb[8].mxu0 %vm322_vm1, %v5569_v21 }
 0x75b   :  { %4475 = vmatpush3.bf16.msra.mxu0 %v4472_v12  ;;  %4301 = vmatprep.mubr.msk.f32.mxu0 %vm322_vm1, %v297_v3 }
 0x75c   :  { %4299 = vmatprep.subr.mxu0 %v1993_v23 }
 0x75f   :  { %4300 = vmatpush3.msra.mxu0 %v1993_v23 }
 0x760   :  { %4476 = vmatprep.subr.bf16.mxu0 %v5089_v0  ;;  %4302 = vmatmul.mubr.msk.f32.vlgmr.msra.gmra.mrb[10].mxu0 %vm322_vm1, %v298_v4 }
 0x761   :  { %4308 = vmatprep.mubr.msk.f32.mxu0 %vm5090_vm0, %v5091_v1 }
 0x766   :  { %4479 = vmatpush3.bf16.xpose.msk.msra.mxu0 %vm5581_vm11, %v5585_v37 }
 0x767   :  { %4480 = vmatprep.subr.bf16.mxu0 %v5089_v0 }
 0x82d   :  { %v2074_v39 = vpop.f32.mrb[8].mxu0 }
 0x82e   :  { %v2075_v40 = vadd.f32 %v3968_v38, %v2074_v39  ;;  %v4285_v41 = vpop.f32.mrb[9].mxu0 }
 0x830   :  { %v5591_v42 = vmul.f32 0.57735026, %v2075_v40 }
 0x832   :  { %v2247_v43 = vmul.f32 %v5346_v22, %v5591_v42  ;;  %v2341_v46 = vmul.f32 %v5356_v24, %v5591_v42  ;;  %v2581_v47 = vmul.f32 %v5369_v26, %v5591_v42  ;;  %v2909_v48 = vmul.f32 %v5395_v30, %v5591_v42 }
 0x833   :  { %v4303_v44 = vpop.f32.mrb[10].mxu0  ;;  %v3073_v49 = vmul.f32 %v5408_v32, %v5591_v42  ;;  %v3237_v50 = vmul.f32 %v5421_v34, %v5591_v42 }
 0x834   :  { %4309 = vmatmul.mubr.msk.f32.vlgmr.msra.gmra.mrb[12].mxu0 %vm322_vm1, %v2247_v43  ;;  %v2238_v45 = vpop.f32.mrb[11].mxu0  ;;  %v2244_v52 = vadd.f32 %v4303_v44, %v3973_v51 }
 0x835   :  { %4483 = vmatpush3.bf16.xpose.msk.msra.mxu0 %vm5581_vm11, %v5585_v37  ;;  %4315 = vmatprep.mubr.msk.f32.mxu0 %vm5090_vm0, %v5091_v1  ;;  %v2239_v53 = vadd.f32 %v3973_v51, %v2238_v45 }
 0x836   :  { %4492 = vmatprep.subr.bf16.mxu0 %v5089_v0  ;;  %v2427_v55 = vmul.f32 %v5356_v24, %v2244_v52  ;;  %v5649_v57 = vmul.f32 %v5346_v22, %v2244_v52  ;;  %v5655_v59 = vmul.f32 %v5369_v26, %v2244_v52  ;;  %v5661_v61 = vmul.f32 %v5382_v28, %v2244_v52 }
 0x837   :  { %v2426_v54 = vmul.f32 %v5356_v24, %v2239_v53  ;;  %v5646_v56 = vmul.f32 %v5346_v22, %v2239_v53  ;;  %v5652_v58 = vmul.f32 %v5369_v26, %v2239_v53  ;;  %v5658_v60 = vmul.f32 %v5382_v28, %v2239_v53 }
 0x838   :  { %v5674_v2 = vmul.f32 %v5395_v30, %v2239_v53  ;;  %v5677_v8 = vmul.f32 %v5395_v30, %v2244_v52  ;;  %v5682_v3 = vmul.f32 %v5408_v32, %v2239_v53  ;;  %v5685_v4 = vmul.f32 %v5408_v32, %v2244_v52 }
 0x839   :  { %v4485_v24 = vpack.c.bf16 %v2427_v55, %v2426_v54  ;;  %v4489_v62 = vpack.c.bf16 %v5649_v57, %v5646_v56  ;;  %v4497_v26 = vpack.c.bf16 %v5655_v59, %v5652_v58  ;;  %v4505_v63 = vpack.c.bf16 %v5661_v61, %v5658_v60 }
 0x83a   :  { %v5688_v5 = vmul.f32 %v5421_v34, %v2239_v53  ;;  %v5691_v6 = vmul.f32 %v5421_v34, %v2244_v52  ;;  %v4513_v30 = vpack.c.bf16 %v5677_v8, %v5674_v2  ;;  %v5697_v7 = vmul.f32 %v5432_v36, %v2239_v53 }
 0x83b   :  { %4487 = vmatpush3.bf16.msk.msra.mxu1 %vm5665_vm14, %v4485_v24  ;;  %v5700_v9 = vmul.f32 %v5432_v36, %v2244_v52  ;;  %v4521_v32 = vpack.c.bf16 %v5685_v4, %v5682_v3  ;;  %v2745_v59 = vmul.f32 %v5382_v28, %v5591_v42 }
 0x83c   :  { %4316 = vmatmul.mubr.msk.f32.vlgmr.msra.gmra.mrb[14].mxu0 %vm322_vm1, %v2341_v46  ;;  %4488 = vmatprep.subr.bf16.mxu1 %v5089_v0  ;;  %v4529_v10 = vpack.c.bf16 %v5691_v6, %v5688_v5  ;;  %v3401_v5 = vmul.f32 %v5432_v36, %v5591_v42 }
 0x83d   :  { %4495 = vmatpush3.bf16.xpose.msk.msra.mxu0 %vm5581_vm11, %v5585_v37  ;;  %4336 = vmatprep.mubr.msk.f32.mxu0 %vm5090_vm0, %v5091_v1  ;;  %v4537_v34 = vpack.c.bf16 %v5700_v9, %v5697_v7  ;;  %v1995_v7 = vld [vmem:[%s5881_s7] sm:$0xff]  ;;  %v1996_v9 = vld [vmem:[%s5881_s7 + $0x8] sm:$0xff] }
 0x83e   :  { %4508 = vmatprep.subr.bf16.mxu0 %v5089_v0 }
 0x844   :  { %4337 = vmatmul.mubr.msk.f32.vlgmr.msra.gmra.mrb[16].mxu0 %vm322_vm1, %v2581_v47 }
 0x845   :  { %4511 = vmatpush3.bf16.xpose.msk.msra.mxu0 %vm5581_vm11, %v5585_v37  ;;  %4364 = vmatprep.mubr.msk.f32.mxu0 %vm5090_vm0, %v5091_v1 }
 0x846   :  { %4516 = vmatprep.subr.bf16.mxu0 %v5089_v0 }
 0x84c   :  { %4365 = vmatmul.mubr.msk.f32.vlgmr.msra.gmra.mrb[18].mxu0 %vm322_vm1, %v2909_v48 }
 0x84d   :  { %4519 = vmatpush3.bf16.xpose.msk.msra.mxu0 %vm5581_vm11, %v5585_v37  ;;  %4378 = vmatprep.mubr.msk.f32.mxu0 %vm5090_vm0, %v5091_v1 }
 0x84e   :  { %4524 = vmatprep.subr.bf16.mxu0 %v5089_v0 }
 0x854   :  { %4379 = vmatmul.mubr.msk.f32.vlgmr.msra.gmra.mrb[20].mxu0 %vm322_vm1, %v3073_v49 }
 0x855   :  { %4527 = vmatpush3.bf16.xpose.msk.msra.mxu0 %vm5581_vm11, %v5585_v37  ;;  %4392 = vmatprep.mubr.msk.f32.mxu0 %vm5090_vm0, %v5091_v1 }
 0x856   :  { %4540 = vmatprep.subr.bf16.mxu0 %v5089_v0 }
 0x85c   :  { %4393 = vmatmul.mubr.msk.f32.vlgmr.msra.gmra.mrb[22].mxu0 %vm322_vm1, %v3237_v50 }
 0x85d   :  { %4422 = vmatprep.mubr.msk.f32.mxu0 %vm5090_vm0, %v5091_v1 }
 0x907   :  { %v2323_v11 = vpop.f32.mrb[12].mxu0 }
 0x908   :  { %v4310_v12 = vpop.f32.mrb[13].mxu0  ;;  %v2328_v13 = vsel %vm2327_vm15, %v2323_v11, -inf }
 0x909   :  { %2329 = vmax.xlane.f32.xlu1 %v2328_v13 }
 0x90f   :  { %v2411_v14 = vpop.f32.mrb[14].mxu0 }
 0x910   :  { %v4317_v15 = vpop.f32.mrb[15].mxu0  ;;  %v2415_v16 = vsel %vm2327_vm15, %v2411_v14, -inf }
 0x911   :  { %2416 = vmax.xlane.f32.xlu0 %v2415_v16 }
 0x917   :  { %v2651_v17 = vpop.f32.mrb[16].mxu0 }
 0x918   :  { %v4338_v18 = vpop.f32.mrb[17].mxu0  ;;  %v2655_v19 = vsel %vm2327_vm15, %v2651_v17, -inf }
 0x919   :  { %2656 = vmax.xlane.f32.xlu0 %v2655_v19 }
 0x91f   :  { %v2979_v20 = vpop.f32.mrb[18].mxu0 }
 0x920   :  { %v4366_v23 = vpop.f32.mrb[19].mxu0  ;;  %v2983_v53 = vsel %vm2327_vm15, %v2979_v20, -inf }
 0x927   :  { %v5711_v25 = vpop.f32.mrb[20].mxu0 }
 0x928   :  { %v4380_v27 = vpop.f32.mrb[21].mxu0  ;;  %v3147_v28 = vsel %vm2327_vm15, %v5711_v25, -inf }
 0x92f   :  { %v3307_v29 = vpop.f32.mrb[22].mxu0 }
 0x930   :  { %v4394_v31 = vpop.f32.mrb[23].mxu0  ;;  %v3311_v54 = vsel %vm2327_vm15, %v3307_v29, -inf }
 0x996   :  { %v2330_v33 = vpop.xlane.xlu1 %2329 }
 0x997   :  { %v2331_v38 = vsub.f32 %v2323_v11, %v2330_v33 }
 0x999   :  { %v2332_v39 = vmul.f32 1.442695, %v2331_v38 }
 0x99b   :  { %4663 = vpow2.f32 %v2332_v39 }
 0x99e   :  { %v2417_v40 = vpop.xlane.xlu0 %2416 }
 0x99f   :  { %v2418_v41 = vsub.f32 %v2411_v14, %v2417_v40 }
 0x9a1   :  { %v2419_v43 = vmul.f32 1.442695, %v2418_v41 }
 0x9a3   :  { %4665 = vpow2.f32 %v2419_v43 }
 0x9a5   :  { %v4664_v44 = vpop.eup %4663 }
 0x9a6   :  { %v2657_v45 = vpop.xlane.xlu0 %2656  ;;  %v2334_v46 = vsel %vm2327_vm15, %v4664_v44, 0.0 }
 0x9a7   :  { %v2658_v47 = vsub.f32 %v2651_v17, %v2657_v45  ;;  %2335 = vadd.xlane.f32.xlu0 %v2334_v46 }
 0x9a9   :  { %v2659_v48 = vmul.f32 1.442695, %v2658_v47 }
 0x9ab   :  { %4667 = vpow2.f32 %v2659_v48 }
 0x9ad   :  { %v4666_v49 = vpop.eup %4665 }
 0x9ae   :  { %v2421_v50 = vsel %vm2327_vm15, %v4666_v49, 0.0 }
 0x9af   :  { %2422 = vadd.xlane.f32.xlu1 %v2421_v50 }
 0x9b5   :  { %v4668_v51 = vpop.eup %4667 }
 0x9b6   :  { %v2661_v52 = vsel %vm2327_vm15, %v4668_v51, 0.0 }
 0x9b7   :  { %2662 = vadd.xlane.f32.xlu1 %v2661_v52 }
 0x9bb   :  { %2984 = vmax.xlane.f32.xlu1 %v2983_v53 }
 0x9bf   :  { %3312 = vmax.xlane.f32.xlu1 %v3311_v54  ;;  %v1997_v54 = vld [vmem:[%s5881_s7 + $0x10] sm:$0xff] }
 0xa34   :  { %v2336_v24 = vpop.xlane.xlu0 %2335 }
 0xa3c   :  { %v2423_v55 = vpop.xlane.xlu1 %2422 }
 0xa3d   :  { %4669 = vrcp.f32 %v2423_v55 }
 0xa3e   :  { %4671 = vrcp.f32 %v2336_v24 }
 0xa44   :  { %v2663_v11 = vpop.xlane.xlu1 %2662 }
 0xa45   :  { %4673 = vrcp.f32 %v2663_v11  ;;  %v4016_v11 = vld [vmem:[#allocation15] ss:$0 sm:$0xff] }
 0xa47   :  { %v4670_v12 = vpop.eup %4669 }
 0xa48   :  { %v2425_v13 = vmul.f32 %v4670_v12, %v4666_v49  ;;  %v2985_v14 = vpop.xlane.xlu1 %2984  ;;  %v4672_v18 = vpop.eup %4671 }
 0xa49   :  { %v2986_v15 = vsub.f32 %v2979_v20, %v2985_v14  ;;  %v2338_v23 = vmul.f32 %v4672_v18, %v4664_v44 }
 0xa4a   :  { %4323 = vmatmul.mubr.msk.f32.vlgmr.msra.gmra.mrb[20].mxu1 %vm2327_vm15, %v2425_v13 }
 0xa4b   :  { %v2987_v16 = vmul.f32 1.442695, %v2986_v15  ;;  %4491 = vmatpush3.bf16.msk.msra.mxu1 %vm5665_vm14, %v4489_v62  ;;  %4329 = vmatprep.mubr.msk.f32.mxu1 %vm5090_vm0, %v5091_v1 }
 0xa4c   :  { %v3313_v17 = vpop.xlane.xlu1 %3312  ;;  %4496 = vmatprep.subr.bf16.mxu1 %v5089_v0 }
 0xa4d   :  { %4675 = vpow2.f32 %v2987_v16  ;;  %v3314_v19 = vsub.f32 %v3307_v29, %v3313_v17 }
 0xa4f   :  { %v3315_v20 = vmul.f32 1.442695, %v3314_v19  ;;  %v4674_v56 = vpop.eup %4673 }
 0xa50   :  { %v2665_v62 = vmul.f32 %v4674_v56, %v4668_v51  ;;  %v4619_v56 = vld [vmem:[%s5882_s10] sm:$0xff]  }
 0xa51   :  { %4677 = vpow2.f32 %v3315_v20 }
 0xa52   :  { %4330 = vmatmul.mubr.msk.f32.vlgmr.msra.gmra.mrb[20].mxu1 %vm2327_vm15, %v2338_v23 }
 0xa53   :  { %4499 = vmatpush3.bf16.msk.msra.mxu1 %vm5665_vm14, %v4497_v26  ;;  %4343 = vmatprep.mubr.msk.f32.mxu1 %vm5090_vm0, %v5091_v1 }
 0xa54   :  { %4500 = vmatprep.subr.bf16.mxu1 %v5089_v0 }
 0xa57   :  { %v4676_v57 = vpop.eup %4675 }
 0xa58   :  { %v2989_v27 = vsel %vm2327_vm15, %v4676_v57, 0.0 }
 0xa59   :  { %2990 = vadd.xlane.f32.xlu1 %v2989_v27  ;;  %v4622_v27 = vld [vmem:[%s5883_s11 + $0x8] sm:$0xff]  }
 0xa5a   :  { %4344 = vmatmul.mubr.msk.f32.vlgmr.msra.gmra.mrb[20].mxu1 %vm2327_vm15, %v2665_v62  ;;  %v4621_v62 = vld [vmem:[%s5883_s11] sm:$0xff]  }
 0xa5b   :  { %v4678_v29 = vpop.eup %4677  ;;  %4350 = vmatprep.mubr.msk.f32.mxu1 %vm5090_vm0, %v5091_v1 }
 0xa5c   :  { %4503 = vmatpush3.bf16.xpose.msk.msra.mxu1 %vm5581_vm11, %v5585_v37  ;;  %v3317_v58 = vsel %vm2327_vm15, %v4678_v29, 0.0 }
 0xa5d   :  { %3318 = vadd.xlane.f32.xlu1 %v3317_v58  ;;  %4504 = vmatprep.subr.bf16.mxu1 %v5089_v0  ;;  %v4624_v58 = vld [vmem:[%s5883_s11 + $0x18] sm:$0xff]  }
 0xa63   :  { %4351 = vmatmul.mubr.msk.f32.vlgmr.msra.gmra.mrb[22].mxu1 %vm322_vm1, %v2745_v59  ;;  %v4625_v59 = vld [vmem:[%s5883_s11 + $0x20] sm:$0xff]  }
 0xa64   :  { %4507 = vmatpush3.bf16.msk.msra.mxu1 %vm5665_vm14, %v4505_v63  ;;  %4357 = vmatprep.mubr.msk.f32.mxu1 %vm5090_vm0, %v5091_v1 }
 0xa65   :  { %4512 = vmatprep.subr.bf16.mxu1 %v5089_v0 }
 0xae6   :  { %v2991_v47 = vpop.xlane.xlu1 %2990 }
 0xaea   :  { %v3319_v52 = vpop.xlane.xlu1 %3318 }
 0xb36   :  { %v2815_v26 = vpop.f32.mrb[22].mxu1 }
 0xb37   :  { %v4352_v31 = vpop.f32.mrb[23].mxu1  ;;  %v2819_v33 = vsel %vm2327_vm15, %v2815_v26, -inf }
 0xb38   :  { %2820 = vmax.xlane.f32.xlu0 %v2819_v33 }
 0xb3c   :  { %3148 = vmax.xlane.f32.xlu0 %v3147_v28 }
 0xbc5   :  { %v2821_v38 = vpop.xlane.xlu0 %2820 }
 0xbc6   :  { %v2822_v39 = vsub.f32 %v2815_v26, %v2821_v38  ;;  %v4626_v26 = vld [vmem:[%s5883_s11 + $0x28] sm:$0xff]  }
 0xbc8   :  { %v2823_v60 = vmul.f32 1.442695, %v2822_v39  ;;  %v4018_v39 = vld [vmem:[#allocation16] ss:$0 sm:$0xff] }
 0xbc9   :  { %v3149_v61 = vpop.xlane.xlu0 %3148 }
 0xbca   :  { %4679 = vpow2.f32 %v2823_v60  ;;  %v3150_v63 = vsub.f32 %v5711_v25, %v3149_v61  ;;  %v4019_v61 = vld [vmem:[#allocation18] ss:$0 sm:$0xff] }
 0xbcc   :  { %v3151_v40 = vmul.f32 1.442695, %v3150_v63 }
 0xbce   :  { %4681 = vpow2.f32 %v3151_v40 }
 0xbd4   :  { %v4680_v41 = vpop.eup %4679 }
 0xbd5   :  { %v2825_v43 = vsel %vm2327_vm15, %v4680_v41, 0.0 }
 0xbd6   :  { %2826 = vadd.xlane.f32.xlu0 %v2825_v43  ;;  %v4627_v43 = vld [vmem:[%s5883_s11 + $0x30] sm:$0xff]  }
 0xbd8   :  { %v4682_v44 = vpop.eup %4681 }
 0xbd9   :  { %v3153_v45 = vsel %vm2327_vm15, %v4682_v44, 0.0 }
 0xbda   :  { %3154 = vadd.xlane.f32.xlu0 %v3153_v45  ;;  %v4020_v45 = vld [vmem:[#allocation19] ss:$0 sm:$0xff] }
 0xc63   :  { %v2827_v46 = vpop.xlane.xlu0 %2826 }
 0xc64   :  { %4683 = vrcp.f32 %v2827_v46 }
 0xc65   :  { %4685 = vrcp.f32 %v2991_v47 }
 0xc67   :  { %v3155_v50 = vpop.xlane.xlu0 %3154 }
 0xc68   :  { %4687 = vrcp.f32 %v3155_v50 }
 0xc69   :  { %4689 = vrcp.f32 %v3319_v52  ;;  %v4024_v52 = vld [vmem:[#allocation21] ss:$0 sm:$0xff] }
 0xc6e   :  { %v4684_v48 = vpop.eup %4683 }
 0xc6f   :  { %v2829_v49 = vmul.f32 %v4684_v48, %v4680_v41  ;;  %v4686_v25 = vpop.eup %4685 }
 0xc70   :  { %v2993_v51 = vmul.f32 %v4686_v25, %v4676_v57 }
 0xc71   :  { %4358 = vmatmul.mubr.msk.f32.vlgmr.msra.gmra.mrb[20].mxu1 %vm2327_vm15, %v2829_v49 }
 0xc72   :  { %4515 = vmatpush3.bf16.msk.msra.mxu1 %vm5665_vm14, %v4513_v30  ;;  %4371 = vmatprep.mubr.msk.f32.mxu1 %vm5090_vm0, %v5091_v1  ;;  %v4688_v2 = vpop.eup %4687 }
 0xc73   :  { %4520 = vmatprep.subr.bf16.mxu1 %v5089_v0  ;;  %v3157_v8 = vmul.f32 %v4688_v2, %v4682_v44  ;;  %v4690_v3 = vpop.eup %4689  ;;  %v4628_v44 = vld [vmem:[%s5883_s11 + $0x38] sm:$0xff]  }
 0xc74   :  { %v3321_v4 = vmul.f32 %v4690_v3, %v4678_v29  ;;  %v4623_v29 = vld [vmem:[%s5883_s11 + $0x10] sm:$0xff]  }
 0xc79   :  { %4372 = vmatmul.mubr.msk.f32.vlgmr.msra.gmra.mrb[20].mxu1 %vm2327_vm15, %v2993_v51 }
 0xc7a   :  { %4523 = vmatpush3.bf16.msk.msra.mxu1 %vm5665_vm14, %v4521_v32  ;;  %4385 = vmatprep.mubr.msk.f32.mxu1 %vm5090_vm0, %v5091_v1  ;;  %v4541_v32 = vpack.c.bf16 %v1996_v9, %v1995_v7 }
 0xc7b   :  { %4528 = vmatprep.subr.bf16.mxu1 %v5089_v0 }
 0xc7c   :  { %4542 = vmatpush3.bf16.msra.mxu0 %v4541_v32  ;;  %v4033_v32 = vld [vmem:[#allocation22] ss:$0 sm:$0xff] }
 0xc7d   :  { %4420 = vmatprep.subr.mxu0 %v5091_v1 }
 0xc80   :  { %4421 = vmatpush3.msra.mxu0 %v1997_v54 }
 0xc81   :  { %4386 = vmatmul.mubr.msk.f32.vlgmr.msra.gmra.mrb[20].mxu1 %vm2327_vm15, %v3157_v8  ;;  %4425 = vmatprep.subr.bf16.mxu0 %v5091_v1 }
 0xc82   :  { %4531 = vmatpush3.bf16.msk.msra.mxu1 %vm5665_vm14, %v4529_v10  ;;  %4399 = vmatprep.mubr.msk.f32.mxu1 %vm5090_vm0, %v5091_v1 }
 0xc83   :  { %4532 = vmatprep.subr.bf16.mxu1 %v5089_v0 }
 0xc89   :  { %4400 = vmatmul.mubr.msk.f32.vlgmr.msra.gmra.mrb[20].mxu1 %vm2327_vm15, %v3321_v4 }
 0xc8a   :  { %4406 = vmatprep.mubr.msk.f32.mxu1 %vm5090_vm0, %v5091_v1 }
 0xc8b   :  { %4535 = vmatpush3.bf16.xpose.msk.msra.mxu1 %vm5581_vm11, %v5585_v37 }
 0xc8c   :  { %4536 = vmatprep.subr.bf16.mxu1 %v5089_v0 }
 0xc92   :  { %4407 = vmatmul.mubr.msk.f32.vlgmr.msra.gmra.mrb[24].mxu1 %vm322_vm1, %v3401_v5 }
 0xc93   :  { %4539 = vmatpush3.bf16.msk.msra.mxu1 %vm5665_vm14, %v4537_v34  ;;  %4413 = vmatprep.mubr.msk.f32.mxu1 %vm5090_vm0, %v5091_v1 }
 0xc94   :  { %4433 = vmatprep.subr.bf16.mxu1 %v5091_v1 }
 0xd65   :  { %v3471_v35 = vpop.f32.mrb[24].mxu1 }
 0xd66   :  { %v4408_v0 = vpop.f32.mrb[25].mxu1  ;;  %v3475_v37 = vsel %vm2327_vm15, %v3471_v35, -inf }
 0xd67   :  { %3476 = vmax.xlane.f32.xlu0 %v3475_v37 }
 0xdf4   :  { %v3477_v36 = vpop.xlane.xlu0 %3476 }
 0xdf5   :  { %v3478_v42 = vsub.f32 %v3471_v35, %v3477_v36 }
 0xdf7   :  { %v3479_v6 = vmul.f32 1.442695, %v3478_v42 }
 0xdf9   :  { %4691 = vpow2.f32 %v3479_v6 }
 0xe03   :  { %v4692_v30 = vpop.eup %4691 }
 0xe04   :  { %v3481_v22 = vsel %vm2327_vm15, %v4692_v30, 0.0 }
 0xe05   :  { %3482 = vadd.xlane.f32.xlu1 %v3481_v22 }
 0xe92   :  { %v3483_v10 = vpop.xlane.xlu1 %3482 }
 0xe93   :  { %4693 = vrcp.f32 %v3483_v10 }
 0xe9d   :  { %v4694_v34 = vpop.eup %4693 }
 0xe9e   :  { %v3485_v53 = vmul.f32 %v4694_v34, %v4692_v30  ;;  %v4034_v34 = vld [vmem:[#allocation24] ss:$0 sm:$0xff] }
 0xea0   :  { %4414 = vmatmul.mubr.msk.f32.vlgmr.msra.gmra.mrb[20].mxu1 %vm2327_vm15, %v3485_v53 }
 0xea1   :  { %4449 = vmatprep.mubr.msk.bf16.mxu1 %vm5090_vm0, %v5091_v1  ;;  %4434 = vmatpush3.bf16.msra.mxu1 %v4621_v62 }
 0xea2   :  { %4435 = vmatprep.subr.bf16.mxu1 %v5091_v1 }
 0xea5   :  { %4436 = vmatpush3.bf16.msra.mxu1 %v4622_v27 }
 0xea6   :  { %4437 = vmatprep.subr.bf16.mxu1 %v5091_v1 }
 0xea9   :  { %4438 = vmatpush3.bf16.msra.mxu1 %v4623_v29 }
 0xeaa   :  { %4439 = vmatprep.subr.bf16.mxu1 %v5091_v1 }
 0xead   :  { %4440 = vmatpush3.bf16.msra.mxu1 %v4624_v58 }
 0xeae   :  { %4441 = vmatprep.subr.bf16.mxu1 %v5091_v1 }
 0xeb1   :  { %4442 = vmatpush3.bf16.msra.mxu1 %v4625_v59 }
 0xeb2   :  { %4443 = vmatprep.subr.bf16.mxu1 %v5091_v1 }
 0xeb5   :  { %4444 = vmatpush3.bf16.msra.mxu1 %v4626_v26 }
 0xeb6   :  { %4445 = vmatprep.subr.bf16.mxu1 %v5091_v1 }
 0xeb9   :  { %4446 = vmatpush3.bf16.msra.mxu1 %v4627_v43 }
 0xeba   :  { %4447 = vmatprep.subr.bf16.mxu1 %v5091_v1 }
 0xebd   :  { %4448 = vmatpush3.bf16.msra.mxu1 %v4628_v44 }
 0xf73   :  { %v3560_v55 = vpop.f32.mrb[20].mxu1 }
 0xf74   :  { %v4415_v24 = vpop.f32.mrb[21].mxu1  ;;  %4423 = vmatmul.mubr.msk.f32.vlgmr.msra.gmra.mrb[24].mxu0 %vm322_vm1, %v3560_v55 }
 0xf75   :  { %4429 = vmatprep.mubr.msk.bf16.mxu0 %vm5090_vm0, %v5091_v1  ;;  %4426 = vmatpush3.bf16.msra.mxu0 %v4619_v56  ;;  %vm3714_vm0 = vcmask 1043456  }
 0xf76   :  { %4427 = vmatprep.subr.bf16.mxu0 %v5091_v1 }
0x1047   :  { %v3640_v12 = vpop.f32.mrb[24].mxu0 }
0x1048   :  { %v3641_v13 = vadd.f32 %v4016_v11, %v3640_v12  ;;  %v4424_v14 = vpop.f32.mrb[25].mxu0 }
0x104a   :  { %v3644_v15 = vadd.f32 %v3641_v13, %v5569_v21  ;;  %v4620_v21 = vld [vmem:[%s5882_s10 + $0x8] ss:$0 sps:$4 sm:$0xff]  }
0x104b   :  { %v3716_v57 = vsel %vm3714_vm0, %v4620_v21, 0 }
0x104c   :  { %v3647_v16 = vsel %vm322_vm1, %v3644_v15, 0.0  ;;  %4428 = vmatpush3.bf16.msra.mxu0 %v3716_v57 }
0x104d   :  { %3648 = vadd.xlane.f32.xlu0 %v3647_v16 }
0x10da   :  { %v3649_v17 = vpop.xlane.xlu0 %3648 }
0x10db   :  { %v3650_v18 = vmul.f32 0.041666668, %v3649_v17 }
0x10dd   :  { %v3651_v19 = vsub.f32 %v3644_v15, %v3650_v18 }
0x10df   :  { %v3652_v20 = vmul.f32 %v3651_v19, %v3651_v19 }
0x10e1   :  { %v3653_v23 = vsel %vm322_vm1, %v3652_v20, 0.0 }
0x10e2   :  { %3654 = vadd.xlane.f32.xlu1 %v3653_v23 }
0x116f   :  { %v3655_v31 = vpop.xlane.xlu1 %3654 }
0x1170   :  { %v3656_v33 = vmul.f32 0.041666668, %v3655_v31 }
0x1172   :  { %v3657_v28 = vadd.f32 1e-05, %v3656_v33 }
0x1174   :  { %4695 = vrsqrt.f32 %v3657_v28 }
0x117e   :  { %v4696_v38 = vpop.eup %4695 }
0x117f   :  { %v3659_v60 = vmul.f32 %v4696_v38, %v3651_v19 }
0x1181   :  { %v3666_v63 = vmul.f32 %v4018_v39, %v3659_v60 }
0x1183   :  { %v3673_v40 = vadd.f32 %v4019_v61, %v3666_v63 }
0x1185   :  { %v3695_v41 = vpack.c.bf16 %v3673_v40, %v3673_v40 }
0x1187   :  { %4430 = vmatmul.mubr.msk.bf16.vlgmr.msra.gmra.mrb[28].mxu0 %vm322_vm1, %v3695_v41 }
0x125a   :  { %v3752_v46 = vpop.f32.mrb[28].mxu0 }
0x125b   :  { %v3753_v47 = vadd.f32 %v4020_v45, %v3752_v46  ;;  %v4431_v48 = vpop.f32.mrb[29].mxu0 }
0x125c   :  { %v3755_v49 = vpop.f32.mrb[30].mxu0 }
0x125d   :  { %v3758_v50 = vmax.f32 %v3753_v47, 0.0  ;;  %v4432_v25 = vpop.f32.mrb[31].mxu0 }
0x125f   :  { %v3759_v51 = vpack.c.bf16 %v3758_v50, %v3758_v50 }
0x1261   :  { %4450 = vmatmul.mubr.bf16.vlgmr.msra.gmra.mrb[28].mxu1 %v3759_v51 }
0x1334   :  { %v3848_v2 = vpop.f32.mrb[28].mxu1 }
0x1335   :  { %v3849_v8 = vadd.f32 %v4024_v52, %v3848_v2  ;;  %v4451_v3 = vpop.f32.mrb[29].mxu1 }
0x1336   :  { %v3851_v4 = vpop.f32.mrb[30].mxu1 }
0x1337   :  { %v4452_v5 = vpop.f32.mrb[31].mxu1  ;;  %v3854_v35 = vadd.f32 %v3849_v8, %v3673_v40 }
0x1339   :  { %v3857_v1 = vsel %vm322_vm1, %v3854_v35, 0.0 }
0x133a   :  { %3858 = vadd.xlane.f32.xlu0 %v3857_v1 }
0x13c7   :  { %v3859_v0 = vpop.xlane.xlu0 %3858 }
0x13c8   :  { %v3860_v37 = vmul.f32 0.041666668, %v3859_v0 }
0x13ca   :  { %v3861_v36 = vsub.f32 %v3854_v35, %v3860_v37 }
0x13cc   :  { %v3862_v42 = vmul.f32 %v3861_v36, %v3861_v36 }
0x13ce   :  { %v3863_v6 = vsel %vm322_vm1, %v3862_v42, 0.0 }
0x13cf   :  { %3864 = vadd.xlane.f32.xlu1 %v3863_v6 }
0x145c   :  { %v3865_v30 = vpop.xlane.xlu1 %3864 }
0x145d   :  { %v3866_v22 = vmul.f32 0.041666668, %v3865_v30 }
0x145f   :  { %v3867_v7 = vadd.f32 1e-05, %v3866_v22 }
0x1461   :  { %4697 = vrsqrt.f32 %v3867_v7 }
0x146b   :  { %v4698_v9 = vpop.eup %4697 }
0x146c   :  { %v3869_v10 = vmul.f32 %v4698_v9, %v3861_v36 }
0x146e   :  { %v3876_v53 = vmul.f32 %v4033_v32, %v3869_v10 }
0x1470   :  { %v3883_v54 = vadd.f32 %v4034_v34, %v3876_v53 }
0x1472   :  { %3884 = vst.msk [vmem:[%s5246_s3] sm:$0xff] %vm322_vm1, %v3883_v54 }
0x1473   :  { %3889 = vsyncpa [#allocation3], 1 }
0x1474   :  { %3890 = vsyncpa [#allocation5], 1 }
0x1475   :  { %3891 = vsyncpa [#allocation8], 1 }
0x1476   :  { %3892 = vsyncpa [#allocation11], 1 }
0x1477   :  { %3893 = vsyncpa [#allocation14], 1 }
0x1478   :  { %3894 = vsyncpa [#allocation17], 1 }
0x1479   :  { %3895 = vsyncpa [#allocation20], 1 }
0x147a   :  { %3896 = vsyncpa [#allocation23], 1 }

</bundles_post_ra>
